<compile_context>
chip_gen: v7x
topology: tpu7x:2x2x1
jax: 0.10.0
libtpu: 0.0.40
codegen_flags: <defaults>
</compile_context>

<pallas_src>
import math

import numpy as np
import jax
import jax.numpy as jnp
from jax.experimental import pallas as pl
from jax.experimental.pallas import tpu as pltpu


# ----------------------------------------------------------------------------
# Bilinear interpolation matrices (PyTorch F.interpolate, align_corners=False)
# ----------------------------------------------------------------------------
def _bilinear_matrix(out_size, in_size):
    A = np.zeros((out_size, in_size), np.float32)
    scale = in_size / out_size
    for d in range(out_size):
        src = max((d + 0.5) * scale - 0.5, 0.0)
        i0 = min(int(np.floor(src)), in_size - 1)
        i1 = min(i0 + 1, in_size - 1)
        l1 = src - i0
        A[d, i0] += 1.0 - l1
        A[d, i1] += l1
    return A


def upsample_bilinear_nhwc(x, out_h, out_w):
    """Separable bilinear upsample on an NHWC tensor (plain-JAX glue)."""
    _, h, w, _ = x.shape
    Ah = jnp.asarray(_bilinear_matrix(out_h, h))
    Aw = jnp.asarray(_bilinear_matrix(out_w, w))
    t = jnp.einsum("Hh,bhwc->bHwc", Ah, x)
    return jnp.einsum("Ww,bHwc->bHWc", Aw, t)


# ----------------------------------------------------------------------------
# Fused Pallas kernel: one grid step == one image of the batch
# ----------------------------------------------------------------------------
def _fpn_fused_kernel(p3_ref, u32_ref, u64_ref,
                      w_s32_ref, w_s64_ref, w1_ref, w2_ref, w3_ref, wout_ref,
                      bias_ref, out_ref, pa_ref, pb_ref):
    # p3/u32/u64: (1, H, W, C) f32       w_s32/w_s64/w2/w3: (9, C, C) bf16
    # w1: (3, C, C) bf16 (blocks for [p3, up_64, up_32])   wout: (C, C) bf16
    # bias: (8, C) f32  rows = [b_s32, b_s64, b_fuse1, b_fuse2, b_fuse3, b_out, 0, 0]
    # pa/pb: (H+2, W+2, C) f32 zero-padded scratch
    _, H, W, C = p3_ref.shape
    HW = H * W

    def conv3x3(pad_ref, w_ref):
        """3x3 conv (pad=1, stride=1) as 9 shifted bf16 GEMMs, f32 accumulation."""
        acc = jnp.zeros((HW, C), jnp.float32)
        for dy in range(3):
            for dx in range(3):
                patch = pad_ref[dy:dy + H, dx:dx + W, :]
                patch = patch.astype(jnp.bfloat16).reshape(HW, C)
                acc = acc + jnp.dot(patch, w_ref[dy * 3 + dx],
                                    preferred_element_type=jnp.float32)
        return acc

    # Zero the padded scratch buffers (borders must stay 0 for the 3x3 convs).
    pa_ref[...] = jnp.zeros_like(pa_ref)
    pb_ref[...] = jnp.zeros_like(pb_ref)

    p3 = p3_ref[0].reshape(HW, C)          # f32
    u32 = u32_ref[0]                       # (H, W, C) f32 (bilinear-upsampled p5)
    u64 = u64_ref[0]                       # (H, W, C) f32 (bilinear-upsampled p4)

    # --- up_32 = relu(up_32 + smooth_32(up_32)) ------------------------------
    pa_ref[1:H + 1, 1:W + 1, :] = u32
    s32 = jnp.maximum(conv3x3(pa_ref, w_s32_ref) + bias_ref[0], 0.0)   # conv+BN+ReLU
    u32f = jnp.maximum(u32.reshape(HW, C) + s32, 0.0)

    # --- up_64 = relu(up_64 + smooth_64(up_64)) ------------------------------
    pb_ref[1:H + 1, 1:W + 1, :] = u64
    s64 = jnp.maximum(conv3x3(pb_ref, w_s64_ref) + bias_ref[1], 0.0)
    u64f = jnp.maximum(u64.reshape(HW, C) + s64, 0.0)

    # --- fusion[0]: 1x1 conv over concat([p3, up_64, up_32]) + BN + ReLU -----
    z1 = jnp.dot(p3.astype(jnp.bfloat16), w1_ref[0], preferred_element_type=jnp.float32)
    z1 = z1 + jnp.dot(u64f.astype(jnp.bfloat16), w1_ref[1], preferred_element_type=jnp.float32)
    z1 = z1 + jnp.dot(u32f.astype(jnp.bfloat16), w1_ref[2], preferred_element_type=jnp.float32)
    z1 = jnp.maximum(z1 + bias_ref[2], 0.0)

    # --- fusion[1]: 3x3 conv + BN + ReLU --------------------------------------
    pa_ref[1:H + 1, 1:W + 1, :] = z1.reshape(H, W, C)
    z2 = jnp.maximum(conv3x3(pa_ref, w2_ref) + bias_ref[3], 0.0)

    # --- fusion[2]: 3x3 conv + BN (no ReLU) -----------------------------------
    pb_ref[1:H + 1, 1:W + 1, :] = z2.reshape(H, W, C)
    z3 = conv3x3(pb_ref, w3_ref) + bias_ref[4]

    # --- residual with p3, ReLU, out_proj 1x1 ---------------------------------
    z4 = jnp.maximum(z3 + p3, 0.0)
    out = jnp.dot(z4.astype(jnp.bfloat16), wout_ref[...],
                  preferred_element_type=jnp.float32) + bias_ref[5]
    out_ref[0] = out.reshape(H, W, C)


def fpn_fusion_residual_forward(p3_nchw, p4_nchw, p5_nchw, params):
    """Inference-mode forward pass of FPNFusionResidual (BatchNorm folded)."""
    B, C, H, W = p3_nchw.shape

    # NCHW -> NHWC glue.
    p3 = jnp.transpose(p3_nchw, (0, 2, 3, 1)).astype(jnp.float32)
    p4 = jnp.transpose(p4_nchw, (0, 2, 3, 1)).astype(jnp.float32)
    p5 = jnp.transpose(p5_nchw, (0, 2, 3, 1)).astype(jnp.float32)

    up32 = upsample_bilinear_nhwc(p5, H, W)        # F.interpolate(p5, size, bilinear)
    up64 = upsample_bilinear_nhwc(p4, H, W)        # F.interpolate(p4, size, bilinear)

    out_nhwc = pl.pallas_call(
        _fpn_fused_kernel,
        out_shape=jax.ShapeDtypeStruct((B, H, W, C), jnp.float32),
        grid_spec=pltpu.PrefetchScalarGridSpec(
            num_scalar_prefetch=0,
            grid=(B,),
            in_specs=[
                pl.BlockSpec((1, H, W, C), lambda b: (b, 0, 0, 0)),   # p3
                pl.BlockSpec((1, H, W, C), lambda b: (b, 0, 0, 0)),   # up_32
                pl.BlockSpec((1, H, W, C), lambda b: (b, 0, 0, 0)),   # up_64
                pl.BlockSpec((9, C, C), lambda b: (0, 0, 0)),         # smooth_32 w
                pl.BlockSpec((9, C, C), lambda b: (0, 0, 0)),         # smooth_64 w
                pl.BlockSpec((3, C, C), lambda b: (0, 0, 0)),         # fusion 1x1 w
                pl.BlockSpec((9, C, C), lambda b: (0, 0, 0)),         # fusion 3x3 w #1
                pl.BlockSpec((9, C, C), lambda b: (0, 0, 0)),         # fusion 3x3 w #2
                pl.BlockSpec((C, C), lambda b: (0, 0)),               # out_proj w
                pl.BlockSpec((8, C), lambda b: (0, 0)),               # folded biases
            ],
            out_specs=pl.BlockSpec((1, H, W, C), lambda b: (b, 0, 0, 0)),
            scratch_shapes=[
                pltpu.VMEM((H + 2, W + 2, C), jnp.float32),
                pltpu.VMEM((H + 2, W + 2, C), jnp.float32),
            ],
        ),
        compiler_params=pltpu.CompilerParams(dimension_semantics=("parallel",)),
    )(p3, up32, up64,
      params["w_s32"], params["w_s64"], params["w1"], params["w2"], params["w3"],
      params["w_out"], params["bias"])

    return jnp.transpose(out_nhwc, (0, 3, 1, 2))   # back to NCHW


# ----------------------------------------------------------------------------
# Parameters (random init, BatchNorm folded into conv weight/bias, weights bf16)
# ----------------------------------------------------------------------------
def init_params(key, C):
    keys = jax.random.split(key, 12)

    def conv_w(k, shape):
        fan_in = int(np.prod(shape[:-1]))
        return jax.random.normal(k, shape, jnp.float32) * math.sqrt(2.0 / fan_in)

    def bn_params(k):
        kg, kb = jax.random.split(k)
        gamma = 1.0 + 0.1 * jax.random.normal(kg, (C,), jnp.float32)
        beta = 0.1 * jax.random.normal(kb, (C,), jnp.float32)
        return gamma, beta, jnp.zeros((C,), jnp.float32), jnp.ones((C,), jnp.float32)

    def fold_bn(w, b, bn, eps=1e-5):
        gamma, beta, mean, var = bn
        scale = gamma / jnp.sqrt(var + eps)
        return w * scale, (b - mean) * scale + beta

    zb = jnp.zeros((C,), jnp.float32)
    # conv weights live channels-last: 3x3 convs as (9, Cin, Cout); 1x1 as (Cin, Cout).
    w_s32, b_s32 = fold_bn(conv_w(keys[0], (9, C, C)), zb, bn_params(keys[1]))
    w_s64, b_s64 = fold_bn(conv_w(keys[2], (9, C, C)), zb, bn_params(keys[3]))
    # fusion 1x1 conv over the 3C concat, stored as 3 blocks in cat order [p3, up_64, up_32].
    w1, b1 = fold_bn(conv_w(keys[4], (3, C, C)), zb, bn_params(keys[5]))
    w2, b2 = fold_bn(conv_w(keys[6], (9, C, C)), zb, bn_params(keys[7]))
    w3, b3 = fold_bn(conv_w(keys[8], (9, C, C)), zb, bn_params(keys[9]))
    w_out = conv_w(keys[10], (C, C))
    b_out = zb

    bias = jnp.concatenate(
        [jnp.stack([b_s32, b_s64, b1, b2, b3, b_out]), jnp.zeros((2, C), jnp.float32)],
        axis=0)

    bf16 = lambda w: w.astype(jnp.bfloat16)
    # NOTE: downsampling_128 / downsampling_64 branches of the module are unused in forward().
    return dict(w_s32=bf16(w_s32), w_s64=bf16(w_s64), w1=bf16(w1), w2=bf16(w2),
                w3=bf16(w3), w_out=bf16(w_out), bias=bias)


# ----------------------------------------------------------------------------
if __name__ == "__main__":
    B = 2
    C = 128            # in_channels (multiple of 128 -> lane-dense GEMM/store tiles)
    H3 = W3 = 16       # p3 spatial
    H4 = W4 = 8        # p4 spatial
    H5 = W5 = 4        # p5 spatial

    key = jax.random.PRNGKey(0)
    k3, k4, k5, kp = jax.random.split(key, 4)
    p3 = jax.random.normal(k3, (B, C, H3, W3), jnp.float32)
    p4 = jax.random.normal(k4, (B, C, H4, W4), jnp.float32)
    p5 = jax.random.normal(k5, (B, C, H5, W5), jnp.float32)

    params = init_params(kp, C)
    out = fpn_fusion_residual_forward(p3, p4, p5, params)
    jax.block_until_ready(out)
    assert out.shape == (B, C, H3, W3) and out.dtype == jnp.float32
    assert bool(jnp.all(jnp.isfinite(out)))
    print("KERNEL_OK")
</pallas_src>

<mosaic_0001>
module attributes {stable_mosaic.version = 11 : i64} {
  func.func @_fpn_fused_kernel(%arg0: i32, %arg1: memref<1x16x16x128xf32, #tpu.memory_space<vmem>>, %arg2: memref<1x16x16x128xf32, #tpu.memory_space<vmem>>, %arg3: memref<1x16x16x128xf32, #tpu.memory_space<vmem>>, %arg4: memref<9x128x128xbf16, #tpu.memory_space<vmem>>, %arg5: memref<9x128x128xbf16, #tpu.memory_space<vmem>>, %arg6: memref<3x128x128xbf16, #tpu.memory_space<vmem>>, %arg7: memref<9x128x128xbf16, #tpu.memory_space<vmem>>, %arg8: memref<9x128x128xbf16, #tpu.memory_space<vmem>>, %arg9: memref<128x128xbf16, #tpu.memory_space<vmem>>, %arg10: memref<8x128xf32, #tpu.memory_space<vmem>>, %arg11: memref<1x16x16x128xf32, #tpu.memory_space<vmem>>, %arg12: memref<18x18x128xf32, #tpu.memory_space<vmem>>, %arg13: memref<18x18x128xf32, #tpu.memory_space<vmem>>) attributes {dimension_semantics = [#tpu.dimension_semantics<parallel>], iteration_bounds = array<i64: 2>, scalar_prefetch = 0 : i64, scratch_operands = 2 : i64, tpu.core_type = #tpu.core_type<tc>, window_params = [{transform_indices = @transform_0, window_bounds = array<i64: 1, 16, 16, 128>}, {transform_indices = @transform_1, window_bounds = array<i64: 1, 16, 16, 128>}, {transform_indices = @transform_2, window_bounds = array<i64: 1, 16, 16, 128>}, {pipeline_mode = #tpu.pipeline_mode<synchronous>, transform_indices = @transform_3, window_bounds = array<i64: 9, 128, 128>}, {pipeline_mode = #tpu.pipeline_mode<synchronous>, transform_indices = @transform_4, window_bounds = array<i64: 9, 128, 128>}, {pipeline_mode = #tpu.pipeline_mode<synchronous>, transform_indices = @transform_5, window_bounds = array<i64: 3, 128, 128>}, {pipeline_mode = #tpu.pipeline_mode<synchronous>, transform_indices = @transform_6, window_bounds = array<i64: 9, 128, 128>}, {pipeline_mode = #tpu.pipeline_mode<synchronous>, transform_indices = @transform_7, window_bounds = array<i64: 9, 128, 128>}, {pipeline_mode = #tpu.pipeline_mode<synchronous>, transform_indices = @transform_8, window_bounds = array<i64: 128, 128>}, {pipeline_mode = #tpu.pipeline_mode<synchronous>, transform_indices = @transform_9, window_bounds = array<i64: 8, 128>}, {transform_indices = @transform_10, window_bounds = array<i64: 1, 16, 16, 128>}]} {
    %cst = arith.constant 0.000000e+00 : f32
    %0 = vector.broadcast %cst : f32 to vector<18x18x128xf32>
    %c0 = arith.constant 0 : index
    %c0_0 = arith.constant 0 : index
    %c0_1 = arith.constant 0 : index
    %1 = vector.load %arg12[%c0, %c0_0, %c0_1] : memref<18x18x128xf32, #tpu.memory_space<vmem>>, vector<18x18x128xf32>
    tpu.vector_store %arg12[%c0, %c0_0, %c0_1], %0 {strides = array<i32>} : memref<18x18x128xf32, #tpu.memory_space<vmem>>, vector<18x18x128xf32>,
    %cst_2 = arith.constant 0.000000e+00 : f32
    %2 = vector.broadcast %cst_2 : f32 to vector<18x18x128xf32>
    %c0_3 = arith.constant 0 : index
    %c0_4 = arith.constant 0 : index
    %c0_5 = arith.constant 0 : index
    %3 = vector.load %arg13[%c0_3, %c0_4, %c0_5] : memref<18x18x128xf32, #tpu.memory_space<vmem>>, vector<18x18x128xf32>
    tpu.vector_store %arg13[%c0_3, %c0_4, %c0_5], %2 {strides = array<i32>} : memref<18x18x128xf32, #tpu.memory_space<vmem>>, vector<18x18x128xf32>,
    %c0_6 = arith.constant 0 : index
    %c0_7 = arith.constant 0 : index
    %c0_8 = arith.constant 0 : index
    %c0_9 = arith.constant 0 : index
    %4 = vector.load %arg1[%c0_6, %c0_7, %c0_8, %c0_9] : memref<1x16x16x128xf32, #tpu.memory_space<vmem>>, vector<1x16x16x128xf32>
    %5 = vector.shape_cast %4 : vector<1x16x16x128xf32> to vector<16x16x128xf32>
    %6 = vector.shape_cast %5 : vector<16x16x128xf32> to vector<256x128xf32>
    %c0_10 = arith.constant 0 : index
    %c0_11 = arith.constant 0 : index
    %c0_12 = arith.constant 0 : index
    %c0_13 = arith.constant 0 : index
    %7 = vector.load %arg2[%c0_10, %c0_11, %c0_12, %c0_13] : memref<1x16x16x128xf32, #tpu.memory_space<vmem>>, vector<1x16x16x128xf32>
    %8 = vector.shape_cast %7 : vector<1x16x16x128xf32> to vector<16x16x128xf32>
    %c0_14 = arith.constant 0 : index
    %c0_15 = arith.constant 0 : index
    %c0_16 = arith.constant 0 : index
    %c0_17 = arith.constant 0 : index
    %9 = vector.load %arg3[%c0_14, %c0_15, %c0_16, %c0_17] : memref<1x16x16x128xf32, #tpu.memory_space<vmem>>, vector<1x16x16x128xf32>
    %10 = vector.shape_cast %9 : vector<1x16x16x128xf32> to vector<16x16x128xf32>
    %c1 = arith.constant 1 : index
    %c1_18 = arith.constant 1 : index
    %c0_19 = arith.constant 0 : index
    %11 = vector.load %arg12[%c1, %c1_18, %c0_19] : memref<18x18x128xf32, #tpu.memory_space<vmem>>, vector<16x16x128xf32>
    tpu.vector_store %arg12[%c1, %c1_18, %c0_19], %8 {strides = array<i32>} : memref<18x18x128xf32, #tpu.memory_space<vmem>>, vector<16x16x128xf32>,
    %cst_20 = arith.constant 0.000000e+00 : f32
    %12 = vector.broadcast %cst_20 : f32 to vector<256x128xf32>
    %c0_21 = arith.constant 0 : index
    %c0_22 = arith.constant 0 : index
    %c0_23 = arith.constant 0 : index
    %13 = vector.load %arg12[%c0_21, %c0_22, %c0_23] : memref<18x18x128xf32, #tpu.memory_space<vmem>>, vector<16x16x128xf32>
    %14 = arith.truncf %13 : vector<16x16x128xf32> to vector<16x16x128xbf16>
    %15 = vector.shape_cast %14 : vector<16x16x128xbf16> to vector<256x128xbf16>
    %c0_24 = arith.constant 0 : index
    %c0_25 = arith.constant 0 : index
    %c0_26 = arith.constant 0 : index
    %16 = vector.load %arg4[%c0_24, %c0_25, %c0_26] : memref<9x128x128xbf16, #tpu.memory_space<vmem>>, vector<1x128x128xbf16>
    %17 = vector.shape_cast %16 : vector<1x128x128xbf16> to vector<128x128xbf16>
    %cst_27 = arith.constant dense<0.000000e+00> : vector<256x128xf32>
    %18 = tpu.matmul %15, %17, %cst_27 {dimension_numbers = #tpu.dot_dimension_numbers<[1], [0], [0], [1], [0, 0, 1, 1], [], []>} : vector<256x128xbf16>, vector<128x128xbf16>, vector<256x128xf32> -> vector<256x128xf32>
    %19 = arith.addf %12, %18 : vector<256x128xf32>
    %c0_28 = arith.constant 0 : index
    %c1_29 = arith.constant 1 : index
    %c0_30 = arith.constant 0 : index
    %20 = vector.load %arg12[%c0_28, %c1_29, %c0_30] : memref<18x18x128xf32, #tpu.memory_space<vmem>>, vector<16x16x128xf32>
    %21 = arith.truncf %20 : vector<16x16x128xf32> to vector<16x16x128xbf16>
    %22 = vector.shape_cast %21 : vector<16x16x128xbf16> to vector<256x128xbf16>
    %c1_31 = arith.constant 1 : index
    %c0_32 = arith.constant 0 : index
    %c0_33 = arith.constant 0 : index
    %23 = vector.load %arg4[%c1_31, %c0_32, %c0_33] : memref<9x128x128xbf16, #tpu.memory_space<vmem>>, vector<1x128x128xbf16>
    %24 = vector.shape_cast %23 : vector<1x128x128xbf16> to vector<128x128xbf16>
    %cst_34 = arith.constant dense<0.000000e+00> : vector<256x128xf32>
    %25 = tpu.matmul %22, %24, %cst_34 {dimension_numbers = #tpu.dot_dimension_numbers<[1], [0], [0], [1], [0, 0, 1, 1], [], []>} : vector<256x128xbf16>, vector<128x128xbf16>, vector<256x128xf32> -> vector<256x128xf32>
    %26 = arith.addf %19, %25 : vector<256x128xf32>
    %c0_35 = arith.constant 0 : index
    %c2 = arith.constant 2 : index
    %c0_36 = arith.constant 0 : index
    %27 = vector.load %arg12[%c0_35, %c2, %c0_36] : memref<18x18x128xf32, #tpu.memory_space<vmem>>, vector<16x16x128xf32>
    %28 = arith.truncf %27 : vector<16x16x128xf32> to vector<16x16x128xbf16>
    %29 = vector.shape_cast %28 : vector<16x16x128xbf16> to vector<256x128xbf16>
    %c2_37 = arith.constant 2 : index
    %c0_38 = arith.constant 0 : index
    %c0_39 = arith.constant 0 : index
    %30 = vector.load %arg4[%c2_37, %c0_38, %c0_39] : memref<9x128x128xbf16, #tpu.memory_space<vmem>>, vector<1x128x128xbf16>
    %31 = vector.shape_cast %30 : vector<1x128x128xbf16> to vector<128x128xbf16>
    %cst_40 = arith.constant dense<0.000000e+00> : vector<256x128xf32>
    %32 = tpu.matmul %29, %31, %cst_40 {dimension_numbers = #tpu.dot_dimension_numbers<[1], [0], [0], [1], [0, 0, 1, 1], [], []>} : vector<256x128xbf16>, vector<128x128xbf16>, vector<256x128xf32> -> vector<256x128xf32>
    %33 = arith.addf %26, %32 : vector<256x128xf32>
    %c1_41 = arith.constant 1 : index
    %c0_42 = arith.constant 0 : index
    %c0_43 = arith.constant 0 : index
    %34 = vector.load %arg12[%c1_41, %c0_42, %c0_43] : memref<18x18x128xf32, #tpu.memory_space<vmem>>, vector<16x16x128xf32>
    %35 = arith.truncf %34 : vector<16x16x128xf32> to vector<16x16x128xbf16>
    %36 = vector.shape_cast %35 : vector<16x16x128xbf16> to vector<256x128xbf16>
    %c3 = arith.constant 3 : index
    %c0_44 = arith.constant 0 : index
    %c0_45 = arith.constant 0 : index
    %37 = vector.load %arg4[%c3, %c0_44, %c0_45] : memref<9x128x128xbf16, #tpu.memory_space<vmem>>, vector<1x128x128xbf16>
    %38 = vector.shape_cast %37 : vector<1x128x128xbf16> to vector<128x128xbf16>
    %cst_46 = arith.constant dense<0.000000e+00> : vector<256x128xf32>
    %39 = tpu.matmul %36, %38, %cst_46 {dimension_numbers = #tpu.dot_dimension_numbers<[1], [0], [0], [1], [0, 0, 1, 1], [], []>} : vector<256x128xbf16>, vector<128x128xbf16>, vector<256x128xf32> -> vector<256x128xf32>
    %40 = arith.addf %33, %39 : vector<256x128xf32>
    %c1_47 = arith.constant 1 : index
    %c1_48 = arith.constant 1 : index
    %c0_49 = arith.constant 0 : index
    %41 = vector.load %arg12[%c1_47, %c1_48, %c0_49] : memref<18x18x128xf32, #tpu.memory_space<vmem>>, vector<16x16x128xf32>
    %42 = arith.truncf %41 : vector<16x16x128xf32> to vector<16x16x128xbf16>
    %43 = vector.shape_cast %42 : vector<16x16x128xbf16> to vector<256x128xbf16>
    %c4 = arith.constant 4 : index
    %c0_50 = arith.constant 0 : index
    %c0_51 = arith.constant 0 : index
    %44 = vector.load %arg4[%c4, %c0_50, %c0_51] : memref<9x128x128xbf16, #tpu.memory_space<vmem>>, vector<1x128x128xbf16>
    %45 = vector.shape_cast %44 : vector<1x128x128xbf16> to vector<128x128xbf16>
    %cst_52 = arith.constant dense<0.000000e+00> : vector<256x128xf32>
    %46 = tpu.matmul %43, %45, %cst_52 {dimension_numbers = #tpu.dot_dimension_numbers<[1], [0], [0], [1], [0, 0, 1, 1], [], []>} : vector<256x128xbf16>, vector<128x128xbf16>, vector<256x128xf32> -> vector<256x128xf32>
    %47 = arith.addf %40, %46 : vector<256x128xf32>
    %c1_53 = arith.constant 1 : index
    %c2_54 = arith.constant 2 : index
    %c0_55 = arith.constant 0 : index
    %48 = vector.load %arg12[%c1_53, %c2_54, %c0_55] : memref<18x18x128xf32, #tpu.memory_space<vmem>>, vector<16x16x128xf32>
    %49 = arith.truncf %48 : vector<16x16x128xf32> to vector<16x16x128xbf16>
    %50 = vector.shape_cast %49 : vector<16x16x128xbf16> to vector<256x128xbf16>
    %c5 = arith.constant 5 : index
    %c0_56 = arith.constant 0 : index
    %c0_57 = arith.constant 0 : index
    %51 = vector.load %arg4[%c5, %c0_56, %c0_57] : memref<9x128x128xbf16, #tpu.memory_space<vmem>>, vector<1x128x128xbf16>
    %52 = vector.shape_cast %51 : vector<1x128x128xbf16> to vector<128x128xbf16>
    %cst_58 = arith.constant dense<0.000000e+00> : vector<256x128xf32>
    %53 = tpu.matmul %50, %52, %cst_58 {dimension_numbers = #tpu.dot_dimension_numbers<[1], [0], [0], [1], [0, 0, 1, 1], [], []>} : vector<256x128xbf16>, vector<128x128xbf16>, vector<256x128xf32> -> vector<256x128xf32>
    %54 = arith.addf %47, %53 : vector<256x128xf32>
    %c2_59 = arith.constant 2 : index
    %c0_60 = arith.constant 0 : index
    %c0_61 = arith.constant 0 : index
    %55 = vector.load %arg12[%c2_59, %c0_60, %c0_61] : memref<18x18x128xf32, #tpu.memory_space<vmem>>, vector<16x16x128xf32>
    %56 = arith.truncf %55 : vector<16x16x128xf32> to vector<16x16x128xbf16>
    %57 = vector.shape_cast %56 : vector<16x16x128xbf16> to vector<256x128xbf16>
    %c6 = arith.constant 6 : index
    %c0_62 = arith.constant 0 : index
    %c0_63 = arith.constant 0 : index
    %58 = vector.load %arg4[%c6, %c0_62, %c0_63] : memref<9x128x128xbf16, #tpu.memory_space<vmem>>, vector<1x128x128xbf16>
    %59 = vector.shape_cast %58 : vector<1x128x128xbf16> to vector<128x128xbf16>
    %cst_64 = arith.constant dense<0.000000e+00> : vector<256x128xf32>
    %60 = tpu.matmul %57, %59, %cst_64 {dimension_numbers = #tpu.dot_dimension_numbers<[1], [0], [0], [1], [0, 0, 1, 1], [], []>} : vector<256x128xbf16>, vector<128x128xbf16>, vector<256x128xf32> -> vector<256x128xf32>
    %61 = arith.addf %54, %60 : vector<256x128xf32>
    %c2_65 = arith.constant 2 : index
    %c1_66 = arith.constant 1 : index
    %c0_67 = arith.constant 0 : index
    %62 = vector.load %arg12[%c2_65, %c1_66, %c0_67] : memref<18x18x128xf32, #tpu.memory_space<vmem>>, vector<16x16x128xf32>
    %63 = arith.truncf %62 : vector<16x16x128xf32> to vector<16x16x128xbf16>
    %64 = vector.shape_cast %63 : vector<16x16x128xbf16> to vector<256x128xbf16>
    %c7 = arith.constant 7 : index
    %c0_68 = arith.constant 0 : index
    %c0_69 = arith.constant 0 : index
    %65 = vector.load %arg4[%c7, %c0_68, %c0_69] : memref<9x128x128xbf16, #tpu.memory_space<vmem>>, vector<1x128x128xbf16>
    %66 = vector.shape_cast %65 : vector<1x128x128xbf16> to vector<128x128xbf16>
    %cst_70 = arith.constant dense<0.000000e+00> : vector<256x128xf32>
    %67 = tpu.matmul %64, %66, %cst_70 {dimension_numbers = #tpu.dot_dimension_numbers<[1], [0], [0], [1], [0, 0, 1, 1], [], []>} : vector<256x128xbf16>, vector<128x128xbf16>, vector<256x128xf32> -> vector<256x128xf32>
    %68 = arith.addf %61, %67 : vector<256x128xf32>
    %c2_71 = arith.constant 2 : index
    %c2_72 = arith.constant 2 : index
    %c0_73 = arith.constant 0 : index
    %69 = vector.load %arg12[%c2_71, %c2_72, %c0_73] : memref<18x18x128xf32, #tpu.memory_space<vmem>>, vector<16x16x128xf32>
    %70 = arith.truncf %69 : vector<16x16x128xf32> to vector<16x16x128xbf16>
    %71 = vector.shape_cast %70 : vector<16x16x128xbf16> to vector<256x128xbf16>
    %c8 = arith.constant 8 : index
    %c0_74 = arith.constant 0 : index
    %c0_75 = arith.constant 0 : index
    %72 = vector.load %arg4[%c8, %c0_74, %c0_75] : memref<9x128x128xbf16, #tpu.memory_space<vmem>>, vector<1x128x128xbf16>
    %73 = vector.shape_cast %72 : vector<1x128x128xbf16> to vector<128x128xbf16>
    %cst_76 = arith.constant dense<0.000000e+00> : vector<256x128xf32>
    %74 = tpu.matmul %71, %73, %cst_76 {dimension_numbers = #tpu.dot_dimension_numbers<[1], [0], [0], [1], [0, 0, 1, 1], [], []>} : vector<256x128xbf16>, vector<128x128xbf16>, vector<256x128xf32> -> vector<256x128xf32>
    %75 = arith.addf %68, %74 : vector<256x128xf32>
    %c0_77 = arith.constant 0 : index
    %c0_78 = arith.constant 0 : index
    %76 = vector.load %arg10[%c0_77, %c0_78] : memref<8x128xf32, #tpu.memory_space<vmem>>, vector<1x128xf32>
    %77 = vector.shape_cast %76 : vector<1x128xf32> to vector<128xf32>
    %78 = vector.shape_cast %77 : vector<128xf32> to vector<1x128xf32>
    %79 = vector.broadcast %78 : vector<1x128xf32> to vector<256x128xf32>
    %80 = arith.addf %75, %79 : vector<256x128xf32>
    %cst_79 = arith.constant 0.000000e+00 : f32
    %81 = vector.broadcast %cst_79 : f32 to vector<256x128xf32>
    %82 = arith.maximumf %80, %81 : vector<256x128xf32>
    %83 = vector.shape_cast %8 : vector<16x16x128xf32> to vector<256x128xf32>
    %84 = arith.addf %83, %82 : vector<256x128xf32>
    %cst_80 = arith.constant 0.000000e+00 : f32
    %85 = vector.broadcast %cst_80 : f32 to vector<256x128xf32>
    %86 = arith.maximumf %84, %85 : vector<256x128xf32>
    %c1_81 = arith.constant 1 : index
    %c1_82 = arith.constant 1 : index
    %c0_83 = arith.constant 0 : index
    %87 = vector.load %arg13[%c1_81, %c1_82, %c0_83] : memref<18x18x128xf32, #tpu.memory_space<vmem>>, vector<16x16x128xf32>
    tpu.vector_store %arg13[%c1_81, %c1_82, %c0_83], %10 {strides = array<i32>} : memref<18x18x128xf32, #tpu.memory_space<vmem>>, vector<16x16x128xf32>,
    %cst_84 = arith.constant 0.000000e+00 : f32
    %88 = vector.broadcast %cst_84 : f32 to vector<256x128xf32>
    %c0_85 = arith.constant 0 : index
    %c0_86 = arith.constant 0 : index
    %c0_87 = arith.constant 0 : index
    %89 = vector.load %arg13[%c0_85, %c0_86, %c0_87] : memref<18x18x128xf32, #tpu.memory_space<vmem>>, vector<16x16x128xf32>
    %90 = arith.truncf %89 : vector<16x16x128xf32> to vector<16x16x128xbf16>
    %91 = vector.shape_cast %90 : vector<16x16x128xbf16> to vector<256x128xbf16>
    %c0_88 = arith.constant 0 : index
    %c0_89 = arith.constant 0 : index
    %c0_90 = arith.constant 0 : index
    %92 = vector.load %arg5[%c0_88, %c0_89, %c0_90] : memref<9x128x128xbf16, #tpu.memory_space<vmem>>, vector<1x128x128xbf16>
    %93 = vector.shape_cast %92 : vector<1x128x128xbf16> to vector<128x128xbf16>
    %cst_91 = arith.constant dense<0.000000e+00> : vector<256x128xf32>
    %94 = tpu.matmul %91, %93, %cst_91 {dimension_numbers = #tpu.dot_dimension_numbers<[1], [0], [0], [1], [0, 0, 1, 1], [], []>} : vector<256x128xbf16>, vector<128x128xbf16>, vector<256x128xf32> -> vector<256x128xf32>
    %95 = arith.addf %88, %94 : vector<256x128xf32>
    %c0_92 = arith.constant 0 : index
    %c1_93 = arith.constant 1 : index
    %c0_94 = arith.constant 0 : index
    %96 = vector.load %arg13[%c0_92, %c1_93, %c0_94] : memref<18x18x128xf32, #tpu.memory_space<vmem>>, vector<16x16x128xf32>
    %97 = arith.truncf %96 : vector<16x16x128xf32> to vector<16x16x128xbf16>
    %98 = vector.shape_cast %97 : vector<16x16x128xbf16> to vector<256x128xbf16>
    %c1_95 = arith.constant 1 : index
    %c0_96 = arith.constant 0 : index
    %c0_97 = arith.constant 0 : index
    %99 = vector.load %arg5[%c1_95, %c0_96, %c0_97] : memref<9x128x128xbf16, #tpu.memory_space<vmem>>, vector<1x128x128xbf16>
    %100 = vector.shape_cast %99 : vector<1x128x128xbf16> to vector<128x128xbf16>
    %cst_98 = arith.constant dense<0.000000e+00> : vector<256x128xf32>
    %101 = tpu.matmul %98, %100, %cst_98 {dimension_numbers = #tpu.dot_dimension_numbers<[1], [0], [0], [1], [0, 0, 1, 1], [], []>} : vector<256x128xbf16>, vector<128x128xbf16>, vector<256x128xf32> -> vector<256x128xf32>
    %102 = arith.addf %95, %101 : vector<256x128xf32>
    %c0_99 = arith.constant 0 : index
    %c2_100 = arith.constant 2 : index
    %c0_101 = arith.constant 0 : index
    %103 = vector.load %arg13[%c0_99, %c2_100, %c0_101] : memref<18x18x128xf32, #tpu.memory_space<vmem>>, vector<16x16x128xf32>
    %104 = arith.truncf %103 : vector<16x16x128xf32> to vector<16x16x128xbf16>
    %105 = vector.shape_cast %104 : vector<16x16x128xbf16> to vector<256x128xbf16>
    %c2_102 = arith.constant 2 : index
    %c0_103 = arith.constant 0 : index
    %c0_104 = arith.constant 0 : index
    %106 = vector.load %arg5[%c2_102, %c0_103, %c0_104] : memref<9x128x128xbf16, #tpu.memory_space<vmem>>, vector<1x128x128xbf16>
    %107 = vector.shape_cast %106 : vector<1x128x128xbf16> to vector<128x128xbf16>
    %cst_105 = arith.constant dense<0.000000e+00> : vector<256x128xf32>
    %108 = tpu.matmul %105, %107, %cst_105 {dimension_numbers = #tpu.dot_dimension_numbers<[1], [0], [0], [1], [0, 0, 1, 1], [], []>} : vector<256x128xbf16>, vector<128x128xbf16>, vector<256x128xf32> -> vector<256x128xf32>
    %109 = arith.addf %102, %108 : vector<256x128xf32>
    %c1_106 = arith.constant 1 : index
    %c0_107 = arith.constant 0 : index
    %c0_108 = arith.constant 0 : index
    %110 = vector.load %arg13[%c1_106, %c0_107, %c0_108] : memref<18x18x128xf32, #tpu.memory_space<vmem>>, vector<16x16x128xf32>
    %111 = arith.truncf %110 : vector<16x16x128xf32> to vector<16x16x128xbf16>
    %112 = vector.shape_cast %111 : vector<16x16x128xbf16> to vector<256x128xbf16>
    %c3_109 = arith.constant 3 : index
    %c0_110 = arith.constant 0 : index
    %c0_111 = arith.constant 0 : index
    %113 = vector.load %arg5[%c3_109, %c0_110, %c0_111] : memref<9x128x128xbf16, #tpu.memory_space<vmem>>, vector<1x128x128xbf16>
    %114 = vector.shape_cast %113 : vector<1x128x128xbf16> to vector<128x128xbf16>
    %cst_112 = arith.constant dense<0.000000e+00> : vector<256x128xf32>
    %115 = tpu.matmul %112, %114, %cst_112 {dimension_numbers = #tpu.dot_dimension_numbers<[1], [0], [0], [1], [0, 0, 1, 1], [], []>} : vector<256x128xbf16>, vector<128x128xbf16>, vector<256x128xf32> -> vector<256x128xf32>
    %116 = arith.addf %109, %115 : vector<256x128xf32>
    %c1_113 = arith.constant 1 : index
    %c1_114 = arith.constant 1 : index
    %c0_115 = arith.constant 0 : index
    %117 = vector.load %arg13[%c1_113, %c1_114, %c0_115] : memref<18x18x128xf32, #tpu.memory_space<vmem>>, vector<16x16x128xf32>
    %118 = arith.truncf %117 : vector<16x16x128xf32> to vector<16x16x128xbf16>
    %119 = vector.shape_cast %118 : vector<16x16x128xbf16> to vector<256x128xbf16>
    %c4_116 = arith.constant 4 : index
    %c0_117 = arith.constant 0 : index
    %c0_118 = arith.constant 0 : index
    %120 = vector.load %arg5[%c4_116, %c0_117, %c0_118] : memref<9x128x128xbf16, #tpu.memory_space<vmem>>, vector<1x128x128xbf16>
    %121 = vector.shape_cast %120 : vector<1x128x128xbf16> to vector<128x128xbf16>
    %cst_119 = arith.constant dense<0.000000e+00> : vector<256x128xf32>
    %122 = tpu.matmul %119, %121, %cst_119 {dimension_numbers = #tpu.dot_dimension_numbers<[1], [0], [0], [1], [0, 0, 1, 1], [], []>} : vector<256x128xbf16>, vector<128x128xbf16>, vector<256x128xf32> -> vector<256x128xf32>
    %123 = arith.addf %116, %122 : vector<256x128xf32>
    %c1_120 = arith.constant 1 : index
    %c2_121 = arith.constant 2 : index
    %c0_122 = arith.constant 0 : index
    %124 = vector.load %arg13[%c1_120, %c2_121, %c0_122] : memref<18x18x128xf32, #tpu.memory_space<vmem>>, vector<16x16x128xf32>
    %125 = arith.truncf %124 : vector<16x16x128xf32> to vector<16x16x128xbf16>
    %126 = vector.shape_cast %125 : vector<16x16x128xbf16> to vector<256x128xbf16>
    %c5_123 = arith.constant 5 : index
    %c0_124 = arith.constant 0 : index
    %c0_125 = arith.constant 0 : index
    %127 = vector.load %arg5[%c5_123, %c0_124, %c0_125] : memref<9x128x128xbf16, #tpu.memory_space<vmem>>, vector<1x128x128xbf16>
    %128 = vector.shape_cast %127 : vector<1x128x128xbf16> to vector<128x128xbf16>
    %cst_126 = arith.constant dense<0.000000e+00> : vector<256x128xf32>
    %129 = tpu.matmul %126, %128, %cst_126 {dimension_numbers = #tpu.dot_dimension_numbers<[1], [0], [0], [1], [0, 0, 1, 1], [], []>} : vector<256x128xbf16>, vector<128x128xbf16>, vector<256x128xf32> -> vector<256x128xf32>
    %130 = arith.addf %123, %129 : vector<256x128xf32>
    %c2_127 = arith.constant 2 : index
    %c0_128 = arith.constant 0 : index
    %c0_129 = arith.constant 0 : index
    %131 = vector.load %arg13[%c2_127, %c0_128, %c0_129] : memref<18x18x128xf32, #tpu.memory_space<vmem>>, vector<16x16x128xf32>
    %132 = arith.truncf %131 : vector<16x16x128xf32> to vector<16x16x128xbf16>
    %133 = vector.shape_cast %132 : vector<16x16x128xbf16> to vector<256x128xbf16>
    %c6_130 = arith.constant 6 : index
    %c0_131 = arith.constant 0 : index
    %c0_132 = arith.constant 0 : index
    %134 = vector.load %arg5[%c6_130, %c0_131, %c0_132] : memref<9x128x128xbf16, #tpu.memory_space<vmem>>, vector<1x128x128xbf16>
    %135 = vector.shape_cast %134 : vector<1x128x128xbf16> to vector<128x128xbf16>
    %cst_133 = arith.constant dense<0.000000e+00> : vector<256x128xf32>
    %136 = tpu.matmul %133, %135, %cst_133 {dimension_numbers = #tpu.dot_dimension_numbers<[1], [0], [0], [1], [0, 0, 1, 1], [], []>} : vector<256x128xbf16>, vector<128x128xbf16>, vector<256x128xf32> -> vector<256x128xf32>
    %137 = arith.addf %130, %136 : vector<256x128xf32>
    %c2_134 = arith.constant 2 : index
    %c1_135 = arith.constant 1 : index
    %c0_136 = arith.constant 0 : index
    %138 = vector.load %arg13[%c2_134, %c1_135, %c0_136] : memref<18x18x128xf32, #tpu.memory_space<vmem>>, vector<16x16x128xf32>
    %139 = arith.truncf %138 : vector<16x16x128xf32> to vector<16x16x128xbf16>
    %140 = vector.shape_cast %139 : vector<16x16x128xbf16> to vector<256x128xbf16>
    %c7_137 = arith.constant 7 : index
    %c0_138 = arith.constant 0 : index
    %c0_139 = arith.constant 0 : index
    %141 = vector.load %arg5[%c7_137, %c0_138, %c0_139] : memref<9x128x128xbf16, #tpu.memory_space<vmem>>, vector<1x128x128xbf16>
    %142 = vector.shape_cast %141 : vector<1x128x128xbf16> to vector<128x128xbf16>
    %cst_140 = arith.constant dense<0.000000e+00> : vector<256x128xf32>
    %143 = tpu.matmul %140, %142, %cst_140 {dimension_numbers = #tpu.dot_dimension_numbers<[1], [0], [0], [1], [0, 0, 1, 1], [], []>} : vector<256x128xbf16>, vector<128x128xbf16>, vector<256x128xf32> -> vector<256x128xf32>
    %144 = arith.addf %137, %143 : vector<256x128xf32>
    %c2_141 = arith.constant 2 : index
    %c2_142 = arith.constant 2 : index
    %c0_143 = arith.constant 0 : index
    %145 = vector.load %arg13[%c2_141, %c2_142, %c0_143] : memref<18x18x128xf32, #tpu.memory_space<vmem>>, vector<16x16x128xf32>
    %146 = arith.truncf %145 : vector<16x16x128xf32> to vector<16x16x128xbf16>
    %147 = vector.shape_cast %146 : vector<16x16x128xbf16> to vector<256x128xbf16>
    %c8_144 = arith.constant 8 : index
    %c0_145 = arith.constant 0 : index
    %c0_146 = arith.constant 0 : index
    %148 = vector.load %arg5[%c8_144, %c0_145, %c0_146] : memref<9x128x128xbf16, #tpu.memory_space<vmem>>, vector<1x128x128xbf16>
    %149 = vector.shape_cast %148 : vector<1x128x128xbf16> to vector<128x128xbf16>
    %cst_147 = arith.constant dense<0.000000e+00> : vector<256x128xf32>
    %150 = tpu.matmul %147, %149, %cst_147 {dimension_numbers = #tpu.dot_dimension_numbers<[1], [0], [0], [1], [0, 0, 1, 1], [], []>} : vector<256x128xbf16>, vector<128x128xbf16>, vector<256x128xf32> -> vector<256x128xf32>
    %151 = arith.addf %144, %150 : vector<256x128xf32>
    %c1_148 = arith.constant 1 : index
    %c0_149 = arith.constant 0 : index
    %152 = vector.load %arg10[%c1_148, %c0_149] : memref<8x128xf32, #tpu.memory_space<vmem>>, vector<1x128xf32>
    %153 = vector.shape_cast %152 : vector<1x128xf32> to vector<128xf32>
    %154 = vector.shape_cast %153 : vector<128xf32> to vector<1x128xf32>
    %155 = vector.broadcast %154 : vector<1x128xf32> to vector<256x128xf32>
    %156 = arith.addf %151, %155 : vector<256x128xf32>
    %cst_150 = arith.constant 0.000000e+00 : f32
    %157 = vector.broadcast %cst_150 : f32 to vector<256x128xf32>
    %158 = arith.maximumf %156, %157 : vector<256x128xf32>
    %159 = vector.shape_cast %10 : vector<16x16x128xf32> to vector<256x128xf32>
    %160 = arith.addf %159, %158 : vector<256x128xf32>
    %cst_151 = arith.constant 0.000000e+00 : f32
    %161 = vector.broadcast %cst_151 : f32 to vector<256x128xf32>
    %162 = arith.maximumf %160, %161 : vector<256x128xf32>
    %163 = arith.truncf %6 : vector<256x128xf32> to vector<256x128xbf16>
    %c0_152 = arith.constant 0 : index
    %c0_153 = arith.constant 0 : index
    %c0_154 = arith.constant 0 : index
    %164 = vector.load %arg6[%c0_152, %c0_153, %c0_154] : memref<3x128x128xbf16, #tpu.memory_space<vmem>>, vector<1x128x128xbf16>
    %165 = vector.shape_cast %164 : vector<1x128x128xbf16> to vector<128x128xbf16>
    %cst_155 = arith.constant dense<0.000000e+00> : vector<256x128xf32>
    %166 = tpu.matmul %163, %165, %cst_155 {dimension_numbers = #tpu.dot_dimension_numbers<[1], [0], [0], [1], [0, 0, 1, 1], [], []>} : vector<256x128xbf16>, vector<128x128xbf16>, vector<256x128xf32> -> vector<256x128xf32>
    %167 = arith.truncf %162 : vector<256x128xf32> to vector<256x128xbf16>
    %c1_156 = arith.constant 1 : index
    %c0_157 = arith.constant 0 : index
    %c0_158 = arith.constant 0 : index
    %168 = vector.load %arg6[%c1_156, %c0_157, %c0_158] : memref<3x128x128xbf16, #tpu.memory_space<vmem>>, vector<1x128x128xbf16>
    %169 = vector.shape_cast %168 : vector<1x128x128xbf16> to vector<128x128xbf16>
    %cst_159 = arith.constant dense<0.000000e+00> : vector<256x128xf32>
    %170 = tpu.matmul %167, %169, %cst_159 {dimension_numbers = #tpu.dot_dimension_numbers<[1], [0], [0], [1], [0, 0, 1, 1], [], []>} : vector<256x128xbf16>, vector<128x128xbf16>, vector<256x128xf32> -> vector<256x128xf32>
    %171 = arith.addf %166, %170 : vector<256x128xf32>
    %172 = arith.truncf %86 : vector<256x128xf32> to vector<256x128xbf16>
    %c2_160 = arith.constant 2 : index
    %c0_161 = arith.constant 0 : index
    %c0_162 = arith.constant 0 : index
    %173 = vector.load %arg6[%c2_160, %c0_161, %c0_162] : memref<3x128x128xbf16, #tpu.memory_space<vmem>>, vector<1x128x128xbf16>
    %174 = vector.shape_cast %173 : vector<1x128x128xbf16> to vector<128x128xbf16>
    %cst_163 = arith.constant dense<0.000000e+00> : vector<256x128xf32>
    %175 = tpu.matmul %172, %174, %cst_163 {dimension_numbers = #tpu.dot_dimension_numbers<[1], [0], [0], [1], [0, 0, 1, 1], [], []>} : vector<256x128xbf16>, vector<128x128xbf16>, vector<256x128xf32> -> vector<256x128xf32>
    %176 = arith.addf %171, %175 : vector<256x128xf32>
    %c2_164 = arith.constant 2 : index
    %c0_165 = arith.constant 0 : index
    %177 = vector.load %arg10[%c2_164, %c0_165] : memref<8x128xf32, #tpu.memory_space<vmem>>, vector<1x128xf32>
    %178 = vector.shape_cast %177 : vector<1x128xf32> to vector<128xf32>
    %179 = vector.shape_cast %178 : vector<128xf32> to vector<1x128xf32>
    %180 = vector.broadcast %179 : vector<1x128xf32> to vector<256x128xf32>
    %181 = arith.addf %176, %180 : vector<256x128xf32>
    %cst_166 = arith.constant 0.000000e+00 : f32
    %182 = vector.broadcast %cst_166 : f32 to vector<256x128xf32>
    %183 = arith.maximumf %181, %182 : vector<256x128xf32>
    %184 = vector.shape_cast %183 : vector<256x128xf32> to vector<16x16x128xf32>
    %c1_167 = arith.constant 1 : index
    %c1_168 = arith.constant 1 : index
    %c0_169 = arith.constant 0 : index
    %185 = vector.load %arg12[%c1_167, %c1_168, %c0_169] : memref<18x18x128xf32, #tpu.memory_space<vmem>>, vector<16x16x128xf32>
    tpu.vector_store %arg12[%c1_167, %c1_168, %c0_169], %184 {strides = array<i32>} : memref<18x18x128xf32, #tpu.memory_space<vmem>>, vector<16x16x128xf32>,
    %cst_170 = arith.constant 0.000000e+00 : f32
    %186 = vector.broadcast %cst_170 : f32 to vector<256x128xf32>
    %c0_171 = arith.constant 0 : index
    %c0_172 = arith.constant 0 : index
    %c0_173 = arith.constant 0 : index
    %187 = vector.load %arg12[%c0_171, %c0_172, %c0_173] : memref<18x18x128xf32, #tpu.memory_space<vmem>>, vector<16x16x128xf32>
    %188 = arith.truncf %187 : vector<16x16x128xf32> to vector<16x16x128xbf16>
    %189 = vector.shape_cast %188 : vector<16x16x128xbf16> to vector<256x128xbf16>
    %c0_174 = arith.constant 0 : index
    %c0_175 = arith.constant 0 : index
    %c0_176 = arith.constant 0 : index
    %190 = vector.load %arg7[%c0_174, %c0_175, %c0_176] : memref<9x128x128xbf16, #tpu.memory_space<vmem>>, vector<1x128x128xbf16>
    %191 = vector.shape_cast %190 : vector<1x128x128xbf16> to vector<128x128xbf16>
    %cst_177 = arith.constant dense<0.000000e+00> : vector<256x128xf32>
    %192 = tpu.matmul %189, %191, %cst_177 {dimension_numbers = #tpu.dot_dimension_numbers<[1], [0], [0], [1], [0, 0, 1, 1], [], []>} : vector<256x128xbf16>, vector<128x128xbf16>, vector<256x128xf32> -> vector<256x128xf32>
    %193 = arith.addf %186, %192 : vector<256x128xf32>
    %c0_178 = arith.constant 0 : index
    %c1_179 = arith.constant 1 : index
    %c0_180 = arith.constant 0 : index
    %194 = vector.load %arg12[%c0_178, %c1_179, %c0_180] : memref<18x18x128xf32, #tpu.memory_space<vmem>>, vector<16x16x128xf32>
    %195 = arith.truncf %194 : vector<16x16x128xf32> to vector<16x16x128xbf16>
    %196 = vector.shape_cast %195 : vector<16x16x128xbf16> to vector<256x128xbf16>
    %c1_181 = arith.constant 1 : index
    %c0_182 = arith.constant 0 : index
    %c0_183 = arith.constant 0 : index
    %197 = vector.load %arg7[%c1_181, %c0_182, %c0_183] : memref<9x128x128xbf16, #tpu.memory_space<vmem>>, vector<1x128x128xbf16>
    %198 = vector.shape_cast %197 : vector<1x128x128xbf16> to vector<128x128xbf16>
    %cst_184 = arith.constant dense<0.000000e+00> : vector<256x128xf32>
    %199 = tpu.matmul %196, %198, %cst_184 {dimension_numbers = #tpu.dot_dimension_numbers<[1], [0], [0], [1], [0, 0, 1, 1], [], []>} : vector<256x128xbf16>, vector<128x128xbf16>, vector<256x128xf32> -> vector<256x128xf32>
    %200 = arith.addf %193, %199 : vector<256x128xf32>
    %c0_185 = arith.constant 0 : index
    %c2_186 = arith.constant 2 : index
    %c0_187 = arith.constant 0 : index
    %201 = vector.load %arg12[%c0_185, %c2_186, %c0_187] : memref<18x18x128xf32, #tpu.memory_space<vmem>>, vector<16x16x128xf32>
    %202 = arith.truncf %201 : vector<16x16x128xf32> to vector<16x16x128xbf16>
    %203 = vector.shape_cast %202 : vector<16x16x128xbf16> to vector<256x128xbf16>
    %c2_188 = arith.constant 2 : index
    %c0_189 = arith.constant 0 : index
    %c0_190 = arith.constant 0 : index
    %204 = vector.load %arg7[%c2_188, %c0_189, %c0_190] : memref<9x128x128xbf16, #tpu.memory_space<vmem>>, vector<1x128x128xbf16>
    %205 = vector.shape_cast %204 : vector<1x128x128xbf16> to vector<128x128xbf16>
    %cst_191 = arith.constant dense<0.000000e+00> : vector<256x128xf32>
    %206 = tpu.matmul %203, %205, %cst_191 {dimension_numbers = #tpu.dot_dimension_numbers<[1], [0], [0], [1], [0, 0, 1, 1], [], []>} : vector<256x128xbf16>, vector<128x128xbf16>, vector<256x128xf32> -> vector<256x128xf32>
    %207 = arith.addf %200, %206 : vector<256x128xf32>
    %c1_192 = arith.constant 1 : index
    %c0_193 = arith.constant 0 : index
    %c0_194 = arith.constant 0 : index
    %208 = vector.load %arg12[%c1_192, %c0_193, %c0_194] : memref<18x18x128xf32, #tpu.memory_space<vmem>>, vector<16x16x128xf32>
    %209 = arith.truncf %208 : vector<16x16x128xf32> to vector<16x16x128xbf16>
    %210 = vector.shape_cast %209 : vector<16x16x128xbf16> to vector<256x128xbf16>
    %c3_195 = arith.constant 3 : index
    %c0_196 = arith.constant 0 : index
    %c0_197 = arith.constant 0 : index
    %211 = vector.load %arg7[%c3_195, %c0_196, %c0_197] : memref<9x128x128xbf16, #tpu.memory_space<vmem>>, vector<1x128x128xbf16>
    %212 = vector.shape_cast %211 : vector<1x128x128xbf16> to vector<128x128xbf16>
    %cst_198 = arith.constant dense<0.000000e+00> : vector<256x128xf32>
    %213 = tpu.matmul %210, %212, %cst_198 {dimension_numbers = #tpu.dot_dimension_numbers<[1], [0], [0], [1], [0, 0, 1, 1], [], []>} : vector<256x128xbf16>, vector<128x128xbf16>, vector<256x128xf32> -> vector<256x128xf32>
    %214 = arith.addf %207, %213 : vector<256x128xf32>
    %c1_199 = arith.constant 1 : index
    %c1_200 = arith.constant 1 : index
    %c0_201 = arith.constant 0 : index
    %215 = vector.load %arg12[%c1_199, %c1_200, %c0_201] : memref<18x18x128xf32, #tpu.memory_space<vmem>>, vector<16x16x128xf32>
    %216 = arith.truncf %215 : vector<16x16x128xf32> to vector<16x16x128xbf16>
    %217 = vector.shape_cast %216 : vector<16x16x128xbf16> to vector<256x128xbf16>
    %c4_202 = arith.constant 4 : index
    %c0_203 = arith.constant 0 : index
    %c0_204 = arith.constant 0 : index
    %218 = vector.load %arg7[%c4_202, %c0_203, %c0_204] : memref<9x128x128xbf16, #tpu.memory_space<vmem>>, vector<1x128x128xbf16>
    %219 = vector.shape_cast %218 : vector<1x128x128xbf16> to vector<128x128xbf16>
    %cst_205 = arith.constant dense<0.000000e+00> : vector<256x128xf32>
    %220 = tpu.matmul %217, %219, %cst_205 {dimension_numbers = #tpu.dot_dimension_numbers<[1], [0], [0], [1], [0, 0, 1, 1], [], []>} : vector<256x128xbf16>, vector<128x128xbf16>, vector<256x128xf32> -> vector<256x128xf32>
    %221 = arith.addf %214, %220 : vector<256x128xf32>
    %c1_206 = arith.constant 1 : index
    %c2_207 = arith.constant 2 : index
    %c0_208 = arith.constant 0 : index
    %222 = vector.load %arg12[%c1_206, %c2_207, %c0_208] : memref<18x18x128xf32, #tpu.memory_space<vmem>>, vector<16x16x128xf32>
    %223 = arith.truncf %222 : vector<16x16x128xf32> to vector<16x16x128xbf16>
    %224 = vector.shape_cast %223 : vector<16x16x128xbf16> to vector<256x128xbf16>
    %c5_209 = arith.constant 5 : index
    %c0_210 = arith.constant 0 : index
    %c0_211 = arith.constant 0 : index
    %225 = vector.load %arg7[%c5_209, %c0_210, %c0_211] : memref<9x128x128xbf16, #tpu.memory_space<vmem>>, vector<1x128x128xbf16>
    %226 = vector.shape_cast %225 : vector<1x128x128xbf16> to vector<128x128xbf16>
    %cst_212 = arith.constant dense<0.000000e+00> : vector<256x128xf32>
    %227 = tpu.matmul %224, %226, %cst_212 {dimension_numbers = #tpu.dot_dimension_numbers<[1], [0], [0], [1], [0, 0, 1, 1], [], []>} : vector<256x128xbf16>, vector<128x128xbf16>, vector<256x128xf32> -> vector<256x128xf32>
    %228 = arith.addf %221, %227 : vector<256x128xf32>
    %c2_213 = arith.constant 2 : index
    %c0_214 = arith.constant 0 : index
    %c0_215 = arith.constant 0 : index
    %229 = vector.load %arg12[%c2_213, %c0_214, %c0_215] : memref<18x18x128xf32, #tpu.memory_space<vmem>>, vector<16x16x128xf32>
    %230 = arith.truncf %229 : vector<16x16x128xf32> to vector<16x16x128xbf16>
    %231 = vector.shape_cast %230 : vector<16x16x128xbf16> to vector<256x128xbf16>
    %c6_216 = arith.constant 6 : index
    %c0_217 = arith.constant 0 : index
    %c0_218 = arith.constant 0 : index
    %232 = vector.load %arg7[%c6_216, %c0_217, %c0_218] : memref<9x128x128xbf16, #tpu.memory_space<vmem>>, vector<1x128x128xbf16>
    %233 = vector.shape_cast %232 : vector<1x128x128xbf16> to vector<128x128xbf16>
    %cst_219 = arith.constant dense<0.000000e+00> : vector<256x128xf32>
    %234 = tpu.matmul %231, %233, %cst_219 {dimension_numbers = #tpu.dot_dimension_numbers<[1], [0], [0], [1], [0, 0, 1, 1], [], []>} : vector<256x128xbf16>, vector<128x128xbf16>, vector<256x128xf32> -> vector<256x128xf32>
    %235 = arith.addf %228, %234 : vector<256x128xf32>
    %c2_220 = arith.constant 2 : index
    %c1_221 = arith.constant 1 : index
    %c0_222 = arith.constant 0 : index
    %236 = vector.load %arg12[%c2_220, %c1_221, %c0_222] : memref<18x18x128xf32, #tpu.memory_space<vmem>>, vector<16x16x128xf32>
    %237 = arith.truncf %236 : vector<16x16x128xf32> to vector<16x16x128xbf16>
    %238 = vector.shape_cast %237 : vector<16x16x128xbf16> to vector<256x128xbf16>
    %c7_223 = arith.constant 7 : index
    %c0_224 = arith.constant 0 : index
    %c0_225 = arith.constant 0 : index
    %239 = vector.load %arg7[%c7_223, %c0_224, %c0_225] : memref<9x128x128xbf16, #tpu.memory_space<vmem>>, vector<1x128x128xbf16>
    %240 = vector.shape_cast %239 : vector<1x128x128xbf16> to vector<128x128xbf16>
    %cst_226 = arith.constant dense<0.000000e+00> : vector<256x128xf32>
    %241 = tpu.matmul %238, %240, %cst_226 {dimension_numbers = #tpu.dot_dimension_numbers<[1], [0], [0], [1], [0, 0, 1, 1], [], []>} : vector<256x128xbf16>, vector<128x128xbf16>, vector<256x128xf32> -> vector<256x128xf32>
    %242 = arith.addf %235, %241 : vector<256x128xf32>
    %c2_227 = arith.constant 2 : index
    %c2_228 = arith.constant 2 : index
    %c0_229 = arith.constant 0 : index
    %243 = vector.load %arg12[%c2_227, %c2_228, %c0_229] : memref<18x18x128xf32, #tpu.memory_space<vmem>>, vector<16x16x128xf32>
    %244 = arith.truncf %243 : vector<16x16x128xf32> to vector<16x16x128xbf16>
    %245 = vector.shape_cast %244 : vector<16x16x128xbf16> to vector<256x128xbf16>
    %c8_230 = arith.constant 8 : index
    %c0_231 = arith.constant 0 : index
    %c0_232 = arith.constant 0 : index
    %246 = vector.load %arg7[%c8_230, %c0_231, %c0_232] : memref<9x128x128xbf16, #tpu.memory_space<vmem>>, vector<1x128x128xbf16>
    %247 = vector.shape_cast %246 : vector<1x128x128xbf16> to vector<128x128xbf16>
    %cst_233 = arith.constant dense<0.000000e+00> : vector<256x128xf32>
    %248 = tpu.matmul %245, %247, %cst_233 {dimension_numbers = #tpu.dot_dimension_numbers<[1], [0], [0], [1], [0, 0, 1, 1], [], []>} : vector<256x128xbf16>, vector<128x128xbf16>, vector<256x128xf32> -> vector<256x128xf32>
    %249 = arith.addf %242, %248 : vector<256x128xf32>
    %c3_234 = arith.constant 3 : index
    %c0_235 = arith.constant 0 : index
    %250 = vector.load %arg10[%c3_234, %c0_235] : memref<8x128xf32, #tpu.memory_space<vmem>>, vector<1x128xf32>
    %251 = vector.shape_cast %250 : vector<1x128xf32> to vector<128xf32>
    %252 = vector.shape_cast %251 : vector<128xf32> to vector<1x128xf32>
    %253 = vector.broadcast %252 : vector<1x128xf32> to vector<256x128xf32>
    %254 = arith.addf %249, %253 : vector<256x128xf32>
    %cst_236 = arith.constant 0.000000e+00 : f32
    %255 = vector.broadcast %cst_236 : f32 to vector<256x128xf32>
    %256 = arith.maximumf %254, %255 : vector<256x128xf32>
    %257 = vector.shape_cast %256 : vector<256x128xf32> to vector<16x16x128xf32>
    %c1_237 = arith.constant 1 : index
    %c1_238 = arith.constant 1 : index
    %c0_239 = arith.constant 0 : index
    %258 = vector.load %arg13[%c1_237, %c1_238, %c0_239] : memref<18x18x128xf32, #tpu.memory_space<vmem>>, vector<16x16x128xf32>
    tpu.vector_store %arg13[%c1_237, %c1_238, %c0_239], %257 {strides = array<i32>} : memref<18x18x128xf32, #tpu.memory_space<vmem>>, vector<16x16x128xf32>,
    %cst_240 = arith.constant 0.000000e+00 : f32
    %259 = vector.broadcast %cst_240 : f32 to vector<256x128xf32>
    %c0_241 = arith.constant 0 : index
    %c0_242 = arith.constant 0 : index
    %c0_243 = arith.constant 0 : index
    %260 = vector.load %arg13[%c0_241, %c0_242, %c0_243] : memref<18x18x128xf32, #tpu.memory_space<vmem>>, vector<16x16x128xf32>
    %261 = arith.truncf %260 : vector<16x16x128xf32> to vector<16x16x128xbf16>
    %262 = vector.shape_cast %261 : vector<16x16x128xbf16> to vector<256x128xbf16>
    %c0_244 = arith.constant 0 : index
    %c0_245 = arith.constant 0 : index
    %c0_246 = arith.constant 0 : index
    %263 = vector.load %arg8[%c0_244, %c0_245, %c0_246] : memref<9x128x128xbf16, #tpu.memory_space<vmem>>, vector<1x128x128xbf16>
    %264 = vector.shape_cast %263 : vector<1x128x128xbf16> to vector<128x128xbf16>
    %cst_247 = arith.constant dense<0.000000e+00> : vector<256x128xf32>
    %265 = tpu.matmul %262, %264, %cst_247 {dimension_numbers = #tpu.dot_dimension_numbers<[1], [0], [0], [1], [0, 0, 1, 1], [], []>} : vector<256x128xbf16>, vector<128x128xbf16>, vector<256x128xf32> -> vector<256x128xf32>
    %266 = arith.addf %259, %265 : vector<256x128xf32>
    %c0_248 = arith.constant 0 : index
    %c1_249 = arith.constant 1 : index
    %c0_250 = arith.constant 0 : index
    %267 = vector.load %arg13[%c0_248, %c1_249, %c0_250] : memref<18x18x128xf32, #tpu.memory_space<vmem>>, vector<16x16x128xf32>
    %268 = arith.truncf %267 : vector<16x16x128xf32> to vector<16x16x128xbf16>
    %269 = vector.shape_cast %268 : vector<16x16x128xbf16> to vector<256x128xbf16>
    %c1_251 = arith.constant 1 : index
    %c0_252 = arith.constant 0 : index
    %c0_253 = arith.constant 0 : index
    %270 = vector.load %arg8[%c1_251, %c0_252, %c0_253] : memref<9x128x128xbf16, #tpu.memory_space<vmem>>, vector<1x128x128xbf16>
    %271 = vector.shape_cast %270 : vector<1x128x128xbf16> to vector<128x128xbf16>
    %cst_254 = arith.constant dense<0.000000e+00> : vector<256x128xf32>
    %272 = tpu.matmul %269, %271, %cst_254 {dimension_numbers = #tpu.dot_dimension_numbers<[1], [0], [0], [1], [0, 0, 1, 1], [], []>} : vector<256x128xbf16>, vector<128x128xbf16>, vector<256x128xf32> -> vector<256x128xf32>
    %273 = arith.addf %266, %272 : vector<256x128xf32>
    %c0_255 = arith.constant 0 : index
    %c2_256 = arith.constant 2 : index
    %c0_257 = arith.constant 0 : index
    %274 = vector.load %arg13[%c0_255, %c2_256, %c0_257] : memref<18x18x128xf32, #tpu.memory_space<vmem>>, vector<16x16x128xf32>
    %275 = arith.truncf %274 : vector<16x16x128xf32> to vector<16x16x128xbf16>
    %276 = vector.shape_cast %275 : vector<16x16x128xbf16> to vector<256x128xbf16>
    %c2_258 = arith.constant 2 : index
    %c0_259 = arith.constant 0 : index
    %c0_260 = arith.constant 0 : index
    %277 = vector.load %arg8[%c2_258, %c0_259, %c0_260] : memref<9x128x128xbf16, #tpu.memory_space<vmem>>, vector<1x128x128xbf16>
    %278 = vector.shape_cast %277 : vector<1x128x128xbf16> to vector<128x128xbf16>
    %cst_261 = arith.constant dense<0.000000e+00> : vector<256x128xf32>
    %279 = tpu.matmul %276, %278, %cst_261 {dimension_numbers = #tpu.dot_dimension_numbers<[1], [0], [0], [1], [0, 0, 1, 1], [], []>} : vector<256x128xbf16>, vector<128x128xbf16>, vector<256x128xf32> -> vector<256x128xf32>
    %280 = arith.addf %273, %279 : vector<256x128xf32>
    %c1_262 = arith.constant 1 : index
    %c0_263 = arith.constant 0 : index
    %c0_264 = arith.constant 0 : index
    %281 = vector.load %arg13[%c1_262, %c0_263, %c0_264] : memref<18x18x128xf32, #tpu.memory_space<vmem>>, vector<16x16x128xf32>
    %282 = arith.truncf %281 : vector<16x16x128xf32> to vector<16x16x128xbf16>
    %283 = vector.shape_cast %282 : vector<16x16x128xbf16> to vector<256x128xbf16>
    %c3_265 = arith.constant 3 : index
    %c0_266 = arith.constant 0 : index
    %c0_267 = arith.constant 0 : index
    %284 = vector.load %arg8[%c3_265, %c0_266, %c0_267] : memref<9x128x128xbf16, #tpu.memory_space<vmem>>, vector<1x128x128xbf16>
    %285 = vector.shape_cast %284 : vector<1x128x128xbf16> to vector<128x128xbf16>
    %cst_268 = arith.constant dense<0.000000e+00> : vector<256x128xf32>
    %286 = tpu.matmul %283, %285, %cst_268 {dimension_numbers = #tpu.dot_dimension_numbers<[1], [0], [0], [1], [0, 0, 1, 1], [], []>} : vector<256x128xbf16>, vector<128x128xbf16>, vector<256x128xf32> -> vector<256x128xf32>
    %287 = arith.addf %280, %286 : vector<256x128xf32>
    %c1_269 = arith.constant 1 : index
    %c1_270 = arith.constant 1 : index
    %c0_271 = arith.constant 0 : index
    %288 = vector.load %arg13[%c1_269, %c1_270, %c0_271] : memref<18x18x128xf32, #tpu.memory_space<vmem>>, vector<16x16x128xf32>
    %289 = arith.truncf %288 : vector<16x16x128xf32> to vector<16x16x128xbf16>
    %290 = vector.shape_cast %289 : vector<16x16x128xbf16> to vector<256x128xbf16>
    %c4_272 = arith.constant 4 : index
    %c0_273 = arith.constant 0 : index
    %c0_274 = arith.constant 0 : index
    %291 = vector.load %arg8[%c4_272, %c0_273, %c0_274] : memref<9x128x128xbf16, #tpu.memory_space<vmem>>, vector<1x128x128xbf16>
    %292 = vector.shape_cast %291 : vector<1x128x128xbf16> to vector<128x128xbf16>
    %cst_275 = arith.constant dense<0.000000e+00> : vector<256x128xf32>
    %293 = tpu.matmul %290, %292, %cst_275 {dimension_numbers = #tpu.dot_dimension_numbers<[1], [0], [0], [1], [0, 0, 1, 1], [], []>} : vector<256x128xbf16>, vector<128x128xbf16>, vector<256x128xf32> -> vector<256x128xf32>
    %294 = arith.addf %287, %293 : vector<256x128xf32>
    %c1_276 = arith.constant 1 : index
    %c2_277 = arith.constant 2 : index
    %c0_278 = arith.constant 0 : index
    %295 = vector.load %arg13[%c1_276, %c2_277, %c0_278] : memref<18x18x128xf32, #tpu.memory_space<vmem>>, vector<16x16x128xf32>
    %296 = arith.truncf %295 : vector<16x16x128xf32> to vector<16x16x128xbf16>
    %297 = vector.shape_cast %296 : vector<16x16x128xbf16> to vector<256x128xbf16>
    %c5_279 = arith.constant 5 : index
    %c0_280 = arith.constant 0 : index
    %c0_281 = arith.constant 0 : index
    %298 = vector.load %arg8[%c5_279, %c0_280, %c0_281] : memref<9x128x128xbf16, #tpu.memory_space<vmem>>, vector<1x128x128xbf16>
    %299 = vector.shape_cast %298 : vector<1x128x128xbf16> to vector<128x128xbf16>
    %cst_282 = arith.constant dense<0.000000e+00> : vector<256x128xf32>
    %300 = tpu.matmul %297, %299, %cst_282 {dimension_numbers = #tpu.dot_dimension_numbers<[1], [0], [0], [1], [0, 0, 1, 1], [], []>} : vector<256x128xbf16>, vector<128x128xbf16>, vector<256x128xf32> -> vector<256x128xf32>
    %301 = arith.addf %294, %300 : vector<256x128xf32>
    %c2_283 = arith.constant 2 : index
    %c0_284 = arith.constant 0 : index
    %c0_285 = arith.constant 0 : index
    %302 = vector.load %arg13[%c2_283, %c0_284, %c0_285] : memref<18x18x128xf32, #tpu.memory_space<vmem>>, vector<16x16x128xf32>
    %303 = arith.truncf %302 : vector<16x16x128xf32> to vector<16x16x128xbf16>
    %304 = vector.shape_cast %303 : vector<16x16x128xbf16> to vector<256x128xbf16>
    %c6_286 = arith.constant 6 : index
    %c0_287 = arith.constant 0 : index
    %c0_288 = arith.constant 0 : index
    %305 = vector.load %arg8[%c6_286, %c0_287, %c0_288] : memref<9x128x128xbf16, #tpu.memory_space<vmem>>, vector<1x128x128xbf16>
    %306 = vector.shape_cast %305 : vector<1x128x128xbf16> to vector<128x128xbf16>
    %cst_289 = arith.constant dense<0.000000e+00> : vector<256x128xf32>
    %307 = tpu.matmul %304, %306, %cst_289 {dimension_numbers = #tpu.dot_dimension_numbers<[1], [0], [0], [1], [0, 0, 1, 1], [], []>} : vector<256x128xbf16>, vector<128x128xbf16>, vector<256x128xf32> -> vector<256x128xf32>
    %308 = arith.addf %301, %307 : vector<256x128xf32>
    %c2_290 = arith.constant 2 : index
    %c1_291 = arith.constant 1 : index
    %c0_292 = arith.constant 0 : index
    %309 = vector.load %arg13[%c2_290, %c1_291, %c0_292] : memref<18x18x128xf32, #tpu.memory_space<vmem>>, vector<16x16x128xf32>
    %310 = arith.truncf %309 : vector<16x16x128xf32> to vector<16x16x128xbf16>
    %311 = vector.shape_cast %310 : vector<16x16x128xbf16> to vector<256x128xbf16>
    %c7_293 = arith.constant 7 : index
    %c0_294 = arith.constant 0 : index
    %c0_295 = arith.constant 0 : index
    %312 = vector.load %arg8[%c7_293, %c0_294, %c0_295] : memref<9x128x128xbf16, #tpu.memory_space<vmem>>, vector<1x128x128xbf16>
    %313 = vector.shape_cast %312 : vector<1x128x128xbf16> to vector<128x128xbf16>
    %cst_296 = arith.constant dense<0.000000e+00> : vector<256x128xf32>
    %314 = tpu.matmul %311, %313, %cst_296 {dimension_numbers = #tpu.dot_dimension_numbers<[1], [0], [0], [1], [0, 0, 1, 1], [], []>} : vector<256x128xbf16>, vector<128x128xbf16>, vector<256x128xf32> -> vector<256x128xf32>
    %315 = arith.addf %308, %314 : vector<256x128xf32>
    %c2_297 = arith.constant 2 : index
    %c2_298 = arith.constant 2 : index
    %c0_299 = arith.constant 0 : index
    %316 = vector.load %arg13[%c2_297, %c2_298, %c0_299] : memref<18x18x128xf32, #tpu.memory_space<vmem>>, vector<16x16x128xf32>
    %317 = arith.truncf %316 : vector<16x16x128xf32> to vector<16x16x128xbf16>
    %318 = vector.shape_cast %317 : vector<16x16x128xbf16> to vector<256x128xbf16>
    %c8_300 = arith.constant 8 : index
    %c0_301 = arith.constant 0 : index
    %c0_302 = arith.constant 0 : index
    %319 = vector.load %arg8[%c8_300, %c0_301, %c0_302] : memref<9x128x128xbf16, #tpu.memory_space<vmem>>, vector<1x128x128xbf16>
    %320 = vector.shape_cast %319 : vector<1x128x128xbf16> to vector<128x128xbf16>
    %cst_303 = arith.constant dense<0.000000e+00> : vector<256x128xf32>
    %321 = tpu.matmul %318, %320, %cst_303 {dimension_numbers = #tpu.dot_dimension_numbers<[1], [0], [0], [1], [0, 0, 1, 1], [], []>} : vector<256x128xbf16>, vector<128x128xbf16>, vector<256x128xf32> -> vector<256x128xf32>
    %322 = arith.addf %315, %321 : vector<256x128xf32>
    %c4_304 = arith.constant 4 : index
    %c0_305 = arith.constant 0 : index
    %323 = vector.load %arg10[%c4_304, %c0_305] : memref<8x128xf32, #tpu.memory_space<vmem>>, vector<1x128xf32>
    %324 = vector.shape_cast %323 : vector<1x128xf32> to vector<128xf32>
    %325 = vector.shape_cast %324 : vector<128xf32> to vector<1x128xf32>
    %326 = vector.broadcast %325 : vector<1x128xf32> to vector<256x128xf32>
    %327 = arith.addf %322, %326 : vector<256x128xf32>
    %328 = arith.addf %327, %6 : vector<256x128xf32>
    %cst_306 = arith.constant 0.000000e+00 : f32
    %329 = vector.broadcast %cst_306 : f32 to vector<256x128xf32>
    %330 = arith.maximumf %328, %329 : vector<256x128xf32>
    %331 = arith.truncf %330 : vector<256x128xf32> to vector<256x128xbf16>
    %c0_307 = arith.constant 0 : index
    %c0_308 = arith.constant 0 : index
    %332 = vector.load %arg9[%c0_307, %c0_308] : memref<128x128xbf16, #tpu.memory_space<vmem>>, vector<128x128xbf16>
    %cst_309 = arith.constant dense<0.000000e+00> : vector<256x128xf32>
    %333 = tpu.matmul %331, %332, %cst_309 {dimension_numbers = #tpu.dot_dimension_numbers<[1], [0], [0], [1], [0, 0, 1, 1], [], []>} : vector<256x128xbf16>, vector<128x128xbf16>, vector<256x128xf32> -> vector<256x128xf32>
    %c5_310 = arith.constant 5 : index
    %c0_311 = arith.constant 0 : index
    %334 = vector.load %arg10[%c5_310, %c0_311] : memref<8x128xf32, #tpu.memory_space<vmem>>, vector<1x128xf32>
    %335 = vector.shape_cast %334 : vector<1x128xf32> to vector<128xf32>
    %336 = vector.shape_cast %335 : vector<128xf32> to vector<1x128xf32>
    %337 = vector.broadcast %336 : vector<1x128xf32> to vector<256x128xf32>
    %338 = arith.addf %333, %337 : vector<256x128xf32>
    %339 = vector.shape_cast %338 : vector<256x128xf32> to vector<16x16x128xf32>
    %c0_312 = arith.constant 0 : index
    %c0_313 = arith.constant 0 : index
    %c0_314 = arith.constant 0 : index
    %c0_315 = arith.constant 0 : index
    %340 = vector.load %arg11[%c0_312, %c0_313, %c0_314, %c0_315] : memref<1x16x16x128xf32, #tpu.memory_space<vmem>>, vector<1x16x16x128xf32>
    %341 = vector.shape_cast %340 : vector<1x16x16x128xf32> to vector<16x16x128xf32>
    %342 = vector.shape_cast %339 : vector<16x16x128xf32> to vector<1x16x16x128xf32>
    tpu.vector_store %arg11[%c0_312, %c0_313, %c0_314, %c0_315], %342 {strides = array<i32>} : memref<1x16x16x128xf32, #tpu.memory_space<vmem>>, vector<1x16x16x128xf32>,
    return
  }
  func.func @transform_0(%arg0: i32) -> (i32, i32, i32, i32) {
    %c0_i32 = arith.constant 0 : i32
    %c0_i32_0 = arith.constant 0 : i32
    %c0_i32_1 = arith.constant 0 : i32
    %c0_i32_2 = arith.constant 0 : i32
    return %arg0, %c0_i32, %c0_i32_0, %c0_i32_1 : i32, i32, i32, i32
  }
  func.func @transform_1(%arg0: i32) -> (i32, i32, i32, i32) {
    %c0_i32 = arith.constant 0 : i32
    %c0_i32_0 = arith.constant 0 : i32
    %c0_i32_1 = arith.constant 0 : i32
    %c0_i32_2 = arith.constant 0 : i32
    return %arg0, %c0_i32, %c0_i32_0, %c0_i32_1 : i32, i32, i32, i32
  }
  func.func @transform_2(%arg0: i32) -> (i32, i32, i32, i32) {
    %c0_i32 = arith.constant 0 : i32
    %c0_i32_0 = arith.constant 0 : i32
    %c0_i32_1 = arith.constant 0 : i32
    %c0_i32_2 = arith.constant 0 : i32
    return %arg0, %c0_i32, %c0_i32_0, %c0_i32_1 : i32, i32, i32, i32
  }
  func.func @transform_3(%arg0: i32) -> (i32, i32, i32) {
    %c0_i32 = arith.constant 0 : i32
    %c0_i32_0 = arith.constant 0 : i32
    %c0_i32_1 = arith.constant 0 : i32
    %c0_i32_2 = arith.constant 0 : i32
    return %c0_i32, %c0_i32_0, %c0_i32_1 : i32, i32, i32
  }
  func.func @transform_4(%arg0: i32) -> (i32, i32, i32) {
    %c0_i32 = arith.constant 0 : i32
    %c0_i32_0 = arith.constant 0 : i32
    %c0_i32_1 = arith.constant 0 : i32
    %c0_i32_2 = arith.constant 0 : i32
    return %c0_i32, %c0_i32_0, %c0_i32_1 : i32, i32, i32
  }
  func.func @transform_5(%arg0: i32) -> (i32, i32, i32) {
    %c0_i32 = arith.constant 0 : i32
    %c0_i32_0 = arith.constant 0 : i32
    %c0_i32_1 = arith.constant 0 : i32
    %c0_i32_2 = arith.constant 0 : i32
    return %c0_i32, %c0_i32_0, %c0_i32_1 : i32, i32, i32
  }
  func.func @transform_6(%arg0: i32) -> (i32, i32, i32) {
    %c0_i32 = arith.constant 0 : i32
    %c0_i32_0 = arith.constant 0 : i32
    %c0_i32_1 = arith.constant 0 : i32
    %c0_i32_2 = arith.constant 0 : i32
    return %c0_i32, %c0_i32_0, %c0_i32_1 : i32, i32, i32
  }
  func.func @transform_7(%arg0: i32) -> (i32, i32, i32) {
    %c0_i32 = arith.constant 0 : i32
    %c0_i32_0 = arith.constant 0 : i32
    %c0_i32_1 = arith.constant 0 : i32
    %c0_i32_2 = arith.constant 0 : i32
    return %c0_i32, %c0_i32_0, %c0_i32_1 : i32, i32, i32
  }
  func.func @transform_8(%arg0: i32) -> (i32, i32) {
    %c0_i32 = arith.constant 0 : i32
    %c0_i32_0 = arith.constant 0 : i32
    %c0_i32_1 = arith.constant 0 : i32
    return %c0_i32, %c0_i32_0 : i32, i32
  }
  func.func @transform_9(%arg0: i32) -> (i32, i32) {
    %c0_i32 = arith.constant 0 : i32
    %c0_i32_0 = arith.constant 0 : i32
    %c0_i32_1 = arith.constant 0 : i32
    return %c0_i32, %c0_i32_0 : i32, i32
  }
  func.func @transform_10(%arg0: i32) -> (i32, i32, i32, i32) {
    %c0_i32 = arith.constant 0 : i32
    %c0_i32_0 = arith.constant 0 : i32
    %c0_i32_1 = arith.constant 0 : i32
    %c0_i32_2 = arith.constant 0 : i32
    return %arg0, %c0_i32, %c0_i32_0, %c0_i32_1 : i32, i32, i32, i32
  }
}

</mosaic_0001>

<bundles_post_ra>
// kernel: tpu_custom_call.1
= control target key start
LH: loop header
LB: loop body
LE: loop exit
PB: predicated region body
PF: predicated region fallthrough
CT: control target
= control target key end

     0   :  { %s20661_s0 = inlined_call_operand.hbm [shape: f32[2,16,16,128], index: 0, kind: input, shape index: {}]   ;;  %s20662_s1 = inlined_call_operand.hbm [shape: f32[2,16,16,128], index: 1, kind: input, shape index: {}]   ;;  %s20663_s2 = inlined_call_operand.hbm [shape: f32[2,16,16,128], index: 2, kind: input, shape index: {}]   ;;  %s20664_s3 = inlined_call_operand.hbm [shape: bf16[9,128,128], index: 3, kind: input, shape index: {}]   ;;  %s20665_s4 = inlined_call_operand.hbm [shape: bf16[9,128,128], index: 4, kind: input, shape index: {}]   ;;  %s20666_s5 = inlined_call_operand.hbm [shape: bf16[3,128,128], index: 5, kind: input, shape index: {}]   ;;  %s20667_s6 = inlined_call_operand.hbm [shape: bf16[9,128,128], index: 6, kind: input, shape index: {}]   ;;  %s20668_s7 = inlined_call_operand.hbm [shape: bf16[9,128,128], index: 7, kind: input, shape index: {}]   ;;  %s20669_s8 = inlined_call_operand.hbm [shape: bf16[128,128], index: 8, kind: input, shape index: {}]   ;;  %s20670_s9 = inlined_call_operand.vmem [shape: f32[8,128], index: 9, kind: input, shape index: {}]   ;;  %s20671_s10 = inlined_call_operand.hbm [shape: f32[2,16,16,128], index: 10, kind: output, shape index: {}]  }
   0x1   :  { %20702 = sst [smem:[#allocation45_spill]] %s20662_s1 }
   0x2   :  { %20703 = sst [smem:[#allocation46_spill]] %s20664_s3 }
   0x3   :  { %20704 = sst [smem:[#allocation47_spill]] %s20666_s5 }
   0x4   :  { %20705 = sst [smem:[#allocation48_spill]] %s20668_s7 }
   0x5   :  { %20706 = sst [smem:[#allocation49_spill]] %s20670_s9 }
   0x6   :  { %20707 = sst [smem:[#allocation50_spill]] %s20671_s10 }
   0x7   :  { %15 = vsyncpa [#allocation5], 0 }
   0x8   :  { %17 = vsyncpa [#allocation5 + $0x1], 0 }
   0x9   :  { %18 = vsyncpa [#allocation8], 0 }
   0xa   :  { %20 = vsyncpa [#allocation8 + $0x1], 0 }
   0xb   :  { %21 = vsyncpa [#allocation11], 0 }
   0xc   :  { %22 = vsyncpa [#allocation14], 0 }
   0xd   :  { %23 = vsyncpa [#allocation17], 0 }
   0xe   :  { %24 = vsyncpa [#allocation6], 0 }
   0xf   :  { %26 = vsyncpa [#allocation6 + $0x1], 0  ;;  %s18657_s13 = smov 0   ;;  %s18659_s14 = smov 0  }
  0x10   :  { %s18661_s15 = smov 0   ;;  %s18663_s16 = smov 0  }
  0x11 LB: > { %20708 = sst [smem:[#allocation26_spill]] %s18570_s13  ;;  %s18584_s17 = smov [#allocation10]   ;;  %s18582_s16 = sphi %s18663_s16, %s20777_s16   ;;  %s18578_s15 = sphi %s18661_s15, %s20781_s15   ;;  %s18574_s14 = sphi %s18659_s14, %s20780_s14   ;;  %s18570_s13 = sphi %s18657_s13, %s20779_s13  }
  0x12   : > { %20709 = sst [smem:[#allocation27_spill]] %s18582_s16  ;;  %s300_s18 = sshll.u32 %s18584_s17, 4  ;;  %s18683_s18 = int_to_ptr.vmem [resolvable:$true] %s300_s18 }
  0x13   : > { %s18678_s19 = sadd.s32 4294967295, %s18582_s16   ;;  %p13363_p0 = scmp.ge.s32.totalorder %s18582_s16, 1 }
  0x14   : > { %20710 = sst [smem:[#allocation28_spill]] %s18678_s19  ;;  %p20682_p1 = scmp.eq.s32.totalorder %s18678_s19, 0 }
  0x15   : > { %p288_p2 = scmp.lt.s32.totalorder %s18582_s16, 3  ;;  %s18585_s21 = smov [#allocation13]  }
  0x16   : > { %s326_s22 = sshll.u32 %s18585_s21, 4  ;;  %s18586_s24 = smov [#allocation16]   ;;  %s18698_s22 = int_to_ptr.vmem [resolvable:$true] %s326_s22 }
  0x17   : > { %p18685_p3 = pnand %p13363_p0, %p288_p2  ;;  %s352_s25 = sshll.u32 %s18586_s24, 4  ;;  %s18700_s25 = int_to_ptr.vmem [resolvable:$true] %s352_s25 }
  0x18   : > { %s20713_s3 = sld [smem:[#allocation46_spill]] }
  0x19   : > { %s20711_s20 = scalar_select %p18685_p3, 1, 0 }
  0x1a   : > { %p17726_p5 = pneg %p18685_p3 }
  0x1c   : > { %p18694_p6 = pnand %p17726_p5, %p20682_p1 }
  0x1e   : > { %s20712_s23 = scalar_select %p18694_p6, 1, 0 }
  0x1f   : > { %s18242_s28 = scalar_lea.hbm %s20713_s3, 9216  ;;  %p18710_p8 = pneg %p18694_p6 }
  0x20   : > { %p18243_p7 = scmp.ne.s32.totalorder %s20713_s3, %s18242_s28  ;;  %p18249_p11 = scmp.lt.u32.totalorder %s18242_s28, %s20713_s3 }
  0x21   : > { %s20714_s11 = scalar_select %p18710_p8, 1, 0 }
  0x22   : > { %p18245_p9 = pnand %p18710_p8, %p18243_p7 }
  0x24   : > { %p18246_p10 = pneg %p18245_p9 }
  0x26   : > { %p18251_p12 = pnand %p18249_p11, %p18246_p10 }
  0x28   : > { %18254 = shalt.err (!%p18251_p12)
}
  0x29   : > { %s18255_s21 = scalar_lea.vmem %s18683_s18, 9216  ;;  %p18263_p5 = scmp.lt.s32.totalorder %s18683_s18, %s18683_s18 }
  0x2a   : > { %p18256_p13 = scmp.ne.s32.totalorder %s18683_s18, %s18255_s21  ;;  %p18264_p4 = scmp.lt.s32.totalorder %s18255_s21, %s18255_s21 }
  0x2c   : > { %p18258_p0 = pnand %p18256_p13, %p18710_p8  ;;  %p18265_p7 = por %p18264_p4, %p18263_p5 }
  0x2e   : > { %p18259_p2 = pneg %p18258_p0 }
  0x30   : > { %p18266_p9 = pnand %p18265_p7, %p18259_p2 }
  0x32   : > { %18269 = shalt.err (!%p18266_p9)
}
  0x33   : > { %s20675_s24 = smov 64   ;;  %s20678_s26 = smov 4  }
  0x34   : > { %17729 = dma.hbm_to_vmem [thread:$0]  (!%p18694_p6), %s20713_s3, 9216, %s18683_s18, [#allocation11], %s20675_s24, %s20675_s24, %s20678_s26  }
  0x35   : > { %s20715_s5 = sld [smem:[#allocation47_spill]] }
  0x3b   : > { %s18270_s12 = scalar_lea.hbm %s20715_s5, 3072 }
  0x3c   : > { %p18271_p4 = scmp.ne.s32.totalorder %s20715_s5, %s18270_s12  ;;  %p18277_p12 = scmp.lt.u32.totalorder %s18270_s12, %s20715_s5 }
  0x3e   : > { %p18273_p10 = pnand %p18271_p4, %p18710_p8 }
  0x40   : > { %p18274_p11 = pneg %p18273_p10 }
  0x42   : > { %p18279_p13 = pnand %p18277_p12, %p18274_p11 }
  0x44   : > { %18282 = shalt.err (!%p18279_p13)
}
  0x45   : > { %s18283_s18 = scalar_lea.vmem %s18698_s22, 3072  ;;  %p18291_p7 = scmp.lt.s32.totalorder %s18698_s22, %s18698_s22 }
  0x46   : > { %p18284_p0 = scmp.ne.s32.totalorder %s18698_s22, %s18283_s18  ;;  %p18292_p9 = scmp.lt.s32.totalorder %s18283_s18, %s18283_s18 }
  0x48   : > { %p18286_p2 = pnand %p18284_p0, %p18710_p8  ;;  %p18293_p4 = por %p18292_p9, %p18291_p7 }
  0x4a   : > { %p18287_p5 = pneg %p18286_p2 }
  0x4c   : > { %p18294_p10 = pnand %p18293_p4, %p18287_p5 }
  0x4e   : > { %18297 = shalt.err (!%p18294_p10)
}
  0x4f   : > { %17735 = dma.hbm_to_vmem [thread:$0]  (!%p18694_p6), %s20715_s5, 3072, %s18698_s22, [#allocation14], %s20675_s24, %s20675_s24, %s20678_s26  }
  0x50   : > { %s20716_s7 = sld [smem:[#allocation48_spill]] }
  0x56   : > { %s18298_s29 = scalar_lea.hbm %s20716_s7, 9216 }
  0x57   : > { %p18299_p11 = scmp.ne.s32.totalorder %s20716_s7, %s18298_s29  ;;  %p18305_p0 = scmp.lt.u32.totalorder %s18298_s29, %s20716_s7 }
  0x59   : > { %p18301_p12 = pnand %p18299_p11, %p18710_p8 }
  0x5b   : > { %p18302_p13 = pneg %p18301_p12 }
  0x5d   : > { %p18307_p2 = pnand %p18305_p0, %p18302_p13 }
  0x5f   : > { %18310 = shalt.err (!%p18307_p2)
}
  0x60   : > { %s18311_s22 = scalar_lea.vmem %s18700_s25, 9216  ;;  %p18319_p4 = scmp.lt.s32.totalorder %s18700_s25, %s18700_s25 }
  0x61   : > { %p18312_p5 = scmp.ne.s32.totalorder %s18700_s25, %s18311_s22  ;;  %p18320_p10 = scmp.lt.s32.totalorder %s18311_s22, %s18311_s22 }
  0x63   : > { %p18314_p7 = pnand %p18312_p5, %p18710_p8  ;;  %p18321_p11 = por %p18320_p10, %p18319_p4 }
  0x65   : > { %p18315_p9 = pneg %p18314_p7 }
  0x67   : > { %p18322_p12 = pnand %p18321_p11, %p18315_p9 }
  0x69   : > { %18325 = shalt.err (!%p18322_p12)
}
  0x6a   : > { %17741 = dma.hbm_to_vmem [thread:$0]  (!%p18694_p6), %s20716_s7, 9216, %s18700_s25, [#allocation17], %s20675_s24, %s20675_s24, %s20678_s26  }
  0x6b   : > { %s13362_s10 = sadd.s32 4294967294, %s18582_s16   ;;  %s18788_s27 = sadd.s32 1, %s18582_s16  }
  0x6c   : > { %20717 = sst [smem:[#allocation29_spill]] %s18788_s27  ;;  %s39_s28 = sadd.s32 1, %s18578_s15 }
  0x6d   : > { %s36_s29 = ssub.s32 %s18582_s16, %s18788_s27  ;;  %p46_p13 = scmp.ne.s32.totalorder %s18578_s15, %s18574_s14 }
  0x6e   : > { %p37_p0 = scmp.eq.s32.totalorder %s36_s29, 0  ;;  %p47_p2 = scmp.eq.s32.totalorder %s18582_s16, 0 }
  0x6f   : > { %p52_p5 = scmp.ne.s32.totalorder %s18574_s14, %s18570_s13  ;;  %p275_p7 = scmp.eq.s32.totalorder %s18678_s19, 1 }
  0x70   : > { %s18800_s30 = scalar_select %p37_p0, %s18578_s15, %s39_s28  }
  0x71   : > { %p48_p9 = por %p47_p2, %p46_p13  ;;  %p18804_p4 = por %p20682_p1, %p52_p5 }
  0x72   : > { %20718 = sst [smem:[#allocation30_spill]] %s18800_s30  ;;  %p18808_p10 = por %p275_p7, %p46_p13 }
  0x73   : > { %s20719_s25 = scalar_select %p18804_p4, 1, 0 }
  0x74   : > { %s20720_s12 = scalar_select %p18808_p10, 1, 0 }
  0x75   : > { %p281_p11 = scmp.eq.s32.totalorder %s13362_s10, 1  ;;  %p17765_p12 = scmp.lt.s32.totalorder %s18582_s16, 2 }
  0x76   : > { %20721 = sst [smem:[#allocation31_spill]] %s20720_s12  ;;  %s20677_s17 = sand.u32 1, %s18578_s15  }
  0x77   : > { %p18814_p3 = por %p281_p11, %p52_p5  ;;  %s18820_s22 = sshll.u32 %s20677_s17, 8 }
  0x78   : > { %s18823_s18 = sshll.u32 %s18582_s16, 12  ;;  %p18825_p0 = pnand %p17765_p12, %p48_p9 }
  0x79   : > { %s20722_s21 = scalar_select %p18814_p3, 1, 0 }
  0x7a   : > { %s20724_s9 = scalar_select %p18825_p0, 1, 0 }
  0x7b   : > { %20723 = sst [smem:[#allocation32_spill]] %s20722_s21  ;;  %s403_s28 = sand.u32 1, %s18582_s16  }
  0x7c   : > { %s20725_s1 = sld [smem:[#allocation45_spill]]  ;;  %s407_s17 = scalar_lea.vmem [#allocation7], %s18820_s22 }
  0x7d   : > { %s414_s26 = sshll.u32 %s407_s17, 4  ;;  %s18839_s3 = scalar_lea.sflag [#allocation8], %s403_s28  ;;  %s18837_s26 = int_to_ptr.vmem [resolvable:$true] %s414_s26 }
  0x7e   : > { %p18845_p2 = pneg %p18825_p0 }
  0x80   : > { %s20726_s7 = scalar_select %p18845_p2, 1, 0 }
  0x82   : > { %s18834_s24 = scalar_lea.hbm %s20725_s1, %s18823_s18  ;;  %s18331_s30 = scalar_lea.hbm %s20725_s1, 8192 }
  0x83   : > { %s18326_s5 = scalar_lea.hbm %s18834_s24, 4096  ;;  %p18332_p9 = scmp.lt.u32.totalorder %s18834_s24, %s20725_s1 }
  0x84   : > { %p18327_p13 = scmp.ne.s32.totalorder %s18834_s24, %s18326_s5  ;;  %p18333_p11 = scmp.lt.u32.totalorder %s18331_s30, %s18326_s5 }
  0x85   : > { %p18335_p1 = scmp.lt.u32.totalorder %s18326_s5, %s18834_s24 }
  0x86   : > { %p18329_p5 = pnand %p18845_p2, %p18327_p13  ;;  %p18334_p12 = por %p18333_p11, %p18332_p9 }
  0x88   : > { %p18330_p7 = pneg %p18329_p5  ;;  %p18336_p3 = por %p18335_p1, %p18334_p12 }
  0x8a   : > { %p18337_p10 = pnand %p18336_p3, %p18330_p7 }
  0x8c   : > { %18340 = shalt.err (!%p18337_p10)
}
  0x8d   : > { %s18341_s28 = scalar_lea.vmem %s18837_s26, 4096  ;;  %s18589_s10 = smov [#allocation7]  }
  0x8e   : > { %p18342_p13 = scmp.ne.s32.totalorder %s18837_s26, %s18341_s28  ;;  %s18346_s29 = sshll.u32 %s18589_s10, 4  ;;  %s18347_s29 = int_to_ptr.vmem [resolvable:$false] %s18346_s29 }
  0x8f   : > { %s18348_s27 = scalar_lea.vmem %s18347_s29, 8192  ;;  %p18349_p6 = scmp.lt.s32.totalorder %s18837_s26, %s18347_s29 }
  0x90   : > { %p18344_p5 = pnand %p18342_p13, %p18845_p2  ;;  %p18350_p8 = scmp.lt.s32.totalorder %s18348_s27, %s18341_s28 }
  0x92   : > { %p18345_p4 = pneg %p18344_p5  ;;  %p18351_p9 = por %p18350_p8, %p18349_p6 }
  0x94   : > { %p18352_p11 = pnand %p18351_p9, %p18345_p4 }
  0x96   : > { %18355 = shalt.err (!%p18352_p11)
}
  0x97   : > { %s20700_s5 = smov 128   ;;  %s18591_s30 = smov 8  }
  0x98   : > { %17751 = dma.hbm_to_vmem [thread:$0]  (!%p18825_p0), %s18834_s24, 4096, %s18837_s26, %s18839_s3, %s20700_s5, %s20700_s5, %s18591_s30  }
  0x99   : > { %s18592_s17 = smov [#allocation12]   ;;  %s18593_s29 = smov [#allocation15]  }
  0x9a   : > { %s313_s10 = sshll.u32 %s18592_s17, 4  ;;  %s339_s28 = sshll.u32 %s18593_s29, 4  ;;  %s314_s10 = int_to_ptr.vmem [resolvable:$true] %s313_s10  ;;  %s340_s28 = int_to_ptr.vmem [resolvable:$true] %s339_s28 }
  0x9b   : > { %s18356_s16 = scalar_lea.hbm %s20665_s4, 9216  ;;  %p20727_p3 = scmp.ne.s32.totalorder %s20714_s11, 0 }
  0x9c   : > { %p18357_p1 = scmp.ne.s32.totalorder %s20665_s4, %s18356_s16  ;;  %p18363_p4 = scmp.lt.u32.totalorder %s18356_s16, %s20665_s4 }
  0x9e   : > { %p18359_p6 = pnand %p18357_p1, %p20727_p3 }
  0xa0   : > { %p18360_p8 = pneg %p18359_p6 }
  0xa2   : > { %p18365_p10 = pnand %p18363_p4, %p18360_p8 }
  0xa4   : > { %18368 = shalt.err (!%p18365_p10)
}
  0xa5   : > { %s18369_s24 = scalar_lea.vmem %s314_s10, 9216  ;;  %p18377_p5 = scmp.lt.s32.totalorder %s314_s10, %s314_s10 }
  0xa6   : > { %p18370_p7 = scmp.ne.s32.totalorder %s314_s10, %s18369_s24  ;;  %p18378_p9 = scmp.lt.s32.totalorder %s18369_s24, %s18369_s24 }
  0xa8   : > { %p18372_p12 = pnand %p18370_p7, %p20727_p3  ;;  %p18379_p11 = por %p18378_p9, %p18377_p5 }
  0xaa   : > { %p18373_p13 = pneg %p18372_p12 }
  0xac   : > { %p18380_p0 = pnand %p18379_p11, %p18373_p13 }
  0xae   : > { %18383 = shalt.err (!%p18380_p0)
}
  0xaf   : > { %p20728_p1 = scmp.ne.s32.totalorder %s20712_s23, 0  ;;  %s20729_s1 = smov 4  }
  0xb0   : > { %s20730_s13 = smov 64   ;;  %s18384_s21 = scalar_lea.hbm %s20667_s6, 9216 }
  0xb1   : > { %17732 = dma.hbm_to_vmem [thread:$0]  (!%p20728_p1), %s20665_s4, 9216, %s314_s10, [#allocation11], %s20730_s13, %s20730_s13, %s20729_s1  }
  0xb2   : > { %p18385_p6 = scmp.ne.s32.totalorder %s20667_s6, %s18384_s21  ;;  %p18391_p4 = scmp.lt.u32.totalorder %s18384_s21, %s20667_s6 }
  0xb4   : > { %p18387_p0 = pnand %p18385_p6, %p20727_p3 }
  0xb6   : > { %p18388_p8 = pneg %p18387_p0 }
  0xb8   : > { %p18393_p10 = pnand %p18391_p4, %p18388_p8 }
  0xba   : > { %18396 = shalt.err (!%p18393_p10)
}
  0xbb   : > { %s18397_s19 = scalar_lea.vmem %s340_s28, 9216  ;;  %p18405_p5 = scmp.lt.s32.totalorder %s340_s28, %s340_s28 }
  0xbc   : > { %p18398_p7 = scmp.ne.s32.totalorder %s340_s28, %s18397_s19  ;;  %p18406_p9 = scmp.lt.s32.totalorder %s18397_s19, %s18397_s19 }
  0xbe   : > { %p18400_p12 = pnand %p18398_p7, %p20727_p3  ;;  %p18407_p11 = por %p18406_p9, %p18405_p5 }
  0xc0   : > { %p18401_p13 = pneg %p18400_p12 }
  0xc2   : > { %p18408_p2 = pnand %p18407_p11, %p18401_p13 }
  0xc4   : > { %18411 = shalt.err (!%p18408_p2)
}
  0xc5   : > { %17738 = dma.hbm_to_vmem [thread:$0]  (!%p20728_p1), %s20667_s6, 9216, %s340_s28, [#allocation14], %s20730_s13, %s20730_s13, %s20729_s1  }
  0xc6   : > { %s18594_s26 = smov [#allocation18]   ;;  %s18412_s29 = scalar_lea.hbm %s20669_s8, 1024 }
  0xc7   : > { %s365_s12 = sshll.u32 %s18594_s26, 4  ;;  %p18413_p2 = scmp.ne.s32.totalorder %s20669_s8, %s18412_s29  ;;  %s366_s12 = int_to_ptr.vmem [resolvable:$true] %s365_s12 }
  0xc8   : > { %p18419_p8 = scmp.lt.u32.totalorder %s18412_s29, %s20669_s8 }
  0xc9   : > { %p18415_p6 = pnand %p18413_p2, %p20727_p3 }
  0xcb   : > { %p18416_p0 = pneg %p18415_p6 }
  0xcd   : > { %p18421_p4 = pnand %p18419_p8, %p18416_p0 }
  0xcf   : > { %18424 = shalt.err (!%p18421_p4)
}
  0xd0   : > { %s18425_s28 = scalar_lea.vmem %s366_s12, 1024  ;;  %p18433_p13 = scmp.lt.s32.totalorder %s366_s12, %s366_s12 }
  0xd1   : > { %p18426_p10 = scmp.ne.s32.totalorder %s366_s12, %s18425_s28  ;;  %p18434_p5 = scmp.lt.s32.totalorder %s18425_s28, %s18425_s28 }
  0xd3   : > { %p18428_p7 = pnand %p18426_p10, %p20727_p3  ;;  %p18435_p9 = por %p18434_p5, %p18433_p13 }
  0xd5   : > { %p18429_p12 = pneg %p18428_p7 }
  0xd7   : > { %p18436_p11 = pnand %p18435_p9, %p18429_p12 }
  0xd9   : > { %18439 = shalt.err (!%p18436_p11)
}
  0xda   : > { %17744 = dma.hbm_to_vmem [thread:$0]  (!%p20728_p1), %s20669_s8, 1024, %s366_s12, [#allocation17], %s20730_s13, %s20730_s13, %s20729_s1  }
  0xdb   : > { %s18939_s26 = scalar_lea.hbm %s20661_s0, %s18823_s18  ;;  %s386_s23 = scalar_lea.vmem [#allocation4], %s18820_s22 }
  0xdc   : > { %s393_s21 = sshll.u32 %s386_s23, 4  ;;  %s20731_s17 = sand.u32 1, %s18578_s15   ;;  %s18942_s21 = int_to_ptr.vmem [resolvable:$true] %s393_s21 }
  0xdd   : > { %s18946_s29 = scalar_lea.sflag [#allocation5], %s20731_s17  ;;  %s18440_s27 = scalar_lea.hbm %s18939_s26, 4096 }
  0xde   : > { %p18441_p3 = scmp.ne.s32.totalorder %s18939_s26, %s18440_s27  ;;  %p20732_p2 = scmp.ne.s32.totalorder %s20726_s7, 0 }
  0xdf   : > { %s18445_s12 = scalar_lea.hbm %s20661_s0, 8192  ;;  %p18446_p0 = scmp.lt.u32.totalorder %s18939_s26, %s20661_s0 }
  0xe0   : > { %p18443_p1 = pnand %p18441_p3, %p20732_p2  ;;  %p18447_p8 = scmp.lt.u32.totalorder %s18445_s12, %s18440_s27 }
  0xe1   : > { %p18449_p10 = scmp.lt.u32.totalorder %s18440_s27, %s18939_s26 }
  0xe2   : > { %p18444_p6 = pneg %p18443_p1  ;;  %p18448_p4 = por %p18447_p8, %p18446_p0 }
  0xe4   : > { %p18450_p7 = por %p18449_p10, %p18448_p4 }
  0xe6   : > { %p18451_p12 = pnand %p18450_p7, %p18444_p6 }
  0xe8   : > { %18454 = shalt.err (!%p18451_p12)
}
  0xe9   : > { %s18455_s28 = scalar_lea.vmem %s18942_s21, 4096  ;;  %s18595_s5 = smov [#allocation4]  }
  0xea   : > { %p18456_p13 = scmp.ne.s32.totalorder %s18942_s21, %s18455_s28  ;;  %s18460_s10 = sshll.u32 %s18595_s5, 4  ;;  %s18461_s10 = int_to_ptr.vmem [resolvable:$false] %s18460_s10 }
  0xeb   : > { %s18462_s11 = scalar_lea.vmem %s18461_s10, 8192  ;;  %p18463_p11 = scmp.lt.s32.totalorder %s18942_s21, %s18461_s10 }
  0xec   : > { %p18458_p5 = pnand %p18456_p13, %p20732_p2  ;;  %p18464_p3 = scmp.lt.s32.totalorder %s18462_s11, %s18455_s28 }
  0xee   : > { %p18459_p9 = pneg %p18458_p5  ;;  %p18465_p1 = por %p18464_p3, %p18463_p11 }
  0xf0   : > { %p18466_p0 = pnand %p18465_p1, %p18459_p9 }
  0xf2   : > { %18469 = shalt.err (!%p18466_p0)
}
  0xf3   : > { %p20733_p6 = scmp.ne.s32.totalorder %s20724_s9, 0  ;;  %s20734_s16 = smov 128  }
  0xf4   : > { %s18977_s27 = scalar_lea.hbm %s20663_s2, %s18823_s18  ;;  %s428_s1 = scalar_lea.vmem [#allocation9], %s18820_s22 }
  0xf5   : > { %17748 = dma.hbm_to_vmem [thread:$0]  (!%p20733_p6), %s18939_s26, 4096, %s18942_s21, %s18946_s29, %s20734_s16, %s20734_s16, %s18591_s30  }
  0xf6   : > { %s435_s13 = sshll.u32 %s428_s1, 4  ;;  %s18470_s12 = scalar_lea.hbm %s18977_s27, 4096  ;;  %s18980_s13 = int_to_ptr.vmem [resolvable:$true] %s435_s13 }
  0xf7   : > { %p18471_p8 = scmp.ne.s32.totalorder %s18977_s27, %s18470_s12  ;;  %s18475_s21 = scalar_lea.hbm %s20663_s2, 8192 }
  0xf8   : > { %p18476_p7 = scmp.lt.u32.totalorder %s18977_s27, %s20663_s2  ;;  %p18477_p12 = scmp.lt.u32.totalorder %s18475_s21, %s18470_s12 }
  0xf9   : > { %p18473_p4 = pnand %p18471_p8, %p20732_p2  ;;  %p18479_p5 = scmp.lt.u32.totalorder %s18470_s12, %s18977_s27 }
  0xfa   : > { %p18478_p13 = por %p18477_p12, %p18476_p7 }
  0xfb   : > { %p18474_p10 = pneg %p18473_p4 }
  0xfc   : > { %p18480_p9 = por %p18479_p5, %p18478_p13 }
  0xfe   : > { %p18481_p11 = pnand %p18480_p9, %p18474_p10 }
 0x100   : > { %18484 = shalt.err (!%p18481_p11)
}
 0x101   : > { %s18485_s22 = scalar_lea.vmem %s18980_s13, 4096  ;;  %s18596_s19 = smov [#allocation9]  }
 0x102   : > { %p18486_p3 = scmp.ne.s32.totalorder %s18980_s13, %s18485_s22  ;;  %s18490_s28 = sshll.u32 %s18596_s19, 4  ;;  %s18491_s28 = int_to_ptr.vmem [resolvable:$false] %s18490_s28 }
 0x103   : > { %s18492_s5 = scalar_lea.vmem %s18491_s28, 8192  ;;  %p18493_p8 = scmp.lt.s32.totalorder %s18980_s13, %s18491_s28 }
 0x104   : > { %p18488_p1 = pnand %p18486_p3, %p20732_p2  ;;  %p18494_p4 = scmp.lt.s32.totalorder %s18492_s5, %s18485_s22 }
 0x106   : > { %p18489_p0 = pneg %p18488_p1  ;;  %p18495_p7 = por %p18494_p4, %p18493_p8 }
 0x108   : > { %p18496_p12 = pnand %p18495_p7, %p18489_p0 }
 0x10a   : > { %18499 = shalt.err (!%p18496_p12)
}
 0x10b   : > { %17754 = dma.hbm_to_vmem [thread:$0]  (!%p20733_p6), %s18977_s27, 4096, %s18980_s13, %s18839_s3, %s20734_s16, %s20734_s16, %s18591_s30  }
 0x10c   : > { %p20735_p2 = scmp.ne.s32.totalorder %s20711_s20, 0 }
 0x10e   : > { %447 = sbr.rel (%p20735_p2) target bundleno = 3264 (0xcc0), region = 60 }
 0x115   : > { %s19010_s7 = sand.u32 1, %s18574_s14   ;;  %p20736_p10 = scmp.ne.s32.totalorder %s20719_s25, 0 }
 0x116   : > { %s19013_s10 = sshll.u32 %s19010_s7, 8  ;;  %s450_s9 = scalar_lea.sflag [#allocation5], %s19010_s7 }
 0x117   : > { %s19017_s11 = scalar_lea.vmem [#allocation4], %s19013_s10 }
 0x118   : > { %18545 = dma.done.wait (%p20736_p10), %s450_s9, 4096  }
 0x119   : > { %18547 = vsyncadd (%p20736_p10), %s450_s9, 4294963200  ;;  %s20737_s3 = sld [smem:[#allocation28_spill]]  ;;  %s19025_s16 = scalar_lea.vmem [#allocation7], %s19013_s10 }
 0x11f   : > { %s458_s20 = sand.u32 1, %s20737_s3  }
 0x120   : > { %s459_s30 = scalar_lea.sflag [#allocation8], %s458_s20 }
 0x121   : > { %18549 = dma.done.wait (%p20736_p10), %s459_s30, 8192  }
 0x122   : > { %18551 = vsyncadd (%p20736_p10), %s459_s30, 4294959104  ;;  %s19032_s23 = scalar_lea.vmem [#allocation9], %s19013_s10  ;;  %p20738_p6 = scmp.eq.s32.totalorder %s20737_s3, 0 }
 0x124   : > { %18553 = dma.done.wait (%p20738_p6), [#allocation11], 18432   ;;  %p20739_p13 = pmov %p20738_p6 }
 0x125   : > { %p20740_p5 = pmov %p20738_p6 }
 0x126   : > { %18555 = vsyncadd (%p20739_p13), [#allocation11], 4294948864 }
 0x127   : > { %18557 = dma.done.wait (%p20740_p5), [#allocation14], 12288   ;;  %p20741_p9 = pmov %p20740_p5 }
 0x128   : > { %p20742_p11 = pmov %p20740_p5 }
 0x129   : > { %18559 = vsyncadd (%p20741_p9), [#allocation14], 4294955008 }
 0x12a   : > { %18561 = dma.done.wait (%p20742_p11), [#allocation17], 10240   ;;  %p20743_p3 = pmov %p20740_p5 }
 0x12b   : > { %v18597_v0 = vmov 0.0   ;;  %v18598_v1 = vmov 0.0|0.0   ;;  %v17818_v2 = vld [vmem:[#allocation10 + $0x40] sm:$0xff]   ;;  %v17820_v4 = vld [vmem:[#allocation10 + $0x48] sm:$0xff]   ;;  %v17822_v6 = vld [vmem:[#allocation10 + $0x50] sm:$0xff]   ;;  %s20756_s27 = sld [smem:[#allocation49_spill]] }
 0x12c   : > { %18563 = vsyncadd (%p20743_p3), [#allocation17], 4294957056  ;;  %543 = vst [vmem:[#allocation2] sm:$0xff] %v18597_v0  ;;  %14750 = vmatprep.mubr.bf16.mxu0 %v18598_v1  ;;  %v17819_v3 = vld [vmem:[#allocation10] sm:$0xff]   ;;  %14686 = vmatprep.subr.bf16.mxu1 %v17818_v2  ;;  %v17821_v5 = vld [vmem:[#allocation10 + $0x8] sm:$0xff]   ;;  %s20546_s28 = scalar_lea.vmem [#allocation19], %s19013_s10 }
 0x12d   : > { %544 = vst [vmem:[#allocation2 + $0x8] sm:$0xff] %v18597_v0  ;;  %545 = vst [vmem:[#allocation2 + $0x10] sm:$0x3] %v18597_v0  ;;  %14734 = vmatprep.subr.bf16.mxu0 %v17819_v3  ;;  %14687 = vmatpush3.bf16.msra.mxu1 %v17818_v2  ;;  %v17823_v7 = vld [vmem:[#allocation10 + $0x10] sm:$0xff]   ;;  %v17824_v8 = vld [vmem:[#allocation10 + $0x58] sm:$0xff]   ;;  %s13725_s5 = sshll.u32 %s20737_s3, 12 }
 0x12e   : > { %546 = vst [vmem:[#allocation2 + $0x18] sm:$0xff] %v18597_v0  ;;  %547 = vst [vmem:[#allocation2 + $0x20] sm:$0xff] %v18597_v0  ;;  %14735 = vmatpush3.bf16.msra.mxu0 %v17819_v3  ;;  %14688 = vmatprep.subr.bf16.mxu1 %v17820_v4  ;;  %v17825_v9 = vld [vmem:[#allocation10 + $0x18] sm:$0xff]   ;;  %v17826_v10 = vld [vmem:[#allocation10 + $0x60] sm:$0xff]   ;;  %s13189_s10 = sshll.u32 %s20546_s28, 4  ;;  %s20769_s9 = sld [smem:[#allocation31_spill]]  ;;  %s20613_s10 = int_to_ptr.vmem [resolvable:$true] %s13189_s10 }
 0x12f   : > { %548 = vst [vmem:[#allocation2 + $0x28] sm:$0x3] %v18597_v0  ;;  %549 = vst [vmem:[#allocation2 + $0x30] sm:$0xff] %v18597_v0  ;;  %14736 = vmatprep.subr.bf16.mxu0 %v17821_v5  ;;  %v17827_v11 = vld [vmem:[#allocation10 + $0x20] sm:$0xff]   ;;  %v17828_v12 = vld [vmem:[#allocation10 + $0x68] sm:$0xff]   ;;  %s20770_s30 = sld [smem:[#allocation50_spill]] }
 0x130   : > { %550 = vst [vmem:[#allocation2 + $0x38] sm:$0xff] %v18597_v0  ;;  %551 = vst [vmem:[#allocation2 + $0x40] sm:$0x3] %v18597_v0  ;;  %v17829_v13 = vld [vmem:[#allocation10 + $0x28] sm:$0xff]   ;;  %v19155_v16 = vld [vmem:[%s19025_s16] sm:$0xff]  ;;  %s13176_s3 = scalar_lea.sflag [#allocation6], %s19010_s7 }
 0x131   : > { %552 = vst [vmem:[#allocation2 + $0x48] sm:$0xff] %v18597_v0  ;;  %553 = vst [vmem:[#allocation2 + $0x50] sm:$0xff] %v18597_v0  ;;  %14689 = vmatpush3.bf16.msra.mxu1 %v17820_v4  ;;  %v19158_v18 = vld [vmem:[%s19025_s16 + $0x8] sm:$0xff]  ;;  %v17830_v19 = vld [vmem:[#allocation10 + $0x70] sm:$0xff]   ;;  %s18599_s25 = smov [#allocation19]  }
 0x132   : > { %554 = vst [vmem:[#allocation2 + $0x58] sm:$0x3] %v18597_v0  ;;  %555 = vst [vmem:[#allocation2 + $0x60] sm:$0xff] %v18597_v0  ;;  %14737 = vmatpush3.bf16.msra.mxu0 %v17821_v5  ;;  %14690 = vmatprep.subr.bf16.mxu1 %v17822_v6  ;;  %v19163_v20 = vld [vmem:[%s19025_s16 + $0x10] sm:$0xff]  ;;  %v19166_v21 = vld [vmem:[%s19025_s16 + $0x18] sm:$0xff]  ;;  %v877_v44 = vpack.c.bf16 %v19158_v18, %v19155_v16  ;;  %s18504_s17 = sshll.u32 %s18599_s25, 4  ;;  %s18505_s17 = int_to_ptr.vmem [resolvable:$false] %s18504_s17 }
 0x133   : > { %556 = vst [vmem:[#allocation2 + $0x68] sm:$0xff] %v18597_v0  ;;  %557 = vst [vmem:[#allocation2 + $0x70] sm:$0x3] %v18597_v0  ;;  %14738 = vmatprep.subr.bf16.mxu0 %v17823_v7  ;;  %v19171_v22 = vld [vmem:[%s19025_s16 + $0x20] sm:$0xff]  ;;  %v19174_v23 = vld [vmem:[%s19025_s16 + $0x28] sm:$0xff]  ;;  %v878_v47 = vpack.c.bf16 %v19166_v21, %v19163_v20  ;;  %s18506_s1 = scalar_lea.vmem %s18505_s17, 8192  ;;  %p18507_p7 = scmp.lt.s32.totalorder %s20613_s10, %s18505_s17 }
 0x134   : > { %558 = vst [vmem:[#allocation2 + $0x78] sm:$0xff] %v18597_v0  ;;  %559 = vst [vmem:[#allocation2 + $0x80] sm:$0xff] %v18597_v0  ;;  %v844_v14 = vld [vmem:[#allocation2 + $0x1] sm:$0xff]  ;;  %v845_v15 = vld [vmem:[#allocation2 + $0x9] sm:$0xff]  ;;  %v879_v60 = vpack.c.bf16 %v19174_v23, %v19171_v22  ;;  %p20771_p0 = scmp.ne.s32.totalorder %s20769_s9, 0 }
 0x135   : > { %560 = vst [vmem:[#allocation2 + $0x88] sm:$0x3] %v18597_v0  ;;  %561 = vst [vmem:[#allocation2 + $0x90] sm:$0xff] %v18597_v0  ;;  %14691 = vmatpush3.bf16.msra.mxu1 %v17822_v6  ;;  %v876_v17 = vpack.c.bf16 %v845_v15, %v844_v14  ;;  %v17831_v24 = vld [vmem:[#allocation10 + $0x30] sm:$0xff]   ;;  %v19182_v26 = vld [vmem:[%s19025_s16 + $0x38] sm:$0xff] }
 0x136   : > { %562 = vst [vmem:[#allocation2 + $0x98] sm:$0xff] %v18597_v0  ;;  %563 = vst [vmem:[#allocation2 + $0xa0] sm:$0x3] %v18597_v0  ;;  %14739 = vmatpush3.bf16.msra.mxu0 %v17823_v7  ;;  %14692 = vmatprep.subr.bf16.mxu1 %v17824_v8  ;;  %v19179_v25 = vld [vmem:[%s19025_s16 + $0x30] sm:$0xff]  ;;  %v19186_v27 = vld [vmem:[%s19025_s16 + $0x40] sm:$0xff] }
 0x137   : > { %564 = vst [vmem:[#allocation2 + $0xa8] sm:$0xff] %v18597_v0  ;;  %565 = vst [vmem:[#allocation2 + $0xb0] sm:$0xff] %v18597_v0  ;;  %14740 = vmatprep.subr.bf16.mxu0 %v17825_v9  ;;  %14702 = vmatprep.mubr.bf16.mxu1 %v876_v17  ;;  %v19189_v28 = vld [vmem:[%s19025_s16 + $0x48] sm:$0xff]  ;;  %v19195_v29 = vld [vmem:[%s19025_s16 + $0x50] sm:$0xff]  ;;  %v880_v63 = vpack.c.bf16 %v19182_v26, %v19179_v25 }
 0x138   : > { %566 = vst [vmem:[#allocation2 + $0xb8] sm:$0x3] %v18597_v0  ;;  %567 = vst [vmem:[#allocation2 + $0xc0] sm:$0xff] %v18597_v0  ;;  %v19198_v30 = vld [vmem:[%s19025_s16 + $0x58] sm:$0xff]  ;;  %v19201_v31 = vld [vmem:[%s19025_s16 + $0x60] sm:$0xff]  ;;  %v881_v14 = vpack.c.bf16 %v19189_v28, %v19186_v27 }
 0x139   : > { %568 = vst [vmem:[#allocation2 + $0xc8] sm:$0xff] %v18597_v0  ;;  %569 = vst [vmem:[#allocation2 + $0xd0] sm:$0x3] %v18597_v0  ;;  %14693 = vmatpush3.bf16.msra.mxu1 %v17824_v8  ;;  %v17832_v32 = vld [vmem:[#allocation10 + $0x78] sm:$0xff]   ;;  %v19206_v33 = vld [vmem:[%s19025_s16 + $0x68] sm:$0xff] }
 0x13a   : > { %570 = vst [vmem:[#allocation2 + $0xd8] sm:$0xff] %v18597_v0  ;;  %571 = vst [vmem:[#allocation2 + $0xe0] sm:$0xff] %v18597_v0  ;;  %14741 = vmatpush3.bf16.msra.mxu0 %v17825_v9  ;;  %14694 = vmatprep.subr.bf16.mxu1 %v17826_v10  ;;  %v17833_v34 = vld [vmem:[#allocation10 + $0x38] sm:$0xff]   ;;  %v19211_v35 = vld [vmem:[%s19025_s16 + $0x70] sm:$0xff] }
 0x13b   : > { %572 = vst [vmem:[#allocation2 + $0xe8] sm:$0x3] %v18597_v0  ;;  %573 = vst [vmem:[#allocation2 + $0xf0] sm:$0xff] %v18597_v0  ;;  %14742 = vmatprep.subr.bf16.mxu0 %v17827_v11  ;;  %v17834_v37 = vld [vmem:[#allocation12 + $0x40] sm:$0xff]   ;;  %v19214_v38 = vld [vmem:[%s19025_s16 + $0x78] sm:$0xff] }
 0x13c   : > { %574 = vst [vmem:[#allocation2 + $0xf8] sm:$0xff] %v18597_v0  ;;  %575 = vst [vmem:[#allocation2 + $0x100] sm:$0x3] %v18597_v0  ;;  %v19219_v40 = vld [vmem:[%s19025_s16 + $0x80] sm:$0xff]  ;;  %v19222_v41 = vld [vmem:[%s19025_s16 + $0x88] sm:$0xff] }
 0x13d   : > { %576 = vst [vmem:[#allocation2 + $0x108] sm:$0xff] %v18597_v0  ;;  %577 = vst [vmem:[#allocation2 + $0x110] sm:$0xff] %v18597_v0  ;;  %14695 = vmatpush3.bf16.msra.mxu1 %v17826_v10  ;;  %v17838_v45 = vld [vmem:[#allocation10 + $0x80] sm:$0xff]   ;;  %v17835_v49 = vld [vmem:[#allocation12 + $0x48] sm:$0xff]  }
 0x13e   : > { %578 = vst [vmem:[#allocation2 + $0x118] sm:$0x3] %v18597_v0  ;;  %579 = vst [vmem:[#allocation2 + $0x120] sm:$0xff] %v18597_v0  ;;  %14743 = vmatpush3.bf16.msra.mxu0 %v17827_v11  ;;  %14696 = vmatprep.subr.bf16.mxu1 %v17828_v12  ;;  %v17836_v50 = vld [vmem:[#allocation12 + $0x50] sm:$0xff]   ;;  %v17840_v51 = vld [vmem:[#allocation10 + $0x88] sm:$0xff]  }
 0x13f   : > { %580 = vst [vmem:[#allocation2 + $0x128] sm:$0xff] %v18597_v0  ;;  %581 = vst [vmem:[#allocation2 + $0x130] sm:$0x3] %v18597_v0  ;;  %14744 = vmatprep.subr.bf16.mxu0 %v17829_v13  ;;  %v19233_v52 = vld [vmem:[%s19025_s16 + $0x90] sm:$0xff]  ;;  %v19236_v54 = vld [vmem:[%s19025_s16 + $0x98] sm:$0xff] }
 0x140   : > { %582 = vst [vmem:[#allocation2 + $0x138] sm:$0xff] %v18597_v0  ;;  %583 = vst [vmem:[#allocation2 + $0x140] sm:$0xff] %v18597_v0  ;;  %v19240_v55 = vld [vmem:[%s19025_s16 + $0xa0] sm:$0xff]  ;;  %v19245_v58 = vld [vmem:[%s19025_s16 + $0xa8] sm:$0xff] }
 0x141   : > { %584 = vst [vmem:[#allocation2 + $0x148] sm:$0x3] %v18597_v0  ;;  %585 = vst [vmem:[#allocation2 + $0x150] sm:$0xff] %v18597_v0  ;;  %14697 = vmatpush3.bf16.msra.mxu1 %v17828_v12  ;;  %v17841_v61 = vld [vmem:[#allocation10 + $0x90] sm:$0xff]   ;;  %v19261_v3 = vld [vmem:[%s19025_s16 + $0xb8] sm:$0xff] }
 0x142   : > { %586 = vst [vmem:[#allocation2 + $0x158] sm:$0xff] %v18597_v0  ;;  %587 = vst [vmem:[#allocation2 + $0x160] sm:$0x3] %v18597_v0  ;;  %14745 = vmatpush3.bf16.msra.mxu0 %v17829_v13  ;;  %14698 = vmatprep.subr.bf16.mxu1 %v17830_v19  ;;  %v19258_v2 = vld [vmem:[%s19025_s16 + $0xb0] sm:$0xff]  ;;  %v19264_v4 = vld [vmem:[%s19025_s16 + $0xc0] sm:$0xff] }
 0x143   : > { %588 = vst [vmem:[#allocation2 + $0x168] sm:$0xff] %v18597_v0  ;;  %589 = vst [vmem:[#allocation2 + $0x170] sm:$0xff] %v18597_v0  ;;  %14746 = vmatprep.subr.bf16.mxu0 %v17831_v24  ;;  %v19269_v5 = vld [vmem:[%s19025_s16 + $0xc8] sm:$0xff]  ;;  %v17843_v7 = vld [vmem:[#allocation10 + $0x98] sm:$0xff]  }
 0x144   : > { %590 = vst [vmem:[#allocation2 + $0x178] sm:$0x3] %v18597_v0  ;;  %591 = vst [vmem:[#allocation2 + $0x180] sm:$0xff] %v18597_v0  ;;  %v17839_v11 = vld [vmem:[#allocation12 + $0x60] sm:$0xff]   ;;  %v19276_v13 = vld [vmem:[%s19025_s16 + $0xd0] sm:$0xff] }
 0x145   : > { %592 = vst [vmem:[#allocation2 + $0x188] sm:$0xff] %v18597_v0  ;;  %593 = vst [vmem:[#allocation2 + $0x190] sm:$0x3] %v18597_v0  ;;  %14699 = vmatpush3.bf16.msra.mxu1 %v17830_v19  ;;  %v17844_v12 = vld [vmem:[#allocation10 + $0xa0] sm:$0xff]   ;;  %v19281_v15 = vld [vmem:[%s19025_s16 + $0xd8] sm:$0xff]  ;;  %v882_v19 = vpack.c.bf16 %v19198_v30, %v19195_v29 }
 0x146   : > { %594 = vst [vmem:[#allocation2 + $0x198] sm:$0xff] %v18597_v0  ;;  %595 = vst [vmem:[#allocation2 + $0x1a0] sm:$0xff] %v18597_v0  ;;  %14747 = vmatpush3.bf16.msra.mxu0 %v17831_v24  ;;  %14700 = vmatprep.subr.bf16.mxu1 %v17832_v32  ;;  %v19288_v17 = vld [vmem:[%s19025_s16 + $0xe8] sm:$0xff] }
 0x147   : > { %596 = vst [vmem:[#allocation2 + $0x1a8] sm:$0x3] %v18597_v0  ;;  %597 = vst [vmem:[#allocation3] sm:$0xff] %v18597_v0  ;;  %14748 = vmatprep.subr.bf16.mxu0 %v17833_v34 }
 0x148   : > { %598 = vst [vmem:[#allocation3 + $0x8] sm:$0xff] %v18597_v0  ;;  %599 = vst [vmem:[#allocation3 + $0x10] sm:$0x3] %v18597_v0 }
 0x149   : > { %600 = vst [vmem:[#allocation3 + $0x18] sm:$0xff] %v18597_v0  ;;  %601 = vst [vmem:[#allocation3 + $0x20] sm:$0xff] %v18597_v0  ;;  %14701 = vmatpush3.bf16.msra.mxu1 %v17832_v32 }
 0x14a   : > { %602 = vst [vmem:[#allocation3 + $0x28] sm:$0x3] %v18597_v0  ;;  %603 = vst [vmem:[#allocation3 + $0x30] sm:$0xff] %v18597_v0  ;;  %14749 = vmatpush3.bf16.msra.mxu0 %v17833_v34  ;;  %15118 = vmatprep.subr.bf16.mxu1 %v17834_v37  ;;  %v884_v34 = vpack.c.bf16 %v19214_v38, %v19211_v35 }
 0x14b   : > { %604 = vst [vmem:[#allocation3 + $0x38] sm:$0xff] %v18597_v0  ;;  %605 = vst [vmem:[#allocation3 + $0x40] sm:$0x3] %v18597_v0  ;;  %14782 = vmatprep.subr.bf16.mxu0 %v17838_v45 }
 0x14c   : > { %606 = vst [vmem:[#allocation3 + $0x48] sm:$0xff] %v18597_v0  ;;  %607 = vst [vmem:[#allocation3 + $0x50] sm:$0xff] %v18597_v0  ;;  %14703 = vmatmul.mubr.bf16.vlgmr.msra.gmra.mrb[0].mxu1 %v877_v44 }
 0x14d   : > { %608 = vst [vmem:[#allocation3 + $0x58] sm:$0x3] %v18597_v0  ;;  %609 = vst [vmem:[#allocation3 + $0x60] sm:$0xff] %v18597_v0  ;;  %15119 = vmatpush3.bf16.msra.mxu1 %v17834_v37  ;;  %14706 = vmatprep.mubr.bf16.mxu1 %v878_v47 }
 0x14e   : > { %610 = vst [vmem:[#allocation3 + $0x68] sm:$0xff] %v18597_v0  ;;  %611 = vst [vmem:[#allocation3 + $0x70] sm:$0x3] %v18597_v0  ;;  %15120 = vmatprep.subr.bf16.mxu1 %v17835_v49 }
 0x14f   : > { %612 = vst [vmem:[#allocation3 + $0x78] sm:$0xff] %v18597_v0  ;;  %613 = vst [vmem:[#allocation3 + $0x80] sm:$0xff] %v18597_v0 }
 0x150   : > { %614 = vst [vmem:[#allocation3 + $0x88] sm:$0x3] %v18597_v0  ;;  %615 = vst [vmem:[#allocation3 + $0x90] sm:$0xff] %v18597_v0 }
 0x151   : > { %616 = vst [vmem:[#allocation3 + $0x98] sm:$0xff] %v18597_v0  ;;  %617 = vst [vmem:[#allocation3 + $0xa0] sm:$0x3] %v18597_v0  ;;  %15121 = vmatpush3.bf16.msra.mxu1 %v17835_v49  ;;  %v19338_v49 = vld [vmem:[#allocation12] sm:$0xff]  }
 0x152   : > { %618 = vst [vmem:[#allocation3 + $0xa8] sm:$0xff] %v18597_v0  ;;  %619 = vst [vmem:[#allocation3 + $0xb0] sm:$0xff] %v18597_v0  ;;  %15122 = vmatprep.subr.bf16.mxu1 %v17836_v50 }
 0x153   : > { %620 = vst [vmem:[#allocation3 + $0xb8] sm:$0x3] %v18597_v0  ;;  %621 = vst [vmem:[#allocation3 + $0xc0] sm:$0xff] %v18597_v0 }
 0x154   : > { %622 = vst [vmem:[#allocation3 + $0xc8] sm:$0xff] %v18597_v0  ;;  %623 = vst [vmem:[#allocation3 + $0xd0] sm:$0x3] %v18597_v0  ;;  %14707 = vmatmul.mubr.bf16.gmra.mrb[4].mxu1 %v879_v60 }
 0x155   : > { %624 = vst [vmem:[#allocation3 + $0xd8] sm:$0xff] %v18597_v0  ;;  %625 = vst [vmem:[#allocation3 + $0xe0] sm:$0xff] %v18597_v0  ;;  %14710 = vmatprep.mubr.bf16.mxu1 %v880_v63  ;;  %15123 = vmatpush3.bf16.msra.mxu1 %v17836_v50  ;;  %v19341_v50 = vld [vmem:[%s19032_s23 + $0x38] sm:$0xff] }
 0x156   : > { %626 = vst [vmem:[#allocation3 + $0xe8] sm:$0x3] %v18597_v0  ;;  %627 = vst [vmem:[#allocation3 + $0xf0] sm:$0xff] %v18597_v0 }
 0x157   : > { %628 = vst [vmem:[#allocation3 + $0xf8] sm:$0xff] %v18597_v0  ;;  %629 = vst [vmem:[#allocation3 + $0x100] sm:$0x3] %v18597_v0 }
 0x158   : > { %630 = vst [vmem:[#allocation3 + $0x108] sm:$0xff] %v18597_v0  ;;  %631 = vst [vmem:[#allocation3 + $0x110] sm:$0xff] %v18597_v0 }
 0x159   : > { %632 = vst [vmem:[#allocation3 + $0x118] sm:$0x3] %v18597_v0  ;;  %633 = vst [vmem:[#allocation3 + $0x120] sm:$0xff] %v18597_v0 }
 0x15a   : > { %634 = vst [vmem:[#allocation3 + $0x128] sm:$0xff] %v18597_v0  ;;  %635 = vst [vmem:[#allocation3 + $0x130] sm:$0x3] %v18597_v0 }
 0x15b   : > { %636 = vst [vmem:[#allocation3 + $0x138] sm:$0xff] %v18597_v0  ;;  %637 = vst [vmem:[#allocation3 + $0x140] sm:$0xff] %v18597_v0 }
 0x15c   : > { %638 = vst [vmem:[#allocation3 + $0x148] sm:$0x3] %v18597_v0  ;;  %639 = vst [vmem:[#allocation3 + $0x150] sm:$0xff] %v18597_v0  ;;  %14711 = vmatmul.mubr.bf16.gmra.mrb[8].mxu1 %v881_v14 }
 0x15d   : > { %640 = vst [vmem:[#allocation3 + $0x158] sm:$0xff] %v18597_v0  ;;  %641 = vst [vmem:[#allocation3 + $0x160] sm:$0x3] %v18597_v0  ;;  %14714 = vmatprep.mubr.bf16.mxu1 %v882_v19  ;;  %v888_v19 = vpack.c.bf16 %v19261_v3, %v19258_v2 }
 0x15e   : > { %642 = vst [vmem:[#allocation3 + $0x168] sm:$0xff] %v18597_v0  ;;  %643 = vst [vmem:[#allocation3 + $0x170] sm:$0xff] %v18597_v0 }
 0x15f   : > { %644 = vst [vmem:[#allocation3 + $0x178] sm:$0x3] %v18597_v0  ;;  %645 = vst [vmem:[#allocation3 + $0x180] sm:$0xff] %v18597_v0 }
 0x160   : > { %646 = vst [vmem:[#allocation3 + $0x188] sm:$0xff] %v18597_v0  ;;  %647 = vst [vmem:[#allocation3 + $0x190] sm:$0x3] %v18597_v0 }
 0x161   : > { %648 = vst [vmem:[#allocation3 + $0x198] sm:$0xff] %v18597_v0  ;;  %649 = vst [vmem:[#allocation3 + $0x1a0] sm:$0xff] %v18597_v0 }
 0x162   : > { %650 = vst [vmem:[#allocation3 + $0x1a8] sm:$0x3] %v18597_v0  ;;  %748 = vst [vmem:[#allocation2 + $0x19] sm:$0xff] %v19155_v16  ;;  %v17837_v0 = vld [vmem:[#allocation12 + $0x58] sm:$0xff]   ;;  %v19285_v16 = vld [vmem:[%s19025_s16 + $0xe0] sm:$0xff] }
 0x163   : > { %749 = vst [vmem:[#allocation2 + $0x21] sm:$0xff] %v19158_v18  ;;  %750 = vst [vmem:[#allocation2 + $0x31] sm:$0xff] %v19163_v20  ;;  %15124 = vmatprep.subr.bf16.mxu1 %v17837_v0 }
 0x164   : > { %751 = vst [vmem:[#allocation2 + $0x39] sm:$0xff] %v19166_v21  ;;  %752 = vst [vmem:[#allocation2 + $0x49] sm:$0xff] %v19171_v22  ;;  %15125 = vmatpush3.bf16.msra.mxu1 %v17837_v0  ;;  %v17842_v21 = vld [vmem:[#allocation12 + $0x68] sm:$0xff]  }
 0x165   : > { %753 = vst [vmem:[#allocation2 + $0x51] sm:$0xff] %v19174_v23  ;;  %754 = vst [vmem:[#allocation2 + $0x61] sm:$0xff] %v19179_v25  ;;  %15126 = vmatprep.subr.bf16.mxu1 %v17839_v11  ;;  %v17846_v22 = vld [vmem:[#allocation10 + $0xa8] sm:$0xff]  }
 0x166   : > { %755 = vst [vmem:[#allocation2 + $0x69] sm:$0xff] %v19182_v26  ;;  %756 = vst [vmem:[#allocation2 + $0x79] sm:$0xff] %v19186_v27  ;;  %v17845_v27 = vld [vmem:[#allocation12 + $0x70] sm:$0xff]  }
 0x167   : > { %757 = vst [vmem:[#allocation2 + $0x81] sm:$0xff] %v19189_v28  ;;  %758 = vst [vmem:[#allocation2 + $0x91] sm:$0xff] %v19195_v29  ;;  %v19302_v28 = vld [vmem:[%s19032_s23] sm:$0xff]  ;;  %v883_v29 = vpack.c.bf16 %v19206_v33, %v19201_v31 }
 0x168   : > { %759 = vst [vmem:[#allocation2 + $0x99] sm:$0xff] %v19198_v30  ;;  %760 = vst [vmem:[#allocation2 + $0xa9] sm:$0xff] %v19201_v31  ;;  %15127 = vmatpush3.bf16.msra.mxu1 %v17839_v11  ;;  %v17847_v30 = vld [vmem:[#allocation10 + $0xb0] sm:$0xff]   ;;  %v17848_v31 = vld [vmem:[#allocation12 + $0x78] sm:$0xff]  }
 0x169   : > { %761 = vst [vmem:[#allocation2 + $0xb1] sm:$0xff] %v19206_v33  ;;  %v782_v36 = vld [vmem:[#allocation2 + $0x18] sm:$0xff]  ;;  %762 = vst [vmem:[#allocation2 + $0xc1] sm:$0xff] %v19211_v35  ;;  %15128 = vmatprep.subr.bf16.mxu1 %v17842_v21  ;;  %v19318_v33 = vld [vmem:[%s19032_s23 + $0x10] sm:$0xff]  ;;  %14715 = vmatmul.mubr.bf16.gmra.mrb[12].mxu1 %v883_v29  ;;  %v890_v29 = vpack.c.bf16 %v19281_v15, %v19276_v13 }
 0x16a   : > { %v783_v39 = vld [vmem:[#allocation2 + $0x20] sm:$0xff]  ;;  %763 = vst [vmem:[#allocation2 + $0xc9] sm:$0xff] %v19214_v38  ;;  %v784_v42 = vld [vmem:[#allocation2 + $0x30] sm:$0xff]  ;;  %764 = vst [vmem:[#allocation2 + $0xd9] sm:$0xff] %v19219_v40  ;;  %14718 = vmatprep.mubr.bf16.mxu1 %v884_v34 }
 0x16b   : > { %v785_v43 = vld [vmem:[#allocation2 + $0x38] sm:$0xff]  ;;  %765 = vst [vmem:[#allocation2 + $0xe1] sm:$0xff] %v19222_v41  ;;  %v813_v46 = vpack.c.bf16 %v783_v39, %v782_v36  ;;  %v786_v53 = vld [vmem:[#allocation2 + $0x48] sm:$0xff]  ;;  %766 = vst [vmem:[#allocation2 + $0xf1] sm:$0xff] %v19233_v52 }
 0x16c   : > { %v19230_v48 = vpack.c.bf16 %v785_v43, %v784_v42  ;;  %v787_v56 = vld [vmem:[#allocation2 + $0x50] sm:$0xff]  ;;  %v788_v57 = vld [vmem:[#allocation2 + $0x60] sm:$0xff]  ;;  %767 = vst [vmem:[#allocation2 + $0xf9] sm:$0xff] %v19236_v54  ;;  %768 = vst [vmem:[#allocation2 + $0x109] sm:$0xff] %v19240_v55  ;;  %15129 = vmatpush3.bf16.msra.mxu1 %v17842_v21 }
 0x16d   : > { %14751 = vmatmul.mubr.bf16.vlgmr.msra.gmra.mrb[0].mxu0 %v813_v46  ;;  %v789_v59 = vld [vmem:[#allocation2 + $0x68] sm:$0xff]  ;;  %769 = vst [vmem:[#allocation2 + $0x111] sm:$0xff] %v19245_v58  ;;  %v19251_v62 = vpack.c.bf16 %v787_v56, %v786_v53  ;;  %770 = vst [vmem:[#allocation2 + $0x121] sm:$0xff] %v19258_v2  ;;  %v790_v6 = vld [vmem:[#allocation2 + $0x78] sm:$0xff]  ;;  %15130 = vmatprep.subr.bf16.mxu1 %v17845_v27 }
 0x16e   : > { %14754 = vmatprep.mubr.bf16.mxu0 %v19230_v48  ;;  %14783 = vmatpush3.bf16.msra.mxu0 %v17838_v45  ;;  %v19255_v1 = vpack.c.bf16 %v789_v59, %v788_v57  ;;  %771 = vst [vmem:[#allocation2 + $0x129] sm:$0xff] %v19261_v3  ;;  %772 = vst [vmem:[#allocation2 + $0x139] sm:$0xff] %v19264_v4  ;;  %v791_v8 = vld [vmem:[#allocation2 + $0x80] sm:$0xff]  ;;  %v792_v9 = vld [vmem:[#allocation2 + $0x90] sm:$0xff]  ;;  %v886_v59 = vpack.c.bf16 %v19236_v54, %v19233_v52 }
 0x16f   : > { %14784 = vmatprep.subr.bf16.mxu0 %v17840_v51  ;;  %773 = vst [vmem:[#allocation2 + $0x141] sm:$0xff] %v19269_v5  ;;  %v793_v10 = vld [vmem:[#allocation2 + $0x98] sm:$0xff]  ;;  %774 = vst [vmem:[#allocation2 + $0x151] sm:$0xff] %v19276_v13  ;;  %v19290_v18 = vpack.c.bf16 %v791_v8, %v790_v6  ;;  %v794_v23 = vld [vmem:[#allocation2 + $0xa8] sm:$0xff] }
 0x170   : > { %775 = vst [vmem:[#allocation2 + $0x159] sm:$0xff] %v19281_v15  ;;  %776 = vst [vmem:[#allocation2 + $0x169] sm:$0xff] %v19285_v16  ;;  %v19297_v20 = vpack.c.bf16 %v793_v10, %v792_v9  ;;  %v795_v24 = vld [vmem:[#allocation2 + $0xb0] sm:$0xff]  ;;  %v796_v25 = vld [vmem:[#allocation2 + $0xc0] sm:$0xff]  ;;  %15131 = vmatpush3.bf16.msra.mxu1 %v17845_v27  ;;  %v887_v9 = vpack.c.bf16 %v19245_v58, %v19240_v55 }
 0x171   : > { %777 = vst [vmem:[#allocation2 + $0x171] sm:$0xff] %v19288_v17  ;;  %v797_v26 = vld [vmem:[#allocation2 + $0xc8] sm:$0xff]  ;;  %3604 = vst [vmem:[#allocation3 + $0x19] sm:$0xff] %v19302_v28  ;;  %v19307_v32 = vpack.c.bf16 %v795_v24, %v794_v23  ;;  %v19321_v39 = vld [vmem:[%s19032_s23 + $0x18] sm:$0xff]  ;;  %15132 = vmatprep.subr.bf16.mxu1 %v17848_v31 }
 0x172   : > { %14785 = vmatpush3.bf16.msra.mxu0 %v17840_v51  ;;  %v19312_v36 = vld [vmem:[%s19032_s23 + $0x8] sm:$0xff]  ;;  %v19314_v37 = vpack.c.bf16 %v797_v26, %v796_v25  ;;  %v17849_v42 = vld [vmem:[#allocation10 + $0xb8] sm:$0xff]   ;;  %3606 = vst [vmem:[#allocation3 + $0x31] sm:$0xff] %v19318_v33  ;;  %3607 = vst [vmem:[#allocation3 + $0x39] sm:$0xff] %v19321_v39  ;;  %v885_v51 = vpack.c.bf16 %v19222_v41, %v19219_v40  ;;  %v889_v26 = vpack.c.bf16 %v19269_v5, %v19264_v4 }
 0x173   : > { %14786 = vmatprep.subr.bf16.mxu0 %v17841_v61  ;;  %3605 = vst [vmem:[#allocation3 + $0x21] sm:$0xff] %v19312_v36  ;;  %v19326_v35 = vld [vmem:[%s19032_s23 + $0x20] sm:$0xff]  ;;  %v19329_v38 = vld [vmem:[%s19032_s23 + $0x28] sm:$0xff]  ;;  %v798_v43 = vld [vmem:[#allocation2 + $0xd8] sm:$0xff] }
 0x174   : > { %3608 = vst [vmem:[#allocation3 + $0x49] sm:$0xff] %v19326_v35  ;;  %3609 = vst [vmem:[#allocation3 + $0x51] sm:$0xff] %v19329_v38  ;;  %v799_v44 = vld [vmem:[#allocation2 + $0xe0] sm:$0xff]  ;;  %v800_v45 = vld [vmem:[#allocation2 + $0xf0] sm:$0xff]  ;;  %15133 = vmatpush3.bf16.msra.mxu1 %v17848_v31 }
 0x175   : > { %14755 = vmatmul.mubr.bf16.gmra.mrb[4].mxu0 %v19251_v62  ;;  %v19336_v46 = vld [vmem:[%s19032_s23 + $0x30] sm:$0xff]  ;;  %v801_v47 = vld [vmem:[#allocation2 + $0xf8] sm:$0xff]  ;;  %3611 = vst [vmem:[#allocation3 + $0x69] sm:$0xff] %v19341_v50  ;;  %v19348_v53 = vld [vmem:[%s19032_s23 + $0x40] sm:$0xff]  ;;  %v19353_v57 = vpack.c.bf16 %v799_v44, %v798_v43  ;;  %15166 = vmatprep.subr.bf16.mxu1 %v19338_v49 }
 0x176   : > { %14758 = vmatprep.mubr.bf16.mxu0 %v19255_v1  ;;  %14787 = vmatpush3.bf16.msra.mxu0 %v17841_v61  ;;  %3610 = vst [vmem:[#allocation3 + $0x61] sm:$0xff] %v19336_v46  ;;  %v19351_v56 = vld [vmem:[%s19032_s23 + $0x48] sm:$0xff]  ;;  %3612 = vst [vmem:[#allocation3 + $0x79] sm:$0xff] %v19348_v53  ;;  %v19359_v60 = vpack.c.bf16 %v801_v47, %v800_v45  ;;  %v19362_v40 = vld [vmem:[%s19032_s23 + $0x50] sm:$0xff] }
 0x177   : > { %14788 = vmatprep.subr.bf16.mxu0 %v17843_v7  ;;  %3613 = vst [vmem:[#allocation3 + $0x81] sm:$0xff] %v19351_v56  ;;  %v19365_v41 = vld [vmem:[%s19032_s23 + $0x58] sm:$0xff]  ;;  %3614 = vst [vmem:[#allocation3 + $0x91] sm:$0xff] %v19362_v40  ;;  %v19371_v52 = vld [vmem:[%s19032_s23 + $0x60] sm:$0xff]  ;;  %14719 = vmatmul.mubr.bf16.gmra.mrb[16].mxu1 %v885_v51 }
 0x178   : > { %3615 = vst [vmem:[#allocation3 + $0x99] sm:$0xff] %v19365_v41  ;;  %v19374_v54 = vld [vmem:[%s19032_s23 + $0x68] sm:$0xff]  ;;  %3616 = vst [vmem:[#allocation3 + $0xa9] sm:$0xff] %v19371_v52  ;;  %14722 = vmatprep.mubr.bf16.mxu1 %v886_v59  ;;  %v803_v63 = vld [vmem:[#allocation2 + $0x110] sm:$0xff]  ;;  %v891_v59 = vpack.c.bf16 %v19288_v17, %v19285_v16 }
 0x179   : > { %v802_v61 = vld [vmem:[#allocation2 + $0x108] sm:$0xff]  ;;  %3617 = vst [vmem:[#allocation3 + $0xb1] sm:$0xff] %v19374_v54  ;;  %v804_v0 = vld [vmem:[#allocation2 + $0x120] sm:$0xff]  ;;  %v19381_v6 = vld [vmem:[%s19032_s23 + $0x70] sm:$0xff] }
 0x17a   : > { %14789 = vmatpush3.bf16.msra.mxu0 %v17843_v7  ;;  %v19384_v7 = vld [vmem:[%s19032_s23 + $0x78] sm:$0xff]  ;;  %v805_v8 = vld [vmem:[#allocation2 + $0x128] sm:$0xff]  ;;  %3618 = vst [vmem:[#allocation3 + $0xc1] sm:$0xff] %v19381_v6  ;;  %v19390_v10 = vld [vmem:[#allocation10 + $0xc0] sm:$0xff]   ;;  %v19398_v14 = vpack.c.bf16 %v803_v63, %v802_v61 }
 0x17b   : > { %14790 = vmatprep.subr.bf16.mxu0 %v17844_v12  ;;  %3619 = vst [vmem:[#allocation3 + $0xc9] sm:$0xff] %v19384_v7  ;;  %v19393_v11 = vld [vmem:[%s19032_s23 + $0x80] sm:$0xff]  ;;  %v19404_v21 = vpack.c.bf16 %v805_v8, %v804_v0  ;;  %v19408_v55 = vld [vmem:[%s19032_s23 + $0x90] sm:$0xff]  ;;  %v806_v58 = vld [vmem:[#allocation2 + $0x138] sm:$0xff] }
 0x17c   : > { %3620 = vst [vmem:[#allocation3 + $0xd9] sm:$0xff] %v19393_v11  ;;  %v19411_v23 = vld [vmem:[%s19032_s23 + $0x98] sm:$0xff]  ;;  %3622 = vst [vmem:[#allocation3 + $0xf1] sm:$0xff] %v19408_v55  ;;  %v808_v2 = vld [vmem:[#allocation2 + $0x150] sm:$0xff] }
 0x17d   : > { %14759 = vmatmul.mubr.bf16.gmra.mrb[8].mxu0 %v19290_v18  ;;  %3623 = vst [vmem:[#allocation3 + $0xf9] sm:$0xff] %v19411_v23  ;;  %v19418_v3 = vld [vmem:[%s19032_s23 + $0xa0] sm:$0xff]  ;;  %v19421_v24 = vld [vmem:[%s19032_s23 + $0xa8] sm:$0xff]  ;;  %v809_v25 = vld [vmem:[#allocation2 + $0x158] sm:$0xff] }
 0x17e   : > { %14762 = vmatprep.mubr.bf16.mxu0 %v19297_v20  ;;  %14791 = vmatpush3.bf16.msra.mxu0 %v17844_v12  ;;  %v19396_v12 = vld [vmem:[%s19032_s23 + $0x88] sm:$0xff]  ;;  %3624 = vst [vmem:[#allocation3 + $0x109] sm:$0xff] %v19418_v3  ;;  %3625 = vst [vmem:[#allocation3 + $0x111] sm:$0xff] %v19421_v24  ;;  %v19435_v34 = vld [vmem:[%s19032_s23 + $0xb8] sm:$0xff]  ;;  %v19437_v31 = vpack.c.bf16 %v809_v25, %v808_v2 }
 0x17f   : > { %14792 = vmatprep.subr.bf16.mxu0 %v17846_v22  ;;  %3621 = vst [vmem:[#allocation3 + $0xe1] sm:$0xff] %v19396_v12  ;;  %14723 = vmatmul.mubr.bf16.gmra.mrb[20].mxu1 %v887_v9  ;;  %3627 = vst [vmem:[#allocation3 + $0x129] sm:$0xff] %v19435_v34  ;;  %v19445_v4 = vld [vmem:[%s19032_s23 + $0xc8] sm:$0xff]  ;;  %v3700_v13 = vld [vmem:[#allocation3 + $0x1] sm:$0xff] }
 0x180   : > { %14726 = vmatprep.mubr.bf16.mxu1 %v888_v19  ;;  %v1327_v5 = vld [vmem:[#allocation2 + $0x2] sm:$0xff]  ;;  %3629 = vst [vmem:[#allocation3 + $0x141] sm:$0xff] %v19445_v4  ;;  %v811_v43 = vld [vmem:[#allocation2 + $0x170] sm:$0xff]  ;;  %v3701_v44 = vld [vmem:[#allocation3 + $0x9] sm:$0xff] }
 0x181   : > { %v810_v15 = vld [vmem:[#allocation2 + $0x168] sm:$0xff]  ;;  %v19452_v47 = vld [vmem:[%s19032_s23 + $0xd0] sm:$0xff]  ;;  %v19455_v51 = vld [vmem:[%s19032_s23 + $0xd8] sm:$0xff]  ;;  %v3732_v63 = vpack.c.bf16 %v3701_v44, %v3700_v13 }
 0x182   : > { %14793 = vmatpush3.bf16.msra.mxu0 %v17846_v22  ;;  %v807_v22 = vld [vmem:[#allocation2 + $0x140] sm:$0xff]  ;;  %v1328_v45 = vld [vmem:[#allocation2 + $0xa] sm:$0xff]  ;;  %3630 = vst [vmem:[#allocation3 + $0x151] sm:$0xff] %v19452_v47  ;;  %3631 = vst [vmem:[#allocation3 + $0x159] sm:$0xff] %v19455_v51  ;;  %v19461_v61 = vpack.c.bf16 %v811_v43, %v810_v15 }
 0x183   : > { %14794 = vmatprep.subr.bf16.mxu0 %v17847_v30  ;;  %v19427_v27 = vpack.c.bf16 %v807_v22, %v806_v58  ;;  %v19464_v0 = vld [vmem:[%s19032_s23 + $0xe0] sm:$0xff]  ;;  %v19467_v8 = vld [vmem:[%s19032_s23 + $0xe8] sm:$0xff]  ;;  %v1359_v9 = vpack.c.bf16 %v1328_v45, %v1327_v5  ;;  %v1331_v19 = vld [vmem:[#allocation2 + $0x32] sm:$0xff]  ;;  %v3733_v22 = vpack.c.bf16 %v19312_v36, %v19302_v28  ;;  %v3735_v28 = vpack.c.bf16 %v19329_v38, %v19326_v35 }
 0x184   : > { %3632 = vst [vmem:[#allocation3 + $0x169] sm:$0xff] %v19464_v0  ;;  %3633 = vst [vmem:[#allocation3 + $0x171] sm:$0xff] %v19467_v8  ;;  %v1329_v16 = vld [vmem:[#allocation2 + $0x1a] sm:$0xff]  ;;  %v1330_v17 = vld [vmem:[#allocation2 + $0x22] sm:$0xff] }
 0x185   : > { %14763 = vmatmul.mubr.bf16.gmra.mrb[12].mxu0 %v19307_v32  ;;  %v1332_v58 = vld [vmem:[#allocation2 + $0x3a] sm:$0xff]  ;;  %v1360_v2 = vpack.c.bf16 %v1330_v17, %v1329_v16  ;;  %v17856_v5 = vld [vmem:[#allocation10 + $0xc8] sm:$0xff]   ;;  %v1334_v15 = vld [vmem:[#allocation2 + $0x52] sm:$0xff] }
 0x186   : > { %14766 = vmatprep.mubr.bf16.mxu0 %v19314_v37  ;;  %14795 = vmatpush3.bf16.msra.mxu0 %v17847_v30  ;;  %v19432_v30 = vld [vmem:[%s19032_s23 + $0xb0] sm:$0xff]  ;;  %v1361_v25 = vpack.c.bf16 %v1332_v58, %v1331_v19  ;;  %v1335_v44 = vld [vmem:[#allocation2 + $0x62] sm:$0xff]  ;;  %v1340_v38 = vld [vmem:[#allocation2 + $0x9a] sm:$0xff]  ;;  %v3738_v19 = vpack.c.bf16 %v19365_v41, %v19362_v40 }
 0x187   : > { %14796 = vmatprep.subr.bf16.mxu0 %v17849_v42  ;;  %3626 = vst [vmem:[#allocation3 + $0x121] sm:$0xff] %v19432_v30  ;;  %14727 = vmatmul.mubr.bf16.gmra.mrb[24].mxu1 %v889_v26  ;;  %v3734_v26 = vpack.c.bf16 %v19321_v39, %v19318_v33  ;;  %v1333_v13 = vld [vmem:[#allocation2 + $0x4a] sm:$0xff]  ;;  %v3736_v39 = vpack.c.bf16 %v19341_v50, %v19336_v46  ;;  %v1339_v35 = vld [vmem:[#allocation2 + $0x92] sm:$0xff]  ;;  %v17855_v16 = vld [vmem:[#allocation12 + $0x20] sm:$0xff]  }
 0x188   : > { %14730 = vmatprep.mubr.bf16.mxu1 %v890_v29  ;;  %v17851_v29 = vld [vmem:[#allocation12 + $0x8] sm:$0xff]   ;;  %v17852_v43 = vld [vmem:[#allocation12 + $0x10] sm:$0xff]   ;;  %v1362_v33 = vpack.c.bf16 %v1334_v15, %v1333_v13  ;;  %v3737_v46 = vpack.c.bf16 %v19351_v56, %v19348_v53  ;;  %v17860_v50 = vld [vmem:[#allocation10 + $0xe0] sm:$0xff]   ;;  %v1365_v58 = vpack.c.bf16 %v1340_v38, %v1339_v35  ;;  %v3743_v35 = vpack.c.bf16 %v19421_v24, %v19418_v3 }
 0x189   : > { %v1336_v45 = vld [vmem:[#allocation2 + $0x6a] sm:$0xff]  ;;  %v1342_v56 = vld [vmem:[#allocation2 + $0xb2] sm:$0xff]  ;;  %v3746_v3 = vpack.c.bf16 %v19455_v51, %v19452_v47  ;;  %v3640_v47 = vld [vmem:[#allocation3 + $0x30] sm:$0xff] }
 0x18a   : > { %14797 = vmatpush3.bf16.msra.mxu0 %v17849_v42  ;;  %v19442_v42 = vld [vmem:[%s19032_s23 + $0xc0] sm:$0xff]  ;;  %v17857_v36 = vld [vmem:[#allocation10 + $0xd0] sm:$0xff]   ;;  %v3641_v51 = vld [vmem:[#allocation3 + $0x38] sm:$0xff] }
 0x18b   : > { %14830 = vmatprep.subr.bf16.mxu0 %v19390_v10  ;;  %3628 = vst [vmem:[#allocation3 + $0x139] sm:$0xff] %v19442_v42  ;;  %v1341_v53 = vld [vmem:[#allocation2 + $0xaa] sm:$0xff] }
 0x18c   : > { %v1344_v40 = vld [vmem:[#allocation2 + $0xca] sm:$0xff]  ;;  %v1366_v15 = vpack.c.bf16 %v1342_v56, %v1341_v53  ;;  %v18138_v53 = vld [vmem:[#allocation2] sm:$0xff] }
 0x18d   : > { %14767 = vmatmul.mubr.bf16.gmra.mrb[16].mxu0 %v19353_v57  ;;  %v17861_v41 = vld [vmem:[#allocation12 + $0x30] sm:$0xff]   ;;  %v3668_v56 = vpack.c.bf16 %v18138_v53, %v18138_v53 }
 0x18e   : > { %14770 = vmatprep.mubr.bf16.mxu0 %v19359_v60  ;;  %v17863_v13 = vld [vmem:[#allocation10 + $0xf0] sm:$0xff]  }
 0x18f   : > { %14731 = vmatmul.mubr.bf16.gmra.mrb[28].mxu1 %v891_v59  ;;  %v17853_v59 = vld [vmem:[#allocation12 + $0x18] sm:$0xff]  }
 0x190   : > { %15134 = vmatprep.mubr.bf16.mxu1 %v3732_v63  ;;  %v17859_v63 = vld [vmem:[#allocation10 + $0xd8] sm:$0xff]  }
 0x195   : > { %14771 = vmatmul.mubr.bf16.gmra.mrb[20].mxu0 %v19398_v14 }
 0x196   : > { %14774 = vmatprep.mubr.bf16.mxu0 %v19404_v21 }
 0x197   : > { %15135 = vmatmul.mubr.bf16.vlgmr.msra.gmra.mrb[32].mxu1 %v3733_v22  ;;  %v17858_v22 = vld [vmem:[#allocation12 + $0x28] sm:$0xff]  }
 0x198   : > { %15167 = vmatpush3.bf16.msra.mxu1 %v19338_v49  ;;  %15138 = vmatprep.mubr.bf16.mxu1 %v3734_v26  ;;  %v1363_v49 = vpack.c.bf16 %v1336_v45, %v1335_v44  ;;  %v17862_v26 = vld [vmem:[#allocation10 + $0xe8] sm:$0xff]   ;;  %v17864_v45 = vld [vmem:[#allocation12 + $0x38] sm:$0xff]  }
 0x199   : > { %15168 = vmatprep.subr.bf16.mxu1 %v17851_v29 }
 0x19c   : > { %15169 = vmatpush3.bf16.msra.mxu1 %v17851_v29  ;;  %v1343_v29 = vld [vmem:[#allocation2 + $0xc2] sm:$0xff] }
 0x19d   : > { %14775 = vmatmul.mubr.bf16.gmra.mrb[24].mxu0 %v19427_v27  ;;  %15170 = vmatprep.subr.bf16.mxu1 %v17852_v43  ;;  %v1367_v44 = vpack.c.bf16 %v1344_v40, %v1343_v29  ;;  %v3639_v29 = vld [vmem:[#allocation3 + $0x20] sm:$0xff] }
 0x19e   : > { %14778 = vmatprep.mubr.bf16.mxu0 %v19437_v31 }
 0x19f   : > { %15139 = vmatmul.mubr.bf16.gmra.mrb[36].mxu1 %v3735_v28  ;;  %v17865_v28 = vld [vmem:[#allocation10 + $0xf8] sm:$0xff]  }
 0x1a0   : > { %15142 = vmatprep.mubr.bf16.mxu1 %v3736_v39  ;;  %15171 = vmatpush3.bf16.msra.mxu1 %v17852_v43  ;;  %v3740_v43 = vpack.c.bf16 %v19384_v7, %v19381_v6  ;;  %v19492_v39 = vld [vmem:[#allocation12 + $0x80] sm:$0xff]   ;;  %v3741_v6 = vpack.c.bf16 %v19396_v12, %v19393_v11  ;;  %v1350_v11 = vld [vmem:[#allocation2 + $0x112] sm:$0xff] }
 0x1a1   : > { %15172 = vmatprep.subr.bf16.mxu1 %v17853_v59  ;;  %v19496_v7 = vld [vmem:[#allocation10 + $0x100] sm:$0xff]  }
 0x1a2   : > { %v1351_v12 = vld [vmem:[#allocation2 + $0x122] sm:$0xff] }
 0x1a4   : > { %15173 = vmatpush3.bf16.msra.mxu1 %v17853_v59  ;;  %v3742_v59 = vpack.c.bf16 %v19411_v23, %v19408_v55  ;;  %v3744_v55 = vpack.c.bf16 %v19435_v34, %v19432_v30  ;;  %v1357_v30 = vld [vmem:[#allocation2 + $0x16a] sm:$0xff]  ;;  %v1358_v34 = vld [vmem:[#allocation2 + $0x172] sm:$0xff] }
 0x1a5   : > { %14779 = vmatmul.mubr.bf16.gmra.mrb[28].mxu0 %v19461_v61  ;;  %15174 = vmatprep.subr.bf16.mxu1 %v17855_v16 }
 0x1a6   : > { %14798 = vmatprep.mubr.bf16.mxu0 %v1359_v9  ;;  %v1338_v9 = vld [vmem:[#allocation2 + $0x82] sm:$0xff] }
 0x1a7   : > { %15143 = vmatmul.mubr.bf16.gmra.mrb[40].mxu1 %v3737_v46  ;;  %v1354_v46 = vld [vmem:[#allocation2 + $0x142] sm:$0xff] }
 0x1a8   : > { %15146 = vmatprep.mubr.bf16.mxu1 %v3738_v19  ;;  %15175 = vmatpush3.bf16.msra.mxu1 %v17855_v16  ;;  %v1353_v16 = vld [vmem:[#allocation2 + $0x13a] sm:$0xff]  ;;  %v3745_v19 = vpack.c.bf16 %v19445_v4, %v19442_v42  ;;  %v3638_v4 = vld [vmem:[#allocation3 + $0x18] sm:$0xff] }
 0x1a9   : > { %15176 = vmatprep.subr.bf16.mxu1 %v17858_v22  ;;  %v19512_v40 = vpack.c.bf16 %v3639_v29, %v3638_v4  ;;  %v3666_v4 = vld [vmem:[#allocation3 + $0x168] sm:$0xff]  ;;  %v3667_v29 = vld [vmem:[#allocation3 + $0x170] sm:$0xff] }
 0x1ac   : > { %15177 = vmatpush3.bf16.msra.mxu1 %v17858_v22  ;;  %v1633_v22 = vld [vmem:[#allocation2 + $0x18] sm:$0xff] }
 0x1ad   : > { %14799 = vmatmul.mubr.bf16.vlgmr.msra.gmra.mrb[0].mxu0 %v1360_v2  ;;  %v713_v2 = vld [vmem:[%s19025_s16 + $0xf0] sm:$0xff]  ;;  %15178 = vmatprep.subr.bf16.mxu1 %v17861_v41 }
 0x1ae   : > { %14802 = vmatprep.mubr.bf16.mxu0 %v1361_v25  ;;  %14831 = vmatpush3.bf16.msra.mxu0 %v19390_v10  ;;  %v1337_v10 = vld [vmem:[#allocation2 + $0x7a] sm:$0xff]  ;;  %778 = vst [vmem:[#allocation2 + $0x181] sm:$0xff] %v713_v2 }
 0x1af   : > { %14832 = vmatprep.subr.bf16.mxu0 %v17856_v5  ;;  %v1364_v17 = vpack.c.bf16 %v1338_v9, %v1337_v10  ;;  %v714_v25 = vld [vmem:[%s19025_s16 + $0xf8] sm:$0xff]  ;;  %v1349_v10 = vld [vmem:[#allocation2 + $0x10a] sm:$0xff]  ;;  %v1634_v2 = vld [vmem:[#allocation2 + $0x20] sm:$0xff]  ;;  %s20611_s16 = scalar_lea.hbm %s20770_s30, %s13725_s5 }
 0x1b0   : > { %779 = vst [vmem:[#allocation2 + $0x189] sm:$0xff] %v714_v25  ;;  %15179 = vmatpush3.bf16.msra.mxu1 %v17861_v41  ;;  %v1352_v9 = vld [vmem:[#allocation2 + $0x12a] sm:$0xff]  ;;  %v1370_v38 = vpack.c.bf16 %v1350_v11, %v1349_v10  ;;  %v3747_v25 = vpack.c.bf16 %v19467_v8, %v19464_v0  ;;  %v1665_v42 = vpack.c.bf16 %v1634_v2, %v1633_v22  ;;  %v3643_v0 = vld [vmem:[#allocation3 + $0x50] sm:$0xff]  ;;  %v3650_v11 = vld [vmem:[#allocation3 + $0xa8] sm:$0xff] }
 0x1b1   : > { %15180 = vmatprep.subr.bf16.mxu1 %v17864_v45  ;;  %v1371_v23 = vpack.c.bf16 %v1352_v9, %v1351_v12  ;;  %v19514_v41 = vpack.c.bf16 %v3641_v51, %v3640_v47  ;;  %v3644_v8 = vld [vmem:[#allocation3 + $0x60] sm:$0xff]  ;;  %v17878_v10 = vld [vmem:[#allocation10 + $0x128] sm:$0xff]   ;;  %v3653_v12 = vld [vmem:[#allocation3 + $0xc8] sm:$0xff] }
 0x1b2   : > { %14833 = vmatpush3.bf16.msra.mxu0 %v17856_v5  ;;  %v3739_v5 = vpack.c.bf16 %v19374_v54, %v19371_v52  ;;  %v1347_v52 = vld [vmem:[#allocation2 + $0xf2] sm:$0xff]  ;;  %v1348_v54 = vld [vmem:[#allocation2 + $0xfa] sm:$0xff] }
 0x1b3   : > { %14834 = vmatprep.subr.bf16.mxu0 %v17857_v36  ;;  %v17877_v9 = vld [vmem:[#allocation12 + $0xb0] sm:$0xff]  }
 0x1b4   : > { %15147 = vmatmul.mubr.bf16.gmra.mrb[44].mxu1 %v3739_v5  ;;  %v17867_v5 = vld [vmem:[#allocation12 + $0x88] sm:$0xff]   ;;  %v3663_v2 = vld [vmem:[#allocation3 + $0x140] sm:$0xff] }
 0x1b5   : > { %14803 = vmatmul.mubr.bf16.gmra.mrb[4].mxu0 %v1362_v33  ;;  %15150 = vmatprep.mubr.bf16.mxu1 %v3740_v43  ;;  %v1346_v33 = vld [vmem:[#allocation2 + $0xe2] sm:$0xff]  ;;  %v3645_v43 = vld [vmem:[#allocation3 + $0x68] sm:$0xff] }
 0x1b6   : > { %14806 = vmatprep.mubr.bf16.mxu0 %v1363_v49  ;;  %14835 = vmatpush3.bf16.msra.mxu0 %v17857_v36  ;;  %v1345_v36 = vld [vmem:[#allocation2 + $0xda] sm:$0xff]  ;;  %v4183_v47 = vld [vmem:[#allocation3 + $0x2] sm:$0xff] }
 0x1b7   : > { %14836 = vmatprep.subr.bf16.mxu0 %v17859_v63  ;;  %v1368_v49 = vpack.c.bf16 %v1346_v33, %v1345_v36  ;;  %15181 = vmatpush3.bf16.msra.mxu1 %v17864_v45  ;;  %v17873_v45 = vld [vmem:[#allocation10 + $0x110] sm:$0xff]   ;;  %v19524_v36 = vpack.c.bf16 %v3645_v43, %v3644_v8  ;;  %v17869_v33 = vld [vmem:[#allocation12 + $0x98] sm:$0xff]   ;;  %v1663_v51 = vld [vmem:[#allocation2 + $0x180] sm:$0xff] }
 0x1b8   : > { %15214 = vmatprep.subr.bf16.mxu1 %v19492_v39 }
 0x1ba   : > { %14837 = vmatpush3.bf16.msra.mxu0 %v17859_v63  ;;  %v1369_v63 = vpack.c.bf16 %v1348_v54, %v1347_v52  ;;  %v3646_v52 = vld [vmem:[#allocation3 + $0x78] sm:$0xff]  ;;  %v3647_v54 = vld [vmem:[#allocation3 + $0x80] sm:$0xff] }
 0x1bb   : > { %14838 = vmatprep.subr.bf16.mxu0 %v17860_v50 }
 0x1bc   : > { %15151 = vmatmul.mubr.bf16.gmra.mrb[48].mxu1 %v3741_v6  ;;  %v17871_v6 = vld [vmem:[#allocation12 + $0xa0] sm:$0xff]  }
 0x1bd   : > { %14807 = vmatmul.mubr.bf16.gmra.mrb[8].mxu0 %v1364_v17  ;;  %15154 = vmatprep.mubr.bf16.mxu1 %v3742_v59  ;;  %v1356_v17 = vld [vmem:[#allocation2 + $0x15a] sm:$0xff] }
 0x1be   : > { %14810 = vmatprep.mubr.bf16.mxu0 %v1365_v58  ;;  %14839 = vmatpush3.bf16.msra.mxu0 %v17860_v50  ;;  %v1355_v50 = vld [vmem:[#allocation2 + $0x152] sm:$0xff]  ;;  %v1372_v58 = vpack.c.bf16 %v1354_v46, %v1353_v16  ;;  %v3654_v16 = vld [vmem:[#allocation3 + $0xd8] sm:$0xff]  ;;  %v3656_v46 = vld [vmem:[#allocation3 + $0xf0] sm:$0xff] }
 0x1bf   : > { %14840 = vmatprep.subr.bf16.mxu0 %v17862_v26  ;;  %v1373_v24 = vpack.c.bf16 %v1356_v17, %v1355_v50  ;;  %v3657_v50 = vld [vmem:[#allocation3 + $0xf8] sm:$0xff]  ;;  %v19546_v17 = vld [vmem:[#allocation12 + $0xc0] sm:$0xff]  }
 0x1c2   : > { %14841 = vmatpush3.bf16.msra.mxu0 %v17862_v26  ;;  %v1374_v26 = vpack.c.bf16 %v1358_v34, %v1357_v30  ;;  %v3661_v30 = vld [vmem:[#allocation3 + $0x128] sm:$0xff] }
 0x1c3   : > { %14842 = vmatprep.subr.bf16.mxu0 %v17863_v13 }
 0x1c4   : > { %15155 = vmatmul.mubr.bf16.gmra.mrb[52].mxu1 %v3743_v35  ;;  %v17879_v35 = vld [vmem:[#allocation10 + $0x130] sm:$0xff]  }
 0x1c5   : > { %14811 = vmatmul.mubr.bf16.gmra.mrb[12].mxu0 %v1366_v15  ;;  %15158 = vmatprep.mubr.bf16.mxu1 %v3744_v55  ;;  %v3642_v15 = vld [vmem:[#allocation3 + $0x48] sm:$0xff] }
 0x1c6   : > { %14814 = vmatprep.mubr.bf16.mxu0 %v1367_v44  ;;  %14843 = vmatpush3.bf16.msra.mxu0 %v17863_v13  ;;  %v17872_v13 = vld [vmem:[#allocation10 + $0x108] sm:$0xff]   ;;  %v17868_v44 = vld [vmem:[#allocation12 + $0x90] sm:$0xff]  }
 0x1c7   : > { %14844 = vmatprep.subr.bf16.mxu0 %v17865_v28 }
 0x1ca   : > { %14845 = vmatpush3.bf16.msra.mxu0 %v17865_v28  ;;  %v19522_v28 = vpack.c.bf16 %v3643_v0, %v3642_v15  ;;  %v19578_v15 = vpack.c.bf16 %v3667_v29, %v3666_v4  ;;  %v17887_v4 = vld [vmem:[#allocation12 + $0xe0] sm:$0xff]  }
 0x1cb   : > { %14878 = vmatprep.subr.bf16.mxu0 %v19496_v7  ;;  %v17892_v29 = vld [vmem:[#allocation10 + $0x160] sm:$0xff]  }
 0x1cc   : > { %15159 = vmatmul.mubr.bf16.gmra.mrb[56].mxu1 %v3745_v19  ;;  %v19548_v19 = vld [vmem:[#allocation10 + $0x140] sm:$0xff]  }
 0x1cd   : > { %14815 = vmatmul.mubr.bf16.gmra.mrb[16].mxu0 %v1368_v49  ;;  %15162 = vmatprep.mubr.bf16.mxu1 %v3746_v3  ;;  %v19530_v49 = vpack.c.bf16 %v3647_v54, %v3646_v52  ;;  %v19552_v3 = vpack.c.bf16 %v3657_v50, %v3656_v46  ;;  %v1944_v52 = vld [vmem:[#allocation2 + $0x51] sm:$0xff] }
 0x1ce   : > { %14818 = vmatprep.mubr.bf16.mxu0 %v1369_v63  ;;  %v17874_v63 = vld [vmem:[#allocation12 + $0xa8] sm:$0xff]  }
 0x1cf   : > { %v4188_v54 = vld [vmem:[#allocation3 + $0x3a] sm:$0xff] }
 0x1d4   : > { %15163 = vmatmul.mubr.bf16.gmra.mrb[60].mxu1 %v3747_v25  ;;  %v3664_v25 = vld [vmem:[#allocation3 + $0x150] sm:$0xff] }
 0x1d5   : > { %14819 = vmatmul.mubr.bf16.gmra.mrb[20].mxu0 %v1370_v38  ;;  %15182 = vmatprep.mubr.bf16.mxu1 %v3668_v56  ;;  %v745_v56 = vld [vmem:[%s19032_s23 + $0xf0] sm:$0xff] }
 0x1d6   : > { %14822 = vmatprep.mubr.bf16.mxu0 %v1371_v23  ;;  %v17880_v23 = vld [vmem:[#allocation12 + $0xb8] sm:$0xff]   ;;  %3634 = vst [vmem:[#allocation3 + $0x181] sm:$0xff] %v745_v56  ;;  %v4195_v56 = vld [vmem:[#allocation3 + $0x92] sm:$0xff] }
 0x1dc   : > { %15183 = vmatmul.mubr.bf16.vlgmr.msra.gmra.mrb[32].mxu1 %v19512_v40 }
 0x1dd   : > { %14823 = vmatmul.mubr.bf16.gmra.mrb[24].mxu0 %v1372_v58  ;;  %15215 = vmatpush3.bf16.msra.mxu1 %v19492_v39  ;;  %v3649_v39 = vld [vmem:[#allocation3 + $0x98] sm:$0xff] }
 0x1de   : > { %14826 = vmatprep.mubr.bf16.mxu0 %v1373_v24  ;;  %15186 = vmatprep.mubr.bf16.mxu1 %v19514_v41  ;;  %v3660_v24 = vld [vmem:[#allocation3 + $0x120] sm:$0xff] }
 0x1df   : > { %15216 = vmatprep.subr.bf16.mxu1 %v17867_v5  ;;  %v19562_v22 = vpack.c.bf16 %v3661_v30, %v3660_v24  ;;  %v17891_v24 = vld [vmem:[#allocation10 + $0x158] sm:$0xff]   ;;  %v4193_v30 = vld [vmem:[#allocation3 + $0x7a] sm:$0xff] }
 0x1e1   : > { %15217 = vmatpush3.bf16.msra.mxu1 %v17867_v5  ;;  %v1664_v5 = vld [vmem:[#allocation2 + $0x188] sm:$0xff] }
 0x1e2   : > { %15218 = vmatprep.subr.bf16.mxu1 %v17868_v44  ;;  %v1680_v0 = vpack.c.bf16 %v1664_v5, %v1663_v51  ;;  %v17890_v5 = vld [vmem:[#allocation12 + $0xe8] sm:$0xff]  }
 0x1e4   : > { %15187 = vmatmul.mubr.bf16.gmra.mrb[36].mxu1 %v19522_v28 }
 0x1e5   : > { %14827 = vmatmul.mubr.bf16.gmra.mrb[28].mxu0 %v1374_v26  ;;  %15190 = vmatprep.mubr.bf16.mxu1 %v19524_v36  ;;  %v3665_v26 = vld [vmem:[#allocation3 + $0x158] sm:$0xff] }
 0x1e6   : > { %14846 = vmatprep.mubr.bf16.mxu0 %v1665_v42  ;;  %15219 = vmatpush3.bf16.msra.mxu1 %v17868_v44  ;;  %v19570_v53 = vpack.c.bf16 %v3665_v26, %v3664_v25  ;;  %v746_v42 = vld [vmem:[%s19032_s23 + $0xf8] sm:$0xff]  ;;  %v4185_v44 = vld [vmem:[#allocation3 + $0x1a] sm:$0xff]  ;;  %s18500_s23 = scalar_lea.vmem %s20613_s10, 4096 }
 0x1e7   : > { %15220 = vmatprep.subr.bf16.mxu1 %v17869_v33  ;;  %3635 = vst [vmem:[#allocation3 + $0x189] sm:$0xff] %v746_v42  ;;  %v4194_v25 = vld [vmem:[#allocation3 + $0x82] sm:$0xff]  ;;  %v4196_v42 = vld [vmem:[#allocation3 + $0x9a] sm:$0xff]  ;;  %p18501_p1 = scmp.ne.s32.totalorder %s20613_s10, %s18500_s23  ;;  %p18508_p12 = scmp.lt.s32.totalorder %s18506_s1, %s18500_s23 }
 0x1e8   : > { %v1952_v26 = vld [vmem:[#allocation2 + $0xb1] sm:$0xff] }
 0x1e9   : > { %p18502_p8 = pnand %p18501_p1, %p20771_p0  ;;  %p18509_p2 = por %p18508_p12, %p18507_p7 }
 0x1ea   : > { %15221 = vmatpush3.bf16.msra.mxu1 %v17869_v33  ;;  %v1942_v33 = vld [vmem:[#allocation2 + $0x39] sm:$0xff] }
 0x1eb   : > { %15222 = vmatprep.subr.bf16.mxu1 %v17871_v6  ;;  %p18503_p4 = pneg %p18502_p8 }
 0x1ec   : > { %15191 = vmatmul.mubr.bf16.gmra.mrb[40].mxu1 %v19530_v49 }
 0x1ed   : > { %14847 = vmatmul.mubr.bf16.vlgmr.msra.gmra.mrb[0].mxu0 %v19230_v48  ;;  %v17875_v48 = vld [vmem:[#allocation10 + $0x118] sm:$0xff]   ;;  %p18510_p10 = pnand %p18509_p2, %p18503_p4 }
 0x1ee   : > { %14850 = vmatprep.mubr.bf16.mxu0 %v19251_v62  ;;  %14879 = vmatpush3.bf16.msra.mxu0 %v19496_v7  ;;  %v3648_v62 = vld [vmem:[#allocation3 + $0x90] sm:$0xff] }
 0x1ef   : > { %14880 = vmatprep.subr.bf16.mxu0 %v17872_v13  ;;  %v17876_v7 = vld [vmem:[#allocation10 + $0x120] sm:$0xff]   ;;  %v19532_v59 = vpack.c.bf16 %v3649_v39, %v3648_v62  ;;  %15223 = vmatpush3.bf16.msra.mxu1 %v17871_v6 }
 0x1f0   : > { %15224 = vmatprep.subr.bf16.mxu1 %v17874_v63 }
 0x1f1   : > { %15194 = vmatprep.mubr.bf16.mxu1 %v19532_v59 }
 0x1f2   : > { %14881 = vmatpush3.bf16.msra.mxu0 %v17872_v13  ;;  %v4184_v13 = vld [vmem:[#allocation3 + $0xa] sm:$0xff] }
 0x1f3   : > { %14882 = vmatprep.subr.bf16.mxu0 %v17873_v45  ;;  %15225 = vmatpush3.bf16.msra.mxu1 %v17874_v63  ;;  %v4215_v8 = vpack.c.bf16 %v4184_v13, %v4183_v47  ;;  %v17883_v63 = vld [vmem:[#allocation12 + $0xc8] sm:$0xff]   ;;  %v4221_v47 = vpack.c.bf16 %v4196_v42, %v4195_v56  ;;  %v4205_v56 = vld [vmem:[#allocation3 + $0x10a] sm:$0xff] }
 0x1f4   : > { %15226 = vmatprep.subr.bf16.mxu1 %v17877_v9  ;;  %v17894_v13 = vld [vmem:[#allocation10 + $0x168] sm:$0xff]  }
 0x1f5   : > { %14851 = vmatmul.mubr.bf16.gmra.mrb[4].mxu0 %v19255_v1  ;;  %v3651_v1 = vld [vmem:[#allocation3 + $0xb0] sm:$0xff] }
 0x1f6   : > { %14854 = vmatprep.mubr.bf16.mxu0 %v19290_v18  ;;  %14883 = vmatpush3.bf16.msra.mxu0 %v17873_v45  ;;  %v3652_v18 = vld [vmem:[#allocation3 + $0xc0] sm:$0xff]  ;;  %v19538_v38 = vpack.c.bf16 %v3651_v1, %v3650_v11  ;;  %v4189_v11 = vld [vmem:[#allocation3 + $0x4a] sm:$0xff]  ;;  %v4206_v42 = vld [vmem:[#allocation3 + $0x112] sm:$0xff] }
 0x1f7   : > { %14884 = vmatprep.subr.bf16.mxu0 %v17875_v48  ;;  %v19540_v55 = vpack.c.bf16 %v3653_v12, %v3652_v18  ;;  %15227 = vmatpush3.bf16.msra.mxu1 %v17877_v9  ;;  %v4186_v45 = vld [vmem:[#allocation3 + $0x22] sm:$0xff]  ;;  %v1945_v1 = vld [vmem:[#allocation2 + $0x61] sm:$0xff]  ;;  %v1946_v18 = vld [vmem:[#allocation2 + $0x69] sm:$0xff] }
 0x1f8   : > { %15195 = vmatmul.mubr.bf16.gmra.mrb[44].mxu1 %v19538_v38  ;;  %15228 = vmatprep.subr.bf16.mxu1 %v17880_v23  ;;  %v4216_v62 = vpack.c.bf16 %v4186_v45, %v4185_v44  ;;  %v4190_v12 = vld [vmem:[#allocation3 + $0x52] sm:$0xff]  ;;  %v1947_v9 = vld [vmem:[#allocation2 + $0x79] sm:$0xff]  ;;  %v1974_v50 = vpack.c.bf16 %v1946_v18, %v1945_v1 }
 0x1f9   : > { %15198 = vmatprep.mubr.bf16.mxu1 %v19540_v55  ;;  %v4218_v46 = vpack.c.bf16 %v4190_v12, %v4189_v11  ;;  %v1955_v44 = vld [vmem:[#allocation2 + $0xd9] sm:$0xff]  ;;  %v1956_v45 = vld [vmem:[#allocation2 + $0xe1] sm:$0xff]  ;;  %v1957_v12 = vld [vmem:[#allocation2 + $0xf1] sm:$0xff] }
 0x1fa   : > { %14885 = vmatpush3.bf16.msra.mxu0 %v17875_v48  ;;  %v1943_v48 = vld [vmem:[#allocation2 + $0x49] sm:$0xff]  ;;  %v1979_v11 = vpack.c.bf16 %v1956_v45, %v1955_v44  ;;  %v17896_v1 = vld [vmem:[#allocation12 + $0xf8] sm:$0xff]  }
 0x1fb   : > { %14886 = vmatprep.subr.bf16.mxu0 %v17876_v7  ;;  %15229 = vmatpush3.bf16.msra.mxu1 %v17880_v23  ;;  %v1973_v6 = vpack.c.bf16 %v1944_v52, %v1943_v48  ;;  %v4191_v23 = vld [vmem:[#allocation3 + $0x62] sm:$0xff]  ;;  %v4200_v48 = vld [vmem:[#allocation3 + $0xca] sm:$0xff] }
 0x1fc   : > { %15262 = vmatprep.subr.bf16.mxu1 %v19546_v17  ;;  %v17897_v18 = vld [vmem:[#allocation10 + $0x178] sm:$0xff]  }
 0x1fd   : > { %14855 = vmatmul.mubr.bf16.gmra.mrb[8].mxu0 %v19297_v20  ;;  %v17881_v20 = vld [vmem:[#allocation10 + $0x138] sm:$0xff]  }
 0x1fe   : > { %14858 = vmatprep.mubr.bf16.mxu0 %v19307_v32  ;;  %14887 = vmatpush3.bf16.msra.mxu0 %v17876_v7  ;;  %v3655_v32 = vld [vmem:[#allocation3 + $0xe0] sm:$0xff] }
 0x1ff   : > { %14888 = vmatprep.subr.bf16.mxu0 %v17878_v10  ;;  %v19550_v58 = vpack.c.bf16 %v3655_v32, %v3654_v16  ;;  %v17884_v16 = vld [vmem:[#allocation12 + $0xd0] sm:$0xff]  }
 0x200   : > { %v17889_v32 = vld [vmem:[#allocation10 + $0x150] sm:$0xff]  }
 0x201   : > { %15199 = vmatmul.mubr.bf16.gmra.mrb[48].mxu1 %v19550_v58  ;;  %v1965_v45 = vld [vmem:[#allocation2 + $0x151] sm:$0xff] }
 0x202   : > { %14889 = vmatpush3.bf16.msra.mxu0 %v17878_v10  ;;  %15202 = vmatprep.mubr.bf16.mxu1 %v19552_v3  ;;  %v17888_v10 = vld [vmem:[#allocation10 + $0x148] sm:$0xff]  }
 0x203   : > { %14890 = vmatprep.subr.bf16.mxu0 %v17879_v35 }
 0x205   : > { %14859 = vmatmul.mubr.bf16.gmra.mrb[12].mxu0 %v19314_v37  ;;  %v3658_v37 = vld [vmem:[#allocation3 + $0x108] sm:$0xff] }
 0x206   : > { %14862 = vmatprep.mubr.bf16.mxu0 %v19353_v57  ;;  %14891 = vmatpush3.bf16.msra.mxu0 %v17879_v35  ;;  %v3659_v57 = vld [vmem:[#allocation3 + $0x110] sm:$0xff] }
 0x207   : > { %14892 = vmatprep.subr.bf16.mxu0 %v17881_v20  ;;  %v19560_v34 = vpack.c.bf16 %v3659_v57, %v3658_v37  ;;  %v1948_v35 = vld [vmem:[#allocation2 + $0x81] sm:$0xff] }
 0x208   : > { %v1975_v57 = vpack.c.bf16 %v1948_v35, %v1947_v9  ;;  %v1958_v9 = vld [vmem:[#allocation2 + $0xf9] sm:$0xff]  ;;  %v4201_v35 = vld [vmem:[#allocation3 + $0xda] sm:$0xff] }
 0x209   : > { %15203 = vmatmul.mubr.bf16.gmra.mrb[52].mxu1 %v19560_v34 }
 0x20a   : > { %14893 = vmatpush3.bf16.msra.mxu0 %v17881_v20  ;;  %15206 = vmatprep.mubr.bf16.mxu1 %v19562_v22  ;;  %v4192_v20 = vld [vmem:[#allocation3 + $0x6a] sm:$0xff] }
 0x20b   : > { %14926 = vmatprep.subr.bf16.mxu0 %v19548_v19  ;;  %v4219_v37 = vpack.c.bf16 %v4192_v20, %v4191_v23  ;;  %v4202_v23 = vld [vmem:[#allocation3 + $0xe2] sm:$0xff]  ;;  %v1959_v20 = vld [vmem:[#allocation2 + $0x109] sm:$0xff] }
 0x20d   : > { %14863 = vmatmul.mubr.bf16.gmra.mrb[16].mxu0 %v19359_v60  ;;  %v3662_v60 = vld [vmem:[#allocation3 + $0x138] sm:$0xff] }
 0x20e   : > { %14866 = vmatprep.mubr.bf16.mxu0 %v19398_v14  ;;  %v19568_v14 = vpack.c.bf16 %v3663_v2, %v3662_v60  ;;  %v1949_v60 = vld [vmem:[#allocation2 + $0x91] sm:$0xff]  ;;  %v1950_v2 = vld [vmem:[#allocation2 + $0x99] sm:$0xff] }
 0x211   : > { %15207 = vmatmul.mubr.bf16.gmra.mrb[56].mxu1 %v19568_v14 }
 0x212   : > { %15210 = vmatprep.mubr.bf16.mxu1 %v19570_v53 }
 0x215   : > { %14867 = vmatmul.mubr.bf16.gmra.mrb[20].mxu0 %v19404_v21  ;;  %v1939_v21 = vld [vmem:[#allocation2 + $0x19] sm:$0xff] }
 0x216   : > { %14870 = vmatprep.mubr.bf16.mxu0 %v19427_v27  ;;  %v1940_v27 = vld [vmem:[#allocation2 + $0x21] sm:$0xff] }
 0x217   : > { %v1971_v43 = vpack.c.bf16 %v1940_v27, %v1939_v21  ;;  %v4220_v21 = vpack.c.bf16 %v4194_v25, %v4193_v30  ;;  %v1976_v27 = vpack.c.bf16 %v1950_v2, %v1949_v60  ;;  %v1980_v60 = vpack.c.bf16 %v1958_v9, %v1957_v12 }
 0x219   : > { %15211 = vmatmul.mubr.bf16.gmra.mrb[60].mxu1 %v19578_v15 }
 0x21a   : > { %15230 = vmatprep.mubr.bf16.mxu1 %v4215_v8  ;;  %v1954_v8 = vld [vmem:[#allocation2 + $0xc9] sm:$0xff] }
 0x21d   : > { %14871 = vmatmul.mubr.bf16.gmra.mrb[24].mxu0 %v19437_v31  ;;  %v1941_v31 = vld [vmem:[#allocation2 + $0x31] sm:$0xff] }
 0x21e   : > { %14874 = vmatprep.mubr.bf16.mxu0 %v19461_v61  ;;  %v4187_v61 = vld [vmem:[#allocation3 + $0x32] sm:$0xff]  ;;  %v1972_v39 = vpack.c.bf16 %v1942_v33, %v1941_v31  ;;  %v4199_v33 = vld [vmem:[#allocation3 + $0xc2] sm:$0xff] }
 0x21f   : > { %v4217_v7 = vpack.c.bf16 %v4188_v54, %v4187_v61  ;;  %v4198_v31 = vld [vmem:[#allocation3 + $0xb2] sm:$0xff]  ;;  %v19583_v52 = vpop.f32.mrb[0].mxu1  ;;  %v17893_v61 = vld [vmem:[#allocation12 + $0xf0] sm:$0xff]  }
 0x220   : > { %v19585_v54 = vpop.f32.mrb[1].mxu1 }
 0x221   : > { %15231 = vmatmul.mubr.bf16.vlgmr.msra.gmra.mrb[32].mxu1 %v4216_v62 }
 0x222   : > { %15263 = vmatpush3.bf16.msra.mxu1 %v19546_v17  ;;  %15234 = vmatprep.mubr.bf16.mxu1 %v4217_v7  ;;  %v17885_v17 = vld [vmem:[#allocation12 + $0xd8] sm:$0xff]  }
 0x223   : > { %15264 = vmatprep.subr.bf16.mxu1 %v17883_v63 }
 0x225   : > { %14875 = vmatmul.mubr.bf16.gmra.mrb[28].mxu0 %v1680_v0  ;;  %v1953_v0 = vld [vmem:[#allocation2 + $0xc1] sm:$0xff] }
 0x226   : > { %14894 = vmatprep.mubr.bf16.mxu0 %v1971_v43  ;;  %15265 = vmatpush3.bf16.msra.mxu1 %v17883_v63  ;;  %v4197_v43 = vld [vmem:[#allocation3 + $0xaa] sm:$0xff]  ;;  %v1978_v7 = vpack.c.bf16 %v1954_v8, %v1953_v0  ;;  %v4223_v63 = vpack.c.bf16 %v4200_v48, %v4199_v33  ;;  %v4209_v33 = vld [vmem:[#allocation3 + $0x13a] sm:$0xff]  ;;  %v4210_v48 = vld [vmem:[#allocation3 + $0x142] sm:$0xff] }
 0x227   : > { %15266 = vmatprep.subr.bf16.mxu1 %v17884_v16  ;;  %v4222_v62 = vpack.c.bf16 %v4198_v31, %v4197_v43 }
 0x229   : > { %15235 = vmatmul.mubr.bf16.gmra.mrb[36].mxu1 %v4218_v46  ;;  %v4204_v46 = vld [vmem:[#allocation3 + $0xfa] sm:$0xff] }
 0x22a   : > { %15238 = vmatprep.mubr.bf16.mxu1 %v4219_v37  ;;  %15267 = vmatpush3.bf16.msra.mxu1 %v17884_v16  ;;  %v1960_v16 = vld [vmem:[#allocation2 + $0x111] sm:$0xff]  ;;  %v19593_v37 = vld [vmem:[#allocation12 + $0x100] sm:$0xff]  }
 0x22b   : > { %15268 = vmatprep.subr.bf16.mxu1 %v17885_v17 }
 0x22d   : > { %14895 = vmatmul.mubr.bf16.vlgmr.msra.gmra.mrb[0].mxu0 %v1972_v39  ;;  %v17895_v39 = vld [vmem:[#allocation10 + $0x170] sm:$0xff]  }
 0x22e   : > { %14898 = vmatprep.mubr.bf16.mxu0 %v1973_v6  ;;  %14927 = vmatpush3.bf16.msra.mxu0 %v19548_v19  ;;  %v1951_v19 = vld [vmem:[#allocation2 + $0xa9] sm:$0xff]  ;;  %v19587_v6 = vpop.f32.mrb[2].mxu1 }
 0x22f   : > { %14928 = vmatprep.subr.bf16.mxu0 %v17888_v10  ;;  %v1977_v51 = vpack.c.bf16 %v1952_v26, %v1951_v19  ;;  %15269 = vmatpush3.bf16.msra.mxu1 %v17885_v17  ;;  %v4224_v17 = vpack.c.bf16 %v4202_v23, %v4201_v35  ;;  %v1981_v19 = vpack.c.bf16 %v1960_v16, %v1959_v20  ;;  %v1961_v26 = vld [vmem:[#allocation2 + $0x121] sm:$0xff] }
 0x230   : > { %15270 = vmatprep.subr.bf16.mxu1 %v17887_v4  ;;  %v4213_v16 = vld [vmem:[#allocation3 + $0x16a] sm:$0xff] }
 0x231   : > { %15239 = vmatmul.mubr.bf16.gmra.mrb[40].mxu1 %v4220_v21  ;;  %v4208_v21 = vld [vmem:[#allocation3 + $0x12a] sm:$0xff] }
 0x232   : > { %14929 = vmatpush3.bf16.msra.mxu0 %v17888_v10  ;;  %15242 = vmatprep.mubr.bf16.mxu1 %v4221_v47  ;;  %v19589_v10 = vpop.f32.mrb[3].mxu1  ;;  %v1963_v47 = vld [vmem:[#allocation2 + $0x139] sm:$0xff] }
 0x233   : > { %14930 = vmatprep.subr.bf16.mxu0 %v17889_v32  ;;  %15271 = vmatpush3.bf16.msra.mxu1 %v17887_v4  ;;  %v1962_v4 = vld [vmem:[#allocation2 + $0x129] sm:$0xff] }
 0x234   : > { %15272 = vmatprep.subr.bf16.mxu1 %v17890_v5  ;;  %v1982_v8 = vpack.c.bf16 %v1962_v4, %v1961_v26 }
 0x235   : > { %14899 = vmatmul.mubr.bf16.gmra.mrb[4].mxu0 %v1974_v50  ;;  %v19591_v50 = vpop.f32.mrb[4].mxu1 }
 0x236   : > { %14902 = vmatprep.mubr.bf16.mxu0 %v1975_v57  ;;  %14931 = vmatpush3.bf16.msra.mxu0 %v17889_v32  ;;  %v4203_v32 = vld [vmem:[#allocation3 + $0xf2] sm:$0xff]  ;;  %v19595_v57 = vpop.f32.mrb[5].mxu1 }
 0x237   : > { %14932 = vmatprep.subr.bf16.mxu0 %v17891_v24  ;;  %15273 = vmatpush3.bf16.msra.mxu1 %v17890_v5  ;;  %v19599_v30 = vpop.f32.mrb[6].mxu1  ;;  %v4225_v2 = vpack.c.bf16 %v4204_v46, %v4203_v32  ;;  %v4214_v32 = vld [vmem:[#allocation3 + $0x172] sm:$0xff]  ;;  %v2245_v46 = vld [vmem:[#allocation2 + $0x1a] sm:$0xff] }
 0x238   : > { %15274 = vmatprep.subr.bf16.mxu1 %v17893_v61  ;;  %v19601_v25 = vpop.f32.mrb[7].mxu1 }
 0x239   : > { %15243 = vmatmul.mubr.bf16.gmra.mrb[44].mxu1 %v4222_v62  ;;  %v4211_v62 = vld [vmem:[#allocation3 + $0x152] sm:$0xff] }
 0x23a   : > { %14933 = vmatpush3.bf16.msra.mxu0 %v17891_v24  ;;  %15246 = vmatprep.mubr.bf16.mxu1 %v4223_v63  ;;  %v19597_v24 = vld [vmem:[#allocation10 + $0x180] sm:$0xff]   ;;  %v1967_v63 = vld [vmem:[#allocation2 + $0x169] sm:$0xff] }
 0x23b   : > { %14934 = vmatprep.subr.bf16.mxu0 %v17892_v29  ;;  %15275 = vmatpush3.bf16.msra.mxu1 %v17893_v61  ;;  %v1966_v61 = vld [vmem:[#allocation2 + $0x159] sm:$0xff] }
 0x23c   : > { %15276 = vmatprep.subr.bf16.mxu1 %v17896_v1  ;;  %v1984_v9 = vpack.c.bf16 %v1966_v61, %v1965_v45 }
 0x23d   : > { %14903 = vmatmul.mubr.bf16.gmra.mrb[8].mxu0 %v1976_v27  ;;  %v19605_v27 = vpop.f32.mrb[8].mxu1 }
 0x23e   : > { %14906 = vmatprep.mubr.bf16.mxu0 %v1977_v51  ;;  %14935 = vmatpush3.bf16.msra.mxu0 %v17892_v29  ;;  %v4207_v29 = vld [vmem:[#allocation3 + $0x122] sm:$0xff]  ;;  %v1964_v51 = vld [vmem:[#allocation2 + $0x141] sm:$0xff]  ;;  %v19607_v5 = vpop.f32.mrb[9].mxu1 }
 0x23f   : > { %14936 = vmatprep.subr.bf16.mxu0 %v17894_v13  ;;  %15277 = vmatpush3.bf16.msra.mxu1 %v17896_v1  ;;  %v19609_v0 = vpop.f32.mrb[10].mxu1  ;;  %v4227_v43 = vpack.c.bf16 %v4208_v21, %v4207_v29  ;;  %v1983_v44 = vpack.c.bf16 %v1964_v51, %v1963_v47  ;;  %v2247_v47 = vld [vmem:[#allocation2 + $0x32] sm:$0xff]  ;;  %v2248_v51 = vld [vmem:[#allocation2 + $0x3a] sm:$0xff] }
 0x240   : > { %15310 = vmatprep.subr.bf16.mxu1 %v19593_v37  ;;  %v19611_v31 = vpop.f32.mrb[11].mxu1 }
 0x241   : > { %15247 = vmatmul.mubr.bf16.gmra.mrb[48].mxu1 %v4224_v17 }
 0x242   : > { %14937 = vmatpush3.bf16.msra.mxu0 %v17894_v13  ;;  %15250 = vmatprep.mubr.bf16.mxu1 %v4225_v2  ;;  %v4226_v13 = vpack.c.bf16 %v4206_v42, %v4205_v56  ;;  %v18139_v56 = vld [vmem:[#allocation2 + $0x181] sm:$0xff]  ;;  %v18140_v42 = vld [vmem:[#allocation2 + $0x189] sm:$0xff] }
 0x243   : > { %14938 = vmatprep.subr.bf16.mxu0 %v17895_v39  ;;  %v1986_v4 = vpack.c.bf16 %v18140_v42, %v18139_v56  ;;  %v2257_v56 = vld [vmem:[#allocation2 + $0xaa] sm:$0xff]  ;;  %v2258_v42 = vld [vmem:[#allocation2 + $0xb2] sm:$0xff] }
 0x245   : > { %14907 = vmatmul.mubr.bf16.gmra.mrb[12].mxu0 %v1978_v7  ;;  %v19613_v7 = vpop.f32.mrb[12].mxu1 }
 0x246   : > { %14910 = vmatprep.mubr.bf16.mxu0 %v1979_v11  ;;  %14939 = vmatpush3.bf16.msra.mxu0 %v17895_v39  ;;  %v4212_v39 = vld [vmem:[#allocation3 + $0x15a] sm:$0xff]  ;;  %v19615_v1 = vpop.f32.mrb[13].mxu1 }
 0x247   : > { %14940 = vmatprep.subr.bf16.mxu0 %v17897_v18  ;;  %v1968_v11 = vld [vmem:[#allocation2 + $0x171] sm:$0xff]  ;;  %v19617_v12 = vpop.f32.mrb[14].mxu1  ;;  %v4229_v35 = vpack.c.bf16 %v4212_v39, %v4211_v62  ;;  %v17899_v62 = vld [vmem:[#allocation12 + $0x108] sm:$0xff]  }
 0x248   : > { %v19619_v23 = vpop.f32.mrb[15].mxu1  ;;  %v1985_v20 = vpack.c.bf16 %v1968_v11, %v1967_v63  ;;  %v17904_v39 = vld [vmem:[#allocation10 + $0x188] sm:$0xff]   ;;  %v2253_v11 = vld [vmem:[#allocation2 + $0x7a] sm:$0xff] }
 0x249   : > { %15251 = vmatmul.mubr.bf16.gmra.mrb[52].mxu1 %v4226_v13  ;;  %v2252_v63 = vld [vmem:[#allocation2 + $0x6a] sm:$0xff] }
 0x24a   : > { %14941 = vmatpush3.bf16.msra.mxu0 %v17897_v18  ;;  %15254 = vmatprep.mubr.bf16.mxu1 %v4227_v43  ;;  %v4228_v18 = vpack.c.bf16 %v4210_v48, %v4209_v33  ;;  %v19621_v17 = vpop.f32.mrb[16].mxu1  ;;  %v2250_v43 = vld [vmem:[#allocation2 + $0x52] sm:$0xff]  ;;  %v2278_v33 = vpack.c.bf16 %v2248_v51, %v2247_v47  ;;  %v17908_v51 = vld [vmem:[#allocation10 + $0x1a0] sm:$0xff]  }
 0x24b   : > { %14974 = vmatprep.subr.bf16.mxu0 %v19597_v24  ;;  %v19623_v2 = vpop.f32.mrb[17].mxu1 }
 0x24c   : > { %v19625_v26 = vpop.f32.mrb[18].mxu1 }
 0x24d   : > { %14911 = vmatmul.mubr.bf16.gmra.mrb[16].mxu0 %v1980_v60  ;;  %v2246_v60 = vld [vmem:[#allocation2 + $0x22] sm:$0xff]  ;;  %v19627_v29 = vpop.f32.mrb[19].mxu1 }
 0x24e   : > { %14914 = vmatprep.mubr.bf16.mxu0 %v1981_v19  ;;  %v4230_v19 = vpack.c.bf16 %v4214_v32, %v4213_v16  ;;  %v2277_v21 = vpack.c.bf16 %v2246_v60, %v2245_v46  ;;  %v17901_v46 = vld [vmem:[#allocation12 + $0x118] sm:$0xff]  }
 0x24f   : > { %v17907_v60 = vld [vmem:[#allocation10 + $0x198] sm:$0xff]  }
 0x251   : > { %15255 = vmatmul.mubr.bf16.gmra.mrb[56].mxu1 %v4228_v18  ;;  %v17900_v18 = vld [vmem:[#allocation12 + $0x110] sm:$0xff]  }
 0x252   : > { %15258 = vmatprep.mubr.bf16.mxu1 %v4229_v35  ;;  %v19630_v13 = vpop.f32.mrb[20].mxu1  ;;  %v2254_v35 = vld [vmem:[#allocation2 + $0x82] sm:$0xff] }
 0x253   : > { %20744 = vst [vmem:[#allocation33_spill] sm:$0xff] %v19630_v13 }
 0x255   : > { %14915 = vmatmul.mubr.bf16.gmra.mrb[20].mxu0 %v1982_v8  ;;  %v2249_v8 = vld [vmem:[#allocation2 + $0x4a] sm:$0xff] }
 0x256   : > { %14918 = vmatprep.mubr.bf16.mxu0 %v1983_v44  ;;  %v19632_v44 = vpop.f32.mrb[21].mxu1  ;;  %v2279_v61 = vpack.c.bf16 %v2250_v43, %v2249_v8 }
 0x257   : > { %20745 = vst [vmem:[#allocation34_spill] sm:$0xff] %v19632_v44  ;;  %v19634_v45 = vpop.f32.mrb[22].mxu1 }
 0x258   : > { %20746 = vst [vmem:[#allocation35_spill] sm:$0xff] %v19634_v45  ;;  %v19636_v48 = vpop.f32.mrb[23].mxu1  ;;  %v3177_v45 = vld [vmem:[#allocation2 + $0xca] sm:$0xff] }
 0x259   : > { %15259 = vmatmul.mubr.bf16.gmra.mrb[60].mxu1 %v4230_v19  ;;  %20747 = vst [vmem:[#allocation36_spill] sm:$0xff] %v19636_v48  ;;  %v2256_v19 = vld [vmem:[#allocation2 + $0x9a] sm:$0xff] }
 0x25a   : > { %15278 = vmatprep.mubr.bf16.mxu1 %v19512_v40  ;;  %v2251_v40 = vld [vmem:[#allocation2 + $0x62] sm:$0xff] }
 0x25d   : > { %14919 = vmatmul.mubr.bf16.gmra.mrb[24].mxu0 %v1984_v9  ;;  %v19641_v9 = vpop.f32.mrb[24].mxu1 }
 0x25e   : > { %14922 = vmatprep.mubr.bf16.mxu0 %v1985_v20  ;;  %20748 = vst [vmem:[#allocation37_spill] sm:$0xff] %v19641_v9  ;;  %v19644_v20 = vpop.f32.mrb[25].mxu1 }
 0x25f   : > { %20749 = vst [vmem:[#allocation38_spill] sm:$0xff] %v19644_v20  ;;  %v19646_v16 = vpop.f32.mrb[26].mxu1  ;;  %v5413_v20 = vld [vmem:[#allocation3 + $0x68] sm:$0xff] }
 0x260   : > { %20750 = vst [vmem:[#allocation39_spill] sm:$0xff] %v19646_v16  ;;  %v19648_v32 = vpop.f32.mrb[27].mxu1  ;;  %v5412_v16 = vld [vmem:[#allocation3 + $0x60] sm:$0xff] }
 0x261   : > { %15279 = vmatmul.mubr.bf16.vlgmr.msra.gmra.mrb[32].mxu1 %v19514_v41  ;;  %v17905_v41 = vld [vmem:[#allocation10 + $0x190] sm:$0xff]   ;;  %20751 = vst [vmem:[#allocation40_spill] sm:$0xff] %v19648_v32  ;;  %v3165_v32 = vld [vmem:[#allocation2 + $0x3a] sm:$0xff] }
 0x262   : > { %15311 = vmatpush3.bf16.msra.mxu1 %v19593_v37  ;;  %15282 = vmatprep.mubr.bf16.mxu1 %v19522_v28  ;;  %v2280_v37 = vpack.c.bf16 %v2252_v63, %v2251_v40  ;;  %v2281_v28 = vpack.c.bf16 %v2254_v35, %v2253_v11  ;;  %v2261_v40 = vld [vmem:[#allocation2 + $0xda] sm:$0xff]  ;;  %v2262_v63 = vld [vmem:[#allocation2 + $0xe2] sm:$0xff]  ;;  %v17909_v11 = vld [vmem:[#allocation12 + $0x130] sm:$0xff]  }
 0x263   : > { %15312 = vmatprep.subr.bf16.mxu1 %v17899_v62 }
 0x265   : > { %14923 = vmatmul.mubr.bf16.gmra.mrb[28].mxu0 %v1986_v4  ;;  %v19652_v4 = vpop.f32.mrb[28].mxu1 }
 0x266   : > { %14942 = vmatprep.mubr.bf16.mxu0 %v2277_v21  ;;  %15313 = vmatpush3.bf16.msra.mxu1 %v17899_v62  ;;  %20752 = vst [vmem:[#allocation41_spill] sm:$0xff] %v19652_v4  ;;  %v17903_v21 = vld [vmem:[#allocation12 + $0x120] sm:$0xff]   ;;  %v19654_v47 = vpop.f32.mrb[29].mxu1  ;;  %v3164_v4 = vld [vmem:[#allocation2 + $0x32] sm:$0xff] }
 0x267   : > { %15314 = vmatprep.subr.bf16.mxu1 %v17900_v18  ;;  %20753 = vst [vmem:[#allocation42_spill] sm:$0xff] %v19654_v47  ;;  %v2259_v62 = vld [vmem:[#allocation2 + $0xc2] sm:$0xff] }
 0x268   : > { %v2887_v47 = vld [vmem:[#allocation2 + $0x189] sm:$0xff] }
 0x269   : > { %15283 = vmatmul.mubr.bf16.gmra.mrb[36].mxu1 %v19524_v36  ;;  %v19656_v36 = vpop.f32.mrb[30].mxu1 }
 0x26a   : > { %15286 = vmatprep.mubr.bf16.mxu1 %v19530_v49  ;;  %15315 = vmatpush3.bf16.msra.mxu1 %v17900_v18  ;;  %20754 = vst [vmem:[#allocation43_spill] sm:$0xff] %v19656_v36  ;;  %v19658_v43 = vpop.f32.mrb[31].mxu1  ;;  %v2283_v49 = vpack.c.bf16 %v2258_v42, %v2257_v56  ;;  %v17911_v18 = vld [vmem:[#allocation10 + $0x1b0] sm:$0xff]   ;;  %v2886_v36 = vld [vmem:[#allocation2 + $0x181] sm:$0xff] }
 0x26b   : > { %15316 = vmatprep.subr.bf16.mxu1 %v17901_v46  ;;  %20755 = vst [vmem:[#allocation44_spill] sm:$0xff] %v19658_v43  ;;  %v5130_v43 = vld [vmem:[#allocation3 + $0x172] sm:$0xff] }
 0x26d   : > { %14943 = vmatmul.mubr.bf16.vlgmr.msra.gmra.mrb[0].mxu0 %v2278_v33  ;;  %v17906_v33 = vld [vmem:[#allocation12 + $0x128] sm:$0xff]  }
 0x26e   : > { %14946 = vmatprep.mubr.bf16.mxu0 %v2279_v61  ;;  %14975 = vmatpush3.bf16.msra.mxu0 %v19597_v24  ;;  %v2255_v24 = vld [vmem:[#allocation2 + $0x92] sm:$0xff]  ;;  %v17910_v61 = vld [vmem:[#allocation10 + $0x1a8] sm:$0xff]  }
 0x26f   : > { %14976 = vmatprep.subr.bf16.mxu0 %v17904_v39  ;;  %v2282_v8 = vpack.c.bf16 %v2256_v19, %v2255_v24  ;;  %15317 = vmatpush3.bf16.msra.mxu1 %v17901_v46  ;;  %v2265_v46 = vld [vmem:[#allocation2 + $0x10a] sm:$0xff]  ;;  %v19664_v24 = vld [vmem:[#allocation12 + $0x140] sm:$0xff]  }
 0x270   : > { %15318 = vmatprep.subr.bf16.mxu1 %v17903_v21  ;;  %v19666_v19 = vld [vmem:[#allocation10 + $0x1c0] sm:$0xff]  }
 0x271   : > { %15287 = vmatmul.mubr.bf16.gmra.mrb[40].mxu1 %v19532_v59  ;;  %v17913_v59 = vld [vmem:[#allocation10 + $0x1b8] sm:$0xff]  }
 0x272   : > { %14977 = vmatpush3.bf16.msra.mxu0 %v17904_v39  ;;  %15290 = vmatprep.mubr.bf16.mxu1 %v19538_v38  ;;  %v2260_v39 = vld [vmem:[#allocation2 + $0xca] sm:$0xff]  ;;  %v2263_v38 = vld [vmem:[#allocation2 + $0xf2] sm:$0xff] }
 0x273   : > { %14978 = vmatprep.subr.bf16.mxu0 %v17905_v41  ;;  %15319 = vmatpush3.bf16.msra.mxu1 %v17903_v21  ;;  %v2284_v35 = vpack.c.bf16 %v2260_v39, %v2259_v62  ;;  %v2269_v21 = vld [vmem:[#allocation2 + $0x13a] sm:$0xff]  ;;  %v2274_v62 = vld [vmem:[#allocation2 + $0x172] sm:$0xff] }
 0x274   : > { %15320 = vmatprep.subr.bf16.mxu1 %v17906_v33 }
 0x275   : > { %14947 = vmatmul.mubr.bf16.gmra.mrb[4].mxu0 %v2280_v37  ;;  %v17912_v37 = vld [vmem:[#allocation12 + $0x138] sm:$0xff]  }
 0x276   : > { %14950 = vmatprep.mubr.bf16.mxu0 %v2281_v28  ;;  %14979 = vmatpush3.bf16.msra.mxu0 %v17905_v41  ;;  %v2285_v41 = vpack.c.bf16 %v2262_v63, %v2261_v40  ;;  %v2264_v28 = vld [vmem:[#allocation2 + $0xfa] sm:$0xff]  ;;  %v4519_v63 = vld [vmem:[#allocation3 + $0x180] sm:$0xff] }
 0x277   : > { %14980 = vmatprep.subr.bf16.mxu0 %v17907_v60  ;;  %15321 = vmatpush3.bf16.msra.mxu1 %v17906_v33  ;;  %v2286_v56 = vpack.c.bf16 %v2264_v28, %v2263_v38  ;;  %v2271_v33 = vld [vmem:[#allocation2 + $0x152] sm:$0xff] }
 0x278   : > { %15322 = vmatprep.subr.bf16.mxu1 %v17909_v11 }
 0x279   : > { %15291 = vmatmul.mubr.bf16.gmra.mrb[44].mxu1 %v19540_v55  ;;  %v2267_v55 = vld [vmem:[#allocation2 + $0x122] sm:$0xff] }
 0x27a   : > { %14981 = vmatpush3.bf16.msra.mxu0 %v17907_v60  ;;  %15294 = vmatprep.mubr.bf16.mxu1 %v19550_v58  ;;  %v2266_v60 = vld [vmem:[#allocation2 + $0x112] sm:$0xff]  ;;  %v2268_v58 = vld [vmem:[#allocation2 + $0x12a] sm:$0xff] }
 0x27b   : > { %14982 = vmatprep.subr.bf16.mxu0 %v17908_v51  ;;  %15323 = vmatpush3.bf16.msra.mxu1 %v17909_v11  ;;  %v2287_v42 = vpack.c.bf16 %v2266_v60, %v2265_v46  ;;  %v4520_v11 = vld [vmem:[#allocation3 + $0x188] sm:$0xff]  ;;  %v4797_v46 = vld [vmem:[#allocation3 + $0x31] sm:$0xff]  ;;  %v4798_v60 = vld [vmem:[#allocation3 + $0x39] sm:$0xff] }
 0x27c   : > { %15324 = vmatprep.subr.bf16.mxu1 %v17912_v37 }
 0x27d   : > { %14951 = vmatmul.mubr.bf16.gmra.mrb[8].mxu0 %v2282_v8  ;;  %v2288_v8 = vpack.c.bf16 %v2268_v58, %v2267_v55  ;;  %v4799_v55 = vld [vmem:[#allocation3 + $0x49] sm:$0xff]  ;;  %v4800_v58 = vld [vmem:[#allocation3 + $0x51] sm:$0xff] }
 0x27e   : > { %14954 = vmatprep.mubr.bf16.mxu0 %v2283_v49  ;;  %14983 = vmatpush3.bf16.msra.mxu0 %v17908_v51  ;;  %v2270_v51 = vld [vmem:[#allocation2 + $0x142] sm:$0xff] }
 0x27f   : > { %14984 = vmatprep.subr.bf16.mxu0 %v17910_v61  ;;  %15325 = vmatpush3.bf16.msra.mxu1 %v17912_v37  ;;  %v2289_v49 = vpack.c.bf16 %v2270_v51, %v2269_v21  ;;  %v4536_v37 = vpack.c.bf16 %v4520_v11, %v4519_v63  ;;  %v4828_v21 = vpack.c.bf16 %v4798_v60, %v4797_v46  ;;  %v2561_v63 = vld [vmem:[#allocation2 + $0x98] sm:$0xff]  ;;  %v4803_v11 = vld [vmem:[#allocation3 + $0x79] sm:$0xff] }
 0x280   : > { %15358 = vmatprep.subr.bf16.mxu1 %v19664_v24  ;;  %v2563_v46 = vld [vmem:[#allocation2 + $0xb0] sm:$0xff] }
 0x281   : > { %15295 = vmatmul.mubr.bf16.gmra.mrb[48].mxu1 %v19552_v3  ;;  %v2272_v3 = vld [vmem:[#allocation2 + $0x15a] sm:$0xff]  ;;  %v4806_v60 = vld [vmem:[#allocation3 + $0x99] sm:$0xff] }
 0x282   : > { %14985 = vmatpush3.bf16.msra.mxu0 %v17910_v61  ;;  %15298 = vmatprep.mubr.bf16.mxu1 %v19560_v34  ;;  %v2273_v61 = vld [vmem:[#allocation2 + $0x16a] sm:$0xff]  ;;  %v2290_v39 = vpack.c.bf16 %v2272_v3, %v2271_v33  ;;  %v2275_v34 = vld [vmem:[#allocation2 + $0x182] sm:$0xff] }
 0x283   : > { %14986 = vmatprep.subr.bf16.mxu0 %v17911_v18  ;;  %v2291_v40 = vpack.c.bf16 %v2274_v62, %v2273_v61  ;;  %v17915_v33 = vld [vmem:[#allocation12 + $0x148] sm:$0xff]   ;;  %v4801_v61 = vld [vmem:[#allocation3 + $0x61] sm:$0xff] }
 0x284   : > { %v17920_v3 = vld [vmem:[#allocation10 + $0x1c8] sm:$0xff]   ;;  %v2558_v62 = vld [vmem:[#allocation2 + $0x78] sm:$0xff] }
 0x285   : > { %14955 = vmatmul.mubr.bf16.gmra.mrb[12].mxu0 %v2284_v35  ;;  %v4796_v35 = vld [vmem:[#allocation3 + $0x21] sm:$0xff] }
 0x286   : > { %14958 = vmatprep.mubr.bf16.mxu0 %v2285_v41  ;;  %14987 = vmatpush3.bf16.msra.mxu0 %v17911_v18  ;;  %v4795_v18 = vld [vmem:[#allocation3 + $0x19] sm:$0xff]  ;;  %v2553_v41 = vld [vmem:[#allocation2 + $0x38] sm:$0xff] }
 0x287   : > { %14988 = vmatprep.subr.bf16.mxu0 %v17913_v59  ;;  %v4827_v38 = vpack.c.bf16 %v4796_v35, %v4795_v18  ;;  %v17916_v18 = vld [vmem:[#allocation12 + $0x150] sm:$0xff]  }
 0x288   : > { %v17921_v35 = vld [vmem:[#allocation10 + $0x1d0] sm:$0xff]  }
 0x289   : > { %15299 = vmatmul.mubr.bf16.gmra.mrb[52].mxu1 %v19562_v22  ;;  %v2276_v22 = vld [vmem:[#allocation2 + $0x18a] sm:$0xff] }
 0x28a   : > { %14989 = vmatpush3.bf16.msra.mxu0 %v17913_v59  ;;  %15302 = vmatprep.mubr.bf16.mxu1 %v19568_v14  ;;  %v2552_v14 = vld [vmem:[#allocation2 + $0x30] sm:$0xff]  ;;  %v2292_v59 = vpack.c.bf16 %v2276_v22, %v2275_v34 }
 0x28b   : > { %15022 = vmatprep.subr.bf16.mxu0 %v19666_v19  ;;  %v2584_v28 = vpack.c.bf16 %v2553_v41, %v2552_v14  ;;  %v2560_v34 = vld [vmem:[#allocation2 + $0x90] sm:$0xff] }
 0x28c   : > { %v4804_v22 = vld [vmem:[#allocation3 + $0x81] sm:$0xff] }
 0x28d   : > { %14959 = vmatmul.mubr.bf16.gmra.mrb[16].mxu0 %v2286_v56  ;;  %v2556_v56 = vld [vmem:[#allocation2 + $0x60] sm:$0xff] }
 0x28e   : > { %14962 = vmatprep.mubr.bf16.mxu0 %v2287_v42  ;;  %v2557_v42 = vld [vmem:[#allocation2 + $0x68] sm:$0xff] }
 0x291   : > { %15303 = vmatmul.mubr.bf16.gmra.mrb[56].mxu1 %v19570_v53  ;;  %v2554_v53 = vld [vmem:[#allocation2 + $0x48] sm:$0xff] }
 0x292   : > { %15306 = vmatprep.mubr.bf16.mxu1 %v19578_v15  ;;  %v2555_v15 = vld [vmem:[#allocation2 + $0x50] sm:$0xff] }
 0x293   : > { %v2585_v51 = vpack.c.bf16 %v2555_v15, %v2554_v53  ;;  %v2562_v53 = vld [vmem:[#allocation2 + $0xa8] sm:$0xff] }
 0x294   : > { %v2565_v15 = vld [vmem:[#allocation2 + $0xc8] sm:$0xff] }
 0x295   : > { %14963 = vmatmul.mubr.bf16.gmra.mrb[20].mxu0 %v2288_v8  ;;  %v2586_v8 = vpack.c.bf16 %v2557_v42, %v2556_v56  ;;  %v4807_v56 = vld [vmem:[#allocation3 + $0xa9] sm:$0xff]  ;;  %v4808_v42 = vld [vmem:[#allocation3 + $0xb1] sm:$0xff] }
 0x296   : > { %14966 = vmatprep.mubr.bf16.mxu0 %v2289_v49  ;;  %v4829_v49 = vpack.c.bf16 %v4800_v58, %v4799_v55  ;;  %v17919_v55 = vld [vmem:[#allocation12 + $0x160] sm:$0xff]  }
 0x297   : > { %v17924_v58 = vld [vmem:[#allocation10 + $0x1e0] sm:$0xff]  }
 0x299   : > { %15307 = vmatmul.mubr.bf16.gmra.mrb[60].mxu1 %v4536_v37  ;;  %v4831_v37 = vpack.c.bf16 %v4804_v22, %v4803_v11  ;;  %v4811_v11 = vld [vmem:[#allocation3 + $0xd9] sm:$0xff]  ;;  %v4812_v22 = vld [vmem:[#allocation3 + $0xe1] sm:$0xff] }
 0x29a   : > { %15326 = vmatprep.mubr.bf16.mxu1 %v4827_v38  ;;  %v17923_v38 = vld [vmem:[#allocation10 + $0x1d8] sm:$0xff]  }
 0x29d   : > { %14967 = vmatmul.mubr.bf16.gmra.mrb[24].mxu0 %v2290_v39  ;;  %v2559_v39 = vld [vmem:[#allocation2 + $0x80] sm:$0xff] }
 0x29e   : > { %14970 = vmatprep.mubr.bf16.mxu0 %v2291_v40  ;;  %v4802_v40 = vld [vmem:[#allocation3 + $0x69] sm:$0xff]  ;;  %v2587_v41 = vpack.c.bf16 %v2559_v39, %v2558_v62 }
 0x29f   : > { %v4830_v14 = vpack.c.bf16 %v4802_v40, %v4801_v61  ;;  %v4809_v61 = vld [vmem:[#allocation3 + $0xc1] sm:$0xff]  ;;  %v2567_v39 = vld [vmem:[#allocation2 + $0xe0] sm:$0xff] }
 0x2a0   : > { %v2566_v62 = vld [vmem:[#allocation2 + $0xd8] sm:$0xff] }
 0x2a1   : > { %15327 = vmatmul.mubr.bf16.vlgmr.msra.gmra.mrb[32].mxu1 %v4828_v21  ;;  %v4810_v40 = vld [vmem:[#allocation3 + $0xc9] sm:$0xff] }
 0x2a2   : > { %15359 = vmatpush3.bf16.msra.mxu1 %v19664_v24  ;;  %15330 = vmatprep.mubr.bf16.mxu1 %v4829_v49  ;;  %v17917_v24 = vld [vmem:[#allocation12 + $0x158] sm:$0xff]  }
 0x2a3   : > { %15360 = vmatprep.subr.bf16.mxu1 %v17915_v33 }
 0x2a5   : > { %14971 = vmatmul.mubr.bf16.gmra.mrb[28].mxu0 %v2292_v59  ;;  %v2588_v59 = vpack.c.bf16 %v2561_v63, %v2560_v34  ;;  %v2568_v34 = vld [vmem:[#allocation2 + $0xf0] sm:$0xff]  ;;  %v2569_v63 = vld [vmem:[#allocation2 + $0xf8] sm:$0xff] }
 0x2a6   : > { %14990 = vmatprep.mubr.bf16.mxu0 %v2584_v28  ;;  %15361 = vmatpush3.bf16.msra.mxu1 %v17915_v33  ;;  %v4805_v28 = vld [vmem:[#allocation3 + $0x91] sm:$0xff] }
 0x2a7   : > { %15362 = vmatprep.subr.bf16.mxu1 %v17916_v18  ;;  %v4832_v21 = vpack.c.bf16 %v4806_v60, %v4805_v28  ;;  %v17922_v33 = vld [vmem:[#allocation12 + $0x168] sm:$0xff]  }
 0x2a8   : > { %v4813_v28 = vld [vmem:[#allocation3 + $0xf1] sm:$0xff]  ;;  %v4814_v60 = vld [vmem:[#allocation3 + $0xf9] sm:$0xff] }
 0x2a9   : > { %15331 = vmatmul.mubr.bf16.gmra.mrb[36].mxu1 %v4830_v14  ;;  %v4834_v14 = vpack.c.bf16 %v4810_v40, %v4809_v61  ;;  %v4817_v61 = vld [vmem:[#allocation3 + $0x121] sm:$0xff]  ;;  %v4819_v40 = vld [vmem:[#allocation3 + $0x139] sm:$0xff] }
 0x2aa   : > { %15334 = vmatprep.mubr.bf16.mxu1 %v4831_v37  ;;  %15363 = vmatpush3.bf16.msra.mxu1 %v17916_v18  ;;  %v17925_v18 = vld [vmem:[#allocation12 + $0x170] sm:$0xff]   ;;  %v4835_v37 = vpack.c.bf16 %v4812_v22, %v4811_v11 }
 0x2ab   : > { %15364 = vmatprep.subr.bf16.mxu1 %v17917_v24 }
 0x2ad   : > { %14991 = vmatmul.mubr.bf16.vlgmr.msra.gmra.mrb[0].mxu0 %v2585_v51  ;;  %v2589_v51 = vpack.c.bf16 %v2563_v46, %v2562_v53  ;;  %v2570_v53 = vld [vmem:[#allocation2 + $0x108] sm:$0xff]  ;;  %v2571_v46 = vld [vmem:[#allocation2 + $0x110] sm:$0xff] }
 0x2ae   : > { %14994 = vmatprep.mubr.bf16.mxu0 %v2586_v8  ;;  %15023 = vmatpush3.bf16.msra.mxu0 %v19666_v19  ;;  %v2564_v19 = vld [vmem:[#allocation2 + $0xc0] sm:$0xff]  ;;  %v4833_v8 = vpack.c.bf16 %v4808_v42, %v4807_v56 }
 0x2af   : > { %15024 = vmatprep.subr.bf16.mxu0 %v17920_v3  ;;  %v2590_v49 = vpack.c.bf16 %v2565_v15, %v2564_v19  ;;  %15365 = vmatpush3.bf16.msra.mxu1 %v17917_v24  ;;  %v17928_v24 = vld [vmem:[#allocation12 + $0x178] sm:$0xff]   ;;  %v2572_v19 = vld [vmem:[#allocation2 + $0x120] sm:$0xff]  ;;  %v2573_v15 = vld [vmem:[#allocation2 + $0x128] sm:$0xff] }
 0x2b0   : > { %15366 = vmatprep.subr.bf16.mxu1 %v17919_v55  ;;  %v4815_v56 = vld [vmem:[#allocation3 + $0x109] sm:$0xff]  ;;  %v4816_v42 = vld [vmem:[#allocation3 + $0x111] sm:$0xff] }
 0x2b1   : > { %15335 = vmatmul.mubr.bf16.gmra.mrb[40].mxu1 %v4832_v21  ;;  %v4836_v21 = vpack.c.bf16 %v4814_v60, %v4813_v28  ;;  %v4824_v28 = vld [vmem:[#allocation3 + $0x171] sm:$0xff] }
 0x2b2   : > { %15025 = vmatpush3.bf16.msra.mxu0 %v17920_v3  ;;  %v17926_v3 = vld [vmem:[#allocation10 + $0x1e8] sm:$0xff]   ;;  %15338 = vmatprep.mubr.bf16.mxu1 %v4833_v8  ;;  %v4837_v8 = vpack.c.bf16 %v4816_v42, %v4815_v56  ;;  %v2858_v56 = vld [vmem:[#allocation2 + $0x31] sm:$0xff] }
 0x2b3   : > { %15026 = vmatprep.subr.bf16.mxu0 %v17921_v35  ;;  %15367 = vmatpush3.bf16.msra.mxu1 %v17919_v55  ;;  %v19678_v55 = vld [vmem:[#allocation12 + $0x180] sm:$0xff]   ;;  %v5101_v42 = vld [vmem:[#allocation3 + $0x1a] sm:$0xff] }
 0x2b4   : > { %15368 = vmatprep.subr.bf16.mxu1 %v17922_v33 }
 0x2b5   : > { %14995 = vmatmul.mubr.bf16.gmra.mrb[4].mxu0 %v2587_v41  ;;  %v2591_v41 = vpack.c.bf16 %v2567_v39, %v2566_v62  ;;  %v4818_v62 = vld [vmem:[#allocation3 + $0x129] sm:$0xff]  ;;  %v2576_v39 = vld [vmem:[#allocation2 + $0x150] sm:$0xff] }
 0x2b6   : > { %14998 = vmatprep.mubr.bf16.mxu0 %v2588_v59  ;;  %15027 = vmatpush3.bf16.msra.mxu0 %v17921_v35  ;;  %v17927_v35 = vld [vmem:[#allocation10 + $0x1f0] sm:$0xff]   ;;  %v2592_v59 = vpack.c.bf16 %v2569_v63, %v2568_v34  ;;  %v2577_v63 = vld [vmem:[#allocation2 + $0x158] sm:$0xff]  ;;  %v4838_v11 = vpack.c.bf16 %v4818_v62, %v4817_v61 }
 0x2b7   : > { %15028 = vmatprep.subr.bf16.mxu0 %v17923_v38  ;;  %15369 = vmatpush3.bf16.msra.mxu1 %v17922_v33  ;;  %v2574_v33 = vld [vmem:[#allocation2 + $0x138] sm:$0xff] }
 0x2b8   : > { %15370 = vmatprep.subr.bf16.mxu1 %v17925_v18  ;;  %v4820_v34 = vld [vmem:[#allocation3 + $0x141] sm:$0xff] }
 0x2b9   : > { %15339 = vmatmul.mubr.bf16.gmra.mrb[44].mxu1 %v4834_v14  ;;  %v2578_v14 = vld [vmem:[#allocation2 + $0x168] sm:$0xff] }
 0x2ba   : > { %15029 = vmatpush3.bf16.msra.mxu0 %v17923_v38  ;;  %v17929_v38 = vld [vmem:[#allocation10 + $0x1f8] sm:$0xff]   ;;  %15342 = vmatprep.mubr.bf16.mxu1 %v4835_v37  ;;  %v4821_v37 = vld [vmem:[#allocation3 + $0x151] sm:$0xff] }
 0x2bb   : > { %15030 = vmatprep.subr.bf16.mxu0 %v17924_v58  ;;  %15371 = vmatpush3.bf16.msra.mxu1 %v17925_v18  ;;  %v19684_v18 = vpack.c.bf16 %v4820_v34, %v4819_v40  ;;  %v5103_v40 = vld [vmem:[#allocation3 + $0x32] sm:$0xff] }
 0x2bc   : > { %15372 = vmatprep.subr.bf16.mxu1 %v17928_v24  ;;  %v2860_v34 = vld [vmem:[#allocation2 + $0x49] sm:$0xff] }
 0x2bd   : > { %14999 = vmatmul.mubr.bf16.gmra.mrb[8].mxu0 %v2589_v51  ;;  %v2593_v51 = vpack.c.bf16 %v2571_v46, %v2570_v53  ;;  %v2581_v53 = vld [vmem:[#allocation2 + $0x188] sm:$0xff] }
 0x2be   : > { %15002 = vmatprep.mubr.bf16.mxu0 %v2590_v49  ;;  %15031 = vmatpush3.bf16.msra.mxu0 %v17924_v58  ;;  %v19680_v58 = vld [vmem:[#allocation10 + $0x200] sm:$0xff]   ;;  %v2594_v49 = vpack.c.bf16 %v2573_v15, %v2572_v19 }
 0x2bf   : > { %15032 = vmatprep.subr.bf16.mxu0 %v17926_v3  ;;  %15373 = vmatpush3.bf16.msra.mxu1 %v17928_v24  ;;  %v2580_v24 = vld [vmem:[#allocation2 + $0x180] sm:$0xff] }
 0x2c0   : > { %15406 = vmatprep.subr.bf16.mxu1 %v19678_v55  ;;  %v2598_v15 = vpack.c.bf16 %v2581_v53, %v2580_v24  ;;  %v2864_v53 = vld [vmem:[#allocation2 + $0x79] sm:$0xff] }
 0x2c1   : > { %15343 = vmatmul.mubr.bf16.gmra.mrb[48].mxu1 %v4836_v21  ;;  %v5102_v21 = vld [vmem:[#allocation3 + $0x22] sm:$0xff] }
 0x2c2   : > { %15033 = vmatpush3.bf16.msra.mxu0 %v17926_v3  ;;  %15346 = vmatprep.mubr.bf16.mxu1 %v4837_v8  ;;  %v2575_v3 = vld [vmem:[#allocation2 + $0x140] sm:$0xff]  ;;  %v18141_v8 = vld [vmem:[#allocation3 + $0x181] sm:$0xff]  ;;  %v5133_v62 = vpack.c.bf16 %v5102_v21, %v5101_v42 }
 0x2c3   : > { %15034 = vmatprep.subr.bf16.mxu0 %v17927_v35  ;;  %v2595_v22 = vpack.c.bf16 %v2575_v3, %v2574_v33  ;;  %v18143_v3 = vld [vmem:[#allocation2] sm:$0xff]  ;;  %v5109_v21 = vld [vmem:[#allocation3 + $0x7a] sm:$0xff] }
 0x2c4   : > { %v19693_v61 = vpack.c.bf16 %v18143_v3, %v18143_v3  ;;  %v5108_v42 = vld [vmem:[#allocation3 + $0x6a] sm:$0xff] }
 0x2c5   : > { %15003 = vmatmul.mubr.bf16.gmra.mrb[12].mxu0 %v2591_v41  ;;  %v2579_v41 = vld [vmem:[#allocation2 + $0x170] sm:$0xff] }
 0x2c6   : > { %15006 = vmatprep.mubr.bf16.mxu0 %v2592_v59  ;;  %15035 = vmatpush3.bf16.msra.mxu0 %v17927_v35  ;;  %v2596_v35 = vpack.c.bf16 %v2577_v63, %v2576_v39  ;;  %v4822_v59 = vld [vmem:[#allocation3 + $0x159] sm:$0xff]  ;;  %v2597_v60 = vpack.c.bf16 %v2579_v41, %v2578_v14  ;;  %v2861_v63 = vld [vmem:[#allocation2 + $0x51] sm:$0xff]  ;;  %v5105_v14 = vld [vmem:[#allocation3 + $0x4a] sm:$0xff] }
 0x2c7   : > { %15036 = vmatprep.subr.bf16.mxu0 %v17929_v38  ;;  %v19687_v46 = vpack.c.bf16 %v4822_v59, %v4821_v37  ;;  %v5106_v41 = vld [vmem:[#allocation3 + $0x52] sm:$0xff]  ;;  %v2891_v59 = vpack.c.bf16 %v2861_v63, %v2860_v34  ;;  %v17933_v34 = vld [vmem:[#allocation12 + $0x198] sm:$0xff]  }
 0x2c8   : > { %v17939_v63 = vld [vmem:[#allocation10 + $0x218] sm:$0xff]  }
 0x2c9   : > { %15347 = vmatmul.mubr.bf16.gmra.mrb[52].mxu1 %v4838_v11  ;;  %v5104_v11 = vld [vmem:[#allocation3 + $0x3a] sm:$0xff] }
 0x2ca   : > { %15037 = vmatpush3.bf16.msra.mxu0 %v17929_v38  ;;  %15350 = vmatprep.mubr.bf16.mxu1 %v19684_v18  ;;  %v4823_v38 = vld [vmem:[#allocation3 + $0x169] sm:$0xff]  ;;  %v19696_v37 = vpack.c.bf16 %v5104_v11, %v5103_v40  ;;  %v5111_v11 = vld [vmem:[#allocation3 + $0x92] sm:$0xff] }
 0x2cb   : > { %15070 = vmatprep.subr.bf16.mxu0 %v19680_v58  ;;  %v19689_v19 = vpack.c.bf16 %v4824_v28, %v4823_v38  ;;  %v19698_v38 = vpack.c.bf16 %v5106_v41, %v5105_v14  ;;  %v17931_v28 = vld [vmem:[#allocation12 + $0x188] sm:$0xff]   ;;  %v5113_v14 = vld [vmem:[#allocation3 + $0xaa] sm:$0xff] }
 0x2cc   : > { %v5114_v41 = vld [vmem:[#allocation3 + $0xb2] sm:$0xff] }
 0x2cd   : > { %15007 = vmatmul.mubr.bf16.gmra.mrb[16].mxu0 %v2593_v51  ;;  %v2859_v51 = vld [vmem:[#allocation2 + $0x39] sm:$0xff] }
 0x2ce   : > { %15010 = vmatprep.mubr.bf16.mxu0 %v2594_v49  ;;  %v18142_v49 = vld [vmem:[#allocation3 + $0x189] sm:$0xff]  ;;  %v2890_v39 = vpack.c.bf16 %v2859_v51, %v2858_v56 }
 0x2cf   : > { %v4842_v33 = vpack.c.bf16 %v18142_v49, %v18141_v8  ;;  %v5107_v56 = vld [vmem:[#allocation3 + $0x62] sm:$0xff] }
 0x2d0   : > { %v5110_v51 = vld [vmem:[#allocation3 + $0x82] sm:$0xff]  ;;  %v19704_v3 = vpack.c.bf16 %v5108_v42, %v5107_v56  ;;  %v19712_v56 = vpack.c.bf16 %v5114_v41, %v5113_v14 }
 0x2d1   : > { %15351 = vmatmul.mubr.bf16.gmra.mrb[56].mxu1 %v19687_v46  ;;  %v17932_v8 = vld [vmem:[#allocation12 + $0x190] sm:$0xff]  }
 0x2d2   : > { %15354 = vmatprep.mubr.bf16.mxu1 %v19689_v19  ;;  %v2866_v49 = vld [vmem:[#allocation2 + $0x91] sm:$0xff] }
 0x2d5   : > { %15011 = vmatmul.mubr.bf16.gmra.mrb[20].mxu0 %v2595_v22  ;;  %v2862_v22 = vld [vmem:[#allocation2 + $0x61] sm:$0xff] }
 0x2d6   : > { %15014 = vmatprep.mubr.bf16.mxu0 %v2596_v35  ;;  %v2863_v35 = vld [vmem:[#allocation2 + $0x69] sm:$0xff] }
 0x2d7   : > { %v2892_v24 = vpack.c.bf16 %v2863_v35, %v2862_v22  ;;  %v5112_v22 = vld [vmem:[#allocation3 + $0x9a] sm:$0xff] }
 0x2d8   : > { %v2869_v35 = vld [vmem:[#allocation2 + $0xb1] sm:$0xff] }
 0x2d9   : > { %15355 = vmatmul.mubr.bf16.gmra.mrb[60].mxu1 %v4842_v33  ;;  %v2867_v33 = vld [vmem:[#allocation2 + $0x99] sm:$0xff] }
 0x2da   : > { %15374 = vmatprep.mubr.bf16.mxu1 %v5133_v62  ;;  %v17937_v62 = vld [vmem:[#allocation10 + $0x210] sm:$0xff]   ;;  %v2894_v40 = vpack.c.bf16 %v2867_v33, %v2866_v49  ;;  %v5116_v33 = vld [vmem:[#allocation3 + $0xca] sm:$0xff] }
 0x2db   : > { %v5115_v49 = vld [vmem:[#allocation3 + $0xc2] sm:$0xff] }
 0x2dd   : > { %15015 = vmatmul.mubr.bf16.gmra.mrb[24].mxu0 %v2597_v60  ;;  %v17936_v60 = vld [vmem:[#allocation10 + $0x208] sm:$0xff]  }
 0x2de   : > { %15018 = vmatprep.mubr.bf16.mxu0 %v2598_v15  ;;  %v2865_v15 = vld [vmem:[#allocation2 + $0x81] sm:$0xff] }
 0x2e1   : > { %15375 = vmatmul.mubr.bf16.vlgmr.msra.gmra.mrb[32].mxu1 %v19696_v37 }
 0x2e2   : > { %15407 = vmatpush3.bf16.msra.mxu1 %v19678_v55  ;;  %15378 = vmatprep.mubr.bf16.mxu1 %v19698_v38  ;;  %v19706_v55 = vpack.c.bf16 %v5110_v51, %v5109_v21  ;;  %v17938_v21 = vld [vmem:[#allocation12 + $0x1a8] sm:$0xff]  }
 0x2e3   : > { %15408 = vmatprep.subr.bf16.mxu1 %v17931_v28  ;;  %v17942_v51 = vld [vmem:[#allocation10 + $0x228] sm:$0xff]  }
 0x2e5   : > { %15019 = vmatmul.mubr.bf16.gmra.mrb[28].mxu0 %v19693_v61 }
 0x2e6   : > { %15038 = vmatprep.mubr.bf16.mxu0 %v2890_v39  ;;  %v2893_v39 = vpack.c.bf16 %v2865_v15, %v2864_v53  ;;  %15409 = vmatpush3.bf16.msra.mxu1 %v17931_v28  ;;  %v17935_v28 = vld [vmem:[#allocation12 + $0x1a0] sm:$0xff]   ;;  %v19710_v53 = vpack.c.bf16 %v5112_v22, %v5111_v11  ;;  %v17941_v11 = vld [vmem:[#allocation12 + $0x1b0] sm:$0xff]  }
 0x2e7   : > { %15410 = vmatprep.subr.bf16.mxu1 %v17932_v8  ;;  %v17943_v22 = vld [vmem:[#allocation10 + $0x230] sm:$0xff]  }
 0x2e9   : > { %15379 = vmatmul.mubr.bf16.gmra.mrb[36].mxu1 %v19704_v3 }
 0x2ea   : > { %15382 = vmatprep.mubr.bf16.mxu1 %v19706_v55  ;;  %15411 = vmatpush3.bf16.msra.mxu1 %v17932_v8  ;;  %v2872_v8 = vld [vmem:[#allocation2 + $0xd9] sm:$0xff] }
 0x2eb   : > { %15412 = vmatprep.subr.bf16.mxu1 %v17933_v34 }
 0x2ed   : > { %15039 = vmatmul.mubr.bf16.vlgmr.msra.gmra.mrb[0].mxu0 %v2891_v59  ;;  %v2870_v59 = vld [vmem:[#allocation2 + $0xc1] sm:$0xff] }
 0x2ee   : > { %15042 = vmatprep.mubr.bf16.mxu0 %v2892_v24  ;;  %15071 = vmatpush3.bf16.msra.mxu0 %v19680_v58  ;;  %v2868_v58 = vld [vmem:[#allocation2 + $0xa9] sm:$0xff] }
 0x2ef   : > { %15072 = vmatprep.subr.bf16.mxu0 %v17936_v60  ;;  %v2871_v24 = vld [vmem:[#allocation2 + $0xc9] sm:$0xff]  ;;  %v2895_v15 = vpack.c.bf16 %v2869_v35, %v2868_v58  ;;  %15413 = vmatpush3.bf16.msra.mxu1 %v17933_v34  ;;  %v2874_v58 = vld [vmem:[#allocation2 + $0xf1] sm:$0xff]  ;;  %v2875_v34 = vld [vmem:[#allocation2 + $0xf9] sm:$0xff] }
 0x2f0   : > { %v2896_v42 = vpack.c.bf16 %v2871_v24, %v2870_v59  ;;  %15414 = vmatprep.subr.bf16.mxu1 %v17935_v28  ;;  %v2898_v41 = vpack.c.bf16 %v2875_v34, %v2874_v58  ;;  %v17944_v59 = vld [vmem:[#allocation12 + $0x1b8] sm:$0xff]  }
 0x2f1   : > { %15383 = vmatmul.mubr.bf16.gmra.mrb[40].mxu1 %v19710_v53  ;;  %v17945_v24 = vld [vmem:[#allocation10 + $0x238] sm:$0xff]  }
 0x2f2   : > { %15073 = vmatpush3.bf16.msra.mxu0 %v17936_v60  ;;  %v17940_v60 = vld [vmem:[#allocation10 + $0x220] sm:$0xff]   ;;  %15386 = vmatprep.mubr.bf16.mxu1 %v19712_v56 }
 0x2f3   : > { %15074 = vmatprep.subr.bf16.mxu0 %v17937_v62  ;;  %15415 = vmatpush3.bf16.msra.mxu1 %v17935_v28  ;;  %v2876_v28 = vld [vmem:[#allocation2 + $0x109] sm:$0xff]  ;;  %v2880_v34 = vld [vmem:[#allocation2 + $0x139] sm:$0xff] }
 0x2f4   : > { %15416 = vmatprep.subr.bf16.mxu1 %v17938_v21 }
 0x2f5   : > { %15043 = vmatmul.mubr.bf16.gmra.mrb[4].mxu0 %v2893_v39  ;;  %v5117_v39 = vld [vmem:[#allocation3 + $0xda] sm:$0xff] }
 0x2f6   : > { %15046 = vmatprep.mubr.bf16.mxu0 %v2894_v40  ;;  %15075 = vmatpush3.bf16.msra.mxu0 %v17937_v62  ;;  %v2873_v62 = vld [vmem:[#allocation2 + $0xe1] sm:$0xff]  ;;  %v5118_v40 = vld [vmem:[#allocation3 + $0xe2] sm:$0xff] }
 0x2f7   : > { %15076 = vmatprep.subr.bf16.mxu0 %v17939_v63  ;;  %v2897_v35 = vpack.c.bf16 %v2873_v62, %v2872_v8  ;;  %v19718_v14 = vpack.c.bf16 %v5118_v40, %v5117_v39  ;;  %15417 = vmatpush3.bf16.msra.mxu1 %v17938_v21  ;;  %v5121_v8 = vld [vmem:[#allocation3 + $0x10a] sm:$0xff]  ;;  %v2879_v21 = vld [vmem:[#allocation2 + $0x129] sm:$0xff] }
 0x2f8   : > { %15418 = vmatprep.subr.bf16.mxu1 %v17941_v11 }
 0x2fa   : > { %15077 = vmatpush3.bf16.msra.mxu0 %v17939_v63  ;;  %v19716_v63 = vpack.c.bf16 %v5116_v33, %v5115_v49  ;;  %v5122_v49 = vld [vmem:[#allocation3 + $0x112] sm:$0xff] }
 0x2fb   : > { %15078 = vmatprep.subr.bf16.mxu0 %v17940_v60  ;;  %15419 = vmatpush3.bf16.msra.mxu1 %v17941_v11  ;;  %v2878_v33 = vld [vmem:[#allocation2 + $0x121] sm:$0xff]  ;;  %v19726_v40 = vpack.c.bf16 %v5122_v49, %v5121_v8  ;;  %v5123_v11 = vld [vmem:[#allocation3 + $0x122] sm:$0xff]  ;;  %v2884_v49 = vld [vmem:[#allocation2 + $0x169] sm:$0xff] }
 0x2fc   : > { %15387 = vmatmul.mubr.bf16.gmra.mrb[44].mxu1 %v19716_v63  ;;  %15420 = vmatprep.subr.bf16.mxu1 %v17944_v59  ;;  %v2900_v58 = vpack.c.bf16 %v2879_v21, %v2878_v33  ;;  %v5127_v33 = vld [vmem:[#allocation3 + $0x152] sm:$0xff]  ;;  %v5128_v21 = vld [vmem:[#allocation3 + $0x15a] sm:$0xff] }
 0x2fd   : > { %15047 = vmatmul.mubr.bf16.gmra.mrb[8].mxu0 %v2895_v15  ;;  %15390 = vmatprep.mubr.bf16.mxu1 %v19718_v14  ;;  %v5120_v15 = vld [vmem:[#allocation3 + $0xfa] sm:$0xff] }
 0x2fe   : > { %15050 = vmatprep.mubr.bf16.mxu0 %v2896_v42  ;;  %15079 = vmatpush3.bf16.msra.mxu0 %v17940_v60  ;;  %v5119_v60 = vld [vmem:[#allocation3 + $0xf2] sm:$0xff]  ;;  %v2877_v42 = vld [vmem:[#allocation2 + $0x111] sm:$0xff] }
 0x2ff   : > { %15080 = vmatprep.subr.bf16.mxu0 %v17942_v51  ;;  %v19724_v62 = vpack.c.bf16 %v5120_v15, %v5119_v60  ;;  %v2899_v39 = vpack.c.bf16 %v2877_v42, %v2876_v28  ;;  %15421 = vmatpush3.bf16.msra.mxu1 %v17944_v59  ;;  %v5126_v60 = vld [vmem:[#allocation3 + $0x142] sm:$0xff] }
 0x300   : > { %v2882_v28 = vld [vmem:[#allocation2 + $0x151] sm:$0xff]  ;;  %v2883_v15 = vld [vmem:[#allocation2 + $0x159] sm:$0xff] }
 0x301   : > { %v2902_v8 = vpack.c.bf16 %v2883_v15, %v2882_v28  ;;  %v5132_v28 = vld [vmem:[#allocation3 + $0x18a] sm:$0xff] }
 0x302   : > { %15081 = vmatpush3.bf16.msra.mxu0 %v17942_v51  ;;  %v19722_v51 = vld [vmem:[#allocation12 + $0x1c0] sm:$0xff]  }
 0x303   : > { %15082 = vmatprep.subr.bf16.mxu0 %v17943_v22  ;;  %15454 = vmatprep.subr.bf16.mxu1 %v19722_v51  ;;  %v2889_v15 = vld [vmem:[#allocation2 + $0x1a1] sm:$0xff] }
 0x304   : > { %15391 = vmatmul.mubr.bf16.gmra.mrb[48].mxu1 %v19724_v62 }
 0x305   : > { %15051 = vmatmul.mubr.bf16.gmra.mrb[12].mxu0 %v2897_v35  ;;  %15394 = vmatprep.mubr.bf16.mxu1 %v19726_v40  ;;  %v2881_v35 = vld [vmem:[#allocation2 + $0x141] sm:$0xff] }
 0x306   : > { %15054 = vmatprep.mubr.bf16.mxu0 %v2898_v41  ;;  %15083 = vmatpush3.bf16.msra.mxu0 %v17943_v22  ;;  %v5124_v22 = vld [vmem:[#allocation3 + $0x12a] sm:$0xff]  ;;  %v5125_v41 = vld [vmem:[#allocation3 + $0x13a] sm:$0xff]  ;;  %v2901_v59 = vpack.c.bf16 %v2881_v35, %v2880_v34  ;;  %v2904_v35 = vpack.c.bf16 %v2887_v47, %v2886_v36 }
 0x307   : > { %15084 = vmatprep.subr.bf16.mxu0 %v17945_v24  ;;  %v19731_v42 = vpack.c.bf16 %v5124_v22, %v5123_v11  ;;  %v19737_v11 = vpack.c.bf16 %v5128_v21, %v5127_v33  ;;  %v3196_v21 = vpack.c.bf16 %v3165_v32, %v3164_v4  ;;  %v5410_v47 = vld [vmem:[#allocation3 + $0x48] sm:$0xff]  ;;  %v5411_v36 = vld [vmem:[#allocation3 + $0x50] sm:$0xff] }
 0x308   : > { %v5441_v9 = vpack.c.bf16 %v5411_v36, %v5410_v47  ;;  %v3170_v32 = vld [vmem:[#allocation2 + $0x7a] sm:$0xff]  ;;  %v3171_v4 = vld [vmem:[#allocation2 + $0x82] sm:$0xff] }
 0x309   : > { %v3173_v47 = vld [vmem:[#allocation2 + $0x9a] sm:$0xff] }
 0x30a   : > { %15085 = vmatpush3.bf16.msra.mxu0 %v17945_v24  ;;  %v19733_v24 = vpack.c.bf16 %v5126_v60, %v5125_v41  ;;  %v2888_v41 = vld [vmem:[#allocation2 + $0x199] sm:$0xff] }
 0x30b   : > { %v5131_v60 = vld [vmem:[#allocation3 + $0x182] sm:$0xff] }
 0x30c   : > { %15395 = vmatmul.mubr.bf16.gmra.mrb[52].mxu1 %v19731_v42  ;;  %v19743_v33 = vpack.c.bf16 %v5132_v28, %v5131_v60  ;;  %v5442_v28 = vpack.c.bf16 %v5413_v20, %v5412_v16  ;;  %v3174_v16 = vld [vmem:[#allocation2 + $0xaa] sm:$0xff] }
 0x30d   : > { %15055 = vmatmul.mubr.bf16.gmra.mrb[16].mxu0 %v2899_v39  ;;  %15398 = vmatprep.mubr.bf16.mxu1 %v19733_v24  ;;  %v2885_v39 = vld [vmem:[#allocation2 + $0x171] sm:$0xff] }
 0x30e   : > { %15058 = vmatprep.mubr.bf16.mxu0 %v2900_v58  ;;  %v5129_v58 = vld [vmem:[#allocation3 + $0x16a] sm:$0xff]  ;;  %v2903_v34 = vpack.c.bf16 %v2885_v39, %v2884_v49  ;;  %v2905_v49 = vpack.c.bf16 %v2889_v15, %v2888_v41  ;;  %v3166_v39 = vld [vmem:[#allocation2 + $0x4a] sm:$0xff] }
 0x30f   : > { %v19739_v22 = vpack.c.bf16 %v5130_v43, %v5129_v58  ;;  %v3167_v58 = vld [vmem:[#allocation2 + $0x52] sm:$0xff]  ;;  %v17947_v41 = vld [vmem:[#allocation12 + $0x1c8] sm:$0xff]  }
 0x310   : > { %v3197_v48 = vpack.c.bf16 %v3167_v58, %v3166_v39  ;;  %v5414_v15 = vld [vmem:[#allocation3 + $0x78] sm:$0xff]  ;;  %v3199_v39 = vpack.c.bf16 %v3171_v4, %v3170_v32  ;;  %v5419_v58 = vld [vmem:[#allocation3 + $0xb0] sm:$0xff] }
 0x311   : > { %v17950_v32 = vld [vmem:[#allocation12 + $0x1e0] sm:$0xff]  }
 0x314   : > { %15399 = vmatmul.mubr.bf16.gmra.mrb[56].mxu1 %v19737_v11 }
 0x315   : > { %15059 = vmatmul.mubr.bf16.gmra.mrb[20].mxu0 %v2901_v59  ;;  %15402 = vmatprep.mubr.bf16.mxu1 %v19739_v22  ;;  %v5408_v59 = vld [vmem:[#allocation3 + $0x30] sm:$0xff] }
 0x316   : > { %15062 = vmatprep.mubr.bf16.mxu0 %v2902_v8  ;;  %v5409_v8 = vld [vmem:[#allocation3 + $0x38] sm:$0xff] }
 0x317   : > { %v5440_v43 = vpack.c.bf16 %v5409_v8, %v5408_v59  ;;  %v5415_v59 = vld [vmem:[#allocation3 + $0x80] sm:$0xff]  ;;  %v5416_v8 = vld [vmem:[#allocation3 + $0x90] sm:$0xff] }
 0x318   : > { %v5443_v36 = vpack.c.bf16 %v5415_v59, %v5414_v15 }
 0x31c   : > { %15403 = vmatmul.mubr.bf16.gmra.mrb[60].mxu1 %v19743_v33 }
 0x31d   : > { %15063 = vmatmul.mubr.bf16.gmra.mrb[24].mxu0 %v2903_v34  ;;  %15422 = vmatprep.mubr.bf16.mxu1 %v5440_v43  ;;  %v3168_v34 = vld [vmem:[#allocation2 + $0x62] sm:$0xff]  ;;  %v17948_v43 = vld [vmem:[#allocation12 + $0x1d0] sm:$0xff]  }
 0x31e   : > { %15066 = vmatprep.mubr.bf16.mxu0 %v2904_v35  ;;  %v3169_v35 = vld [vmem:[#allocation2 + $0x6a] sm:$0xff] }
 0x31f   : > { %v3198_v60 = vpack.c.bf16 %v3169_v35, %v3168_v34  ;;  %v3175_v34 = vld [vmem:[#allocation2 + $0xb2] sm:$0xff] }
 0x320   : > { %v5420_v35 = vld [vmem:[#allocation3 + $0xc0] sm:$0xff]  ;;  %v3201_v4 = vpack.c.bf16 %v3175_v34, %v3174_v16  ;;  %v17953_v34 = vld [vmem:[#allocation12 + $0x1f8] sm:$0xff]  }
 0x321   : > { %v17952_v16 = vld [vmem:[#allocation12 + $0x1f0] sm:$0xff]  }
 0x324   : > { %15423 = vmatmul.mubr.bf16.vlgmr.msra.gmra.mrb[32].mxu1 %v5441_v9 }
 0x325   : > { %15067 = vmatmul.mubr.bf16.gmra.mrb[28].mxu0 %v2905_v49  ;;  %15455 = vmatpush3.bf16.msra.mxu1 %v19722_v51  ;;  %v5417_v49 = vld [vmem:[#allocation3 + $0x98] sm:$0xff]  ;;  %v5418_v51 = vld [vmem:[#allocation3 + $0xa8] sm:$0xff] }
 0x326   : > { %15086 = vmatprep.mubr.bf16.mxu0 %v3196_v21  ;;  %15426 = vmatprep.mubr.bf16.mxu1 %v5442_v28  ;;  %v3172_v21 = vld [vmem:[#allocation2 + $0x92] sm:$0xff]  ;;  %v5444_v20 = vpack.c.bf16 %v5417_v49, %v5416_v8  ;;  %v3176_v28 = vld [vmem:[#allocation2 + $0xc2] sm:$0xff]  ;;  %v3178_v49 = vld [vmem:[#allocation2 + $0xda] sm:$0xff] }
 0x327   : > { %15456 = vmatprep.subr.bf16.mxu1 %v17947_v41  ;;  %v3200_v9 = vpack.c.bf16 %v3173_v47, %v3172_v21  ;;  %v3202_v59 = vpack.c.bf16 %v3177_v45, %v3176_v28  ;;  %v17951_v8 = vld [vmem:[#allocation12 + $0x1e8] sm:$0xff]   ;;  %v5423_v47 = vld [vmem:[#allocation3 + $0xe0] sm:$0xff]  ;;  %v5427_v28 = vld [vmem:[#allocation3 + $0x110] sm:$0xff] }
 0x328   : > { %v5422_v21 = vld [vmem:[#allocation3 + $0xd8] sm:$0xff] }
 0x329   : > { %15457 = vmatpush3.bf16.msra.mxu1 %v17947_v41  ;;  %v5445_v41 = vpack.c.bf16 %v5419_v58, %v5418_v51  ;;  %v5447_v51 = vpack.c.bf16 %v5423_v47, %v5422_v21 }
 0x32a   : > { %15458 = vmatprep.subr.bf16.mxu1 %v17948_v43 }
 0x32c   : > { %15427 = vmatmul.mubr.bf16.gmra.mrb[36].mxu1 %v5443_v36  ;;  %v5424_v36 = vld [vmem:[#allocation3 + $0xf0] sm:$0xff] }
 0x32d   : > { %15087 = vmatmul.mubr.bf16.vlgmr.msra.gmra.mrb[0].mxu0 %v3197_v48  ;;  %v17949_v48 = vld [vmem:[#allocation12 + $0x1d8] sm:$0xff]   ;;  %15430 = vmatprep.mubr.bf16.mxu1 %v5444_v20 }
 0x32e   : > { %15090 = vmatprep.mubr.bf16.mxu0 %v3198_v60  ;;  %15459 = vmatpush3.bf16.msra.mxu1 %v17948_v43  ;;  %v5421_v60 = vld [vmem:[#allocation3 + $0xc8] sm:$0xff]  ;;  %v3179_v43 = vld [vmem:[#allocation2 + $0xe2] sm:$0xff] }
 0x32f   : > { %15460 = vmatprep.subr.bf16.mxu1 %v17949_v48  ;;  %v5446_v15 = vpack.c.bf16 %v5421_v60, %v5420_v35  ;;  %v3180_v20 = vld [vmem:[#allocation2 + $0xf2] sm:$0xff]  ;;  %v3203_v45 = vpack.c.bf16 %v3179_v43, %v3178_v49  ;;  %v3182_v35 = vld [vmem:[#allocation2 + $0x10a] sm:$0xff]  ;;  %v17954_v49 = vld [vmem:[#allocation12 + $0x200] sm:$0xff]  }
 0x330   : > { %v5426_v60 = vld [vmem:[#allocation3 + $0x108] sm:$0xff] }
 0x331   : > { %v5449_v21 = vpack.c.bf16 %v5427_v28, %v5426_v60  ;;  %v5434_v28 = vld [vmem:[#allocation3 + $0x168] sm:$0xff] }
 0x332   : > { %15461 = vmatpush3.bf16.msra.mxu1 %v17949_v48 }
 0x333   : > { %15462 = vmatprep.subr.bf16.mxu1 %v17950_v32 }
 0x334   : > { %15431 = vmatmul.mubr.bf16.gmra.mrb[40].mxu1 %v5445_v41  ;;  %v3183_v41 = vld [vmem:[#allocation2 + $0x112] sm:$0xff] }
 0x335   : > { %15091 = vmatmul.mubr.bf16.gmra.mrb[4].mxu0 %v3199_v39  ;;  %15434 = vmatprep.mubr.bf16.mxu1 %v5446_v15  ;;  %v5425_v39 = vld [vmem:[#allocation3 + $0xf8] sm:$0xff]  ;;  %v3205_v47 = vpack.c.bf16 %v3183_v41, %v3182_v35  ;;  %v5435_v41 = vld [vmem:[#allocation3 + $0x170] sm:$0xff] }
 0x336   : > { %15094 = vmatprep.mubr.bf16.mxu0 %v3200_v9  ;;  %15463 = vmatpush3.bf16.msra.mxu1 %v17950_v32  ;;  %v3181_v9 = vld [vmem:[#allocation2 + $0xfa] sm:$0xff]  ;;  %v5448_v48 = vpack.c.bf16 %v5425_v39, %v5424_v36  ;;  %v5428_v32 = vld [vmem:[#allocation3 + $0x120] sm:$0xff]  ;;  %v3184_v15 = vld [vmem:[#allocation2 + $0x122] sm:$0xff] }
 0x337   : > { %15464 = vmatprep.subr.bf16.mxu1 %v17951_v8  ;;  %v3204_v58 = vpack.c.bf16 %v3181_v9, %v3180_v20  ;;  %v3186_v36 = vld [vmem:[#allocation2 + $0x13a] sm:$0xff]  ;;  %v5430_v39 = vld [vmem:[#allocation3 + $0x138] sm:$0xff]  ;;  %v5431_v20 = vld [vmem:[#allocation3 + $0x140] sm:$0xff] }
 0x338   : > { %v3187_v9 = vld [vmem:[#allocation2 + $0x142] sm:$0xff] }
 0x339   : > { %v3207_v44 = vpack.c.bf16 %v3187_v9, %v3186_v36  ;;  %v3194_v36 = vld [vmem:[#allocation2 + $0x19a] sm:$0xff] }
 0x33a   : > { %15465 = vmatpush3.bf16.msra.mxu1 %v17951_v8 }
 0x33b   : > { %15466 = vmatprep.subr.bf16.mxu1 %v17952_v16 }
 0x33c   : > { %15435 = vmatmul.mubr.bf16.gmra.mrb[44].mxu1 %v5447_v51  ;;  %v5432_v51 = vld [vmem:[#allocation3 + $0x150] sm:$0xff] }
 0x33d   : > { %15095 = vmatmul.mubr.bf16.gmra.mrb[8].mxu0 %v3201_v4  ;;  %15438 = vmatprep.mubr.bf16.mxu1 %v5448_v48  ;;  %v5429_v4 = vld [vmem:[#allocation3 + $0x128] sm:$0xff] }
 0x33e   : > { %15098 = vmatprep.mubr.bf16.mxu0 %v3202_v59  ;;  %15467 = vmatpush3.bf16.msra.mxu1 %v17952_v16  ;;  %v3185_v59 = vld [vmem:[#allocation2 + $0x12a] sm:$0xff]  ;;  %v5450_v8 = vpack.c.bf16 %v5429_v4, %v5428_v32  ;;  %v3189_v48 = vld [vmem:[#allocation2 + $0x15a] sm:$0xff]  ;;  %v3191_v32 = vld [vmem:[#allocation2 + $0x172] sm:$0xff] }
 0x33f   : > { %15468 = vmatprep.subr.bf16.mxu1 %v17953_v34  ;;  %v3206_v43 = vpack.c.bf16 %v3185_v59, %v3184_v15  ;;  %v5433_v16 = vld [vmem:[#allocation3 + $0x158] sm:$0xff]  ;;  %v5436_v4 = vld [vmem:[#allocation3 + $0x180] sm:$0xff]  ;;  %v5437_v15 = vld [vmem:[#allocation3 + $0x188] sm:$0xff] }
 0x340   : > { %v5452_v60 = vpack.c.bf16 %v5433_v16, %v5432_v51  ;;  %v3192_v59 = vld [vmem:[#allocation2 + $0x182] sm:$0xff]  ;;  %v5716_v16 = vld [vmem:[#allocation3 + $0x49] sm:$0xff] }
 0x342   : > { %15469 = vmatpush3.bf16.msra.mxu1 %v17953_v34  ;;  %v3190_v34 = vld [vmem:[#allocation2 + $0x16a] sm:$0xff] }
 0x343   : > { %15502 = vmatprep.subr.bf16.mxu1 %v17954_v49 }
 0x344   : > { %15439 = vmatmul.mubr.bf16.gmra.mrb[48].mxu1 %v5449_v21  ;;  %v3193_v21 = vld [vmem:[#allocation2 + $0x18a] sm:$0xff] }
 0x345   : > { %15099 = vmatmul.mubr.bf16.gmra.mrb[12].mxu0 %v3203_v45  ;;  %15442 = vmatprep.mubr.bf16.mxu1 %v5450_v8  ;;  %v3188_v45 = vld [vmem:[#allocation2 + $0x152] sm:$0xff]  ;;  %v3209_v8 = vpack.c.bf16 %v3191_v32, %v3190_v34  ;;  %v3210_v13 = vpack.c.bf16 %v3193_v21, %v3192_v59  ;;  %v17955_v34 = vld [vmem:[#allocation12 + $0x208] sm:$0xff]  }
 0x346   : > { %15102 = vmatprep.mubr.bf16.mxu0 %v3204_v58  ;;  %v5451_v58 = vpack.c.bf16 %v5431_v20, %v5430_v39  ;;  %v3208_v35 = vpack.c.bf16 %v3189_v48, %v3188_v45  ;;  %v5714_v39 = vld [vmem:[#allocation3 + $0x31] sm:$0xff]  ;;  %v5715_v20 = vld [vmem:[#allocation3 + $0x39] sm:$0xff]  ;;  %v5718_v48 = vld [vmem:[#allocation3 + $0x61] sm:$0xff] }
 0x347   : > { %v5746_v51 = vpack.c.bf16 %v5715_v20, %v5714_v39  ;;  %v5717_v45 = vld [vmem:[#allocation3 + $0x51] sm:$0xff]  ;;  %v5723_v32 = vld [vmem:[#allocation3 + $0x99] sm:$0xff]  ;;  %v17957_v59 = vld [vmem:[#allocation12 + $0x218] sm:$0xff]  }
 0x348   : > { %v5724_v21 = vld [vmem:[#allocation3 + $0xa9] sm:$0xff]  ;;  %v17959_v39 = vld [vmem:[#allocation12 + $0x228] sm:$0xff]  }
 0x349   : > { %v5728_v20 = vld [vmem:[#allocation3 + $0xd9] sm:$0xff] }
 0x34c   : > { %15443 = vmatmul.mubr.bf16.gmra.mrb[52].mxu1 %v5451_v58  ;;  %v5719_v58 = vld [vmem:[#allocation3 + $0x69] sm:$0xff] }
 0x34d   : > { %15103 = vmatmul.mubr.bf16.gmra.mrb[16].mxu0 %v3205_v47  ;;  %15446 = vmatprep.mubr.bf16.mxu1 %v5452_v60  ;;  %v5453_v47 = vpack.c.bf16 %v5435_v41, %v5434_v28  ;;  %v5747_v60 = vpack.c.bf16 %v5717_v45, %v5716_v16  ;;  %v5721_v28 = vld [vmem:[#allocation3 + $0x81] sm:$0xff]  ;;  %v5722_v41 = vld [vmem:[#allocation3 + $0x91] sm:$0xff]  ;;  %v5731_v16 = vld [vmem:[#allocation3 + $0xf9] sm:$0xff] }
 0x34e   : > { %15106 = vmatprep.mubr.bf16.mxu0 %v3206_v43  ;;  %v5454_v43 = vpack.c.bf16 %v5437_v15, %v5436_v4  ;;  %v17956_v4 = vld [vmem:[#allocation12 + $0x210] sm:$0xff]  }
 0x34f   : > { %v17960_v45 = vld [vmem:[#allocation12 + $0x230] sm:$0xff]  }
 0x354   : > { %15447 = vmatmul.mubr.bf16.gmra.mrb[56].mxu1 %v5453_v47  ;;  %v5725_v47 = vld [vmem:[#allocation3 + $0xb1] sm:$0xff] }
 0x355   : > { %15107 = vmatmul.mubr.bf16.gmra.mrb[20].mxu0 %v3207_v44  ;;  %15450 = vmatprep.mubr.bf16.mxu1 %v5454_v43  ;;  %v3195_v44 = vld [vmem:[#allocation2 + $0x1a2] sm:$0xff]  ;;  %v5727_v43 = vld [vmem:[#allocation3 + $0xc9] sm:$0xff] }
 0x356   : > { %15110 = vmatprep.mubr.bf16.mxu0 %v3208_v35  ;;  %v3211_v9 = vpack.c.bf16 %v3195_v44, %v3194_v36  ;;  %v5748_v35 = vpack.c.bf16 %v5719_v58, %v5718_v48  ;;  %v5751_v36 = vpack.c.bf16 %v5725_v47, %v5724_v21  ;;  %v5745_v21 = vld [vmem:[#allocation3 + $0x1a1] sm:$0xff] }
 0x35c   : > { %15451 = vmatmul.mubr.bf16.gmra.mrb[60].mxu1 %v19693_v61  ;;  %v5750_v61 = vpack.c.bf16 %v5723_v32, %v5722_v41 }
 0x35d   : > { %15111 = vmatmul.mubr.bf16.gmra.mrb[24].mxu0 %v3209_v8  ;;  %15470 = vmatprep.mubr.bf16.mxu1 %v5746_v51  ;;  %v5726_v8 = vld [vmem:[#allocation3 + $0xc1] sm:$0xff]  ;;  %v5730_v51 = vld [vmem:[#allocation3 + $0xf1] sm:$0xff] }
 0x35e   : > { %15114 = vmatprep.mubr.bf16.mxu0 %v3210_v13  ;;  %v5720_v13 = vld [vmem:[#allocation3 + $0x79] sm:$0xff]  ;;  %v5752_v44 = vpack.c.bf16 %v5727_v43, %v5726_v8  ;;  %v5754_v58 = vpack.c.bf16 %v5731_v16, %v5730_v51 }
 0x35f   : > { %v5749_v15 = vpack.c.bf16 %v5721_v28, %v5720_v13  ;;  %v5734_v13 = vld [vmem:[#allocation3 + $0x121] sm:$0xff]  ;;  %v5735_v28 = vld [vmem:[#allocation3 + $0x129] sm:$0xff] }
 0x360   : > { %v5756_v32 = vpack.c.bf16 %v5735_v28, %v5734_v13 }
 0x364   : > { %15471 = vmatmul.mubr.bf16.vlgmr.msra.gmra.mrb[32].mxu1 %v5747_v60  ;;  %v17961_v60 = vld [vmem:[#allocation12 + $0x238] sm:$0xff]  }
 0x365   : > { %15115 = vmatmul.mubr.bf16.gmra.mrb[28].mxu0 %v3211_v9  ;;  %15503 = vmatpush3.bf16.msra.mxu1 %v17954_v49  ;;  %v17958_v49 = vld [vmem:[#allocation12 + $0x220] sm:$0xff]   ;;  %v5729_v9 = vld [vmem:[#allocation3 + $0xe1] sm:$0xff] }
 0x366   : > { %15474 = vmatprep.mubr.bf16.mxu1 %v5748_v35  ;;  %15504 = vmatprep.subr.bf16.mxu1 %v17955_v34  ;;  %v5753_v48 = vpack.c.bf16 %v5729_v9, %v5728_v20  ;;  %v5732_v35 = vld [vmem:[#allocation3 + $0x109] sm:$0xff] }
 0x369   : > { %15505 = vmatpush3.bf16.msra.mxu1 %v17955_v34  ;;  %v5733_v34 = vld [vmem:[#allocation3 + $0x111] sm:$0xff] }
 0x36a   : > { %15506 = vmatprep.subr.bf16.mxu1 %v17956_v4  ;;  %v5755_v41 = vpack.c.bf16 %v5733_v34, %v5732_v35  ;;  %v17969_v34 = vld [vmem:[#allocation13 + $0x78] sm:$0xff]  }
 0x36c   : > { %15475 = vmatmul.mubr.bf16.gmra.mrb[36].mxu1 %v5749_v15  ;;  %v5743_v15 = vld [vmem:[#allocation3 + $0x189] sm:$0xff] }
 0x36d   : > { %15478 = vmatprep.mubr.bf16.mxu1 %v5750_v61  ;;  %15507 = vmatpush3.bf16.msra.mxu1 %v17956_v4  ;;  %v5742_v4 = vld [vmem:[#allocation3 + $0x181] sm:$0xff] }
 0x36e   : > { %15508 = vmatprep.subr.bf16.mxu1 %v17957_v59  ;;  %v5760_v61 = vpack.c.bf16 %v5743_v15, %v5742_v4 }
 0x371   : > { %15509 = vmatpush3.bf16.msra.mxu1 %v17957_v59  ;;  %v5744_v59 = vld [vmem:[#allocation3 + $0x199] sm:$0xff] }
 0x372   : > { %15510 = vmatprep.subr.bf16.mxu1 %v17958_v49  ;;  %v5761_v47 = vpack.c.bf16 %v5745_v21, %v5744_v59 }
 0x374   : > { %15479 = vmatmul.mubr.bf16.gmra.mrb[40].mxu1 %v5751_v36 }
 0x375   : > { %15482 = vmatprep.mubr.bf16.mxu1 %v5752_v44  ;;  %15511 = vmatpush3.bf16.msra.mxu1 %v17958_v49 }
 0x376   : > { %15512 = vmatprep.subr.bf16.mxu1 %v17959_v39 }
 0x379   : > { %15513 = vmatpush3.bf16.msra.mxu1 %v17959_v39 }
 0x37a   : > { %15514 = vmatprep.subr.bf16.mxu1 %v17960_v45 }
 0x37c   : > { %15483 = vmatmul.mubr.bf16.gmra.mrb[44].mxu1 %v5753_v48 }
 0x37d   : > { %15486 = vmatprep.mubr.bf16.mxu1 %v5754_v58  ;;  %15515 = vmatpush3.bf16.msra.mxu1 %v17960_v45  ;;  %v18146_v58 = vld [vmem:[#allocation2 + $0x39] sm:$0xff] }
 0x37e   : > { %15516 = vmatprep.subr.bf16.mxu1 %v17961_v60 }
 0x381   : > { %15517 = vmatpush3.bf16.msra.mxu1 %v17961_v60 }
 0x384   : > { %15487 = vmatmul.mubr.bf16.gmra.mrb[48].mxu1 %v5755_v41 }
 0x385   : > { %15490 = vmatprep.mubr.bf16.mxu1 %v5756_v32 }
 0x38c   : > { %15491 = vmatmul.mubr.bf16.gmra.mrb[52].mxu1 %v19684_v18  ;;  %v17962_v18 = vld [vmem:[#allocation13 + $0x40] sm:$0xff]  }
 0x38d   : > { %15494 = vmatprep.mubr.bf16.mxu1 %v19687_v46  ;;  %v17963_v46 = vld [vmem:[#allocation13 + $0x48] sm:$0xff]   ;;  %15550 = vmatprep.subr.bf16.mxu0 %v17962_v18 }
 0x38e   : > { %15551 = vmatpush3.bf16.msra.mxu0 %v17962_v18 }
 0x38f   : > { %15552 = vmatprep.subr.bf16.mxu0 %v17963_v46 }
 0x392   : > { %15553 = vmatpush3.bf16.msra.mxu0 %v17963_v46 }
 0x394   : > { %15495 = vmatmul.mubr.bf16.gmra.mrb[56].mxu1 %v19689_v19  ;;  %v17964_v19 = vld [vmem:[#allocation13 + $0x50] sm:$0xff]  }
 0x395   : > { %15498 = vmatprep.mubr.bf16.mxu1 %v5760_v61  ;;  %15554 = vmatprep.subr.bf16.mxu0 %v17964_v19 }
 0x396   : > { %15555 = vmatpush3.bf16.msra.mxu0 %v17964_v19 }
 0x39c   : > { %15499 = vmatmul.mubr.bf16.gmra.mrb[60].mxu1 %v5761_v47 }
 0x39d   : > { %15518 = vmatprep.mubr.bf16.mxu1 %v19696_v37  ;;  %v17965_v37 = vld [vmem:[#allocation13 + $0x58] sm:$0xff]  }
 0x39e   : > { %15556 = vmatprep.subr.bf16.mxu0 %v17965_v37 }
 0x39f   : > { %15557 = vmatpush3.bf16.msra.mxu0 %v17965_v37 }
 0x3a4   : > { %15519 = vmatmul.mubr.bf16.vlgmr.msra.gmra.mrb[32].mxu1 %v19698_v38  ;;  %v17966_v38 = vld [vmem:[#allocation13 + $0x60] sm:$0xff]  }
 0x3a5   : > { %15522 = vmatprep.mubr.bf16.mxu1 %v19704_v3  ;;  %15558 = vmatprep.subr.bf16.mxu0 %v17966_v38  ;;  %v17967_v3 = vld [vmem:[#allocation13 + $0x68] sm:$0xff]  }
 0x3a6   : > { %15559 = vmatpush3.bf16.msra.mxu0 %v17966_v38 }
 0x3a7   : > { %15560 = vmatprep.subr.bf16.mxu0 %v17967_v3 }
 0x3aa   : > { %15561 = vmatpush3.bf16.msra.mxu0 %v17967_v3 }
 0x3ac   : > { %15523 = vmatmul.mubr.bf16.gmra.mrb[36].mxu1 %v19706_v55  ;;  %v17968_v55 = vld [vmem:[#allocation13 + $0x70] sm:$0xff]  }
 0x3ad   : > { %15526 = vmatprep.mubr.bf16.mxu1 %v19710_v53  ;;  %15562 = vmatprep.subr.bf16.mxu0 %v17968_v55  ;;  %v6050_v53 = vld [vmem:[#allocation3 + $0x19a] sm:$0xff] }
 0x3ae   : > { %15563 = vmatpush3.bf16.msra.mxu0 %v17968_v55 }
 0x3af   : > { %15564 = vmatprep.subr.bf16.mxu0 %v17969_v34 }
 0x3b2   : > { %15565 = vmatpush3.bf16.msra.mxu0 %v17969_v34  ;;  %v18153_v34 = vld [vmem:[#allocation2 + $0x79] sm:$0xff] }
 0x3b4   : > { %15527 = vmatmul.mubr.bf16.gmra.mrb[40].mxu1 %v19712_v56  ;;  %v6051_v56 = vld [vmem:[#allocation3 + $0x1a2] sm:$0xff] }
 0x3b5   : > { %15530 = vmatprep.mubr.bf16.mxu1 %v19716_v63  ;;  %v6067_v63 = vpack.c.bf16 %v6051_v56, %v6050_v53  ;;  %v18149_v56 = vld [vmem:[#allocation2 + $0x49] sm:$0xff] }
 0x3bc   : > { %15531 = vmatmul.mubr.bf16.gmra.mrb[44].mxu1 %v19718_v14 }
 0x3bd   : > { %15534 = vmatprep.mubr.bf16.mxu1 %v19724_v62  ;;  %v19769_v62 = vld [vmem:[%s20756_s27] ss:$0 sm:$0xff] }
 0x3c4   : > { %15535 = vmatmul.mubr.bf16.gmra.mrb[48].mxu1 %v19726_v40 }
 0x3c5   : > { %15538 = vmatprep.mubr.bf16.mxu1 %v19731_v42 }
 0x3cc   : > { %15539 = vmatmul.mubr.bf16.gmra.mrb[52].mxu1 %v19733_v24 }
 0x3cd   : > { %15542 = vmatprep.mubr.bf16.mxu1 %v19737_v11 }
 0x3d4   : > { %15543 = vmatmul.mubr.bf16.gmra.mrb[56].mxu1 %v19739_v22 }
 0x3d5   : > { %15546 = vmatprep.mubr.bf16.mxu1 %v19743_v33 }
 0x3dc   : > { %15547 = vmatmul.mubr.bf16.gmra.mrb[60].mxu1 %v6067_v63 }
 0x400   : > { %v15088_v14 = vpop.f32.mrb[0].mxu0 }
 0x401   : > { %v16606_v40 = vadd.f32 %v15088_v14, %v19583_v52  ;;  %v3311_v42 = vpop.f32.mrb[1].mxu0  ;;  %v18144_v52 = vld [vmem:[#allocation2 + $0x31] sm:$0xff] }
 0x402   : > { %v16607_v24 = vadd.f32 %v3311_v42, %v19585_v54  ;;  %v15089_v11 = vpop.f32.mrb[2].mxu0  ;;  %v18145_v54 = vld [vmem:[#allocation2 + $0x19] sm:$0xff]  ;;  %v18150_v42 = vld [vmem:[#allocation2 + $0x69] sm:$0xff] }
 0x403   : > { %v3477_v22 = vadd.f32 %v16606_v40, %v19769_v62  ;;  %v16608_v33 = vadd.f32 %v15089_v11, %v19587_v6  ;;  %v3314_v8 = vpop.f32.mrb[3].mxu0 }
 0x404   : > { %v3475_v43 = vadd.f32 %v16607_v24, %v19769_v62  ;;  %v16609_v49 = vadd.f32 %v3314_v8, %v19589_v10  ;;  %v18147_v10 = vld [vmem:[#allocation2 + $0x21] sm:$0xff] }
 0x405   : > { %v3509_v36 = vmax.f32 %v3477_v22, 0.0  ;;  %v3478_v44 = vadd.f32 %v16608_v33, %v19769_v62  ;;  %v19792_v22 = vld [vmem:[#allocation13] sm:$0xff]   ;;  %v18151_v33 = vld [vmem:[#allocation2 + $0x51] sm:$0xff] }
 0x406   : > { %v3507_v39 = vmax.f32 %v3475_v43, 0.0  ;;  %v3476_v20 = vadd.f32 %v16609_v49, %v19769_v62  ;;  %15598 = vmatprep.subr.bf16.mxu0 %v19792_v22 }
 0x407   : > { %v3541_v9 = vadd.f32 %v18144_v52, %v3509_v36  ;;  %v3510_v51 = vmax.f32 %v3478_v44, 0.0 }
 0x408   : > { %v3539_v16 = vadd.f32 %v18145_v54, %v3507_v39  ;;  %v3508_v45 = vmax.f32 %v3476_v20, 0.0  ;;  %v15092_v48 = vpop.f32.mrb[4].mxu0 }
 0x409   : > { %v3542_v6 = vadd.f32 %v18146_v58, %v3510_v51  ;;  %v16610_v60 = vadd.f32 %v15092_v48, %v19591_v50  ;;  %v3327_v35 = vpop.f32.mrb[5].mxu0  ;;  %v3573_v32 = vmax.f32 %v3541_v9, 0.0 }
 0x40a   : > { %v3540_v13 = vadd.f32 %v18147_v10, %v3508_v45  ;;  %v16611_v28 = vadd.f32 %v3327_v35, %v19595_v57  ;;  %v15093_v41 = vpop.f32.mrb[6].mxu0  ;;  %v3571_v21 = vmax.f32 %v3539_v16, 0.0 }
 0x40b   : > { %v3574_v4 = vmax.f32 %v3542_v6, 0.0  ;;  %v3481_v15 = vadd.f32 %v16610_v60, %v19769_v62  ;;  %v16612_v61 = vadd.f32 %v15093_v41, %v19599_v30  ;;  %v3330_v59 = vpop.f32.mrb[7].mxu0  ;;  %v18148_v30 = vld [vmem:[#allocation2 + $0x61] sm:$0xff]  ;;  %v18154_v41 = vld [vmem:[#allocation2 + $0x99] sm:$0xff] }
 0x40c   : > { %v3572_v47 = vmax.f32 %v3540_v13, 0.0  ;;  %v3479_v18 = vadd.f32 %v16611_v28, %v19769_v62  ;;  %v16613_v50 = vadd.f32 %v3330_v59, %v19601_v25 }
 0x40d   : > { %v19785_v46 = vpack.c.bf16 %v3574_v4, %v3573_v32  ;;  %v3513_v19 = vmax.f32 %v3481_v15, 0.0  ;;  %v3482_v57 = vadd.f32 %v16612_v61, %v19769_v62  ;;  %v18155_v15 = vld [vmem:[#allocation2 + $0x81] sm:$0xff] }
 0x40e   : > { %v3511_v37 = vmax.f32 %v3479_v18, 0.0  ;;  %v3480_v38 = vadd.f32 %v16613_v50, %v19769_v62  ;;  %v19789_v3 = vpack.c.bf16 %v3572_v47, %v3571_v21 }
 0x40f   : > { %v3545_v55 = vadd.f32 %v18148_v30, %v3513_v19  ;;  %v3514_v53 = vmax.f32 %v3482_v57, 0.0 }
 0x410   : > { %v3543_v63 = vadd.f32 %v18149_v56, %v3511_v37  ;;  %v3512_v14 = vmax.f32 %v3480_v38, 0.0  ;;  %v15096_v40 = vpop.f32.mrb[8].mxu0 }
 0x411   : > { %v3546_v25 = vadd.f32 %v18150_v42, %v3514_v53  ;;  %v16614_v24 = vadd.f32 %v15096_v40, %v19605_v27  ;;  %v3343_v11 = vpop.f32.mrb[9].mxu0  ;;  %v3577_v36 = vmax.f32 %v3545_v55, 0.0  ;;  %v18156_v40 = vld [vmem:[#allocation2 + $0xc1] sm:$0xff] }
 0x412   : > { %v3544_v8 = vadd.f32 %v18151_v33, %v3512_v14  ;;  %v16615_v43 = vadd.f32 %v3343_v11, %v19607_v5  ;;  %v15097_v49 = vpop.f32.mrb[10].mxu0  ;;  %v3575_v9 = vmax.f32 %v3543_v63, 0.0 }
 0x413   : > { %v3578_v44 = vmax.f32 %v3546_v25, 0.0  ;;  %v3485_v39 = vadd.f32 %v16614_v24, %v19769_v62  ;;  %v16616_v20 = vadd.f32 %v15097_v49, %v19609_v0  ;;  %v3346_v52 = vpop.f32.mrb[11].mxu0  ;;  %v18152_v0 = vld [vmem:[#allocation2 + $0x91] sm:$0xff]  ;;  %v18157_v25 = vld [vmem:[#allocation2 + $0xa9] sm:$0xff] }
 0x414   : > { %v3576_v51 = vmax.f32 %v3544_v8, 0.0  ;;  %v3483_v27 = vadd.f32 %v16615_v43, %v19769_v62  ;;  %v16617_v54 = vadd.f32 %v3346_v52, %v19611_v31  ;;  %v18158_v8 = vld [vmem:[#allocation2 + $0xc9] sm:$0xff] }
 0x415   : > { %v3517_v16 = vmax.f32 %v3485_v39, 0.0  ;;  %v3486_v45 = vadd.f32 %v16616_v20, %v19769_v62  ;;  %v19801_v5 = vpack.c.bf16 %v3578_v44, %v3577_v36  ;;  %v18159_v36 = vld [vmem:[#allocation2 + $0xb1] sm:$0xff] }
 0x416   : > { %v3515_v48 = vmax.f32 %v3483_v27, 0.0  ;;  %v3484_v58 = vadd.f32 %v16617_v54, %v19769_v62  ;;  %v19804_v6 = vpack.c.bf16 %v3576_v51, %v3575_v9 }
 0x417   : > { %v3549_v60 = vadd.f32 %v18152_v0, %v3517_v16  ;;  %v3518_v35 = vmax.f32 %v3486_v45, 0.0 }
 0x418   : > { %v3547_v10 = vadd.f32 %v18153_v34, %v3515_v48  ;;  %v3516_v13 = vmax.f32 %v3484_v58, 0.0  ;;  %v15100_v28 = vpop.f32.mrb[12].mxu0 }
 0x419   : > { %v3550_v32 = vadd.f32 %v18154_v41, %v3518_v35  ;;  %v16618_v31 = vadd.f32 %v15100_v28, %v19613_v7  ;;  %v3359_v4 = vpop.f32.mrb[13].mxu0  ;;  %v3581_v47 = vmax.f32 %v3549_v60, 0.0  ;;  %v18161_v28 = vld [vmem:[#allocation2 + $0xd9] sm:$0xff] }
 0x41a   : > { %v3548_v61 = vadd.f32 %v18155_v15, %v3516_v13  ;;  %v16619_v59 = vadd.f32 %v3359_v4, %v19615_v1  ;;  %v15101_v21 = vpop.f32.mrb[14].mxu0  ;;  %v3579_v37 = vmax.f32 %v3547_v10, 0.0  ;;  %v18160_v10 = vld [vmem:[#allocation2 + $0xf1] sm:$0xff]  ;;  %v18162_v4 = vld [vmem:[#allocation2 + $0xf9] sm:$0xff] }
 0x41b   : > { %v3582_v18 = vmax.f32 %v3550_v32, 0.0  ;;  %v3489_v50 = vadd.f32 %v16618_v31, %v19769_v62  ;;  %v16620_v19 = vadd.f32 %v15101_v21, %v19617_v12  ;;  %v3362_v57 = vpop.f32.mrb[15].mxu0  ;;  %v18163_v21 = vld [vmem:[#allocation2 + $0xe1] sm:$0xff] }
 0x41c   : > { %v3580_v38 = vmax.f32 %v3548_v61, 0.0  ;;  %v3487_v30 = vadd.f32 %v16619_v59, %v19769_v62  ;;  %v16621_v55 = vadd.f32 %v3362_v57, %v19619_v23 }
 0x41d   : > { %v3521_v7 = vmax.f32 %v3489_v50, 0.0  ;;  %v3490_v53 = vadd.f32 %v16620_v19, %v19769_v62  ;;  %v19813_v56 = vpack.c.bf16 %v3582_v18, %v3581_v47  ;;  %v20758_v18 = vld [vmem:[#allocation34_spill] sm:$0xff] }
 0x41e   : > { %v3519_v1 = vmax.f32 %v3487_v30, 0.0  ;;  %v3488_v63 = vadd.f32 %v16621_v55, %v19769_v62  ;;  %v19816_v14 = vpack.c.bf16 %v3580_v38, %v3579_v37  ;;  %v20759_v30 = vld [vmem:[#allocation35_spill] sm:$0xff] }
 0x41f   : > { %v3553_v42 = vadd.f32 %v18156_v40, %v3521_v7  ;;  %v3522_v12 = vmax.f32 %v3490_v53, 0.0  ;;  %v20760_v40 = vld [vmem:[#allocation36_spill] sm:$0xff] }
 0x420   : > { %v3551_v24 = vadd.f32 %v18157_v25, %v3519_v1  ;;  %v3520_v11 = vmax.f32 %v3488_v63, 0.0  ;;  %v15104_v33 = vpop.f32.mrb[16].mxu0 }
 0x421   : > { %v3554_v43 = vadd.f32 %v18158_v8, %v3522_v12  ;;  %v16622_v23 = vadd.f32 %v15104_v33, %v19621_v17  ;;  %v3375_v49 = vpop.f32.mrb[17].mxu0  ;;  %v3585_v52 = vmax.f32 %v3553_v42, 0.0 }
 0x422   : > { %v3552_v44 = vadd.f32 %v18159_v36, %v3520_v11  ;;  %v16623_v39 = vadd.f32 %v3375_v49, %v19623_v2  ;;  %v15105_v20 = vpop.f32.mrb[18].mxu0  ;;  %v3583_v16 = vmax.f32 %v3551_v24, 0.0  ;;  %v18165_v36 = vld [vmem:[#allocation2 + $0x109] sm:$0xff] }
 0x423   : > { %v3586_v9 = vmax.f32 %v3554_v43, 0.0  ;;  %v3493_v51 = vadd.f32 %v16622_v23, %v19769_v62  ;;  %v16624_v27 = vadd.f32 %v15105_v20, %v19625_v26  ;;  %v3378_v54 = vpop.f32.mrb[19].mxu0  ;;  %v18164_v43 = vld [vmem:[#allocation2 + $0x121] sm:$0xff] }
 0x424   : > { %v3584_v45 = vmax.f32 %v3552_v44, 0.0  ;;  %v3491_v48 = vadd.f32 %v16623_v39, %v19769_v62  ;;  %v16625_v58 = vadd.f32 %v3378_v54, %v19627_v29  ;;  %v20757_v29 = vld [vmem:[#allocation33_spill] sm:$0xff] }
 0x425   : > { %v3525_v17 = vmax.f32 %v3493_v51, 0.0  ;;  %v3494_v0 = vadd.f32 %v16624_v27, %v19769_v62  ;;  %v19825_v60 = vpack.c.bf16 %v3586_v9, %v3585_v52  ;;  %v18166_v52 = vld [vmem:[#allocation2 + $0x129] sm:$0xff]  ;;  %v20761_v51 = vld [vmem:[#allocation37_spill] sm:$0xff] }
 0x426   : > { %v3523_v2 = vmax.f32 %v3491_v48, 0.0  ;;  %v3492_v35 = vadd.f32 %v16625_v58, %v19769_v62  ;;  %v19828_v34 = vpack.c.bf16 %v3584_v45, %v3583_v16  ;;  %v18167_v16 = vld [vmem:[#allocation2 + $0x111] sm:$0xff]  ;;  %v20762_v48 = vld [vmem:[#allocation38_spill] sm:$0xff] }
 0x427   : > { %v3557_v13 = vadd.f32 %v18160_v10, %v3525_v17  ;;  %v3526_v26 = vmax.f32 %v3494_v0, 0.0  ;;  %v20763_v10 = vld [vmem:[#allocation39_spill] sm:$0xff] }
 0x428   : > { %v3555_v41 = vadd.f32 %v18161_v28, %v3523_v2  ;;  %v3524_v32 = vmax.f32 %v3492_v35, 0.0  ;;  %v15108_v31 = vpop.f32.mrb[20].mxu0 }
 0x429   : > { %v3558_v15 = vadd.f32 %v18162_v4, %v3526_v26  ;;  %v16626_v61 = vadd.f32 %v15108_v31, %v20757_v29  ;;  %v3391_v59 = vpop.f32.mrb[21].mxu0  ;;  %v3589_v57 = vmax.f32 %v3557_v13, 0.0  ;;  %v20764_v31 = vld [vmem:[#allocation40_spill] sm:$0xff] }
 0x42a   : > { %v3556_v47 = vadd.f32 %v18163_v21, %v3524_v32  ;;  %v16627_v50 = vadd.f32 %v3391_v59, %v20758_v18  ;;  %v15109_v19 = vpop.f32.mrb[22].mxu0  ;;  %v3587_v53 = vmax.f32 %v3555_v41, 0.0  ;;  %v18168_v18 = vld [vmem:[#allocation2 + $0x151] sm:$0xff] }
 0x42b   : > { %v3590_v37 = vmax.f32 %v3558_v15, 0.0  ;;  %v3497_v38 = vadd.f32 %v16626_v61, %v19769_v62  ;;  %v16628_v55 = vadd.f32 %v15109_v19, %v20759_v30  ;;  %v3394_v7 = vpop.f32.mrb[23].mxu0 }
 0x42c   : > { %v3588_v1 = vmax.f32 %v3556_v47, 0.0  ;;  %v3495_v63 = vadd.f32 %v16627_v50, %v19769_v62  ;;  %v16629_v42 = vadd.f32 %v3394_v7, %v20760_v40  ;;  %v18171_v40 = vld [vmem:[#allocation2 + $0x141] sm:$0xff] }
 0x42d   : > { %v3529_v12 = vmax.f32 %v3497_v38, 0.0  ;;  %v3498_v25 = vadd.f32 %v16628_v55, %v19769_v62  ;;  %v19837_v24 = vpack.c.bf16 %v3590_v37, %v3589_v57  ;;  %v18169_v57 = vld [vmem:[#allocation2 + $0x139] sm:$0xff] }
 0x42e   : > { %v3527_v11 = vmax.f32 %v3495_v63, 0.0  ;;  %v3496_v33 = vadd.f32 %v16629_v42, %v19769_v62  ;;  %v19840_v8 = vpack.c.bf16 %v3588_v1, %v3587_v53  ;;  %v18170_v55 = vld [vmem:[#allocation2 + $0x159] sm:$0xff] }
 0x42f   : > { %v3561_v23 = vadd.f32 %v18164_v43, %v3529_v12  ;;  %v3530_v49 = vmax.f32 %v3498_v25, 0.0  ;;  %v20765_v53 = vld [vmem:[#allocation41_spill] sm:$0xff]  ;;  %v20766_v12 = vld [vmem:[#allocation42_spill] sm:$0xff] }
 0x430   : > { %v3559_v44 = vadd.f32 %v18165_v36, %v3527_v11  ;;  %v3528_v39 = vmax.f32 %v3496_v33, 0.0  ;;  %v15112_v20 = vpop.f32.mrb[24].mxu0 }
 0x431   : > { %v3562_v9 = vadd.f32 %v18166_v52, %v3530_v49  ;;  %v16630_v27 = vadd.f32 %v15112_v20, %v20761_v51  ;;  %v3407_v54 = vpop.f32.mrb[25].mxu0  ;;  %v3593_v0 = vmax.f32 %v3561_v23, 0.0  ;;  %v20767_v49 = vld [vmem:[#allocation43_spill] sm:$0xff] }
 0x432   : > { %v3560_v45 = vadd.f32 %v18167_v16, %v3528_v39  ;;  %v16631_v58 = vadd.f32 %v3407_v54, %v20762_v48  ;;  %v15113_v17 = vpop.f32.mrb[26].mxu0  ;;  %v3591_v28 = vmax.f32 %v3559_v44, 0.0 }
 0x433   : > { %v3594_v2 = vmax.f32 %v3562_v9, 0.0  ;;  %v3501_v35 = vadd.f32 %v16630_v27, %v19769_v62  ;;  %v16632_v13 = vadd.f32 %v15113_v17, %v20763_v10  ;;  %v3410_v26 = vpop.f32.mrb[27].mxu0  ;;  %v20768_v9 = vld [vmem:[#allocation44_spill] sm:$0xff]  ;;  %v18172_v17 = vld [vmem:[#allocation2 + $0x181] sm:$0xff] }
 0x434   : > { %v3592_v41 = vmax.f32 %v3560_v45, 0.0  ;;  %v3499_v32 = vadd.f32 %v16631_v58, %v19769_v62  ;;  %v16633_v4 = vadd.f32 %v3410_v26, %v20764_v31  ;;  %v18174_v26 = vld [vmem:[#allocation2 + $0x189] sm:$0xff] }
 0x435   : > { %v3533_v15 = vmax.f32 %v3501_v35, 0.0  ;;  %v3502_v29 = vadd.f32 %v16632_v13, %v19769_v62  ;;  %v19849_v61 = vpack.c.bf16 %v3594_v2, %v3593_v0  ;;  %v18173_v35 = vld [vmem:[#allocation2 + $0x169] sm:$0xff] }
 0x436   : > { %v3531_v59 = vmax.f32 %v3499_v32, 0.0  ;;  %v3500_v21 = vadd.f32 %v16633_v4, %v19769_v62  ;;  %v19852_v47 = vpack.c.bf16 %v3592_v41, %v3591_v28  ;;  %v18175_v41 = vld [vmem:[#allocation2 + $0x171] sm:$0xff] }
 0x437   : > { %v3565_v50 = vadd.f32 %v18168_v18, %v3533_v15  ;;  %v3534_v19 = vmax.f32 %v3502_v29, 0.0 }
 0x438   : > { %v3563_v37 = vadd.f32 %v18169_v57, %v3531_v59  ;;  %v3532_v38 = vmax.f32 %v3500_v21, 0.0  ;;  %v15116_v30 = vpop.f32.mrb[28].mxu0 }
 0x439   : > { %v3566_v7 = vadd.f32 %v18170_v55, %v3534_v19  ;;  %v16634_v1 = vadd.f32 %v15116_v30, %v20765_v53  ;;  %v3423_v63 = vpop.f32.mrb[29].mxu0  ;;  %v3597_v33 = vmax.f32 %v3565_v50, 0.0 }
 0x43a   : > { %v3564_v42 = vadd.f32 %v18171_v40, %v3532_v38  ;;  %v16635_v25 = vadd.f32 %v3423_v63, %v20766_v12  ;;  %v15117_v11 = vpop.f32.mrb[30].mxu0  ;;  %v3595_v39 = vmax.f32 %v3563_v37, 0.0 }
 0x43b   : > { %v3598_v43 = vmax.f32 %v3566_v7, 0.0  ;;  %v3505_v23 = vadd.f32 %v16634_v1, %v19769_v62  ;;  %v16636_v36 = vadd.f32 %v15117_v11, %v20767_v49  ;;  %v3426_v44 = vpop.f32.mrb[31].mxu0  ;;  %v18176_v1 = vld [vmem:[#allocation3 + $0x31] sm:$0xff]  ;;  %v18178_v11 = vld [vmem:[#allocation3 + $0x39] sm:$0xff] }
 0x43c   : > { %v3596_v20 = vmax.f32 %v3564_v42, 0.0  ;;  %v3503_v52 = vadd.f32 %v16635_v25, %v19769_v62  ;;  %v16637_v51 = vadd.f32 %v3426_v44, %v20768_v9  ;;  %v18177_v42 = vld [vmem:[#allocation3 + $0x19] sm:$0xff] }
 0x43d   : > { %v3537_v27 = vmax.f32 %v3505_v23, 0.0  ;;  %v3506_v54 = vadd.f32 %v16636_v36, %v19769_v62  ;;  %v19861_v16 = vpack.c.bf16 %v3598_v43, %v3597_v33  ;;  %v18179_v43 = vld [vmem:[#allocation3 + $0x21] sm:$0xff] }
 0x43e   : > { %v3535_v45 = vmax.f32 %v3503_v52, 0.0  ;;  %v3504_v48 = vadd.f32 %v16637_v51, %v19769_v62  ;;  %v19864_v58 = vpack.c.bf16 %v3596_v20, %v3595_v39  ;;  %v19873_v62 = vld [vmem:[%s20756_s27 + $0x1] ss:$0 sm:$0xff] }
 0x43f   : > { %v3569_v0 = vadd.f32 %v18172_v17, %v3537_v27  ;;  %v3538_v2 = vmax.f32 %v3506_v54, 0.0 }
 0x440   : > { %v3567_v10 = vadd.f32 %v18173_v35, %v3535_v45  ;;  %v3536_v13 = vmax.f32 %v3504_v48, 0.0 }
 0x441   : > { %v3570_v28 = vadd.f32 %v18174_v26, %v3538_v2  ;;  %v3601_v31 = vmax.f32 %v3569_v0, 0.0 }
 0x442   : > { %v3568_v32 = vadd.f32 %v18175_v41, %v3536_v13  ;;  %v3599_v15 = vmax.f32 %v3567_v10, 0.0  ;;  %v18180_v10 = vld [vmem:[#allocation3 + $0x61] sm:$0xff]  ;;  %v18181_v41 = vld [vmem:[#allocation3 + $0x49] sm:$0xff] }
 0x443   : > { %v3602_v4 = vmax.f32 %v3570_v28, 0.0  ;;  %v17971_v28 = vld [vmem:[#allocation13 + $0x8] sm:$0xff]  }
 0x444   : > { %v3600_v29 = vmax.f32 %v3568_v32, 0.0 }
 0x445   : > { %v19866_v59 = vpack.c.bf16 %v3602_v4, %v3601_v31  ;;  %v18182_v4 = vld [vmem:[#allocation3 + $0x69] sm:$0xff] }
 0x446   : > { %v19868_v21 = vpack.c.bf16 %v3600_v29, %v3599_v15  ;;  %v18183_v29 = vld [vmem:[#allocation3 + $0x51] sm:$0xff] }
 0x477   : > { %v15520_v18 = vpop.f32.mrb[32].mxu1 }
 0x478   : > { %v6333_v50 = vadd.f32 %v15520_v18, %v19873_v62  ;;  %v6167_v19 = vpop.f32.mrb[33].mxu1 }
 0x479   : > { %v6331_v57 = vadd.f32 %v19873_v62, %v6167_v19  ;;  %v15521_v37 = vpop.f32.mrb[34].mxu1 }
 0x47a   : > { %v6365_v38 = vmax.f32 %v6333_v50, 0.0  ;;  %v6334_v30 = vadd.f32 %v15521_v37, %v19873_v62  ;;  %v6170_v55 = vpop.f32.mrb[35].mxu1 }
 0x47b   : > { %v6363_v7 = vmax.f32 %v6331_v57, 0.0  ;;  %v6332_v53 = vadd.f32 %v19873_v62, %v6170_v55 }
 0x47c   : > { %v6397_v63 = vadd.f32 %v18176_v1, %v6365_v38  ;;  %v6366_v40 = vmax.f32 %v6334_v30, 0.0  ;;  %v17972_v30 = vld [vmem:[#allocation13 + $0x10] sm:$0xff]  }
 0x47d   : > { %v6395_v12 = vadd.f32 %v18177_v42, %v6363_v7  ;;  %v6364_v25 = vmax.f32 %v6332_v53, 0.0 }
 0x47e   : > { %v6398_v33 = vadd.f32 %v18178_v11, %v6366_v40  ;;  %v6429_v36 = vmax.f32 %v6397_v63, 0.0 }
 0x47f   : > { %v6396_v23 = vadd.f32 %v18179_v43, %v6364_v25  ;;  %v15524_v49 = vpop.f32.mrb[36].mxu1  ;;  %v6427_v52 = vmax.f32 %v6395_v12, 0.0 }
 0x480   : > { %v6430_v44 = vmax.f32 %v6398_v33, 0.0  ;;  %v6337_v39 = vadd.f32 %v15524_v49, %v19873_v62  ;;  %v6183_v20 = vpop.f32.mrb[37].mxu1  ;;  %v18184_v33 = vld [vmem:[#allocation3 + $0x91] sm:$0xff]  ;;  %v17973_v49 = vld [vmem:[#allocation13 + $0x18] sm:$0xff]  }
 0x481   : > { %v6428_v9 = vmax.f32 %v6396_v23, 0.0  ;;  %v6335_v51 = vadd.f32 %v19873_v62, %v6183_v20  ;;  %v15525_v27 = vpop.f32.mrb[38].mxu1  ;;  %v18186_v20 = vld [vmem:[#allocation3 + $0x99] sm:$0xff] }
 0x482   : > { %v6492_v54 = vpack.c.bf16 %v6430_v44, %v6429_v36  ;;  %v6369_v45 = vmax.f32 %v6337_v39, 0.0  ;;  %v6338_v48 = vadd.f32 %v15525_v27, %v19873_v62  ;;  %v6186_v17 = vpop.f32.mrb[39].mxu1  ;;  %v18185_v36 = vld [vmem:[#allocation3 + $0x79] sm:$0xff] }
 0x483   : > { %v6367_v0 = vmax.f32 %v6335_v51, 0.0  ;;  %v6336_v2 = vadd.f32 %v19873_v62, %v6186_v17  ;;  %v6491_v35 = vpack.c.bf16 %v6428_v9, %v6427_v52  ;;  %v18187_v9 = vld [vmem:[#allocation3 + $0x81] sm:$0xff] }
 0x484   : > { %v6401_v13 = vadd.f32 %v18180_v10, %v6369_v45  ;;  %v6370_v26 = vmax.f32 %v6338_v48, 0.0 }
 0x485   : > { %v6399_v32 = vadd.f32 %v18181_v41, %v6367_v0  ;;  %v6368_v31 = vmax.f32 %v6336_v2, 0.0  ;;  %15566 = vmatprep.mubr.bf16.mxu0 %v6491_v35  ;;  %v17974_v0 = vld [vmem:[#allocation13 + $0x20] sm:$0xff]  }
 0x486   : > { %v6402_v15 = vadd.f32 %v18182_v4, %v6370_v26  ;;  %15567 = vmatmul.mubr.bf16.vlgmr.msra.gmra.mrb[32].mxu0 %v6492_v54  ;;  %v6433_v19 = vmax.f32 %v6401_v13, 0.0 }
 0x487   : > { %v6400_v18 = vadd.f32 %v18183_v29, %v6368_v31  ;;  %v15528_v50 = vpop.f32.mrb[40].mxu1  ;;  %15599 = vmatpush3.bf16.msra.mxu0 %v19792_v22  ;;  %v6431_v55 = vmax.f32 %v6399_v32, 0.0  ;;  %v18188_v29 = vld [vmem:[#allocation3 + $0xc1] sm:$0xff] }
 0x488   : > { %v6434_v57 = vmax.f32 %v6402_v15, 0.0  ;;  %v6341_v37 = vadd.f32 %v15528_v50, %v19873_v62  ;;  %v6199_v38 = vpop.f32.mrb[41].mxu1  ;;  %15600 = vmatprep.subr.bf16.mxu0 %v17971_v28 }
 0x489   : > { %v6432_v7 = vmax.f32 %v6400_v18, 0.0  ;;  %v6339_v53 = vadd.f32 %v19873_v62, %v6199_v38  ;;  %v15529_v1 = vpop.f32.mrb[42].mxu1 }
 0x48a   : > { %v6373_v63 = vmax.f32 %v6341_v37, 0.0  ;;  %v6342_v40 = vadd.f32 %v15529_v1, %v19873_v62  ;;  %v6202_v42 = vpop.f32.mrb[43].mxu1  ;;  %v6494_v12 = vpack.c.bf16 %v6434_v57, %v6433_v19  ;;  %v17975_v19 = vld [vmem:[#allocation13 + $0x28] sm:$0xff]   ;;  %v18189_v57 = vld [vmem:[#allocation3 + $0xa9] sm:$0xff] }
 0x48b   : > { %v6371_v25 = vmax.f32 %v6339_v53, 0.0  ;;  %v6340_v22 = vadd.f32 %v19873_v62, %v6202_v42  ;;  %v6493_v11 = vpack.c.bf16 %v6432_v7, %v6431_v55  ;;  %15601 = vmatpush3.bf16.msra.mxu0 %v17971_v28  ;;  %v18191_v7 = vld [vmem:[#allocation3 + $0xb1] sm:$0xff] }
 0x48c   : > { %v6405_v43 = vadd.f32 %v18184_v33, %v6373_v63  ;;  %v6374_v23 = vmax.f32 %v6342_v40, 0.0  ;;  %15602 = vmatprep.subr.bf16.mxu0 %v17972_v30 }
 0x48d   : > { %v6403_v44 = vadd.f32 %v18185_v36, %v6371_v25  ;;  %v6372_v39 = vmax.f32 %v6340_v22, 0.0  ;;  %15570 = vmatprep.mubr.bf16.mxu0 %v6493_v11  ;;  %v17976_v25 = vld [vmem:[#allocation13 + $0x30] sm:$0xff]  }
 0x48e   : > { %v6406_v52 = vadd.f32 %v18186_v20, %v6374_v23  ;;  %15571 = vmatmul.mubr.bf16.gmra.mrb[36].mxu0 %v6494_v12  ;;  %v6437_v54 = vmax.f32 %v6405_v43, 0.0 }
 0x48f   : > { %v6404_v51 = vadd.f32 %v18187_v9, %v6372_v39  ;;  %v15532_v27 = vpop.f32.mrb[44].mxu1  ;;  %15603 = vmatpush3.bf16.msra.mxu0 %v17972_v30  ;;  %v6435_v2 = vmax.f32 %v6403_v44, 0.0  ;;  %v18190_v30 = vld [vmem:[#allocation3 + $0xc9] sm:$0xff]  ;;  %v18192_v9 = vld [vmem:[#allocation3 + $0xf1] sm:$0xff] }
 0x490   : > { %v6438_v45 = vmax.f32 %v6406_v52, 0.0  ;;  %v6345_v48 = vadd.f32 %v15532_v27, %v19873_v62  ;;  %v6215_v17 = vpop.f32.mrb[45].mxu1  ;;  %15604 = vmatprep.subr.bf16.mxu0 %v17973_v49 }
 0x491   : > { %v6436_v35 = vmax.f32 %v6404_v51, 0.0  ;;  %v6343_v10 = vadd.f32 %v19873_v62, %v6215_v17  ;;  %v15533_v13 = vpop.f32.mrb[46].mxu1 }
 0x492   : > { %v6377_v26 = vmax.f32 %v6345_v48, 0.0  ;;  %v6346_v28 = vadd.f32 %v15533_v13, %v19873_v62  ;;  %v6218_v41 = vpop.f32.mrb[47].mxu1  ;;  %v6496_v32 = vpack.c.bf16 %v6438_v45, %v6437_v54  ;;  %v17977_v54 = vld [vmem:[#allocation13 + $0x38] sm:$0xff]   ;;  %v18193_v45 = vld [vmem:[#allocation3 + $0xd9] sm:$0xff] }
 0x493   : > { %v6375_v31 = vmax.f32 %v6343_v10, 0.0  ;;  %v6344_v4 = vadd.f32 %v19873_v62, %v6218_v41  ;;  %v6495_v15 = vpack.c.bf16 %v6436_v35, %v6435_v2  ;;  %15605 = vmatpush3.bf16.msra.mxu0 %v17973_v49  ;;  %v18195_v35 = vld [vmem:[#allocation3 + $0xe1] sm:$0xff] }
 0x494   : > { %v6409_v18 = vadd.f32 %v18188_v29, %v6377_v26  ;;  %v6378_v50 = vmax.f32 %v6346_v28, 0.0  ;;  %15606 = vmatprep.subr.bf16.mxu0 %v17974_v0 }
 0x495   : > { %v6407_v37 = vadd.f32 %v18189_v57, %v6375_v31  ;;  %v6376_v38 = vmax.f32 %v6344_v4, 0.0  ;;  %15574 = vmatprep.mubr.bf16.mxu0 %v6495_v15  ;;  %v19897_v31 = vld [vmem:[#allocation13 + $0x80] sm:$0xff]  }
 0x496   : > { %v6410_v55 = vadd.f32 %v18190_v30, %v6378_v50  ;;  %15575 = vmatmul.mubr.bf16.gmra.mrb[40].mxu0 %v6496_v32  ;;  %v6441_v63 = vmax.f32 %v6409_v18, 0.0 }
 0x497   : > { %v6408_v53 = vadd.f32 %v18191_v7, %v6376_v38  ;;  %v15536_v1 = vpop.f32.mrb[48].mxu1  ;;  %15607 = vmatpush3.bf16.msra.mxu0 %v17974_v0  ;;  %v6439_v22 = vmax.f32 %v6407_v37, 0.0  ;;  %v18194_v0 = vld [vmem:[#allocation3 + $0xf9] sm:$0xff]  ;;  %v18196_v7 = vld [vmem:[#allocation3 + $0x121] sm:$0xff] }
 0x498   : > { %v6442_v40 = vmax.f32 %v6410_v55, 0.0  ;;  %v6349_v42 = vadd.f32 %v15536_v1, %v19873_v62  ;;  %v6231_v12 = vpop.f32.mrb[49].mxu1  ;;  %15608 = vmatprep.subr.bf16.mxu0 %v17975_v19 }
 0x499   : > { %v6440_v11 = vmax.f32 %v6408_v53, 0.0  ;;  %v6347_v33 = vadd.f32 %v19873_v62, %v6231_v12  ;;  %v15537_v43 = vpop.f32.mrb[50].mxu1  ;;  %v18198_v12 = vld [vmem:[#allocation3 + $0x129] sm:$0xff] }
 0x49a   : > { %v6381_v23 = vmax.f32 %v6349_v42, 0.0  ;;  %v6350_v49 = vadd.f32 %v15537_v43, %v19873_v62  ;;  %v6234_v36 = vpop.f32.mrb[51].mxu1  ;;  %v6498_v44 = vpack.c.bf16 %v6442_v40, %v6441_v63  ;;  %v18197_v63 = vld [vmem:[#allocation3 + $0x109] sm:$0xff] }
 0x49b   : > { %v6379_v39 = vmax.f32 %v6347_v33, 0.0  ;;  %v6348_v20 = vadd.f32 %v19873_v62, %v6234_v36  ;;  %v6497_v52 = vpack.c.bf16 %v6440_v11, %v6439_v22  ;;  %15609 = vmatpush3.bf16.msra.mxu0 %v17975_v19  ;;  %v18199_v22 = vld [vmem:[#allocation3 + $0x111] sm:$0xff] }
 0x49c   : > { %v6413_v51 = vadd.f32 %v18192_v9, %v6381_v23  ;;  %v6382_v27 = vmax.f32 %v6350_v49, 0.0  ;;  %15610 = vmatprep.subr.bf16.mxu0 %v17976_v25 }
 0x49d   : > { %v6411_v48 = vadd.f32 %v18193_v45, %v6379_v39  ;;  %v6380_v17 = vmax.f32 %v6348_v20, 0.0  ;;  %15578 = vmatprep.mubr.bf16.mxu0 %v6497_v52 }
 0x49e   : > { %v6414_v2 = vadd.f32 %v18194_v0, %v6382_v27  ;;  %15579 = vmatmul.mubr.bf16.gmra.mrb[44].mxu0 %v6498_v44  ;;  %v6445_v26 = vmax.f32 %v6413_v51, 0.0  ;;  %v18200_v0 = vld [vmem:[#allocation3 + $0x151] sm:$0xff] }
 0x49f   : > { %v6412_v10 = vadd.f32 %v18195_v35, %v6380_v17  ;;  %v15540_v13 = vpop.f32.mrb[52].mxu1  ;;  %15611 = vmatpush3.bf16.msra.mxu0 %v17976_v25  ;;  %v6443_v4 = vmax.f32 %v6411_v48, 0.0 }
 0x4a0   : > { %v6446_v28 = vmax.f32 %v6414_v2, 0.0  ;;  %v6353_v41 = vadd.f32 %v15540_v13, %v19873_v62  ;;  %v6247_v32 = vpop.f32.mrb[53].mxu1  ;;  %15612 = vmatprep.subr.bf16.mxu0 %v17977_v54 }
 0x4a1   : > { %v6444_v15 = vmax.f32 %v6412_v10, 0.0  ;;  %v6351_v29 = vadd.f32 %v19873_v62, %v6247_v32  ;;  %v15541_v18 = vpop.f32.mrb[54].mxu1  ;;  %v18201_v10 = vld [vmem:[#allocation3 + $0x139] sm:$0xff]  ;;  %v18203_v32 = vld [vmem:[#allocation3 + $0x141] sm:$0xff] }
 0x4a2   : > { %v6385_v50 = vmax.f32 %v6353_v41, 0.0  ;;  %v6354_v19 = vadd.f32 %v15541_v18, %v19873_v62  ;;  %v6250_v57 = vpop.f32.mrb[55].mxu1  ;;  %v6500_v37 = vpack.c.bf16 %v6446_v28, %v6445_v26  ;;  %v18202_v28 = vld [vmem:[#allocation3 + $0x159] sm:$0xff] }
 0x4a3   : > { %v6383_v38 = vmax.f32 %v6351_v29, 0.0  ;;  %v6352_v30 = vadd.f32 %v19873_v62, %v6250_v57  ;;  %v6499_v55 = vpack.c.bf16 %v6444_v15, %v6443_v4  ;;  %15613 = vmatpush3.bf16.msra.mxu0 %v17977_v54 }
 0x4a4   : > { %v6417_v53 = vadd.f32 %v18196_v7, %v6385_v50  ;;  %v6386_v1 = vmax.f32 %v6354_v19, 0.0  ;;  %15646 = vmatprep.subr.bf16.mxu0 %v19897_v31 }
 0x4a5   : > { %v6415_v40 = vadd.f32 %v18197_v63, %v6383_v38  ;;  %v6384_v42 = vmax.f32 %v6352_v30, 0.0  ;;  %15582 = vmatprep.mubr.bf16.mxu0 %v6499_v55 }
 0x4a6   : > { %v6418_v25 = vadd.f32 %v18198_v12, %v6386_v1  ;;  %15583 = vmatmul.mubr.bf16.gmra.mrb[48].mxu0 %v6500_v37  ;;  %v6449_v43 = vmax.f32 %v6417_v53, 0.0  ;;  %v18204_v12 = vld [vmem:[#allocation3 + $0x181] sm:$0xff] }
 0x4a7   : > { %v6416_v11 = vadd.f32 %v18199_v22, %v6384_v42  ;;  %v15544_v33 = vpop.f32.mrb[56].mxu1  ;;  %v6447_v44 = vmax.f32 %v6415_v40, 0.0 }
 0x4a8   : > { %v6450_v23 = vmax.f32 %v6418_v25, 0.0  ;;  %v6357_v49 = vadd.f32 %v15544_v33, %v19873_v62  ;;  %v6263_v36 = vpop.f32.mrb[57].mxu1 }
 0x4a9   : > { %v6448_v39 = vmax.f32 %v6416_v11, 0.0  ;;  %v6355_v20 = vadd.f32 %v19873_v62, %v6263_v36  ;;  %v15545_v52 = vpop.f32.mrb[58].mxu1  ;;  %v18205_v11 = vld [vmem:[#allocation3 + $0x169] sm:$0xff]  ;;  %v18207_v36 = vld [vmem:[#allocation3 + $0x171] sm:$0xff] }
 0x4aa   : > { %v6389_v9 = vmax.f32 %v6357_v49, 0.0  ;;  %v6358_v51 = vadd.f32 %v15545_v52, %v19873_v62  ;;  %v6266_v27 = vpop.f32.mrb[59].mxu1  ;;  %v6502_v54 = vpack.c.bf16 %v6450_v23, %v6449_v43  ;;  %v18206_v23 = vld [vmem:[#allocation3 + $0x189] sm:$0xff]  ;;  %v652_v52 = vld [vmem:[%s19017_s11 + $0x8] sm:$0xff] }
 0x4ab   : > { %v6387_v45 = vmax.f32 %v6355_v20, 0.0  ;;  %v6356_v48 = vadd.f32 %v19873_v62, %v6266_v27  ;;  %v6501_v17 = vpack.c.bf16 %v6448_v39, %v6447_v44  ;;  %v651_v20 = vld [vmem:[%s19017_s11] sm:$0xff] }
 0x4ac   : > { %v6421_v2 = vadd.f32 %v18200_v0, %v6389_v9  ;;  %v6390_v35 = vmax.f32 %v6358_v51, 0.0  ;;  %v653_v0 = vld [vmem:[%s19017_s11 + $0x10] sm:$0xff] }
 0x4ad   : > { %v6419_v13 = vadd.f32 %v18201_v10, %v6387_v45  ;;  %v6388_v26 = vmax.f32 %v6356_v48, 0.0  ;;  %15586 = vmatprep.mubr.bf16.mxu0 %v6501_v17  ;;  %v6459_v45 = vpack.c.bf16 %v652_v52, %v651_v20  ;;  %v17986_v48 = vld [vmem:[#allocation15 + $0x40] sm:$0xff]   ;;  %v17987_v17 = vld [vmem:[#allocation15 + $0x48] sm:$0xff]  }
 0x4ae   : > { %v6422_v41 = vadd.f32 %v18202_v28, %v6390_v35  ;;  %15587 = vmatmul.mubr.bf16.gmra.mrb[52].mxu0 %v6502_v54  ;;  %v6453_v29 = vmax.f32 %v6421_v2, 0.0  ;;  %v654_v2 = vld [vmem:[%s19017_s11 + $0x18] sm:$0xff]  ;;  %v655_v35 = vld [vmem:[%s19017_s11 + $0x20] sm:$0xff]  ;;  %v656_v10 = vld [vmem:[%s19017_s11 + $0x28] sm:$0xff]  ;;  %15694 = vmatprep.subr.bf16.mxu1 %v17986_v48 }
 0x4af   : > { %v6420_v4 = vadd.f32 %v18203_v32, %v6388_v26  ;;  %v15548_v15 = vpop.f32.mrb[60].mxu1  ;;  %v6451_v57 = vmax.f32 %v6419_v13, 0.0  ;;  %15695 = vmatpush3.bf16.msra.mxu1 %v17986_v48  ;;  %v6460_v13 = vpack.c.bf16 %v654_v2, %v653_v0  ;;  %v17988_v26 = vld [vmem:[#allocation15 + $0x50] sm:$0xff]   ;;  %v6461_v28 = vpack.c.bf16 %v656_v10, %v655_v35  ;;  %v17989_v32 = vld [vmem:[#allocation15 + $0x58] sm:$0xff]   ;;  %v679_v2 = vld [vmem:[%s19017_s11 + $0xe0] sm:$0xff] }
 0x4b0   : > { %v6454_v18 = vmax.f32 %v6422_v41, 0.0  ;;  %v6361_v50 = vadd.f32 %v15548_v15, %v19873_v62  ;;  %v6279_v19 = vpop.f32.mrb[61].mxu1  ;;  %15696 = vmatprep.subr.bf16.mxu1 %v17987_v17  ;;  %v17979_v41 = vld [vmem:[#allocation13 + $0x88] sm:$0xff]   ;;  %v658_v15 = vld [vmem:[%s19017_s11 + $0x38] sm:$0xff] }
 0x4b1   : > { %v6452_v37 = vmax.f32 %v6420_v4, 0.0  ;;  %v6359_v38 = vadd.f32 %v19873_v62, %v6279_v19  ;;  %v15549_v30 = vpop.f32.mrb[62].mxu1  ;;  %v657_v4 = vld [vmem:[%s19017_s11 + $0x30] sm:$0xff]  ;;  %v678_v0 = vld [vmem:[%s19017_s11 + $0xd8] sm:$0xff]  ;;  %v680_v35 = vld [vmem:[%s19017_s11 + $0xe8] sm:$0xff] }
 0x4b2   : > { %v6393_v55 = vmax.f32 %v6361_v50, 0.0  ;;  %v6362_v7 = vadd.f32 %v15549_v30, %v19873_v62  ;;  %v6282_v53 = vpop.f32.mrb[63].mxu1  ;;  %v6504_v1 = vpack.c.bf16 %v6454_v18, %v6453_v29  ;;  %v659_v29 = vld [vmem:[%s19017_s11 + $0x40] sm:$0xff]  ;;  %v660_v18 = vld [vmem:[%s19017_s11 + $0x48] sm:$0xff]  ;;  %v17980_v50 = vld [vmem:[#allocation13 + $0x90] sm:$0xff]   ;;  %v6462_v19 = vpack.c.bf16 %v658_v15, %v657_v4 }
 0x4b3   : > { %v6391_v63 = vmax.f32 %v6359_v38, 0.0  ;;  %v6360_v40 = vadd.f32 %v19873_v62, %v6282_v53  ;;  %v6503_v42 = vpack.c.bf16 %v6452_v37, %v6451_v57  ;;  %15697 = vmatpush3.bf16.msra.mxu1 %v17987_v17  ;;  %v17990_v57 = vld [vmem:[#allocation15 + $0x60] sm:$0xff]   ;;  %v6463_v37 = vpack.c.bf16 %v660_v18, %v659_v29  ;;  %v17981_v38 = vld [vmem:[#allocation13 + $0x98] sm:$0xff]   ;;  %v661_v30 = vld [vmem:[%s19017_s11 + $0x50] sm:$0xff] }
 0x4b4   : > { %v6425_v25 = vadd.f32 %v18204_v12, %v6393_v55  ;;  %v6394_v22 = vmax.f32 %v6362_v7, 0.0  ;;  %15698 = vmatprep.subr.bf16.mxu1 %v17988_v26  ;;  %v662_v55 = vld [vmem:[%s19017_s11 + $0x58] sm:$0xff]  ;;  %v663_v7 = vld [vmem:[%s19017_s11 + $0x60] sm:$0xff]  ;;  %v664_v53 = vld [vmem:[%s19017_s11 + $0x68] sm:$0xff] }
 0x4b5   : > { %v6423_v33 = vadd.f32 %v18205_v11, %v6391_v63  ;;  %v6392_v43 = vmax.f32 %v6360_v40, 0.0  ;;  %15590 = vmatprep.mubr.bf16.mxu0 %v6503_v42  ;;  %v6464_v63 = vpack.c.bf16 %v662_v55, %v661_v30  ;;  %v6465_v40 = vpack.c.bf16 %v664_v53, %v663_v7  ;;  %v17983_v42 = vld [vmem:[#allocation13 + $0xa8] sm:$0xff]   ;;  %v665_v12 = vld [vmem:[%s19017_s11 + $0x70] sm:$0xff] }
 0x4b6   : > { %v6426_v49 = vadd.f32 %v18206_v23, %v6394_v22  ;;  %15591 = vmatmul.mubr.bf16.gmra.mrb[56].mxu0 %v6504_v1  ;;  %v6457_v39 = vmax.f32 %v6425_v25, 0.0  ;;  %v17982_v1 = vld [vmem:[#allocation13 + $0xa0] sm:$0xff]   ;;  %v666_v25 = vld [vmem:[%s19017_s11 + $0x78] sm:$0xff]  ;;  %v668_v11 = vld [vmem:[%s19017_s11 + $0x88] sm:$0xff] }
 0x4b7   : > { %v6424_v44 = vadd.f32 %v18207_v36, %v6392_v43  ;;  %v6455_v9 = vmax.f32 %v6423_v33, 0.0  ;;  %15699 = vmatpush3.bf16.msra.mxu1 %v17988_v26  ;;  %v667_v22 = vld [vmem:[%s19017_s11 + $0x80] sm:$0xff]  ;;  %v17984_v33 = vld [vmem:[#allocation13 + $0xb0] sm:$0xff]   ;;  %v6466_v43 = vpack.c.bf16 %v666_v25, %v665_v12 }
 0x4b8   : > { %v6458_v62 = vmax.f32 %v6426_v49, 0.0  ;;  %15700 = vmatprep.subr.bf16.mxu1 %v17989_v32  ;;  %v6467_v23 = vpack.c.bf16 %v668_v11, %v667_v22  ;;  %v17985_v49 = vld [vmem:[#allocation13 + $0xb8] sm:$0xff]   ;;  %v669_v36 = vld [vmem:[%s19017_s11 + $0x90] sm:$0xff] }
 0x4b9   : > { %v6456_v51 = vmax.f32 %v6424_v44, 0.0  ;;  %v670_v44 = vld [vmem:[%s19017_s11 + $0x98] sm:$0xff]  ;;  %v677_v17 = vld [vmem:[%s19017_s11 + $0xd0] sm:$0xff] }
 0x4ba   : > { %v6506_v27 = vpack.c.bf16 %v6458_v62, %v6457_v39  ;;  %v671_v39 = vld [vmem:[%s19017_s11 + $0xa0] sm:$0xff]  ;;  %v672_v62 = vld [vmem:[%s19017_s11 + $0xa8] sm:$0xff]  ;;  %v6468_v20 = vpack.c.bf16 %v670_v44, %v669_v36  ;;  %v6472_v10 = vpack.c.bf16 %v678_v0, %v677_v17  ;;  %v681_v26 = vld [vmem:[%s19017_s11 + $0xf0] sm:$0xff] }
 0x4bb   : > { %v6505_v54 = vpack.c.bf16 %v6456_v51, %v6455_v9  ;;  %15701 = vmatpush3.bf16.msra.mxu1 %v17989_v32  ;;  %v6469_v52 = vpack.c.bf16 %v672_v62, %v671_v39  ;;  %v673_v9 = vld [vmem:[%s19017_s11 + $0xb0] sm:$0xff]  ;;  %v674_v51 = vld [vmem:[%s19017_s11 + $0xb8] sm:$0xff] }
 0x4bc   : > { %15702 = vmatprep.subr.bf16.mxu1 %v17990_v57  ;;  %v17997_v11 = vld [vmem:[#allocation15 + $0x18] sm:$0xff]  }
 0x4bd   : > { %15594 = vmatprep.mubr.bf16.mxu0 %v6505_v54  ;;  %v676_v54 = vld [vmem:[%s19017_s11 + $0xc8] sm:$0xff] }
 0x4be   : > { %15595 = vmatmul.mubr.bf16.gmra.mrb[60].mxu0 %v6506_v27  ;;  %v675_v27 = vld [vmem:[%s19017_s11 + $0xc0] sm:$0xff] }
 0x4bf   : > { %15614 = vmatprep.mubr.bf16.mxu0 %v6459_v45  ;;  %15703 = vmatpush3.bf16.msra.mxu1 %v17990_v57  ;;  %v6470_v45 = vpack.c.bf16 %v674_v51, %v673_v9  ;;  %v6471_v48 = vpack.c.bf16 %v676_v54, %v675_v27 }
 0x4c6   : > { %15615 = vmatmul.mubr.bf16.vlgmr.msra.gmra.mrb[32].mxu0 %v6460_v13  ;;  %v6473_v13 = vpack.c.bf16 %v680_v35, %v679_v2 }
 0x4c7   : > { %15647 = vmatpush3.bf16.msra.mxu0 %v19897_v31  ;;  %15618 = vmatprep.mubr.bf16.mxu0 %v6461_v28  ;;  %v17991_v31 = vld [vmem:[#allocation15 + $0x68] sm:$0xff]   ;;  %v682_v28 = vld [vmem:[%s19017_s11 + $0xf8] sm:$0xff] }
 0x4c8   : > { %15648 = vmatprep.subr.bf16.mxu0 %v17979_v41  ;;  %15704 = vmatprep.subr.bf16.mxu1 %v17991_v31 }
 0x4c9   : > { %15705 = vmatpush3.bf16.msra.mxu1 %v17991_v31 }
 0x4cb   : > { %15649 = vmatpush3.bf16.msra.mxu0 %v17979_v41  ;;  %v6474_v41 = vpack.c.bf16 %v682_v28, %v681_v26 }
 0x4cc   : > { %15650 = vmatprep.subr.bf16.mxu0 %v17980_v50 }
 0x4ce   : > { %15619 = vmatmul.mubr.bf16.gmra.mrb[36].mxu0 %v6462_v19  ;;  %v17995_v19 = vld [vmem:[#allocation15 + $0x8] sm:$0xff]  }
 0x4cf   : > { %15622 = vmatprep.mubr.bf16.mxu0 %v6463_v37  ;;  %15651 = vmatpush3.bf16.msra.mxu0 %v17980_v50 }
 0x4d0   : > { %15652 = vmatprep.subr.bf16.mxu0 %v17981_v38 }
 0x4d3   : > { %15653 = vmatpush3.bf16.msra.mxu0 %v17981_v38 }
 0x4d4   : > { %15654 = vmatprep.subr.bf16.mxu0 %v17982_v1 }
 0x4d6   : > { %15623 = vmatmul.mubr.bf16.gmra.mrb[40].mxu0 %v6464_v63  ;;  %v17996_v63 = vld [vmem:[#allocation15 + $0x10] sm:$0xff]  }
 0x4d7   : > { %15626 = vmatprep.mubr.bf16.mxu0 %v6465_v40  ;;  %15655 = vmatpush3.bf16.msra.mxu0 %v17982_v1 }
 0x4d8   : > { %15656 = vmatprep.subr.bf16.mxu0 %v17983_v42 }
 0x4db   : > { %15657 = vmatpush3.bf16.msra.mxu0 %v17983_v42 }
 0x4dc   : > { %15658 = vmatprep.subr.bf16.mxu0 %v17984_v33 }
 0x4de   : > { %15627 = vmatmul.mubr.bf16.gmra.mrb[44].mxu0 %v6466_v43 }
 0x4df   : > { %15630 = vmatprep.mubr.bf16.mxu0 %v6467_v23  ;;  %15659 = vmatpush3.bf16.msra.mxu0 %v17984_v33 }
 0x4e0   : > { %15660 = vmatprep.subr.bf16.mxu0 %v17985_v49 }
 0x4e3   : > { %15661 = vmatpush3.bf16.msra.mxu0 %v17985_v49 }
 0x4e6   : > { %15631 = vmatmul.mubr.bf16.gmra.mrb[48].mxu0 %v6468_v20 }
 0x4e7   : > { %15634 = vmatprep.mubr.bf16.mxu0 %v6469_v52  ;;  %v17998_v52 = vld [vmem:[#allocation15 + $0x20] sm:$0xff]  }
 0x4ee   : > { %15635 = vmatmul.mubr.bf16.gmra.mrb[52].mxu0 %v6470_v45 }
 0x4ef   : > { %15638 = vmatprep.mubr.bf16.mxu0 %v6471_v48  ;;  %v17999_v48 = vld [vmem:[#allocation15 + $0x28] sm:$0xff]  }
 0x4f6   : > { %15639 = vmatmul.mubr.bf16.gmra.mrb[56].mxu0 %v6472_v10 }
 0x4f7   : > { %15642 = vmatprep.mubr.bf16.mxu0 %v6473_v13 }
 0x4fe   : > { %15643 = vmatmul.mubr.bf16.gmra.mrb[60].mxu0 %v6474_v41 }
 0x4ff   : > { %15662 = vmatprep.mubr.bf16.mxu0 %v19789_v3  ;;  %v17993_v3 = vld [vmem:[#allocation15 + $0x78] sm:$0xff]  }
 0x506   : > { %15663 = vmatmul.mubr.bf16.vlgmr.msra.gmra.mrb[32].mxu0 %v19785_v46  ;;  %v17992_v46 = vld [vmem:[#allocation15 + $0x70] sm:$0xff]  }
 0x507   : > { %15666 = vmatprep.mubr.bf16.mxu0 %v19804_v6  ;;  %15706 = vmatprep.subr.bf16.mxu1 %v17992_v46  ;;  %v7382_v6 = vld [vmem:[#allocation2 + $0x9] sm:$0xff] }
 0x508   : > { %15707 = vmatpush3.bf16.msra.mxu1 %v17992_v46  ;;  %v18000_v46 = vld [vmem:[#allocation15 + $0x30] sm:$0xff]  }
 0x509   : > { %15708 = vmatprep.subr.bf16.mxu1 %v17993_v3 }
 0x50c   : > { %15709 = vmatpush3.bf16.msra.mxu1 %v17993_v3 }
 0x50e   : > { %15667 = vmatmul.mubr.bf16.gmra.mrb[36].mxu0 %v19801_v5  ;;  %v7381_v5 = vld [vmem:[#allocation2 + $0x1] sm:$0xff] }
 0x50f   : > { %15670 = vmatprep.mubr.bf16.mxu0 %v19816_v14  ;;  %v17994_v14 = vld [vmem:[#allocation15] sm:$0xff]  }
 0x510   : > { %15742 = vmatprep.subr.bf16.mxu1 %v17994_v14 }
 0x516   : > { %15671 = vmatmul.mubr.bf16.gmra.mrb[40].mxu0 %v19813_v56  ;;  %v7413_v56 = vpack.c.bf16 %v7382_v6, %v7381_v5 }
 0x517   : > { %15674 = vmatprep.mubr.bf16.mxu0 %v19828_v34 }
 0x518   : > { %15710 = vmatprep.mubr.bf16.mxu1 %v7413_v56 }
 0x51e   : > { %15675 = vmatmul.mubr.bf16.gmra.mrb[44].mxu0 %v19825_v60  ;;  %v19963_v60 = vld [vmem:[%s20756_s27 + $0x2] ss:$0 sm:$0xff] }
 0x51f   : > { %15678 = vmatprep.mubr.bf16.mxu0 %v19840_v8 }
 0x526   : > { %15679 = vmatmul.mubr.bf16.gmra.mrb[48].mxu0 %v19837_v24 }
 0x527   : > { %15682 = vmatprep.mubr.bf16.mxu0 %v19852_v47 }
 0x52e   : > { %15683 = vmatmul.mubr.bf16.gmra.mrb[52].mxu0 %v19849_v61 }
 0x52f   : > { %15686 = vmatprep.mubr.bf16.mxu0 %v19864_v58 }
 0x536   : > { %15687 = vmatmul.mubr.bf16.gmra.mrb[56].mxu0 %v19861_v16 }
 0x537   : > { %15690 = vmatprep.mubr.bf16.mxu0 %v19868_v21 }
 0x53e   : > { %15691 = vmatmul.mubr.bf16.gmra.mrb[60].mxu0 %v19866_v59 }
 0x5d9   : > { %v15664_v34 = vpop.f32.mrb[32].mxu0 }
 0x5da   : > { %v7223_v24 = vadd.f32 %v15664_v34, %v19963_v60  ;;  %v7057_v8 = vpop.f32.mrb[33].mxu0  ;;  %v18001_v34 = vld [vmem:[#allocation15 + $0x38] sm:$0xff]  }
 0x5db   : > { %v7221_v61 = vadd.f32 %v19963_v60, %v7057_v8  ;;  %v15665_v47 = vpop.f32.mrb[34].mxu0 }
 0x5dc   : > { %v7255_v16 = vmax.f32 %v7223_v24, 0.0  ;;  %v7224_v58 = vadd.f32 %v15665_v47, %v19963_v60  ;;  %v7060_v59 = vpop.f32.mrb[35].mxu0 }
 0x5dd   : > { %v7253_v21 = vmax.f32 %v7221_v61, 0.0  ;;  %v7222_v32 = vadd.f32 %v19963_v60, %v7060_v59 }
 0x5de   : > { %7287 = vst [vmem:[#allocation2 + $0x31] sm:$0xff] %v7255_v16  ;;  %v7256_v4 = vmax.f32 %v7224_v58, 0.0 }
 0x5df   : > { %7285 = vst [vmem:[#allocation2 + $0x19] sm:$0xff] %v7253_v21  ;;  %v7254_v15 = vmax.f32 %v7222_v32, 0.0 }
 0x5e0   : > { %7288 = vst [vmem:[#allocation2 + $0x39] sm:$0xff] %v7256_v4  ;;  %v7415_v29 = vpack.c.bf16 %v7256_v4, %v7255_v16  ;;  %v19996_v4 = vld [vmem:[#allocation15 + $0x80] sm:$0xff]  }
 0x5e1   : > { %7286 = vst [vmem:[#allocation2 + $0x21] sm:$0xff] %v7254_v15  ;;  %v15668_v18 = vpop.f32.mrb[36].mxu0  ;;  %v7414_v50 = vpack.c.bf16 %v7254_v15, %v7253_v21 }
 0x5e2   : > { %v7227_v57 = vadd.f32 %v15668_v18, %v19963_v60  ;;  %v7073_v37 = vpop.f32.mrb[37].mxu0 }
 0x5e3   : > { %v7225_v38 = vadd.f32 %v19963_v60, %v7073_v37  ;;  %v15669_v31 = vpop.f32.mrb[38].mxu0  ;;  %15711 = vmatmul.mubr.bf16.vlgmr.msra.gmra.mrb[64].mxu1 %v7414_v50 }
 0x5e4   : > { %v7259_v30 = vmax.f32 %v7227_v57, 0.0  ;;  %v7228_v55 = vadd.f32 %v15669_v31, %v19963_v60  ;;  %v7076_v7 = vpop.f32.mrb[39].mxu0  ;;  %15714 = vmatprep.mubr.bf16.mxu1 %v7415_v29  ;;  %15743 = vmatpush3.bf16.msra.mxu1 %v17994_v14 }
 0x5e5   : > { %v7257_v53 = vmax.f32 %v7225_v38, 0.0  ;;  %v7226_v1 = vadd.f32 %v19963_v60, %v7076_v7  ;;  %15744 = vmatprep.subr.bf16.mxu1 %v17995_v19 }
 0x5e6   : > { %7291 = vst [vmem:[#allocation2 + $0x61] sm:$0xff] %v7259_v30  ;;  %v7260_v40 = vmax.f32 %v7228_v55, 0.0 }
 0x5e7   : > { %7289 = vst [vmem:[#allocation2 + $0x49] sm:$0xff] %v7257_v53  ;;  %v7258_v42 = vmax.f32 %v7226_v1, 0.0 }
 0x5e8   : > { %7292 = vst [vmem:[#allocation2 + $0x69] sm:$0xff] %v7260_v40  ;;  %v7417_v12 = vpack.c.bf16 %v7260_v40, %v7259_v30  ;;  %15745 = vmatpush3.bf16.msra.mxu1 %v17995_v19 }
 0x5e9   : > { %7290 = vst [vmem:[#allocation2 + $0x51] sm:$0xff] %v7258_v42  ;;  %v15672_v25 = vpop.f32.mrb[40].mxu0  ;;  %v7416_v22 = vpack.c.bf16 %v7258_v42, %v7257_v53  ;;  %15746 = vmatprep.subr.bf16.mxu1 %v17996_v63 }
 0x5ea   : > { %v7231_v33 = vadd.f32 %v15672_v25, %v19963_v60  ;;  %v7089_v43 = vpop.f32.mrb[41].mxu0 }
 0x5eb   : > { %v7229_v23 = vadd.f32 %v19963_v60, %v7089_v43  ;;  %v15673_v49 = vpop.f32.mrb[42].mxu0  ;;  %15715 = vmatmul.mubr.bf16.gmra.mrb[68].mxu1 %v7416_v22 }
 0x5ec   : > { %v7263_v36 = vmax.f32 %v7231_v33, 0.0  ;;  %v7232_v44 = vadd.f32 %v15673_v49, %v19963_v60  ;;  %v7092_v39 = vpop.f32.mrb[43].mxu0  ;;  %15718 = vmatprep.mubr.bf16.mxu1 %v7417_v12  ;;  %15747 = vmatpush3.bf16.msra.mxu1 %v17996_v63 }
 0x5ed   : > { %v7261_v62 = vmax.f32 %v7229_v23, 0.0  ;;  %v7230_v20 = vadd.f32 %v19963_v60, %v7092_v39  ;;  %15748 = vmatprep.subr.bf16.mxu1 %v17997_v11 }
 0x5ee   : > { %7295 = vst [vmem:[#allocation2 + $0x91] sm:$0xff] %v7263_v36  ;;  %v7264_v9 = vmax.f32 %v7232_v44, 0.0 }
 0x5ef   : > { %7293 = vst [vmem:[#allocation2 + $0x79] sm:$0xff] %v7261_v62  ;;  %v19977_v51 = vmax.f32 %v7230_v20, 0.0 }
 0x5f0   : > { %7296 = vst [vmem:[#allocation2 + $0x99] sm:$0xff] %v7264_v9  ;;  %v7419_v27 = vpack.c.bf16 %v7264_v9, %v7263_v36  ;;  %15749 = vmatpush3.bf16.msra.mxu1 %v17997_v11 }
 0x5f1   : > { %7294 = vst [vmem:[#allocation2 + $0x81] sm:$0xff] %v19977_v51  ;;  %v15676_v54 = vpop.f32.mrb[44].mxu0  ;;  %v7418_v45 = vpack.c.bf16 %v19977_v51, %v7261_v62  ;;  %15750 = vmatprep.subr.bf16.mxu1 %v17998_v52 }
 0x5f2   : > { %v7235_v17 = vadd.f32 %v15676_v54, %v19963_v60  ;;  %v7105_v0 = vpop.f32.mrb[45].mxu0 }
 0x5f3   : > { %v7233_v2 = vadd.f32 %v19963_v60, %v7105_v0  ;;  %v15677_v35 = vpop.f32.mrb[46].mxu0  ;;  %15719 = vmatmul.mubr.bf16.gmra.mrb[72].mxu1 %v7418_v45 }
 0x5f4   : > { %v7267_v10 = vmax.f32 %v7235_v17, 0.0  ;;  %v7236_v13 = vadd.f32 %v15677_v35, %v19963_v60  ;;  %v7108_v26 = vpop.f32.mrb[47].mxu0  ;;  %15722 = vmatprep.mubr.bf16.mxu1 %v7419_v27  ;;  %15751 = vmatpush3.bf16.msra.mxu1 %v17998_v52 }
 0x5f5   : > { %v7265_v28 = vmax.f32 %v7233_v2, 0.0  ;;  %v7234_v41 = vadd.f32 %v19963_v60, %v7108_v26  ;;  %15752 = vmatprep.subr.bf16.mxu1 %v17999_v48 }
 0x5f6   : > { %7299 = vst [vmem:[#allocation2 + $0xc1] sm:$0xff] %v7267_v10  ;;  %v19985_v3 = vmax.f32 %v7236_v13, 0.0 }
 0x5f7   : > { %7297 = vst [vmem:[#allocation2 + $0xa9] sm:$0xff] %v7265_v28  ;;  %v7266_v5 = vmax.f32 %v7234_v41, 0.0  ;;  %v18208_v41 = vld [vmem:[#allocation2] sm:$0xff] }
 0x5f8   : > { %7300 = vst [vmem:[#allocation2 + $0xc9] sm:$0xff] %v19985_v3  ;;  %v7421_v6 = vpack.c.bf16 %v19985_v3, %v7267_v10  ;;  %15753 = vmatpush3.bf16.msra.mxu1 %v17999_v48 }
 0x5f9   : > { %7298 = vst [vmem:[#allocation2 + $0xb1] sm:$0xff] %v7266_v5  ;;  %v15680_v56 = vpop.f32.mrb[48].mxu0  ;;  %v19989_v14 = vpack.c.bf16 %v7266_v5, %v7265_v28  ;;  %15754 = vmatprep.subr.bf16.mxu1 %v18000_v46 }
 0x5fa   : > { %v7239_v24 = vadd.f32 %v15680_v56, %v19963_v60  ;;  %v7121_v8 = vpop.f32.mrb[49].mxu0  ;;  %v7320_v56 = vld [vmem:[#allocation2 + $0x20] sm:$0xff] }
 0x5fb   : > { %v7237_v61 = vadd.f32 %v19963_v60, %v7121_v8  ;;  %v15681_v47 = vpop.f32.mrb[50].mxu0  ;;  %15723 = vmatmul.mubr.bf16.gmra.mrb[76].mxu1 %v19989_v14  ;;  %v7321_v8 = vld [vmem:[#allocation2 + $0x30] sm:$0xff] }
 0x5fc   : > { %v7271_v16 = vmax.f32 %v7239_v24, 0.0  ;;  %v7240_v58 = vadd.f32 %v15681_v47, %v19963_v60  ;;  %v7124_v59 = vpop.f32.mrb[51].mxu0  ;;  %15726 = vmatprep.mubr.bf16.mxu1 %v7421_v6  ;;  %15755 = vmatpush3.bf16.msra.mxu1 %v18000_v46  ;;  %v20029_v46 = vpack.c.bf16 %v18208_v41, %v18208_v41  ;;  %v7865_v41 = vld [vmem:[#allocation2 + $0xa] sm:$0xff] }
 0x5fd   : > { %v7269_v21 = vmax.f32 %v7237_v61, 0.0  ;;  %v7238_v32 = vadd.f32 %v19963_v60, %v7124_v59  ;;  %15756 = vmatprep.subr.bf16.mxu1 %v18001_v34  ;;  %v18003_v61 = vld [vmem:[#allocation15 + $0x88] sm:$0xff]  }
 0x5fe   : > { %7303 = vst [vmem:[#allocation2 + $0xf1] sm:$0xff] %v7271_v16  ;;  %v7272_v15 = vmax.f32 %v7240_v58, 0.0  ;;  %v7324_v58 = vld [vmem:[#allocation2 + $0x50] sm:$0xff]  ;;  %v7326_v59 = vld [vmem:[#allocation2 + $0x68] sm:$0xff] }
 0x5ff   : > { %7301 = vst [vmem:[#allocation2 + $0xd9] sm:$0xff] %v7269_v21  ;;  %v7270_v29 = vmax.f32 %v7238_v32, 0.0 }
 0x600   : > { %7304 = vst [vmem:[#allocation2 + $0xf9] sm:$0xff] %v7272_v15  ;;  %v19998_v18 = vpack.c.bf16 %v7272_v15, %v7271_v16  ;;  %15757 = vmatpush3.bf16.msra.mxu1 %v18001_v34  ;;  %v7322_v34 = vld [vmem:[#allocation2 + $0x38] sm:$0xff]  ;;  %v18004_v16 = vld [vmem:[#allocation15 + $0x90] sm:$0xff]   ;;  %v7325_v15 = vld [vmem:[#allocation2 + $0x60] sm:$0xff] }
 0x601   : > { %7302 = vst [vmem:[#allocation2 + $0xe1] sm:$0xff] %v7270_v29  ;;  %v15684_v50 = vpop.f32.mrb[52].mxu0  ;;  %v20000_v19 = vpack.c.bf16 %v7270_v29, %v7269_v21  ;;  %15790 = vmatprep.subr.bf16.mxu1 %v19996_v4  ;;  %v20039_v47 = vpack.c.bf16 %v7322_v34, %v7321_v8  ;;  %v7323_v21 = vld [vmem:[#allocation2 + $0x48] sm:$0xff]  ;;  %v18005_v29 = vld [vmem:[#allocation15 + $0x98] sm:$0xff]  }
 0x602   : > { %v7243_v57 = vadd.f32 %v15684_v50, %v19963_v60  ;;  %v7137_v37 = vpop.f32.mrb[53].mxu0  ;;  %v20044_v32 = vpack.c.bf16 %v7324_v58, %v7323_v21  ;;  %v20046_v50 = vpack.c.bf16 %v7326_v59, %v7325_v15  ;;  %v7868_v58 = vld [vmem:[#allocation2 + $0x32] sm:$0xff]  ;;  %v7869_v59 = vld [vmem:[#allocation2 + $0x3a] sm:$0xff]  ;;  %v18011_v15 = vld [vmem:[#allocation15 + $0xc8] sm:$0xff]  }
 0x603   : > { %v7241_v38 = vadd.f32 %v19963_v60, %v7137_v37  ;;  %v15685_v31 = vpop.f32.mrb[54].mxu0  ;;  %15727 = vmatmul.mubr.bf16.gmra.mrb[80].mxu1 %v20000_v19  ;;  %v7330_v37 = vld [vmem:[#allocation2 + $0x98] sm:$0xff] }
 0x604   : > { %v7275_v30 = vmax.f32 %v7243_v57, 0.0  ;;  %v7244_v55 = vadd.f32 %v15685_v31, %v19963_v60  ;;  %v7140_v7 = vpop.f32.mrb[55].mxu0  ;;  %15730 = vmatprep.mubr.bf16.mxu1 %v19998_v18  ;;  %v7328_v57 = vld [vmem:[#allocation2 + $0x80] sm:$0xff] }
 0x605   : > { %v7273_v53 = vmax.f32 %v7241_v38, 0.0  ;;  %v7242_v1 = vadd.f32 %v19963_v60, %v7140_v7  ;;  %v7327_v38 = vld [vmem:[#allocation2 + $0x78] sm:$0xff] }
 0x606   : > { %7307 = vst [vmem:[#allocation2 + $0x121] sm:$0xff] %v7275_v30  ;;  %v7276_v63 = vmax.f32 %v7244_v55, 0.0  ;;  %v20050_v31 = vpack.c.bf16 %v7328_v57, %v7327_v38  ;;  %v18007_v55 = vld [vmem:[#allocation15 + $0xa8] sm:$0xff]  }
 0x607   : > { %7305 = vst [vmem:[#allocation2 + $0x109] sm:$0xff] %v7273_v53  ;;  %v7274_v40 = vmax.f32 %v7242_v1, 0.0  ;;  %v7332_v1 = vld [vmem:[#allocation2 + $0xb0] sm:$0xff]  ;;  %v7872_v38 = vld [vmem:[#allocation2 + $0x62] sm:$0xff] }
 0x608   : > { %7308 = vst [vmem:[#allocation2 + $0x129] sm:$0xff] %v7276_v63  ;;  %v20009_v42 = vpack.c.bf16 %v7276_v63, %v7275_v30  ;;  %v7329_v30 = vld [vmem:[#allocation2 + $0x90] sm:$0xff]  ;;  %v7334_v63 = vld [vmem:[#allocation2 + $0xc8] sm:$0xff] }
 0x609   : > { %7306 = vst [vmem:[#allocation2 + $0x111] sm:$0xff] %v7274_v40  ;;  %v15688_v12 = vpop.f32.mrb[56].mxu0  ;;  %v20011_v25 = vpack.c.bf16 %v7274_v40, %v7273_v53  ;;  %v20052_v7 = vpack.c.bf16 %v7330_v37, %v7329_v30  ;;  %v18008_v53 = vld [vmem:[#allocation15 + $0xb0] sm:$0xff]   ;;  %v7331_v40 = vld [vmem:[#allocation2 + $0xa8] sm:$0xff] }
 0x60a   : > { %v7247_v22 = vadd.f32 %v15688_v12, %v19963_v60  ;;  %v7153_v11 = vpop.f32.mrb[57].mxu0  ;;  %v20056_v12 = vpack.c.bf16 %v7332_v1, %v7331_v40  ;;  %v7870_v57 = vld [vmem:[#allocation2 + $0x4a] sm:$0xff]  ;;  %v7871_v37 = vld [vmem:[#allocation2 + $0x52] sm:$0xff]  ;;  %v7874_v40 = vld [vmem:[#allocation2 + $0x7a] sm:$0xff] }
 0x60b   : > { %v7245_v33 = vadd.f32 %v19963_v60, %v7153_v11  ;;  %v15689_v43 = vpop.f32.mrb[58].mxu0  ;;  %15731 = vmatmul.mubr.bf16.gmra.mrb[84].mxu1 %v20011_v25  ;;  %v18009_v11 = vld [vmem:[#allocation15 + $0xb8] sm:$0xff]   ;;  %v7873_v30 = vld [vmem:[#allocation2 + $0x6a] sm:$0xff] }
 0x60c   : > { %v7279_v23 = vmax.f32 %v7247_v22, 0.0  ;;  %v7248_v49 = vadd.f32 %v15689_v43, %v19963_v60  ;;  %v7156_v36 = vpop.f32.mrb[59].mxu0  ;;  %15734 = vmatprep.mubr.bf16.mxu1 %v20009_v42  ;;  %v7333_v22 = vld [vmem:[#allocation2 + $0xc0] sm:$0xff]  ;;  %v20091_v1 = vpack.c.bf16 %v7873_v30, %v7872_v38 }
 0x60d   : > { %v7277_v44 = vmax.f32 %v7245_v33, 0.0  ;;  %v7246_v39 = vadd.f32 %v19963_v60, %v7156_v36  ;;  %v20058_v33 = vpack.c.bf16 %v7334_v63, %v7333_v22  ;;  %v18010_v43 = vld [vmem:[#allocation15 + $0xc0] sm:$0xff]   ;;  %v7335_v36 = vld [vmem:[#allocation2 + $0xd8] sm:$0xff] }
 0x60e   : > { %7311 = vst [vmem:[#allocation2 + $0x151] sm:$0xff] %v7279_v23  ;;  %v7280_v62 = vmax.f32 %v7248_v49, 0.0  ;;  %v7338_v49 = vld [vmem:[#allocation2 + $0xf8] sm:$0xff]  ;;  %v18014_v63 = vld [vmem:[#allocation15 + $0xe0] sm:$0xff]  }
 0x60f   : > { %7309 = vst [vmem:[#allocation2 + $0x139] sm:$0xff] %v7277_v44  ;;  %v7278_v20 = vmax.f32 %v7246_v39, 0.0  ;;  %v7337_v39 = vld [vmem:[#allocation2 + $0xf0] sm:$0xff]  ;;  %v7875_v22 = vld [vmem:[#allocation2 + $0x82] sm:$0xff] }
 0x610   : > { %7312 = vst [vmem:[#allocation2 + $0x159] sm:$0xff] %v7280_v62  ;;  %v20019_v52 = vpack.c.bf16 %v7280_v62, %v7279_v23  ;;  %v7336_v23 = vld [vmem:[#allocation2 + $0xe0] sm:$0xff]  ;;  %v20064_v62 = vpack.c.bf16 %v7338_v49, %v7337_v39  ;;  %v18015_v49 = vld [vmem:[#allocation15 + $0xe8] sm:$0xff]   ;;  %v18016_v39 = vld [vmem:[#allocation15 + $0xf0] sm:$0xff]  }
 0x611   : > { %7310 = vst [vmem:[#allocation2 + $0x141] sm:$0xff] %v7278_v20  ;;  %v15692_v9 = vpop.f32.mrb[60].mxu0  ;;  %v20021_v27 = vpack.c.bf16 %v7278_v20, %v7277_v44  ;;  %v20062_v44 = vpack.c.bf16 %v7336_v23, %v7335_v36  ;;  %v7340_v20 = vld [vmem:[#allocation2 + $0x110] sm:$0xff]  ;;  %v20095_v23 = vpack.c.bf16 %v7875_v22, %v7874_v40 }
 0x612   : > { %v7251_v54 = vadd.f32 %v15692_v9, %v19963_v60  ;;  %v7169_v45 = vpop.f32.mrb[61].mxu0  ;;  %v7342_v9 = vld [vmem:[#allocation2 + $0x128] sm:$0xff] }
 0x613   : > { %v7249_v48 = vadd.f32 %v19963_v60, %v7169_v45  ;;  %v15693_v17 = vpop.f32.mrb[62].mxu0  ;;  %15735 = vmatmul.mubr.bf16.gmra.mrb[88].mxu1 %v20021_v27 }
 0x614   : > { %v7283_v0 = vmax.f32 %v7251_v54, 0.0  ;;  %v7252_v2 = vadd.f32 %v15693_v17, %v19963_v60  ;;  %v7172_v35 = vpop.f32.mrb[63].mxu0  ;;  %15738 = vmatprep.mubr.bf16.mxu1 %v20019_v52  ;;  %v7339_v54 = vld [vmem:[#allocation2 + $0x108] sm:$0xff] }
 0x615   : > { %v7281_v10 = vmax.f32 %v7249_v48, 0.0  ;;  %v7250_v13 = vadd.f32 %v19963_v60, %v7172_v35  ;;  %v7319_v60 = vld [vmem:[#allocation2 + $0x18] sm:$0xff]  ;;  %v20068_v45 = vpack.c.bf16 %v7340_v20, %v7339_v54  ;;  %v7341_v48 = vld [vmem:[#allocation2 + $0x120] sm:$0xff]  ;;  %v7878_v20 = vld [vmem:[#allocation2 + $0xaa] sm:$0xff] }
 0x616   : > { %7315 = vst [vmem:[#allocation2 + $0x181] sm:$0xff] %v7283_v0  ;;  %v7284_v26 = vmax.f32 %v7252_v2, 0.0  ;;  %v20037_v24 = vpack.c.bf16 %v7320_v56, %v7319_v60  ;;  %v20070_v17 = vpack.c.bf16 %v7342_v9, %v7341_v48  ;;  %v7343_v35 = vld [vmem:[#allocation2 + $0x138] sm:$0xff]  ;;  %v7880_v54 = vld [vmem:[#allocation2 + $0xc2] sm:$0xff]  ;;  %v7881_v48 = vld [vmem:[#allocation2 + $0xca] sm:$0xff] }
 0x617   : > { %7313 = vst [vmem:[#allocation2 + $0x169] sm:$0xff] %v7281_v10  ;;  %v7282_v28 = vmax.f32 %v7250_v13, 0.0  ;;  %v7346_v2 = vld [vmem:[#allocation2 + $0x158] sm:$0xff]  ;;  %v7345_v13 = vld [vmem:[#allocation2 + $0x150] sm:$0xff] }
 0x618   : > { %7316 = vst [vmem:[#allocation2 + $0x189] sm:$0xff] %v7284_v26  ;;  %v20031_v5 = vpack.c.bf16 %v7284_v26, %v7283_v0  ;;  %v7344_v0 = vld [vmem:[#allocation2 + $0x140] sm:$0xff]  ;;  %v20076_v26 = vpack.c.bf16 %v7346_v2, %v7345_v13  ;;  %v7879_v9 = vld [vmem:[#allocation2 + $0xb2] sm:$0xff] }
 0x619   : > { %7314 = vst [vmem:[#allocation2 + $0x171] sm:$0xff] %v7282_v28  ;;  %v20033_v6 = vpack.c.bf16 %v7282_v28, %v7281_v10  ;;  %v20074_v10 = vpack.c.bf16 %v7344_v0, %v7343_v35  ;;  %v7864_v28 = vld [vmem:[#allocation2 + $0x2] sm:$0xff]  ;;  %v20101_v0 = vpack.c.bf16 %v7879_v9, %v7878_v20  ;;  %v18017_v2 = vld [vmem:[#allocation15 + $0xf8] sm:$0xff]   ;;  %v20103_v35 = vpack.c.bf16 %v7881_v48, %v7880_v54  ;;  %v18024_v54 = vld [vmem:[#allocation15 + $0x130] sm:$0xff]  }
 0x61a   : > { %v7896_v60 = vpack.c.bf16 %v7865_v41, %v7864_v28  ;;  %v18018_v13 = vld [vmem:[#allocation15 + $0x100] sm:$0xff]   ;;  %v7892_v30 = vld [vmem:[#allocation2 + $0x152] sm:$0xff] }
 0x61b   : > { %15739 = vmatmul.mubr.bf16.gmra.mrb[92].mxu1 %v20033_v6  ;;  %v7882_v28 = vld [vmem:[#allocation2 + $0xda] sm:$0xff]  ;;  %v7883_v41 = vld [vmem:[#allocation2 + $0xe2] sm:$0xff] }
 0x61c   : > { %15758 = vmatprep.mubr.bf16.mxu1 %v20029_v46  ;;  %v7891_v38 = vld [vmem:[#allocation2 + $0x142] sm:$0xff]  ;;  %v18021_v20 = vld [vmem:[#allocation15 + $0x118] sm:$0xff]  }
 0x61d   : > { %v18022_v9 = vld [vmem:[#allocation15 + $0x120] sm:$0xff]   ;;  %v18025_v48 = vld [vmem:[#allocation15 + $0x138] sm:$0xff]  }
 0x61e   : > { %v7347_v34 = vld [vmem:[#allocation2 + $0x168] sm:$0xff] }
 0x620   : > { %v7348_v56 = vld [vmem:[#allocation2 + $0x170] sm:$0xff] }
 0x621   : > { %v20080_v8 = vpack.c.bf16 %v7348_v56, %v7347_v34  ;;  %v7884_v56 = vld [vmem:[#allocation2 + $0xf2] sm:$0xff]  ;;  %v7885_v34 = vld [vmem:[#allocation2 + $0xfa] sm:$0xff]  ;;  %v7894_v22 = vld [vmem:[#allocation2 + $0x16a] sm:$0xff] }
 0x623   : > { %15759 = vmatmul.mubr.bf16.vlgmr.msra.gmra.mrb[64].mxu1 %v20037_v24 }
 0x624   : > { %15762 = vmatprep.mubr.bf16.mxu1 %v20039_v47  ;;  %15791 = vmatpush3.bf16.msra.mxu1 %v19996_v4  ;;  %v18006_v4 = vld [vmem:[#allocation15 + $0xa0] sm:$0xff]  }
 0x625   : > { %15792 = vmatprep.subr.bf16.mxu1 %v18003_v61 }
 0x628   : > { %15793 = vmatpush3.bf16.msra.mxu1 %v18003_v61  ;;  %v7866_v61 = vld [vmem:[#allocation2 + $0x1a] sm:$0xff] }
 0x629   : > { %15794 = vmatprep.subr.bf16.mxu1 %v18004_v16 }
 0x62b   : > { %15763 = vmatmul.mubr.bf16.gmra.mrb[68].mxu1 %v20044_v32 }
 0x62c   : > { %15766 = vmatprep.mubr.bf16.mxu1 %v20046_v50  ;;  %15795 = vmatpush3.bf16.msra.mxu1 %v18004_v16  ;;  %v7867_v16 = vld [vmem:[#allocation2 + $0x22] sm:$0xff] }
 0x62d   : > { %15796 = vmatprep.subr.bf16.mxu1 %v18005_v29  ;;  %v20083_v21 = vpack.c.bf16 %v7867_v16, %v7866_v61  ;;  %v20109_v61 = vpack.c.bf16 %v7885_v34, %v7884_v56  ;;  %v7886_v16 = vld [vmem:[#allocation2 + $0x10a] sm:$0xff]  ;;  %v8476_v34 = vld [vmem:[#allocation2 + $0x19] sm:$0xff] }
 0x630   : > { %15797 = vmatpush3.bf16.msra.mxu1 %v18005_v29  ;;  %v20085_v29 = vpack.c.bf16 %v7869_v59, %v7868_v58  ;;  %v7887_v58 = vld [vmem:[#allocation2 + $0x112] sm:$0xff]  ;;  %v7888_v59 = vld [vmem:[#allocation2 + $0x122] sm:$0xff] }
 0x631   : > { %15798 = vmatprep.subr.bf16.mxu1 %v18006_v4 }
 0x633   : > { %15767 = vmatmul.mubr.bf16.gmra.mrb[72].mxu1 %v20050_v31 }
 0x634   : > { %15770 = vmatprep.mubr.bf16.mxu1 %v20052_v7  ;;  %15799 = vmatpush3.bf16.msra.mxu1 %v18006_v4  ;;  %v18012_v4 = vld [vmem:[#allocation15 + $0xd0] sm:$0xff]  }
 0x635   : > { %15800 = vmatprep.subr.bf16.mxu1 %v18007_v55 }
 0x638   : > { %15801 = vmatpush3.bf16.msra.mxu1 %v18007_v55  ;;  %v20089_v55 = vpack.c.bf16 %v7871_v37, %v7870_v57  ;;  %v7890_v37 = vld [vmem:[#allocation2 + $0x13a] sm:$0xff] }
 0x639   : > { %15802 = vmatprep.subr.bf16.mxu1 %v18008_v53 }
 0x63b   : > { %15771 = vmatmul.mubr.bf16.gmra.mrb[76].mxu1 %v20056_v12 }
 0x63c   : > { %15774 = vmatprep.mubr.bf16.mxu1 %v20058_v33  ;;  %15803 = vmatpush3.bf16.msra.mxu1 %v18008_v53  ;;  %v18013_v53 = vld [vmem:[#allocation15 + $0xd8] sm:$0xff]  }
 0x63d   : > { %15804 = vmatprep.subr.bf16.mxu1 %v18009_v11 }
 0x640   : > { %15805 = vmatpush3.bf16.msra.mxu1 %v18009_v11  ;;  %v7876_v11 = vld [vmem:[#allocation2 + $0x92] sm:$0xff] }
 0x641   : > { %15838 = vmatprep.subr.bf16.mxu1 %v18010_v43 }
 0x643   : > { %15775 = vmatmul.mubr.bf16.gmra.mrb[80].mxu1 %v20062_v44 }
 0x644   : > { %15778 = vmatprep.mubr.bf16.mxu1 %v20064_v62 }
 0x64b   : > { %15779 = vmatmul.mubr.bf16.gmra.mrb[84].mxu1 %v20068_v45 }
 0x64c   : > { %15782 = vmatprep.mubr.bf16.mxu1 %v20070_v17 }
 0x653   : > { %15783 = vmatmul.mubr.bf16.gmra.mrb[88].mxu1 %v20074_v10 }
 0x654   : > { %15786 = vmatprep.mubr.bf16.mxu1 %v20076_v26 }
 0x65b   : > { %15787 = vmatmul.mubr.bf16.gmra.mrb[92].mxu1 %v20080_v8 }
 0x65c   : > { %15806 = vmatprep.mubr.bf16.mxu1 %v7896_v60  ;;  %v20107_v60 = vpack.c.bf16 %v7883_v41, %v7882_v28  ;;  %v8477_v28 = vld [vmem:[#allocation2 + $0x21] sm:$0xff] }
 0x65d   : > { %v8200_v41 = vld [vmem:[#allocation2 + $0x180] sm:$0xff] }
 0x663   : > { %15807 = vmatmul.mubr.bf16.vlgmr.msra.gmra.mrb[64].mxu1 %v20083_v21 }
 0x664   : > { %15810 = vmatprep.mubr.bf16.mxu1 %v20085_v29  ;;  %15839 = vmatpush3.bf16.msra.mxu1 %v18010_v43  ;;  %v7877_v43 = vld [vmem:[#allocation2 + $0x9a] sm:$0xff] }
 0x665   : > { %15840 = vmatprep.subr.bf16.mxu1 %v18011_v15  ;;  %v20097_v36 = vpack.c.bf16 %v7877_v43, %v7876_v11  ;;  %v7895_v11 = vld [vmem:[#allocation2 + $0x172] sm:$0xff] }
 0x666   : > { %v20125_v43 = vpack.c.bf16 %v7895_v11, %v7894_v22  ;;  %v18028_v22 = vld [vmem:[#allocation15 + $0x150] sm:$0xff]  }
 0x667   : > { %v8483_v11 = vld [vmem:[#allocation2 + $0x69] sm:$0xff] }
 0x668   : > { %15841 = vmatpush3.bf16.msra.mxu1 %v18011_v15  ;;  %v7889_v15 = vld [vmem:[#allocation2 + $0x12a] sm:$0xff] }
 0x669   : > { %15842 = vmatprep.subr.bf16.mxu1 %v18012_v4  ;;  %v20115_v57 = vpack.c.bf16 %v7889_v15, %v7888_v59  ;;  %v8481_v59 = vld [vmem:[#allocation2 + $0x51] sm:$0xff] }
 0x66a   : > { %v8478_v15 = vld [vmem:[#allocation2 + $0x31] sm:$0xff] }
 0x66b   : > { %15811 = vmatmul.mubr.bf16.gmra.mrb[68].mxu1 %v20089_v55 }
 0x66c   : > { %15814 = vmatprep.mubr.bf16.mxu1 %v20091_v1  ;;  %15843 = vmatpush3.bf16.msra.mxu1 %v18012_v4  ;;  %v20113_v4 = vpack.c.bf16 %v7887_v58, %v7886_v16  ;;  %v8508_v16 = vpack.c.bf16 %v8477_v28, %v8476_v34  ;;  %v8479_v58 = vld [vmem:[#allocation2 + $0x39] sm:$0xff]  ;;  %v18031_v28 = vld [vmem:[#allocation15 + $0x168] sm:$0xff]  }
 0x66d   : > { %15844 = vmatprep.subr.bf16.mxu1 %v18013_v53 }
 0x670   : > { %15845 = vmatpush3.bf16.msra.mxu1 %v18013_v53  ;;  %v7893_v53 = vld [vmem:[#allocation2 + $0x15a] sm:$0xff] }
 0x671   : > { %15846 = vmatprep.subr.bf16.mxu1 %v18014_v63  ;;  %v20121_v40 = vpack.c.bf16 %v7893_v53, %v7892_v30  ;;  %v18027_v30 = vld [vmem:[#allocation15 + $0x148] sm:$0xff]  }
 0x673   : > { %15815 = vmatmul.mubr.bf16.gmra.mrb[72].mxu1 %v20095_v23 }
 0x674   : > { %15818 = vmatprep.mubr.bf16.mxu1 %v20097_v36  ;;  %15847 = vmatpush3.bf16.msra.mxu1 %v18014_v63  ;;  %v20119_v63 = vpack.c.bf16 %v7891_v38, %v7890_v37  ;;  %v20146_v37 = vpack.c.bf16 %v8479_v58, %v8478_v15  ;;  %v8480_v38 = vld [vmem:[#allocation2 + $0x49] sm:$0xff]  ;;  %v18034_v58 = vld [vmem:[#allocation15 + $0x180] sm:$0xff]  }
 0x675   : > { %15848 = vmatprep.subr.bf16.mxu1 %v18015_v49  ;;  %v20148_v53 = vpack.c.bf16 %v8481_v59, %v8480_v38  ;;  %v9408_v59 = vld [vmem:[#allocation2 + $0xd9] sm:$0xff] }
 0x676   : > { %v18057_v38 = vld [vmem:[#allocation15 + $0x238] sm:$0xff]  }
 0x678   : > { %15849 = vmatpush3.bf16.msra.mxu1 %v18015_v49  ;;  %v18019_v49 = vld [vmem:[#allocation15 + $0x108] sm:$0xff]  }
 0x679   : > { %15850 = vmatprep.subr.bf16.mxu1 %v18016_v39 }
 0x67b   : > { %15819 = vmatmul.mubr.bf16.gmra.mrb[76].mxu1 %v20101_v0 }
 0x67c   : > { %15822 = vmatprep.mubr.bf16.mxu1 %v20103_v35  ;;  %15851 = vmatpush3.bf16.msra.mxu1 %v18016_v39  ;;  %v18020_v39 = vld [vmem:[#allocation15 + $0x110] sm:$0xff]  }
 0x67d   : > { %15852 = vmatprep.subr.bf16.mxu1 %v18017_v2 }
 0x680   : > { %15853 = vmatpush3.bf16.msra.mxu1 %v18017_v2  ;;  %v18026_v2 = vld [vmem:[#allocation15 + $0x140] sm:$0xff]  }
 0x681   : > { %15886 = vmatprep.subr.bf16.mxu1 %v18018_v13 }
 0x683   : > { %15823 = vmatmul.mubr.bf16.gmra.mrb[80].mxu1 %v20107_v60 }
 0x684   : > { %15826 = vmatprep.mubr.bf16.mxu1 %v20109_v61 }
 0x68b   : > { %15827 = vmatmul.mubr.bf16.gmra.mrb[84].mxu1 %v20113_v4 }
 0x68c   : > { %15830 = vmatprep.mubr.bf16.mxu1 %v20115_v57 }
 0x693   : > { %15831 = vmatmul.mubr.bf16.gmra.mrb[88].mxu1 %v20119_v63 }
 0x694   : > { %15834 = vmatprep.mubr.bf16.mxu1 %v20121_v40 }
 0x69b   : > { %15835 = vmatmul.mubr.bf16.gmra.mrb[92].mxu1 %v20125_v43 }
 0x69c   : > { %15854 = vmatprep.mubr.bf16.mxu1 %v20037_v24  ;;  %v18023_v24 = vld [vmem:[#allocation15 + $0x128] sm:$0xff]  }
 0x6a3   : > { %15855 = vmatmul.mubr.bf16.vlgmr.msra.gmra.mrb[64].mxu1 %v20039_v47 }
 0x6a4   : > { %15858 = vmatprep.mubr.bf16.mxu1 %v20044_v32  ;;  %15887 = vmatpush3.bf16.msra.mxu1 %v18018_v13  ;;  %v8201_v13 = vld [vmem:[#allocation2 + $0x188] sm:$0xff] }
 0x6a5   : > { %15888 = vmatprep.subr.bf16.mxu1 %v18019_v49  ;;  %v20143_v56 = vpack.c.bf16 %v8201_v13, %v8200_v41  ;;  %v20163_v41 = vld [vmem:[#allocation2 + $0xc1] sm:$0xff] }
 0x6a6   : > { %v8515_v34 = vpack.c.bf16 %v19985_v3, %v20163_v41  ;;  %v18035_v3 = vld [vmem:[#allocation15 + $0x188] sm:$0xff]  }
 0x6a8   : > { %15889 = vmatpush3.bf16.msra.mxu1 %v18019_v49  ;;  %v20152_v49 = vld [vmem:[#allocation2 + $0x79] sm:$0xff] }
 0x6a9   : > { %15890 = vmatprep.subr.bf16.mxu1 %v18020_v39 }
 0x6ab   : > { %15859 = vmatmul.mubr.bf16.gmra.mrb[68].mxu1 %v20046_v50 }
 0x6ac   : > { %15862 = vmatprep.mubr.bf16.mxu1 %v20050_v31  ;;  %15891 = vmatpush3.bf16.msra.mxu1 %v18020_v39  ;;  %v8482_v39 = vld [vmem:[#allocation2 + $0x61] sm:$0xff] }
 0x6ad   : > { %15892 = vmatprep.subr.bf16.mxu1 %v18021_v20 }
 0x6b0   : > { %15893 = vmatpush3.bf16.msra.mxu1 %v18021_v20  ;;  %v20154_v20 = vpack.c.bf16 %v8483_v11, %v8482_v39  ;;  %v9412_v11 = vld [vmem:[#allocation2 + $0x109] sm:$0xff]  ;;  %v9414_v39 = vld [vmem:[#allocation2 + $0x121] sm:$0xff] }
 0x6b1   : > { %15894 = vmatprep.subr.bf16.mxu1 %v18022_v9 }
 0x6b3   : > { %15863 = vmatmul.mubr.bf16.gmra.mrb[72].mxu1 %v20052_v7 }
 0x6b4   : > { %15866 = vmatprep.mubr.bf16.mxu1 %v20056_v12  ;;  %15895 = vmatpush3.bf16.msra.mxu1 %v18022_v9  ;;  %v18029_v9 = vld [vmem:[#allocation15 + $0x158] sm:$0xff]  }
 0x6b5   : > { %15896 = vmatprep.subr.bf16.mxu1 %v18023_v24 }
 0x6b8   : > { %15897 = vmatpush3.bf16.msra.mxu1 %v18023_v24  ;;  %v8512_v24 = vpack.c.bf16 %v19977_v51, %v20152_v49  ;;  %v18032_v51 = vld [vmem:[#allocation15 + $0x170] sm:$0xff]  }
 0x6b9   : > { %15898 = vmatprep.subr.bf16.mxu1 %v18024_v54 }
 0x6bb   : > { %15867 = vmatmul.mubr.bf16.gmra.mrb[76].mxu1 %v20058_v33 }
 0x6bc   : > { %15870 = vmatprep.mubr.bf16.mxu1 %v20062_v44  ;;  %15899 = vmatpush3.bf16.msra.mxu1 %v18024_v54  ;;  %v18030_v54 = vld [vmem:[#allocation15 + $0x160] sm:$0xff]  }
 0x6bd   : > { %15900 = vmatprep.subr.bf16.mxu1 %v18025_v48 }
 0x6c0   : > { %15901 = vmatpush3.bf16.msra.mxu1 %v18025_v48  ;;  %v8487_v48 = vld [vmem:[#allocation2 + $0x99] sm:$0xff] }
 0x6c1   : > { %15934 = vmatprep.subr.bf16.mxu1 %v18026_v2 }
 0x6c3   : > { %15871 = vmatmul.mubr.bf16.gmra.mrb[80].mxu1 %v20064_v62 }
 0x6c4   : > { %15874 = vmatprep.mubr.bf16.mxu1 %v20068_v45 }
 0x6cb   : > { %15875 = vmatmul.mubr.bf16.gmra.mrb[84].mxu1 %v20070_v17 }
 0x6cc   : > { %15878 = vmatprep.mubr.bf16.mxu1 %v20074_v10 }
 0x6d3   : > { %15879 = vmatmul.mubr.bf16.gmra.mrb[88].mxu1 %v20076_v26 }
 0x6d4   : > { %15882 = vmatprep.mubr.bf16.mxu1 %v20080_v8 }
 0x6db   : > { %15883 = vmatmul.mubr.bf16.gmra.mrb[92].mxu1 %v20143_v56 }
 0x6dc   : > { %15902 = vmatprep.mubr.bf16.mxu1 %v8508_v16  ;;  %v18033_v16 = vld [vmem:[#allocation15 + $0x178] sm:$0xff]  }
 0x6e3   : > { %15903 = vmatmul.mubr.bf16.vlgmr.msra.gmra.mrb[64].mxu1 %v20146_v37 }
 0x6e4   : > { %15906 = vmatprep.mubr.bf16.mxu1 %v20148_v53  ;;  %15935 = vmatpush3.bf16.msra.mxu1 %v18026_v2  ;;  %v8486_v2 = vld [vmem:[#allocation2 + $0x91] sm:$0xff] }
 0x6e5   : > { %15936 = vmatprep.subr.bf16.mxu1 %v18027_v30  ;;  %v20159_v13 = vpack.c.bf16 %v8487_v48, %v8486_v2  ;;  %v9418_v2 = vld [vmem:[#allocation2 + $0x151] sm:$0xff] }
 0x6e8   : > { %15937 = vmatpush3.bf16.msra.mxu1 %v18027_v30 }
 0x6e9   : > { %15938 = vmatprep.subr.bf16.mxu1 %v18028_v22 }
 0x6eb   : > { %15907 = vmatmul.mubr.bf16.gmra.mrb[68].mxu1 %v20154_v20 }
 0x6ec   : > { %15910 = vmatprep.mubr.bf16.mxu1 %v8512_v24  ;;  %15939 = vmatpush3.bf16.msra.mxu1 %v18028_v22  ;;  %v9415_v22 = vld [vmem:[#allocation2 + $0x129] sm:$0xff]  ;;  %v9419_v24 = vld [vmem:[#allocation2 + $0x159] sm:$0xff] }
 0x6ed   : > { %15940 = vmatprep.subr.bf16.mxu1 %v18029_v9 }
 0x6f0   : > { %15941 = vmatpush3.bf16.msra.mxu1 %v18029_v9  ;;  %v9417_v9 = vld [vmem:[#allocation2 + $0x141] sm:$0xff] }
 0x6f1   : > { %15942 = vmatprep.subr.bf16.mxu1 %v18030_v54 }
 0x6f3   : > { %15911 = vmatmul.mubr.bf16.gmra.mrb[72].mxu1 %v20159_v13 }
 0x6f4   : > { %15914 = vmatprep.mubr.bf16.mxu1 %v19989_v14  ;;  %15943 = vmatpush3.bf16.msra.mxu1 %v18030_v54  ;;  %v18036_v14 = vld [vmem:[#allocation15 + $0x190] sm:$0xff]   ;;  %v9416_v54 = vld [vmem:[#allocation2 + $0x139] sm:$0xff] }
 0x6f5   : > { %15944 = vmatprep.subr.bf16.mxu1 %v18031_v28  ;;  %v9437_v48 = vpack.c.bf16 %v9417_v9, %v9416_v54  ;;  %v10171_v9 = vld [vmem:[#allocation3 + $0x1] sm:$0xff] }
 0x6f8   : > { %15945 = vmatpush3.bf16.msra.mxu1 %v18031_v28  ;;  %v9421_v28 = vld [vmem:[#allocation2 + $0x171] sm:$0xff] }
 0x6f9   : > { %15946 = vmatprep.subr.bf16.mxu1 %v18032_v51 }
 0x6fb   : > { %15915 = vmatmul.mubr.bf16.gmra.mrb[76].mxu1 %v8515_v34 }
 0x6fc   : > { %15918 = vmatprep.mubr.bf16.mxu1 %v20000_v19  ;;  %15947 = vmatpush3.bf16.msra.mxu1 %v18032_v51  ;;  %v18038_v19 = vld [vmem:[#allocation15 + $0x1a0] sm:$0xff]   ;;  %v9423_v51 = vld [vmem:[#allocation2 + $0x189] sm:$0xff] }
 0x6fd   : > { %15948 = vmatprep.subr.bf16.mxu1 %v18033_v16 }
 0x700   : > { %15949 = vmatpush3.bf16.msra.mxu1 %v18033_v16  ;;  %v9422_v16 = vld [vmem:[#allocation2 + $0x181] sm:$0xff] }
 0x701   : > { %15982 = vmatprep.subr.bf16.mxu1 %v18034_v58 }
 0x703   : > { %15919 = vmatmul.mubr.bf16.gmra.mrb[80].mxu1 %v19998_v18  ;;  %v18037_v18 = vld [vmem:[#allocation15 + $0x198] sm:$0xff]  }
 0x704   : > { %15922 = vmatprep.mubr.bf16.mxu1 %v20011_v25  ;;  %v18040_v25 = vld [vmem:[#allocation15 + $0x1b0] sm:$0xff]  }
 0x70b   : > { %15923 = vmatmul.mubr.bf16.gmra.mrb[84].mxu1 %v20009_v42  ;;  %v18039_v42 = vld [vmem:[#allocation15 + $0x1a8] sm:$0xff]  }
 0x70c   : > { %15926 = vmatprep.mubr.bf16.mxu1 %v20021_v27  ;;  %v18042_v27 = vld [vmem:[#allocation15 + $0x1c0] sm:$0xff]  }
 0x713   : > { %15927 = vmatmul.mubr.bf16.gmra.mrb[88].mxu1 %v20019_v52  ;;  %v18041_v52 = vld [vmem:[#allocation15 + $0x1b8] sm:$0xff]  }
 0x714   : > { %15930 = vmatprep.mubr.bf16.mxu1 %v20033_v6  ;;  %v8813_v6 = vld [vmem:[#allocation2 + $0x18a] sm:$0xff] }
 0x71b   : > { %15931 = vmatmul.mubr.bf16.gmra.mrb[92].mxu1 %v20031_v5  ;;  %v8812_v5 = vld [vmem:[#allocation2 + $0x182] sm:$0xff] }
 0x71c   : > { %15950 = vmatprep.mubr.bf16.mxu1 %v20083_v21  ;;  %v20190_v21 = vpack.c.bf16 %v8813_v6, %v8812_v5  ;;  %v9704_v5 = vld [vmem:[#allocation2 + $0x62] sm:$0xff]  ;;  %v9705_v6 = vld [vmem:[#allocation2 + $0x6a] sm:$0xff] }
 0x723   : > { %15951 = vmatmul.mubr.bf16.vlgmr.msra.gmra.mrb[64].mxu1 %v20085_v29  ;;  %v18043_v29 = vld [vmem:[#allocation15 + $0x1c8] sm:$0xff]  }
 0x724   : > { %15954 = vmatprep.mubr.bf16.mxu1 %v20089_v55  ;;  %15983 = vmatpush3.bf16.msra.mxu1 %v18034_v58  ;;  %v18044_v55 = vld [vmem:[#allocation15 + $0x1d0] sm:$0xff]   ;;  %v9440_v58 = vpack.c.bf16 %v9423_v51, %v9422_v16 }
 0x725   : > { %15984 = vmatprep.subr.bf16.mxu1 %v18035_v3 }
 0x728   : > { %15985 = vmatpush3.bf16.msra.mxu1 %v18035_v3  ;;  %v9424_v3 = vld [vmem:[#allocation2 + $0x199] sm:$0xff] }
 0x729   : > { %15986 = vmatprep.subr.bf16.mxu1 %v18036_v14 }
 0x72b   : > { %15955 = vmatmul.mubr.bf16.gmra.mrb[68].mxu1 %v20091_v1  ;;  %v18045_v1 = vld [vmem:[#allocation15 + $0x1d8] sm:$0xff]  }
 0x72c   : > { %15958 = vmatprep.mubr.bf16.mxu1 %v20095_v23  ;;  %15987 = vmatpush3.bf16.msra.mxu1 %v18036_v14  ;;  %v18046_v23 = vld [vmem:[#allocation15 + $0x1e0] sm:$0xff]  }
 0x72d   : > { %15988 = vmatprep.subr.bf16.mxu1 %v18037_v18  ;;  %v9425_v14 = vld [vmem:[#allocation2 + $0x1a1] sm:$0xff] }
 0x730   : > { %15989 = vmatpush3.bf16.msra.mxu1 %v18037_v18  ;;  %v9441_v18 = vpack.c.bf16 %v9425_v14, %v9424_v3 }
 0x731   : > { %15990 = vmatprep.subr.bf16.mxu1 %v18038_v19 }
 0x733   : > { %15959 = vmatmul.mubr.bf16.gmra.mrb[72].mxu1 %v20097_v36  ;;  %v18063_v36 = vld [vmem:[#allocation16 + $0x68] sm:$0xff]  }
 0x734   : > { %15962 = vmatprep.mubr.bf16.mxu1 %v20101_v0  ;;  %15991 = vmatpush3.bf16.msra.mxu1 %v18038_v19  ;;  %v18054_v0 = vld [vmem:[#allocation15 + $0x220] sm:$0xff]   ;;  %v9700_v19 = vld [vmem:[#allocation2 + $0x32] sm:$0xff] }
 0x735   : > { %15992 = vmatprep.subr.bf16.mxu1 %v18039_v42 }
 0x738   : > { %15993 = vmatpush3.bf16.msra.mxu1 %v18039_v42  ;;  %v9701_v42 = vld [vmem:[#allocation2 + $0x3a] sm:$0xff] }
 0x739   : > { %15994 = vmatprep.subr.bf16.mxu1 %v18040_v25 }
 0x73b   : > { %15963 = vmatmul.mubr.bf16.gmra.mrb[76].mxu1 %v20103_v35  ;;  %v9405_v35 = vld [vmem:[#allocation2 + $0xb1] sm:$0xff] }
 0x73c   : > { %15966 = vmatprep.mubr.bf16.mxu1 %v20107_v60  ;;  %15995 = vmatpush3.bf16.msra.mxu1 %v18040_v25  ;;  %v9407_v60 = vld [vmem:[#allocation2 + $0xc9] sm:$0xff]  ;;  %v9732_v25 = vpack.c.bf16 %v9701_v42, %v9700_v19 }
 0x73d   : > { %15996 = vmatprep.subr.bf16.mxu1 %v18041_v52 }
 0x740   : > { %15997 = vmatpush3.bf16.msra.mxu1 %v18041_v52  ;;  %v9702_v52 = vld [vmem:[#allocation2 + $0x4a] sm:$0xff] }
 0x741   : > { %16030 = vmatprep.subr.bf16.mxu1 %v18042_v27 }
 0x743   : > { %15967 = vmatmul.mubr.bf16.gmra.mrb[80].mxu1 %v20109_v61  ;;  %v9404_v61 = vld [vmem:[#allocation2 + $0xa9] sm:$0xff] }
 0x744   : > { %15970 = vmatprep.mubr.bf16.mxu1 %v20113_v4  ;;  %v9431_v4 = vpack.c.bf16 %v9405_v35, %v9404_v61  ;;  %v9718_v35 = vld [vmem:[#allocation2 + $0x10a] sm:$0xff]  ;;  %v9720_v61 = vld [vmem:[#allocation2 + $0x122] sm:$0xff] }
 0x74b   : > { %15971 = vmatmul.mubr.bf16.gmra.mrb[84].mxu1 %v20115_v57  ;;  %v18055_v57 = vld [vmem:[#allocation15 + $0x228] sm:$0xff]  }
 0x74c   : > { %15974 = vmatprep.mubr.bf16.mxu1 %v20119_v63  ;;  %v9432_v63 = vpack.c.bf16 %v9407_v60, %v20163_v41  ;;  %v9420_v41 = vld [vmem:[#allocation2 + $0x169] sm:$0xff]  ;;  %v9719_v60 = vld [vmem:[#allocation2 + $0x112] sm:$0xff] }
 0x74d   : > { %v9439_v34 = vpack.c.bf16 %v9421_v28, %v9420_v41 }
 0x753   : > { %15975 = vmatmul.mubr.bf16.gmra.mrb[88].mxu1 %v20121_v40  ;;  %v18056_v40 = vld [vmem:[#allocation15 + $0x230] sm:$0xff]  }
 0x754   : > { %15978 = vmatprep.mubr.bf16.mxu1 %v20125_v43  ;;  %v9409_v43 = vld [vmem:[#allocation2 + $0xe1] sm:$0xff] }
 0x755   : > { %v9433_v15 = vpack.c.bf16 %v9409_v43, %v9408_v59  ;;  %v9723_v43 = vld [vmem:[#allocation2 + $0x142] sm:$0xff]  ;;  %v9725_v59 = vld [vmem:[#allocation2 + $0x15a] sm:$0xff] }
 0x75b   : > { %15979 = vmatmul.mubr.bf16.gmra.mrb[92].mxu1 %v20190_v21 }
 0x75c   : > { %15998 = vmatprep.mubr.bf16.mxu1 %v20039_v47  ;;  %v18047_v47 = vld [vmem:[#allocation15 + $0x1e8] sm:$0xff]  }
 0x763   : > { %15999 = vmatmul.mubr.bf16.vlgmr.msra.gmra.mrb[64].mxu1 %v20044_v32  ;;  %v18048_v32 = vld [vmem:[#allocation15 + $0x1f0] sm:$0xff]  }
 0x764   : > { %16002 = vmatprep.mubr.bf16.mxu1 %v20046_v50  ;;  %16031 = vmatpush3.bf16.msra.mxu1 %v18042_v27  ;;  %v18049_v50 = vld [vmem:[#allocation15 + $0x1f8] sm:$0xff]  }
 0x765   : > { %16032 = vmatprep.subr.bf16.mxu1 %v18043_v29  ;;  %v9703_v27 = vld [vmem:[#allocation2 + $0x52] sm:$0xff] }
 0x768   : > { %16033 = vmatpush3.bf16.msra.mxu1 %v18043_v29  ;;  %v9733_v29 = vpack.c.bf16 %v9703_v27, %v9702_v52  ;;  %v18067_v27 = vld [vmem:[#allocation16 + $0x8] sm:$0xff]  }
 0x769   : > { %16034 = vmatprep.subr.bf16.mxu1 %v18044_v55 }
 0x76b   : > { %16003 = vmatmul.mubr.bf16.gmra.mrb[68].mxu1 %v20050_v31  ;;  %v18050_v31 = vld [vmem:[#allocation15 + $0x200] sm:$0xff]  }
 0x76c   : > { %16006 = vmatprep.mubr.bf16.mxu1 %v20052_v7  ;;  %16035 = vmatpush3.bf16.msra.mxu1 %v18044_v55  ;;  %v18058_v7 = vld [vmem:[#allocation16 + $0x40] sm:$0xff]   ;;  %v9734_v55 = vpack.c.bf16 %v9705_v6, %v9704_v5 }
 0x76d   : > { %16036 = vmatprep.subr.bf16.mxu1 %v18045_v1  ;;  %16126 = vmatprep.subr.bf16.mxu0 %v18058_v7 }
 0x76e   : > { %16127 = vmatpush3.bf16.msra.mxu0 %v18058_v7  ;;  %v9710_v7 = vld [vmem:[#allocation2 + $0xaa] sm:$0xff] }
 0x770   : > { %16037 = vmatpush3.bf16.msra.mxu1 %v18045_v1  ;;  %v9706_v1 = vld [vmem:[#allocation2 + $0x7a] sm:$0xff] }
 0x771   : > { %16038 = vmatprep.subr.bf16.mxu1 %v18046_v23 }
 0x773   : > { %16007 = vmatmul.mubr.bf16.gmra.mrb[72].mxu1 %v20056_v12  ;;  %v18059_v12 = vld [vmem:[#allocation16 + $0x48] sm:$0xff]  }
 0x774   : > { %16010 = vmatprep.mubr.bf16.mxu1 %v20058_v33  ;;  %16039 = vmatpush3.bf16.msra.mxu1 %v18046_v23  ;;  %v18060_v33 = vld [vmem:[#allocation16 + $0x50] sm:$0xff]   ;;  %v9707_v23 = vld [vmem:[#allocation2 + $0x82] sm:$0xff] }
 0x775   : > { %16040 = vmatprep.subr.bf16.mxu1 %v18047_v47  ;;  %16128 = vmatprep.subr.bf16.mxu0 %v18059_v12 }
 0x776   : > { %16129 = vmatpush3.bf16.msra.mxu0 %v18059_v12  ;;  %v9711_v12 = vld [vmem:[#allocation2 + $0xb2] sm:$0xff] }
 0x777   : > { %16130 = vmatprep.subr.bf16.mxu0 %v18060_v33 }
 0x778   : > { %16041 = vmatpush3.bf16.msra.mxu1 %v18047_v47  ;;  %v9708_v47 = vld [vmem:[#allocation2 + $0x92] sm:$0xff] }
 0x779   : > { %16042 = vmatprep.subr.bf16.mxu1 %v18048_v32 }
 0x77a   : > { %16131 = vmatpush3.bf16.msra.mxu0 %v18060_v33  ;;  %v9712_v33 = vld [vmem:[#allocation2 + $0xc2] sm:$0xff] }
 0x77b   : > { %16011 = vmatmul.mubr.bf16.gmra.mrb[76].mxu1 %v20062_v44  ;;  %v18051_v44 = vld [vmem:[#allocation15 + $0x208] sm:$0xff]  }
 0x77c   : > { %16014 = vmatprep.mubr.bf16.mxu1 %v20064_v62  ;;  %16043 = vmatpush3.bf16.msra.mxu1 %v18048_v32  ;;  %v18061_v62 = vld [vmem:[#allocation16 + $0x58] sm:$0xff]  }
 0x77d   : > { %16044 = vmatprep.subr.bf16.mxu1 %v18049_v50  ;;  %16132 = vmatprep.subr.bf16.mxu0 %v18061_v62  ;;  %v9709_v32 = vld [vmem:[#allocation2 + $0x9a] sm:$0xff] }
 0x77e   : > { %16133 = vmatpush3.bf16.msra.mxu0 %v18061_v62  ;;  %v9737_v62 = vpack.c.bf16 %v9711_v12, %v9710_v7 }
 0x780   : > { %16045 = vmatpush3.bf16.msra.mxu1 %v18049_v50  ;;  %v9735_v50 = vpack.c.bf16 %v9707_v23, %v9706_v1 }
 0x781   : > { %16078 = vmatprep.subr.bf16.mxu1 %v18050_v31 }
 0x783   : > { %16015 = vmatmul.mubr.bf16.gmra.mrb[80].mxu1 %v20068_v45  ;;  %v18052_v45 = vld [vmem:[#allocation15 + $0x210] sm:$0xff]  }
 0x784   : > { %16018 = vmatprep.mubr.bf16.mxu1 %v20070_v17  ;;  %v9401_v17 = vld [vmem:[#allocation2 + $0x81] sm:$0xff] }
 0x78b   : > { %16019 = vmatmul.mubr.bf16.gmra.mrb[84].mxu1 %v20074_v10  ;;  %v18062_v10 = vld [vmem:[#allocation16 + $0x60] sm:$0xff]  }
 0x78c   : > { %16022 = vmatprep.mubr.bf16.mxu1 %v20076_v26  ;;  %v9429_v26 = vpack.c.bf16 %v9401_v17, %v20152_v49  ;;  %16134 = vmatprep.subr.bf16.mxu0 %v18062_v10  ;;  %v9714_v17 = vld [vmem:[#allocation2 + $0xda] sm:$0xff] }
 0x78d   : > { %16135 = vmatpush3.bf16.msra.mxu0 %v18062_v10  ;;  %v9715_v10 = vld [vmem:[#allocation2 + $0xe2] sm:$0xff] }
 0x78e   : > { %16136 = vmatprep.subr.bf16.mxu0 %v18063_v36 }
 0x791   : > { %16137 = vmatpush3.bf16.msra.mxu0 %v18063_v36  ;;  %v9739_v36 = vpack.c.bf16 %v9715_v10, %v9714_v17 }
 0x793   : > { %16023 = vmatmul.mubr.bf16.gmra.mrb[88].mxu1 %v20080_v8  ;;  %v18053_v8 = vld [vmem:[#allocation15 + $0x218] sm:$0xff]  }
 0x794   : > { %16026 = vmatprep.mubr.bf16.mxu1 %v20143_v56  ;;  %v9411_v56 = vld [vmem:[#allocation2 + $0xf9] sm:$0xff] }
 0x79b   : > { %16027 = vmatmul.mubr.bf16.gmra.mrb[92].mxu1 %v20029_v46 }
 0x79c   : > { %16046 = vmatprep.mubr.bf16.mxu1 %v20146_v37  ;;  %v9410_v37 = vld [vmem:[#allocation2 + $0xf1] sm:$0xff] }
 0x79d   : > { %v9434_v30 = vpack.c.bf16 %v9411_v56, %v9410_v37  ;;  %v9724_v56 = vld [vmem:[#allocation2 + $0x152] sm:$0xff] }
 0x79e   : > { %v9744_v37 = vpack.c.bf16 %v9725_v59, %v9724_v56  ;;  %v18071_v59 = vld [vmem:[#allocation16 + $0x28] sm:$0xff]  }
 0x7a3   : > { %16047 = vmatmul.mubr.bf16.vlgmr.msra.gmra.mrb[64].mxu1 %v20148_v53  ;;  %v9413_v53 = vld [vmem:[#allocation2 + $0x111] sm:$0xff] }
 0x7a4   : > { %16050 = vmatprep.mubr.bf16.mxu1 %v20154_v20  ;;  %16079 = vmatpush3.bf16.msra.mxu1 %v18050_v31  ;;  %v9435_v49 = vpack.c.bf16 %v9413_v53, %v9412_v11  ;;  %v9436_v20 = vpack.c.bf16 %v9415_v22, %v9414_v39  ;;  %v9736_v31 = vpack.c.bf16 %v9709_v32, %v9708_v47  ;;  %v9730_v22 = vld [vmem:[#allocation2 + $0x19a] sm:$0xff]  ;;  %v9731_v11 = vld [vmem:[#allocation2 + $0x1a2] sm:$0xff]  ;;  %v18064_v39 = vld [vmem:[#allocation16 + $0x70] sm:$0xff]  }
 0x7a5   : > { %16080 = vmatprep.subr.bf16.mxu1 %v18051_v44  ;;  %16138 = vmatprep.subr.bf16.mxu0 %v18064_v39 }
 0x7a6   : > { %16139 = vmatpush3.bf16.msra.mxu0 %v18064_v39 }
 0x7a8   : > { %16081 = vmatpush3.bf16.msra.mxu1 %v18051_v44  ;;  %v9713_v44 = vld [vmem:[#allocation2 + $0xca] sm:$0xff] }
 0x7a9   : > { %16082 = vmatprep.subr.bf16.mxu1 %v18052_v45 }
 0x7ab   : > { %16051 = vmatmul.mubr.bf16.gmra.mrb[68].mxu1 %v9429_v26  ;;  %v9716_v26 = vld [vmem:[#allocation2 + $0xf2] sm:$0xff] }
 0x7ac   : > { %16054 = vmatprep.mubr.bf16.mxu1 %v20159_v13  ;;  %16083 = vmatpush3.bf16.msra.mxu1 %v18052_v45  ;;  %v9438_v13 = vpack.c.bf16 %v9419_v24, %v9418_v2  ;;  %v9738_v45 = vpack.c.bf16 %v9713_v44, %v9712_v33  ;;  %v10172_v24 = vld [vmem:[#allocation3 + $0x9] sm:$0xff] }
 0x7ad   : > { %16084 = vmatprep.subr.bf16.mxu1 %v18053_v8  ;;  %v10203_v54 = vpack.c.bf16 %v10172_v24, %v10171_v9 }
 0x7af   : > { %16142 = vmatprep.mubr.bf16.mxu0 %v10203_v54 }
 0x7b0   : > { %16085 = vmatpush3.bf16.msra.mxu1 %v18053_v8  ;;  %v9717_v8 = vld [vmem:[#allocation2 + $0xfa] sm:$0xff] }
 0x7b1   : > { %16086 = vmatprep.subr.bf16.mxu1 %v18054_v0 }
 0x7b3   : > { %16055 = vmatmul.mubr.bf16.gmra.mrb[72].mxu1 %v9431_v4  ;;  %v9721_v4 = vld [vmem:[#allocation2 + $0x12a] sm:$0xff] }
 0x7b4   : > { %16058 = vmatprep.mubr.bf16.mxu1 %v9432_v63  ;;  %16087 = vmatpush3.bf16.msra.mxu1 %v18054_v0  ;;  %v9740_v0 = vpack.c.bf16 %v9717_v8, %v9716_v26  ;;  %v9742_v63 = vpack.c.bf16 %v9721_v4, %v9720_v61  ;;  %v18070_v4 = vld [vmem:[#allocation16 + $0x20] sm:$0xff]  }
 0x7b5   : > { %16088 = vmatprep.subr.bf16.mxu1 %v18055_v57 }
 0x7b8   : > { %16089 = vmatpush3.bf16.msra.mxu1 %v18055_v57  ;;  %v9741_v57 = vpack.c.bf16 %v9719_v60, %v9718_v35 }
 0x7b9   : > { %16090 = vmatprep.subr.bf16.mxu1 %v18056_v40 }
 0x7bb   : > { %16059 = vmatmul.mubr.bf16.gmra.mrb[76].mxu1 %v9433_v15 }
 0x7bc   : > { %16062 = vmatprep.mubr.bf16.mxu1 %v9434_v30  ;;  %16091 = vmatpush3.bf16.msra.mxu1 %v18056_v40  ;;  %v9722_v40 = vld [vmem:[#allocation2 + $0x13a] sm:$0xff]  ;;  %v9727_v30 = vld [vmem:[#allocation2 + $0x172] sm:$0xff] }
 0x7bd   : > { %16092 = vmatprep.subr.bf16.mxu1 %v18057_v38  ;;  %v9743_v15 = vpack.c.bf16 %v9723_v43, %v9722_v40 }
 0x7c0   : > { %16093 = vmatpush3.bf16.msra.mxu1 %v18057_v38  ;;  %v9726_v38 = vld [vmem:[#allocation2 + $0x16a] sm:$0xff] }
 0x7c1   : > { %v9745_v53 = vpack.c.bf16 %v9727_v30, %v9726_v38 }
 0x7c3   : > { %16063 = vmatmul.mubr.bf16.gmra.mrb[80].mxu1 %v9435_v49  ;;  %v9747_v49 = vpack.c.bf16 %v9731_v11, %v9730_v22 }
 0x7c4   : > { %16066 = vmatprep.mubr.bf16.mxu1 %v9436_v20  ;;  %v18065_v20 = vld [vmem:[#allocation16 + $0x78] sm:$0xff]  }
 0x7c5   : > { %16140 = vmatprep.subr.bf16.mxu0 %v18065_v20 }
 0x7c6   : > { %16141 = vmatpush3.bf16.msra.mxu0 %v18065_v20  ;;  %v18072_v20 = vld [vmem:[#allocation16 + $0x30] sm:$0xff]  }
 0x7cb   : > { %16067 = vmatmul.mubr.bf16.gmra.mrb[84].mxu1 %v9437_v48  ;;  %v18066_v48 = vld [vmem:[#allocation16] sm:$0xff]  }
 0x7cc   : > { %16070 = vmatprep.mubr.bf16.mxu1 %v9438_v13  ;;  %16174 = vmatprep.subr.bf16.mxu0 %v18066_v48 }
 0x7d3   : > { %16071 = vmatmul.mubr.bf16.gmra.mrb[88].mxu1 %v9439_v34 }
 0x7d4   : > { %16074 = vmatprep.mubr.bf16.mxu1 %v9440_v58 }
 0x7db   : > { %16075 = vmatmul.mubr.bf16.gmra.mrb[92].mxu1 %v9441_v18 }
 0x7dc   : > { %16094 = vmatprep.mubr.bf16.mxu1 %v9732_v25 }
 0x7e3   : > { %16095 = vmatmul.mubr.bf16.vlgmr.msra.gmra.mrb[64].mxu1 %v9733_v29 }
 0x7e4   : > { %16098 = vmatprep.mubr.bf16.mxu1 %v9734_v55 }
 0x7eb   : > { %16099 = vmatmul.mubr.bf16.gmra.mrb[68].mxu1 %v9735_v50 }
 0x7ec   : > { %16102 = vmatprep.mubr.bf16.mxu1 %v9736_v31  ;;  %v18068_v31 = vld [vmem:[#allocation16 + $0x10] sm:$0xff]  }
 0x7f3   : > { %16103 = vmatmul.mubr.bf16.gmra.mrb[72].mxu1 %v9737_v62 }
 0x7f4   : > { %16106 = vmatprep.mubr.bf16.mxu1 %v9738_v45  ;;  %v18069_v45 = vld [vmem:[#allocation16 + $0x18] sm:$0xff]  }
 0x7fb   : > { %16107 = vmatmul.mubr.bf16.gmra.mrb[76].mxu1 %v9739_v36 }
 0x7fc   : > { %16110 = vmatprep.mubr.bf16.mxu1 %v9740_v0 }
 0x803   : > { %16111 = vmatmul.mubr.bf16.gmra.mrb[80].mxu1 %v9741_v57 }
 0x804   : > { %16114 = vmatprep.mubr.bf16.mxu1 %v9742_v63 }
 0x80b   : > { %16115 = vmatmul.mubr.bf16.gmra.mrb[84].mxu1 %v9743_v15 }
 0x80c   : > { %16118 = vmatprep.mubr.bf16.mxu1 %v9744_v37 }
 0x813   : > { %16119 = vmatmul.mubr.bf16.gmra.mrb[88].mxu1 %v9745_v53 }
 0x814   : > { %16122 = vmatprep.mubr.bf16.mxu1 %v20190_v21  ;;  %v20219_v21 = vld [vmem:[%s20756_s27 + $0x3] ss:$0 sm:$0xff] }
 0x81b   : > { %16123 = vmatmul.mubr.bf16.gmra.mrb[92].mxu1 %v9747_v49 }
 0x8b6   : > { %v16096_v2 = vpop.f32.mrb[64].mxu1 }
 0x8b7   : > { %v10013_v13 = vadd.f32 %v16096_v2, %v20219_v21  ;;  %v9847_v28 = vpop.f32.mrb[65].mxu1 }
 0x8b8   : > { %v10011_v51 = vadd.f32 %v20219_v21, %v9847_v28  ;;  %v16097_v41 = vpop.f32.mrb[66].mxu1 }
 0x8b9   : > { %v10045_v34 = vmax.f32 %v10013_v13, 0.0  ;;  %v10014_v16 = vadd.f32 %v16097_v41, %v20219_v21  ;;  %v9850_v58 = vpop.f32.mrb[67].mxu1  ;;  %v18073_v13 = vld [vmem:[#allocation16 + $0x38] sm:$0xff]  }
 0x8ba   : > { %v10043_v3 = vmax.f32 %v10011_v51, 0.0  ;;  %v10012_v14 = vadd.f32 %v20219_v21, %v9850_v58 }
 0x8bb   : > { %10077 = vst [vmem:[#allocation3 + $0x31] sm:$0xff] %v10045_v34  ;;  %v10046_v18 = vmax.f32 %v10014_v16, 0.0 }
 0x8bc   : > { %10075 = vst [vmem:[#allocation3 + $0x19] sm:$0xff] %v10043_v3  ;;  %v10044_v19 = vmax.f32 %v10012_v14, 0.0 }
 0x8bd   : > { %10078 = vst [vmem:[#allocation3 + $0x39] sm:$0xff] %v10046_v18  ;;  %v10205_v42 = vpack.c.bf16 %v10046_v18, %v10045_v34 }
 0x8be   : > { %10076 = vst [vmem:[#allocation3 + $0x21] sm:$0xff] %v10044_v19  ;;  %v16100_v25 = vpop.f32.mrb[68].mxu1  ;;  %v10204_v52 = vpack.c.bf16 %v10044_v19, %v10043_v3  ;;  %v20252_v19 = vld [vmem:[#allocation16 + $0x80] sm:$0xff]  }
 0x8bf   : > { %v10017_v5 = vadd.f32 %v16100_v25, %v20219_v21  ;;  %v9863_v6 = vpop.f32.mrb[69].mxu1 }
 0x8c0   : > { %v10015_v29 = vadd.f32 %v20219_v21, %v9863_v6  ;;  %v16101_v55 = vpop.f32.mrb[70].mxu1  ;;  %16143 = vmatmul.mubr.bf16.vlgmr.msra.gmra.mrb[64].mxu0 %v10204_v52 }
 0x8c1   : > { %v10049_v1 = vmax.f32 %v10017_v5, 0.0  ;;  %v10018_v23 = vadd.f32 %v16101_v55, %v20219_v21  ;;  %v9866_v47 = vpop.f32.mrb[71].mxu1  ;;  %16146 = vmatprep.mubr.bf16.mxu0 %v10205_v42  ;;  %16175 = vmatpush3.bf16.msra.mxu0 %v18066_v48 }
 0x8c2   : > { %v10047_v32 = vmax.f32 %v10015_v29, 0.0  ;;  %v10016_v50 = vadd.f32 %v20219_v21, %v9866_v47  ;;  %16176 = vmatprep.subr.bf16.mxu0 %v18067_v27 }
 0x8c3   : > { %10081 = vst [vmem:[#allocation3 + $0x61] sm:$0xff] %v10049_v1  ;;  %v10050_v7 = vmax.f32 %v10018_v23, 0.0 }
 0x8c4   : > { %10079 = vst [vmem:[#allocation3 + $0x49] sm:$0xff] %v10047_v32  ;;  %v10048_v12 = vmax.f32 %v10016_v50, 0.0 }
 0x8c5   : > { %10082 = vst [vmem:[#allocation3 + $0x69] sm:$0xff] %v10050_v7  ;;  %v10207_v33 = vpack.c.bf16 %v10050_v7, %v10049_v1  ;;  %16177 = vmatpush3.bf16.msra.mxu0 %v18067_v27 }
 0x8c6   : > { %10080 = vst [vmem:[#allocation3 + $0x51] sm:$0xff] %v10048_v12  ;;  %v16104_v44 = vpop.f32.mrb[72].mxu1  ;;  %v10206_v62 = vpack.c.bf16 %v10048_v12, %v10047_v32  ;;  %16178 = vmatprep.subr.bf16.mxu0 %v18068_v31 }
 0x8c7   : > { %v10021_v17 = vadd.f32 %v16104_v44, %v20219_v21  ;;  %v9879_v10 = vpop.f32.mrb[73].mxu1 }
 0x8c8   : > { %v10019_v26 = vadd.f32 %v20219_v21, %v9879_v10  ;;  %v16105_v8 = vpop.f32.mrb[74].mxu1  ;;  %16147 = vmatmul.mubr.bf16.gmra.mrb[68].mxu0 %v10206_v62 }
 0x8c9   : > { %v10053_v36 = vmax.f32 %v10021_v17, 0.0  ;;  %v10022_v0 = vadd.f32 %v16105_v8, %v20219_v21  ;;  %v9882_v35 = vpop.f32.mrb[75].mxu1  ;;  %16150 = vmatprep.mubr.bf16.mxu0 %v10207_v33  ;;  %16179 = vmatpush3.bf16.msra.mxu0 %v18068_v31 }
 0x8ca   : > { %v10051_v60 = vmax.f32 %v10019_v26, 0.0  ;;  %v10020_v61 = vadd.f32 %v20219_v21, %v9882_v35  ;;  %16180 = vmatprep.subr.bf16.mxu0 %v18069_v45 }
 0x8cb   : > { %10085 = vst [vmem:[#allocation3 + $0x91] sm:$0xff] %v10053_v36  ;;  %v10054_v57 = vmax.f32 %v10022_v0, 0.0 }
 0x8cc   : > { %10083 = vst [vmem:[#allocation3 + $0x79] sm:$0xff] %v10051_v60  ;;  %v20233_v63 = vmax.f32 %v10020_v61, 0.0 }
 0x8cd   : > { %10086 = vst [vmem:[#allocation3 + $0x99] sm:$0xff] %v10054_v57  ;;  %v10209_v40 = vpack.c.bf16 %v10054_v57, %v10053_v36  ;;  %16181 = vmatpush3.bf16.msra.mxu0 %v18069_v45 }
 0x8ce   : > { %10084 = vst [vmem:[#allocation3 + $0x81] sm:$0xff] %v20233_v63  ;;  %v16108_v43 = vpop.f32.mrb[76].mxu1  ;;  %v10208_v56 = vpack.c.bf16 %v20233_v63, %v10051_v60  ;;  %16182 = vmatprep.subr.bf16.mxu0 %v18070_v4 }
 0x8cf   : > { %v10025_v15 = vadd.f32 %v16108_v43, %v20219_v21  ;;  %v9895_v37 = vpop.f32.mrb[77].mxu1 }
 0x8d0   : > { %v10023_v38 = vadd.f32 %v20219_v21, %v9895_v37  ;;  %v16109_v30 = vpop.f32.mrb[78].mxu1  ;;  %16151 = vmatmul.mubr.bf16.gmra.mrb[72].mxu0 %v10208_v56 }
 0x8d1   : > { %v10057_v53 = vmax.f32 %v10025_v15, 0.0  ;;  %v10026_v22 = vadd.f32 %v16109_v30, %v20219_v21  ;;  %v9898_v11 = vpop.f32.mrb[79].mxu1  ;;  %16154 = vmatprep.mubr.bf16.mxu0 %v10209_v40  ;;  %16183 = vmatpush3.bf16.msra.mxu0 %v18070_v4 }
 0x8d2   : > { %v10055_v49 = vmax.f32 %v10023_v38, 0.0  ;;  %v10024_v39 = vadd.f32 %v20219_v21, %v9898_v11  ;;  %16184 = vmatprep.subr.bf16.mxu0 %v18071_v59 }
 0x8d3   : > { %10089 = vst [vmem:[#allocation3 + $0xc1] sm:$0xff] %v10057_v53  ;;  %v20241_v9 = vmax.f32 %v10026_v22, 0.0 }
 0x8d4   : > { %10087 = vst [vmem:[#allocation3 + $0xa9] sm:$0xff] %v10055_v49  ;;  %v10056_v24 = vmax.f32 %v10024_v39, 0.0 }
 0x8d5   : > { %10090 = vst [vmem:[#allocation3 + $0xc9] sm:$0xff] %v20241_v9  ;;  %v10211_v54 = vpack.c.bf16 %v20241_v9, %v10057_v53  ;;  %16185 = vmatpush3.bf16.msra.mxu0 %v18071_v59 }
 0x8d6   : > { %10088 = vst [vmem:[#allocation3 + $0xb1] sm:$0xff] %v10056_v24  ;;  %v16112_v48 = vpop.f32.mrb[80].mxu1  ;;  %v20245_v2 = vpack.c.bf16 %v10056_v24, %v10055_v49  ;;  %16186 = vmatprep.subr.bf16.mxu0 %v18072_v20 }
 0x8d7   : > { %v10029_v28 = vadd.f32 %v16112_v48, %v20219_v21  ;;  %v9911_v51 = vpop.f32.mrb[81].mxu1  ;;  %v10112_v48 = vld [vmem:[#allocation3 + $0x38] sm:$0xff] }
 0x8d8   : > { %v10027_v41 = vadd.f32 %v20219_v21, %v9911_v51  ;;  %v16113_v34 = vpop.f32.mrb[82].mxu1  ;;  %16155 = vmatmul.mubr.bf16.gmra.mrb[76].mxu0 %v20245_v2  ;;  %v18075_v51 = vld [vmem:[#allocation16 + $0x88] sm:$0xff]  }
 0x8d9   : > { %v10061_v16 = vmax.f32 %v10029_v28, 0.0  ;;  %v10030_v58 = vadd.f32 %v16113_v34, %v20219_v21  ;;  %v9914_v3 = vpop.f32.mrb[83].mxu1  ;;  %16158 = vmatprep.mubr.bf16.mxu0 %v10211_v54  ;;  %16187 = vmatpush3.bf16.msra.mxu0 %v18072_v20  ;;  %v10110_v54 = vld [vmem:[#allocation3 + $0x20] sm:$0xff] }
 0x8da   : > { %v10059_v14 = vmax.f32 %v10027_v41, 0.0  ;;  %v10028_v18 = vadd.f32 %v20219_v21, %v9914_v3  ;;  %16188 = vmatprep.subr.bf16.mxu0 %v18073_v13  ;;  %v18076_v34 = vld [vmem:[#allocation16 + $0x90] sm:$0xff]  }
 0x8db   : > { %10093 = vst [vmem:[#allocation3 + $0xf1] sm:$0xff] %v10061_v16  ;;  %v10062_v42 = vmax.f32 %v10030_v58, 0.0  ;;  %v10116_v58 = vld [vmem:[#allocation3 + $0x68] sm:$0xff] }
 0x8dc   : > { %10091 = vst [vmem:[#allocation3 + $0xd9] sm:$0xff] %v10059_v14  ;;  %v10060_v25 = vmax.f32 %v10028_v18, 0.0  ;;  %v18077_v18 = vld [vmem:[#allocation16 + $0x98] sm:$0xff]  }
 0x8dd   : > { %10094 = vst [vmem:[#allocation3 + $0xf9] sm:$0xff] %v10062_v42  ;;  %v20254_v52 = vpack.c.bf16 %v10062_v42, %v10061_v16  ;;  %16189 = vmatpush3.bf16.msra.mxu0 %v18073_v13  ;;  %v10109_v13 = vld [vmem:[#allocation3 + $0x18] sm:$0xff]  ;;  %v10114_v16 = vld [vmem:[#allocation3 + $0x50] sm:$0xff] }
 0x8de   : > { %10092 = vst [vmem:[#allocation3 + $0xe1] sm:$0xff] %v10060_v25  ;;  %v16116_v27 = vpop.f32.mrb[84].mxu1  ;;  %v20256_v5 = vpack.c.bf16 %v10060_v25, %v10059_v14  ;;  %16222 = vmatprep.subr.bf16.mxu0 %v20252_v19  ;;  %v20291_v28 = vpack.c.bf16 %v10110_v54, %v10109_v13  ;;  %v10115_v14 = vld [vmem:[#allocation3 + $0x60] sm:$0xff] }
 0x8df   : > { %v10033_v6 = vadd.f32 %v16116_v27, %v20219_v21  ;;  %v9927_v29 = vpop.f32.mrb[85].mxu1  ;;  %v20300_v42 = vpack.c.bf16 %v10116_v58, %v10115_v14  ;;  %v10118_v25 = vld [vmem:[#allocation3 + $0x80] sm:$0xff]  ;;  %v10120_v27 = vld [vmem:[#allocation3 + $0x98] sm:$0xff] }
 0x8e0   : > { %v10031_v55 = vadd.f32 %v20219_v21, %v9927_v29  ;;  %v16117_v1 = vpop.f32.mrb[86].mxu1  ;;  %16159 = vmatmul.mubr.bf16.gmra.mrb[80].mxu0 %v20256_v5 }
 0x8e1   : > { %v10065_v23 = vmax.f32 %v10033_v6, 0.0  ;;  %v10034_v47 = vadd.f32 %v16117_v1, %v20219_v21  ;;  %v9930_v32 = vpop.f32.mrb[87].mxu1  ;;  %16162 = vmatprep.mubr.bf16.mxu0 %v20254_v52  ;;  %v10117_v6 = vld [vmem:[#allocation3 + $0x78] sm:$0xff] }
 0x8e2   : > { %v10063_v50 = vmax.f32 %v10031_v55, 0.0  ;;  %v10032_v31 = vadd.f32 %v20219_v21, %v9930_v32  ;;  %v20304_v29 = vpack.c.bf16 %v10118_v25, %v10117_v6  ;;  %v10119_v55 = vld [vmem:[#allocation3 + $0x90] sm:$0xff]  ;;  %v18079_v1 = vld [vmem:[#allocation16 + $0xa8] sm:$0xff]  }
 0x8e3   : > { %10097 = vst [vmem:[#allocation3 + $0x121] sm:$0xff] %v10065_v23  ;;  %v10066_v7 = vmax.f32 %v10034_v47, 0.0  ;;  %v18080_v47 = vld [vmem:[#allocation16 + $0xb0] sm:$0xff]   ;;  %v10122_v32 = vld [vmem:[#allocation3 + $0xb0] sm:$0xff] }
 0x8e4   : > { %10095 = vst [vmem:[#allocation3 + $0x109] sm:$0xff] %v10063_v50  ;;  %v10064_v12 = vmax.f32 %v10032_v31, 0.0  ;;  %v10121_v31 = vld [vmem:[#allocation3 + $0xa8] sm:$0xff]  ;;  %v10661_v25 = vld [vmem:[#allocation3 + $0x52] sm:$0xff] }
 0x8e5   : > { %10098 = vst [vmem:[#allocation3 + $0x129] sm:$0xff] %v10066_v7  ;;  %v20265_v33 = vpack.c.bf16 %v10066_v7, %v10065_v23  ;;  %v20306_v23 = vpack.c.bf16 %v10120_v27, %v10119_v55  ;;  %v20310_v7 = vpack.c.bf16 %v10122_v32, %v10121_v31  ;;  %v10662_v27 = vld [vmem:[#allocation3 + $0x62] sm:$0xff]  ;;  %v10663_v6 = vld [vmem:[#allocation3 + $0x6a] sm:$0xff] }
 0x8e6   : > { %10096 = vst [vmem:[#allocation3 + $0x111] sm:$0xff] %v10064_v12  ;;  %v16120_v44 = vpop.f32.mrb[88].mxu1  ;;  %v20267_v62 = vpack.c.bf16 %v10064_v12, %v10063_v50  ;;  %v10124_v50 = vld [vmem:[#allocation3 + $0xc8] sm:$0xff]  ;;  %v10123_v12 = vld [vmem:[#allocation3 + $0xc0] sm:$0xff]  ;;  %v18086_v32 = vld [vmem:[#allocation16 + $0xe0] sm:$0xff]  }
 0x8e7   : > { %v10037_v45 = vadd.f32 %v16120_v44, %v20219_v21  ;;  %v9943_v17 = vpop.f32.mrb[89].mxu1  ;;  %v18081_v44 = vld [vmem:[#allocation16 + $0xb8] sm:$0xff]  }
 0x8e8   : > { %v10035_v10 = vadd.f32 %v20219_v21, %v9943_v17  ;;  %v16121_v26 = vpop.f32.mrb[90].mxu1  ;;  %16163 = vmatmul.mubr.bf16.gmra.mrb[84].mxu0 %v20267_v62  ;;  %v18082_v17 = vld [vmem:[#allocation16 + $0xc0] sm:$0xff]   ;;  %v10665_v31 = vld [vmem:[#allocation3 + $0x82] sm:$0xff] }
 0x8e9   : > { %v10069_v8 = vmax.f32 %v10037_v45, 0.0  ;;  %v10038_v36 = vadd.f32 %v16121_v26, %v20219_v21  ;;  %v9946_v0 = vpop.f32.mrb[91].mxu1  ;;  %16166 = vmatprep.mubr.bf16.mxu0 %v20265_v33  ;;  %v20312_v45 = vpack.c.bf16 %v10124_v50, %v10123_v12  ;;  %v10128_v26 = vld [vmem:[#allocation3 + $0xf8] sm:$0xff] }
 0x8ea   : > { %v10067_v35 = vmax.f32 %v10035_v10, 0.0  ;;  %v10036_v60 = vadd.f32 %v20219_v21, %v9946_v0  ;;  %v10126_v10 = vld [vmem:[#allocation3 + $0xe0] sm:$0xff]  ;;  %v10127_v0 = vld [vmem:[#allocation3 + $0xf0] sm:$0xff] }
 0x8eb   : > { %10101 = vst [vmem:[#allocation3 + $0x151] sm:$0xff] %v10069_v8  ;;  %v10070_v61 = vmax.f32 %v10038_v36, 0.0  ;;  %v10664_v50 = vld [vmem:[#allocation3 + $0x7a] sm:$0xff]  ;;  %v10666_v12 = vld [vmem:[#allocation3 + $0x92] sm:$0xff] }
 0x8ec   : > { %10099 = vst [vmem:[#allocation3 + $0x139] sm:$0xff] %v10067_v35  ;;  %v10068_v4 = vmax.f32 %v10036_v60, 0.0 }
 0x8ed   : > { %10102 = vst [vmem:[#allocation3 + $0x159] sm:$0xff] %v10070_v61  ;;  %v20275_v57 = vpack.c.bf16 %v10070_v61, %v10069_v8  ;;  %v10125_v8 = vld [vmem:[#allocation3 + $0xd8] sm:$0xff]  ;;  %v10130_v60 = vld [vmem:[#allocation3 + $0x110] sm:$0xff]  ;;  %v10132_v61 = vld [vmem:[#allocation3 + $0x128] sm:$0xff] }
 0x8ee   : > { %10100 = vst [vmem:[#allocation3 + $0x141] sm:$0xff] %v10068_v4  ;;  %v16124_v40 = vpop.f32.mrb[92].mxu1  ;;  %v20277_v43 = vpack.c.bf16 %v10068_v4, %v10067_v35  ;;  %v20316_v36 = vpack.c.bf16 %v10126_v10, %v10125_v8  ;;  %v20318_v35 = vpack.c.bf16 %v10128_v26, %v10127_v0  ;;  %v10129_v4 = vld [vmem:[#allocation3 + $0x108] sm:$0xff]  ;;  %v18087_v10 = vld [vmem:[#allocation16 + $0xe8] sm:$0xff]   ;;  %v18088_v8 = vld [vmem:[#allocation16 + $0xf0] sm:$0xff]  }
 0x8ef   : > { %v10041_v56 = vadd.f32 %v16124_v40, %v20219_v21  ;;  %v9959_v59 = vpop.f32.mrb[93].mxu1  ;;  %v20322_v40 = vpack.c.bf16 %v10130_v60, %v10129_v4  ;;  %v10668_v0 = vld [vmem:[#allocation3 + $0xaa] sm:$0xff]  ;;  %v10669_v60 = vld [vmem:[#allocation3 + $0xb2] sm:$0xff] }
 0x8f0   : > { %v10039_v15 = vadd.f32 %v20219_v21, %v9959_v59  ;;  %v16125_v37 = vpop.f32.mrb[94].mxu1  ;;  %16167 = vmatmul.mubr.bf16.gmra.mrb[88].mxu0 %v20277_v43  ;;  %v10671_v4 = vld [vmem:[#allocation3 + $0xca] sm:$0xff] }
 0x8f1   : > { %v10073_v38 = vmax.f32 %v10041_v56, 0.0  ;;  %v10042_v30 = vadd.f32 %v16125_v37, %v20219_v21  ;;  %v9962_v53 = vpop.f32.mrb[95].mxu1  ;;  %16170 = vmatprep.mubr.bf16.mxu0 %v20275_v57  ;;  %v10131_v56 = vld [vmem:[#allocation3 + $0x120] sm:$0xff] }
 0x8f2   : > { %v10071_v22 = vmax.f32 %v10039_v15, 0.0  ;;  %v10040_v11 = vadd.f32 %v20219_v21, %v9962_v53  ;;  %v10111_v21 = vld [vmem:[#allocation3 + $0x30] sm:$0xff]  ;;  %v20324_v59 = vpack.c.bf16 %v10132_v61, %v10131_v56  ;;  %v10670_v61 = vld [vmem:[#allocation3 + $0xc2] sm:$0xff]  ;;  %v20355_v56 = vpack.c.bf16 %v10669_v60, %v10668_v0 }
 0x8f3   : > { %10105 = vst [vmem:[#allocation3 + $0x181] sm:$0xff] %v10073_v38  ;;  %v10074_v49 = vmax.f32 %v10042_v30, 0.0  ;;  %v20293_v41 = vpack.c.bf16 %v10112_v48, %v10111_v21  ;;  %v10135_v53 = vld [vmem:[#allocation3 + $0x150] sm:$0xff]  ;;  %v10656_v21 = vld [vmem:[#allocation3 + $0x1a] sm:$0xff] }
 0x8f4   : > { %10103 = vst [vmem:[#allocation3 + $0x169] sm:$0xff] %v10071_v22  ;;  %v10072_v39 = vmax.f32 %v10040_v11, 0.0  ;;  %v10136_v37 = vld [vmem:[#allocation3 + $0x158] sm:$0xff]  ;;  %v10654_v11 = vld [vmem:[#allocation3 + $0x2] sm:$0xff]  ;;  %v18094_v0 = vld [vmem:[#allocation16 + $0x120] sm:$0xff]  }
 0x8f5   : > { %10106 = vst [vmem:[#allocation3 + $0x189] sm:$0xff] %v10074_v49  ;;  %v20285_v20 = vpack.c.bf16 %v10074_v49, %v10073_v38  ;;  %v10134_v15 = vld [vmem:[#allocation3 + $0x140] sm:$0xff]  ;;  %v10133_v38 = vld [vmem:[#allocation3 + $0x138] sm:$0xff]  ;;  %v10655_v49 = vld [vmem:[#allocation3 + $0xa] sm:$0xff] }
 0x8f6   : > { %10104 = vst [vmem:[#allocation3 + $0x171] sm:$0xff] %v10072_v39  ;;  %v20287_v24 = vpack.c.bf16 %v10072_v39, %v10071_v22  ;;  %v20328_v30 = vpack.c.bf16 %v10134_v15, %v10133_v38  ;;  %v20330_v22 = vpack.c.bf16 %v10136_v37, %v10135_v53  ;;  %v10686_v48 = vpack.c.bf16 %v10655_v49, %v10654_v11  ;;  %v18089_v15 = vld [vmem:[#allocation16 + $0xf8] sm:$0xff]   ;;  %v18090_v38 = vld [vmem:[#allocation16 + $0x100] sm:$0xff]   ;;  %v10672_v53 = vld [vmem:[#allocation3 + $0xda] sm:$0xff] }
 0x8f7   : > { %v20357_v37 = vpack.c.bf16 %v10671_v4, %v10670_v61  ;;  %v10673_v11 = vld [vmem:[#allocation3 + $0xe2] sm:$0xff]  ;;  %v10674_v49 = vld [vmem:[#allocation3 + $0xf2] sm:$0xff] }
 0x8f8   : > { %16171 = vmatmul.mubr.bf16.gmra.mrb[92].mxu0 %v20287_v24  ;;  %v18096_v60 = vld [vmem:[#allocation16 + $0x130] sm:$0xff]   ;;  %v18097_v61 = vld [vmem:[#allocation16 + $0x138] sm:$0xff]   ;;  %v18098_v4 = vld [vmem:[#allocation16 + $0x140] sm:$0xff]  }
 0x8f9   : > { %16190 = vmatprep.mubr.bf16.mxu0 %v20029_v46  ;;  %v10113_v46 = vld [vmem:[#allocation3 + $0x48] sm:$0xff] }
 0x8fa   : > { %v20298_v3 = vpack.c.bf16 %v10114_v16, %v10113_v46  ;;  %v10659_v16 = vld [vmem:[#allocation3 + $0x3a] sm:$0xff] }
 0x8fb   : > { %v10137_v54 = vld [vmem:[#allocation3 + $0x168] sm:$0xff]  ;;  %v18083_v46 = vld [vmem:[#allocation16 + $0xc8] sm:$0xff]  }
 0x8fd   : > { %v10138_v39 = vld [vmem:[#allocation3 + $0x170] sm:$0xff] }
 0x8fe   : > { %v20334_v13 = vpack.c.bf16 %v10138_v39, %v10137_v54  ;;  %v10675_v39 = vld [vmem:[#allocation3 + $0xfa] sm:$0xff]  ;;  %v20361_v54 = vpack.c.bf16 %v10673_v11, %v10672_v53 }
 0x8ff   : > { %v10990_v53 = vld [vmem:[#allocation3 + $0x180] sm:$0xff] }
 0x900   : > { %16191 = vmatmul.mubr.bf16.vlgmr.msra.gmra.mrb[64].mxu0 %v20291_v28 }
 0x901   : > { %16194 = vmatprep.mubr.bf16.mxu0 %v20293_v41  ;;  %16223 = vmatpush3.bf16.msra.mxu0 %v20252_v19  ;;  %v18078_v19 = vld [vmem:[#allocation16 + $0xa0] sm:$0xff]  }
 0x902   : > { %16224 = vmatprep.subr.bf16.mxu0 %v18075_v51 }
 0x905   : > { %16225 = vmatpush3.bf16.msra.mxu0 %v18075_v51  ;;  %v10657_v51 = vld [vmem:[#allocation3 + $0x22] sm:$0xff] }
 0x906   : > { %16226 = vmatprep.subr.bf16.mxu0 %v18076_v34  ;;  %v20337_v58 = vpack.c.bf16 %v10657_v51, %v10656_v21  ;;  %v10676_v21 = vld [vmem:[#allocation3 + $0x10a] sm:$0xff]  ;;  %v10677_v51 = vld [vmem:[#allocation3 + $0x112] sm:$0xff] }
 0x908   : > { %16195 = vmatmul.mubr.bf16.gmra.mrb[68].mxu0 %v20298_v3 }
 0x909   : > { %16198 = vmatprep.mubr.bf16.mxu0 %v20300_v42  ;;  %16227 = vmatpush3.bf16.msra.mxu0 %v18076_v34  ;;  %v10658_v34 = vld [vmem:[#allocation3 + $0x32] sm:$0xff] }
 0x90a   : > { %16228 = vmatprep.subr.bf16.mxu0 %v18077_v18  ;;  %v20339_v14 = vpack.c.bf16 %v10659_v16, %v10658_v34  ;;  %v10678_v34 = vld [vmem:[#allocation3 + $0x122] sm:$0xff]  ;;  %v10679_v16 = vld [vmem:[#allocation3 + $0x12a] sm:$0xff] }
 0x90d   : > { %16229 = vmatpush3.bf16.msra.mxu0 %v18077_v18  ;;  %v18084_v18 = vld [vmem:[#allocation16 + $0xd0] sm:$0xff]  }
 0x90e   : > { %16230 = vmatprep.subr.bf16.mxu0 %v18078_v19 }
 0x910   : > { %16199 = vmatmul.mubr.bf16.gmra.mrb[72].mxu0 %v20304_v29 }
 0x911   : > { %16202 = vmatprep.mubr.bf16.mxu0 %v20306_v23  ;;  %16231 = vmatpush3.bf16.msra.mxu0 %v18078_v19  ;;  %v10660_v19 = vld [vmem:[#allocation3 + $0x4a] sm:$0xff] }
 0x912   : > { %16232 = vmatprep.subr.bf16.mxu0 %v18079_v1  ;;  %v20343_v55 = vpack.c.bf16 %v10661_v25, %v10660_v19  ;;  %v10680_v19 = vld [vmem:[#allocation3 + $0x13a] sm:$0xff]  ;;  %v10681_v25 = vld [vmem:[#allocation3 + $0x142] sm:$0xff] }
 0x915   : > { %16233 = vmatpush3.bf16.msra.mxu0 %v18079_v1  ;;  %v18085_v1 = vld [vmem:[#allocation16 + $0xd8] sm:$0xff]  }
 0x916   : > { %16234 = vmatprep.subr.bf16.mxu0 %v18080_v47 }
 0x918   : > { %16203 = vmatmul.mubr.bf16.gmra.mrb[76].mxu0 %v20310_v7 }
 0x919   : > { %16206 = vmatprep.mubr.bf16.mxu0 %v20312_v45  ;;  %16235 = vmatpush3.bf16.msra.mxu0 %v18080_v47  ;;  %v20345_v47 = vpack.c.bf16 %v10663_v6, %v10662_v27  ;;  %v10682_v27 = vld [vmem:[#allocation3 + $0x152] sm:$0xff]  ;;  %v10683_v6 = vld [vmem:[#allocation3 + $0x15a] sm:$0xff] }
 0x91a   : > { %16236 = vmatprep.subr.bf16.mxu0 %v18081_v44 }
 0x91d   : > { %16237 = vmatpush3.bf16.msra.mxu0 %v18081_v44  ;;  %v10667_v44 = vld [vmem:[#allocation3 + $0x9a] sm:$0xff] }
 0x91e   : > { %16270 = vmatprep.subr.bf16.mxu0 %v18082_v17  ;;  %v20351_v26 = vpack.c.bf16 %v10667_v44, %v10666_v12  ;;  %v18091_v44 = vld [vmem:[#allocation16 + $0x108] sm:$0xff]  }
 0x920   : > { %16207 = vmatmul.mubr.bf16.gmra.mrb[80].mxu0 %v20316_v36 }
 0x921   : > { %16210 = vmatprep.mubr.bf16.mxu0 %v20318_v35 }
 0x928   : > { %16211 = vmatmul.mubr.bf16.gmra.mrb[84].mxu0 %v20322_v40 }
 0x929   : > { %16214 = vmatprep.mubr.bf16.mxu0 %v20324_v59 }
 0x930   : > { %16215 = vmatmul.mubr.bf16.gmra.mrb[88].mxu0 %v20328_v30 }
 0x931   : > { %16218 = vmatprep.mubr.bf16.mxu0 %v20330_v22 }
 0x938   : > { %16219 = vmatmul.mubr.bf16.gmra.mrb[92].mxu0 %v20334_v13 }
 0x939   : > { %16238 = vmatprep.mubr.bf16.mxu0 %v10686_v48  ;;  %v20363_v48 = vpack.c.bf16 %v10675_v39, %v10674_v49  ;;  %v11266_v49 = vld [vmem:[#allocation3 + $0x19] sm:$0xff] }
 0x940   : > { %16239 = vmatmul.mubr.bf16.vlgmr.msra.gmra.mrb[64].mxu0 %v20337_v58 }
 0x941   : > { %16242 = vmatprep.mubr.bf16.mxu0 %v20339_v14  ;;  %16271 = vmatpush3.bf16.msra.mxu0 %v18082_v17  ;;  %v20349_v17 = vpack.c.bf16 %v10665_v31, %v10664_v50  ;;  %v10684_v50 = vld [vmem:[#allocation3 + $0x16a] sm:$0xff]  ;;  %v10685_v31 = vld [vmem:[#allocation3 + $0x172] sm:$0xff] }
 0x942   : > { %16272 = vmatprep.subr.bf16.mxu0 %v18083_v46  ;;  %v20379_v12 = vpack.c.bf16 %v10685_v31, %v10684_v50  ;;  %v11273_v50 = vld [vmem:[#allocation3 + $0x69] sm:$0xff]  ;;  %v20406_v31 = vld [vmem:[#allocation3 + $0x79] sm:$0xff] }
 0x945   : > { %16273 = vmatpush3.bf16.msra.mxu0 %v18083_v46  ;;  %v20367_v46 = vpack.c.bf16 %v10677_v51, %v10676_v21  ;;  %v11269_v21 = vld [vmem:[#allocation3 + $0x39] sm:$0xff]  ;;  %v11271_v51 = vld [vmem:[#allocation3 + $0x51] sm:$0xff] }
 0x946   : > { %16274 = vmatprep.subr.bf16.mxu0 %v18084_v18 }
 0x948   : > { %16243 = vmatmul.mubr.bf16.gmra.mrb[68].mxu0 %v20343_v55 }
 0x949   : > { %16246 = vmatprep.mubr.bf16.mxu0 %v20345_v47  ;;  %16275 = vmatpush3.bf16.msra.mxu0 %v18084_v18  ;;  %v20369_v18 = vpack.c.bf16 %v10679_v16, %v10678_v34  ;;  %v11268_v34 = vld [vmem:[#allocation3 + $0x31] sm:$0xff] }
 0x94a   : > { %16276 = vmatprep.subr.bf16.mxu0 %v18085_v1  ;;  %v20400_v16 = vpack.c.bf16 %v11269_v21, %v11268_v34  ;;  %v18128_v21 = vld [vmem:[#allocation16 + $0x230] sm:$0xff]  }
 0x94b   : > { %v12201_v34 = vld [vmem:[#allocation3 + $0xf9] sm:$0xff] }
 0x94d   : > { %16277 = vmatpush3.bf16.msra.mxu0 %v18085_v1  ;;  %v20373_v1 = vpack.c.bf16 %v10681_v25, %v10680_v19  ;;  %v11270_v19 = vld [vmem:[#allocation3 + $0x49] sm:$0xff]  ;;  %v18099_v25 = vld [vmem:[#allocation16 + $0x148] sm:$0xff]  }
 0x94e   : > { %16278 = vmatprep.subr.bf16.mxu0 %v18086_v32 }
 0x950   : > { %16247 = vmatmul.mubr.bf16.gmra.mrb[72].mxu0 %v20349_v17 }
 0x951   : > { %16250 = vmatprep.mubr.bf16.mxu0 %v20351_v26  ;;  %16279 = vmatpush3.bf16.msra.mxu0 %v18086_v32  ;;  %v20375_v32 = vpack.c.bf16 %v10683_v6, %v10682_v27  ;;  %v20402_v27 = vpack.c.bf16 %v11271_v51, %v11270_v19  ;;  %v18100_v6 = vld [vmem:[#allocation16 + $0x150] sm:$0xff]  }
 0x952   : > { %16280 = vmatprep.subr.bf16.mxu0 %v18087_v10  ;;  %v12199_v51 = vld [vmem:[#allocation3 + $0xe1] sm:$0xff] }
 0x955   : > { %16281 = vmatpush3.bf16.msra.mxu0 %v18087_v10  ;;  %v18092_v10 = vld [vmem:[#allocation16 + $0x110] sm:$0xff]  }
 0x956   : > { %16282 = vmatprep.subr.bf16.mxu0 %v18088_v8 }
 0x958   : > { %16251 = vmatmul.mubr.bf16.gmra.mrb[76].mxu0 %v20355_v56 }
 0x959   : > { %16254 = vmatprep.mubr.bf16.mxu0 %v20357_v37  ;;  %16283 = vmatpush3.bf16.msra.mxu0 %v18088_v8  ;;  %v18093_v8 = vld [vmem:[#allocation16 + $0x118] sm:$0xff]  }
 0x95a   : > { %16284 = vmatprep.subr.bf16.mxu0 %v18089_v15 }
 0x95d   : > { %16285 = vmatpush3.bf16.msra.mxu0 %v18089_v15  ;;  %v10991_v15 = vld [vmem:[#allocation3 + $0x188] sm:$0xff] }
 0x95e   : > { %16318 = vmatprep.subr.bf16.mxu0 %v18090_v38  ;;  %v20397_v11 = vpack.c.bf16 %v10991_v15, %v10990_v53  ;;  %v18103_v15 = vld [vmem:[#allocation16 + $0x168] sm:$0xff]  }
 0x960   : > { %16255 = vmatmul.mubr.bf16.gmra.mrb[80].mxu0 %v20361_v54 }
 0x961   : > { %16258 = vmatprep.mubr.bf16.mxu0 %v20363_v48 }
 0x968   : > { %16259 = vmatmul.mubr.bf16.gmra.mrb[84].mxu0 %v20367_v46 }
 0x969   : > { %16262 = vmatprep.mubr.bf16.mxu0 %v20369_v18 }
 0x970   : > { %16263 = vmatmul.mubr.bf16.gmra.mrb[88].mxu0 %v20373_v1 }
 0x971   : > { %16266 = vmatprep.mubr.bf16.mxu0 %v20375_v32 }
 0x978   : > { %16267 = vmatmul.mubr.bf16.gmra.mrb[92].mxu0 %v20379_v12 }
 0x979   : > { %16286 = vmatprep.mubr.bf16.mxu0 %v20291_v28  ;;  %v18095_v28 = vld [vmem:[#allocation16 + $0x128] sm:$0xff]  }
 0x980   : > { %16287 = vmatmul.mubr.bf16.vlgmr.msra.gmra.mrb[64].mxu0 %v20293_v41 }
 0x981   : > { %16290 = vmatprep.mubr.bf16.mxu0 %v20298_v3  ;;  %16319 = vmatpush3.bf16.msra.mxu0 %v18090_v38  ;;  %v11267_v38 = vld [vmem:[#allocation3 + $0x21] sm:$0xff] }
 0x982   : > { %16320 = vmatprep.subr.bf16.mxu0 %v18091_v44  ;;  %v11298_v39 = vpack.c.bf16 %v11267_v38, %v11266_v49  ;;  %v20417_v38 = vld [vmem:[#allocation3 + $0xc1] sm:$0xff] }
 0x983   : > { %v11305_v53 = vpack.c.bf16 %v20241_v9, %v20417_v38  ;;  %v18105_v49 = vld [vmem:[#allocation16 + $0x178] sm:$0xff]   ;;  %v18107_v9 = vld [vmem:[#allocation16 + $0x188] sm:$0xff]  }
 0x985   : > { %16321 = vmatpush3.bf16.msra.mxu0 %v18091_v44  ;;  %v11272_v44 = vld [vmem:[#allocation3 + $0x61] sm:$0xff] }
 0x986   : > { %16322 = vmatprep.subr.bf16.mxu0 %v18092_v10 }
 0x988   : > { %16291 = vmatmul.mubr.bf16.gmra.mrb[68].mxu0 %v20300_v42 }
 0x989   : > { %16294 = vmatprep.mubr.bf16.mxu0 %v20304_v29  ;;  %16323 = vmatpush3.bf16.msra.mxu0 %v18092_v10  ;;  %v20408_v10 = vpack.c.bf16 %v11273_v50, %v11272_v44  ;;  %v12203_v50 = vld [vmem:[#allocation3 + $0x111] sm:$0xff]  ;;  %v12202_v44 = vld [vmem:[#allocation3 + $0x109] sm:$0xff] }
 0x98a   : > { %16324 = vmatprep.subr.bf16.mxu0 %v18093_v8 }
 0x98d   : > { %16325 = vmatpush3.bf16.msra.mxu0 %v18093_v8  ;;  %v18101_v8 = vld [vmem:[#allocation16 + $0x158] sm:$0xff]  }
 0x98e   : > { %16326 = vmatprep.subr.bf16.mxu0 %v18094_v0 }
 0x990   : > { %16295 = vmatmul.mubr.bf16.gmra.mrb[72].mxu0 %v20306_v23 }
 0x991   : > { %16298 = vmatprep.mubr.bf16.mxu0 %v20310_v7  ;;  %16327 = vmatpush3.bf16.msra.mxu0 %v18094_v0  ;;  %v11302_v0 = vpack.c.bf16 %v20233_v63, %v20406_v31  ;;  %v18104_v63 = vld [vmem:[#allocation16 + $0x170] sm:$0xff]  }
 0x992   : > { %16328 = vmatprep.subr.bf16.mxu0 %v18095_v28 }
 0x995   : > { %16329 = vmatpush3.bf16.msra.mxu0 %v18095_v28  ;;  %v18102_v28 = vld [vmem:[#allocation16 + $0x160] sm:$0xff]  }
 0x996   : > { %16330 = vmatprep.subr.bf16.mxu0 %v18096_v60 }
 0x998   : > { %16299 = vmatmul.mubr.bf16.gmra.mrb[76].mxu0 %v20312_v45 }
 0x999   : > { %16302 = vmatprep.mubr.bf16.mxu0 %v20316_v36  ;;  %16331 = vmatpush3.bf16.msra.mxu0 %v18096_v60  ;;  %v11277_v60 = vld [vmem:[#allocation3 + $0x99] sm:$0xff] }
 0x99a   : > { %16332 = vmatprep.subr.bf16.mxu0 %v18097_v61 }
 0x99d   : > { %16333 = vmatpush3.bf16.msra.mxu0 %v18097_v61  ;;  %v11276_v61 = vld [vmem:[#allocation3 + $0x91] sm:$0xff] }
 0x99e   : > { %16366 = vmatprep.subr.bf16.mxu0 %v18098_v4 }
 0x9a0   : > { %16303 = vmatmul.mubr.bf16.gmra.mrb[80].mxu0 %v20318_v35 }
 0x9a1   : > { %16306 = vmatprep.mubr.bf16.mxu0 %v20322_v40 }
 0x9a8   : > { %16307 = vmatmul.mubr.bf16.gmra.mrb[84].mxu0 %v20324_v59 }
 0x9a9   : > { %16310 = vmatprep.mubr.bf16.mxu0 %v20328_v30 }
 0x9b0   : > { %16311 = vmatmul.mubr.bf16.gmra.mrb[88].mxu0 %v20330_v22 }
 0x9b1   : > { %16314 = vmatprep.mubr.bf16.mxu0 %v20334_v13 }
 0x9b8   : > { %16315 = vmatmul.mubr.bf16.gmra.mrb[92].mxu0 %v20397_v11 }
 0x9b9   : > { %16334 = vmatprep.mubr.bf16.mxu0 %v11298_v39  ;;  %v18106_v39 = vld [vmem:[#allocation16 + $0x180] sm:$0xff]  }
 0x9c0   : > { %16335 = vmatmul.mubr.bf16.vlgmr.msra.gmra.mrb[64].mxu0 %v20400_v16 }
 0x9c1   : > { %16338 = vmatprep.mubr.bf16.mxu0 %v20402_v27  ;;  %16367 = vmatpush3.bf16.msra.mxu0 %v18098_v4  ;;  %v20413_v4 = vpack.c.bf16 %v11277_v60, %v11276_v61  ;;  %v12209_v60 = vld [vmem:[#allocation3 + $0x159] sm:$0xff] }
 0x9c2   : > { %16368 = vmatprep.subr.bf16.mxu0 %v18099_v25  ;;  %v12206_v61 = vld [vmem:[#allocation3 + $0x139] sm:$0xff] }
 0x9c5   : > { %16369 = vmatpush3.bf16.msra.mxu0 %v18099_v25  ;;  %v12200_v25 = vld [vmem:[#allocation3 + $0xf1] sm:$0xff] }
 0x9c6   : > { %16370 = vmatprep.subr.bf16.mxu0 %v18100_v6 }
 0x9c8   : > { %16339 = vmatmul.mubr.bf16.gmra.mrb[68].mxu0 %v20408_v10 }
 0x9c9   : > { %16342 = vmatprep.mubr.bf16.mxu0 %v11302_v0  ;;  %16371 = vmatpush3.bf16.msra.mxu0 %v18100_v6  ;;  %v12224_v6 = vpack.c.bf16 %v12201_v34, %v12200_v25  ;;  %v12515_v34 = vld [vmem:[#allocation3 + $0x15a] sm:$0xff]  ;;  %v12516_v25 = vld [vmem:[#allocation3 + $0x16a] sm:$0xff] }
 0x9ca   : > { %16372 = vmatprep.subr.bf16.mxu0 %v18101_v8 }
 0x9cd   : > { %16373 = vmatpush3.bf16.msra.mxu0 %v18101_v8  ;;  %v12204_v8 = vld [vmem:[#allocation3 + $0x121] sm:$0xff] }
 0x9ce   : > { %16374 = vmatprep.subr.bf16.mxu0 %v18102_v28 }
 0x9d0   : > { %16343 = vmatmul.mubr.bf16.gmra.mrb[72].mxu0 %v20413_v4 }
 0x9d1   : > { %16346 = vmatprep.mubr.bf16.mxu0 %v20245_v2  ;;  %16375 = vmatpush3.bf16.msra.mxu0 %v18102_v28  ;;  %v18108_v2 = vld [vmem:[#allocation16 + $0x190] sm:$0xff]  }
 0x9d2   : > { %16376 = vmatprep.subr.bf16.mxu0 %v18103_v15  ;;  %v12207_v28 = vld [vmem:[#allocation3 + $0x141] sm:$0xff] }
 0x9d5   : > { %16377 = vmatpush3.bf16.msra.mxu0 %v18103_v15  ;;  %v12208_v15 = vld [vmem:[#allocation3 + $0x151] sm:$0xff] }
 0x9d6   : > { %16378 = vmatprep.subr.bf16.mxu0 %v18104_v63 }
 0x9d8   : > { %16347 = vmatmul.mubr.bf16.gmra.mrb[76].mxu0 %v11305_v53  ;;  %v12213_v53 = vld [vmem:[#allocation3 + $0x189] sm:$0xff] }
 0x9d9   : > { %16350 = vmatprep.mubr.bf16.mxu0 %v20256_v5  ;;  %16379 = vmatpush3.bf16.msra.mxu0 %v18104_v63  ;;  %v18110_v5 = vld [vmem:[#allocation16 + $0x1a0] sm:$0xff]   ;;  %v12228_v63 = vpack.c.bf16 %v12209_v60, %v12208_v15 }
 0x9da   : > { %16380 = vmatprep.subr.bf16.mxu0 %v18105_v49 }
 0x9dd   : > { %16381 = vmatpush3.bf16.msra.mxu0 %v18105_v49  ;;  %v12210_v49 = vld [vmem:[#allocation3 + $0x169] sm:$0xff] }
 0x9de   : > { %16414 = vmatprep.subr.bf16.mxu0 %v18106_v39 }
 0x9e0   : > { %16351 = vmatmul.mubr.bf16.gmra.mrb[80].mxu0 %v20254_v52  ;;  %v18109_v52 = vld [vmem:[#allocation16 + $0x198] sm:$0xff]  }
 0x9e1   : > { %16354 = vmatprep.mubr.bf16.mxu0 %v20267_v62  ;;  %v18112_v62 = vld [vmem:[#allocation16 + $0x1b0] sm:$0xff]  }
 0x9e8   : > { %16355 = vmatmul.mubr.bf16.gmra.mrb[84].mxu0 %v20265_v33  ;;  %v18111_v33 = vld [vmem:[#allocation16 + $0x1a8] sm:$0xff]  }
 0x9e9   : > { %16358 = vmatprep.mubr.bf16.mxu0 %v20277_v43  ;;  %v18114_v43 = vld [vmem:[#allocation16 + $0x1c0] sm:$0xff]  }
 0x9f0   : > { %16359 = vmatmul.mubr.bf16.gmra.mrb[88].mxu0 %v20275_v57  ;;  %v18113_v57 = vld [vmem:[#allocation16 + $0x1b8] sm:$0xff]  }
 0x9f1   : > { %16362 = vmatprep.mubr.bf16.mxu0 %v20287_v24  ;;  %v11603_v24 = vld [vmem:[#allocation3 + $0x18a] sm:$0xff] }
 0x9f8   : > { %16363 = vmatmul.mubr.bf16.gmra.mrb[92].mxu0 %v20285_v20  ;;  %v11602_v20 = vld [vmem:[#allocation3 + $0x182] sm:$0xff] }
 0x9f9   : > { %16382 = vmatprep.mubr.bf16.mxu0 %v20337_v58  ;;  %v20444_v58 = vpack.c.bf16 %v11603_v24, %v11602_v20  ;;  %v12492_v20 = vld [vmem:[#allocation3 + $0x4a] sm:$0xff]  ;;  %v12493_v24 = vld [vmem:[#allocation3 + $0x52] sm:$0xff] }
 0xa00   : > { %16383 = vmatmul.mubr.bf16.vlgmr.msra.gmra.mrb[64].mxu0 %v20339_v14  ;;  %v18115_v14 = vld [vmem:[#allocation16 + $0x1c8] sm:$0xff]  }
 0xa01   : > { %16386 = vmatprep.mubr.bf16.mxu0 %v20343_v55  ;;  %16415 = vmatpush3.bf16.msra.mxu0 %v18106_v39  ;;  %v18116_v55 = vld [vmem:[#allocation16 + $0x1d0] sm:$0xff]  }
 0xa02   : > { %16416 = vmatprep.subr.bf16.mxu0 %v18107_v9 }
 0xa05   : > { %16417 = vmatpush3.bf16.msra.mxu0 %v18107_v9  ;;  %v12212_v9 = vld [vmem:[#allocation3 + $0x181] sm:$0xff] }
 0xa06   : > { %16418 = vmatprep.subr.bf16.mxu0 %v18108_v2 }
 0xa08   : > { %16387 = vmatmul.mubr.bf16.gmra.mrb[68].mxu0 %v20345_v47  ;;  %v18117_v47 = vld [vmem:[#allocation16 + $0x1d8] sm:$0xff]  }
 0xa09   : > { %16390 = vmatprep.mubr.bf16.mxu0 %v20349_v17  ;;  %16419 = vmatpush3.bf16.msra.mxu0 %v18108_v2  ;;  %v18118_v17 = vld [vmem:[#allocation16 + $0x1e0] sm:$0xff]   ;;  %v12230_v2 = vpack.c.bf16 %v12213_v53, %v12212_v9  ;;  %v18212_v9 = vld [vmem:[%s19017_s11 + $0x18] sm:$0xff] }
 0xa0a   : > { %16420 = vmatprep.subr.bf16.mxu0 %v18109_v52  ;;  %v18211_v53 = vld [vmem:[%s19017_s11] sm:$0xff] }
 0xa0d   : > { %16421 = vmatpush3.bf16.msra.mxu0 %v18109_v52  ;;  %v12214_v52 = vld [vmem:[#allocation3 + $0x199] sm:$0xff] }
 0xa0e   : > { %16422 = vmatprep.subr.bf16.mxu0 %v18110_v5 }
 0xa10   : > { %16391 = vmatmul.mubr.bf16.gmra.mrb[72].mxu0 %v20351_v26 }
 0xa11   : > { %16394 = vmatprep.mubr.bf16.mxu0 %v20355_v56  ;;  %16423 = vmatpush3.bf16.msra.mxu0 %v18110_v5  ;;  %v18125_v56 = vld [vmem:[#allocation16 + $0x218] sm:$0xff]  }
 0xa12   : > { %16424 = vmatprep.subr.bf16.mxu0 %v18111_v33  ;;  %v12215_v5 = vld [vmem:[#allocation3 + $0x1a1] sm:$0xff] }
 0xa15   : > { %16425 = vmatpush3.bf16.msra.mxu0 %v18111_v33  ;;  %v12231_v33 = vpack.c.bf16 %v12215_v5, %v12214_v52  ;;  %v18213_v52 = vld [vmem:[%s19017_s11 + $0x8] sm:$0xff] }
 0xa16   : > { %16426 = vmatprep.subr.bf16.mxu0 %v18112_v62 }
 0xa18   : > { %16395 = vmatmul.mubr.bf16.gmra.mrb[76].mxu0 %v20357_v37  ;;  %v18135_v37 = vld [vmem:[#allocation18 + $0x28] sm:$0xff]  }
 0xa19   : > { %16398 = vmatprep.mubr.bf16.mxu0 %v20361_v54  ;;  %16427 = vmatpush3.bf16.msra.mxu0 %v18112_v62  ;;  %v18126_v54 = vld [vmem:[#allocation16 + $0x220] sm:$0xff]  }
 0xa1a   : > { %16428 = vmatprep.subr.bf16.mxu0 %v18113_v57  ;;  %v12490_v62 = vld [vmem:[#allocation3 + $0x32] sm:$0xff] }
 0xa1d   : > { %16429 = vmatpush3.bf16.msra.mxu0 %v18113_v57  ;;  %v12491_v57 = vld [vmem:[#allocation3 + $0x3a] sm:$0xff] }
 0xa1e   : > { %16462 = vmatprep.subr.bf16.mxu0 %v18114_v43 }
 0xa20   : > { %16399 = vmatmul.mubr.bf16.gmra.mrb[80].mxu0 %v20363_v48  ;;  %v12195_v48 = vld [vmem:[#allocation3 + $0xb1] sm:$0xff] }
 0xa21   : > { %16402 = vmatprep.mubr.bf16.mxu0 %v20367_v46  ;;  %v12197_v46 = vld [vmem:[#allocation3 + $0xc9] sm:$0xff] }
 0xa28   : > { %16403 = vmatmul.mubr.bf16.gmra.mrb[84].mxu0 %v20369_v18  ;;  %v18136_v18 = vld [vmem:[#allocation18 + $0x30] sm:$0xff]  }
 0xa29   : > { %16406 = vmatprep.mubr.bf16.mxu0 %v20373_v1  ;;  %v12194_v1 = vld [vmem:[#allocation3 + $0xa9] sm:$0xff] }
 0xa30   : > { %16407 = vmatmul.mubr.bf16.gmra.mrb[88].mxu0 %v20375_v32  ;;  %v12221_v32 = vpack.c.bf16 %v12195_v48, %v12194_v1  ;;  %v12508_v48 = vld [vmem:[#allocation3 + $0x10a] sm:$0xff] }
 0xa31   : > { %16410 = vmatprep.mubr.bf16.mxu0 %v20379_v12  ;;  %v18127_v12 = vld [vmem:[#allocation16 + $0x228] sm:$0xff]   ;;  %v12511_v1 = vld [vmem:[#allocation3 + $0x12a] sm:$0xff] }
 0xa38   : > { %16411 = vmatmul.mubr.bf16.gmra.mrb[92].mxu0 %v20444_v58 }
 0xa39   : > { %16430 = vmatprep.mubr.bf16.mxu0 %v20293_v41  ;;  %v18119_v41 = vld [vmem:[#allocation16 + $0x1e8] sm:$0xff]  }
 0xa40   : > { %16431 = vmatmul.mubr.bf16.vlgmr.msra.gmra.mrb[64].mxu0 %v20298_v3  ;;  %v18120_v3 = vld [vmem:[#allocation16 + $0x1f0] sm:$0xff]  }
 0xa41   : > { %16434 = vmatprep.mubr.bf16.mxu0 %v20300_v42  ;;  %16463 = vmatpush3.bf16.msra.mxu0 %v18114_v43  ;;  %v18121_v42 = vld [vmem:[#allocation16 + $0x1f8] sm:$0xff]   ;;  %v12522_v43 = vpack.c.bf16 %v12491_v57, %v12490_v62 }
 0xa42   : > { %16464 = vmatprep.subr.bf16.mxu0 %v18115_v14 }
 0xa45   : > { %16465 = vmatpush3.bf16.msra.mxu0 %v18115_v14  ;;  %v12494_v14 = vld [vmem:[#allocation3 + $0x62] sm:$0xff] }
 0xa46   : > { %16466 = vmatprep.subr.bf16.mxu0 %v18116_v55 }
 0xa48   : > { %16435 = vmatmul.mubr.bf16.gmra.mrb[68].mxu0 %v20304_v29  ;;  %v18122_v29 = vld [vmem:[#allocation16 + $0x200] sm:$0xff]  }
 0xa49   : > { %16438 = vmatprep.mubr.bf16.mxu0 %v20306_v23  ;;  %16467 = vmatpush3.bf16.msra.mxu0 %v18116_v55  ;;  %v18209_v23 = vld [vmem:[#allocation2] sm:$0xff] }
 0xa4a   : > { %16468 = vmatprep.subr.bf16.mxu0 %v18117_v47  ;;  %v12495_v55 = vld [vmem:[#allocation3 + $0x6a] sm:$0xff] }
 0xa4d   : > { %16469 = vmatpush3.bf16.msra.mxu0 %v18117_v47  ;;  %v12523_v47 = vpack.c.bf16 %v12493_v24, %v12492_v20 }
 0xa4e   : > { %16470 = vmatprep.subr.bf16.mxu0 %v18118_v17 }
 0xa50   : > { %16439 = vmatmul.mubr.bf16.gmra.mrb[72].mxu0 %v20310_v7  ;;  %v11925_v7 = vpack.c.bf16 %v18209_v23, %v18209_v23 }
 0xa51   : > { %16442 = vmatprep.mubr.bf16.mxu0 %v20312_v45  ;;  %16471 = vmatpush3.bf16.msra.mxu0 %v18118_v17  ;;  %v18130_v45 = vld [vmem:[#allocation18] sm:$0xff]   ;;  %v12524_v17 = vpack.c.bf16 %v12495_v55, %v12494_v14 }
 0xa52   : > { %16472 = vmatprep.subr.bf16.mxu0 %v18119_v41  ;;  %16558 = vmatprep.subr.bf16.mxu1 %v18130_v45 }
 0xa53   : > { %16559 = vmatpush3.bf16.msra.mxu1 %v18130_v45  ;;  %v12500_v45 = vld [vmem:[#allocation3 + $0xaa] sm:$0xff] }
 0xa55   : > { %16473 = vmatpush3.bf16.msra.mxu0 %v18119_v41  ;;  %v12496_v41 = vld [vmem:[#allocation3 + $0x7a] sm:$0xff] }
 0xa56   : > { %16474 = vmatprep.subr.bf16.mxu0 %v18120_v3 }
 0xa58   : > { %16443 = vmatmul.mubr.bf16.gmra.mrb[76].mxu0 %v20316_v36  ;;  %v18131_v36 = vld [vmem:[#allocation18 + $0x8] sm:$0xff]  }
 0xa59   : > { %16446 = vmatprep.mubr.bf16.mxu0 %v20318_v35  ;;  %16475 = vmatpush3.bf16.msra.mxu0 %v18120_v3  ;;  %v18132_v35 = vld [vmem:[#allocation18 + $0x10] sm:$0xff]  }
 0xa5a   : > { %16476 = vmatprep.subr.bf16.mxu0 %v18121_v42  ;;  %16560 = vmatprep.subr.bf16.mxu1 %v18131_v36  ;;  %v12497_v3 = vld [vmem:[#allocation3 + $0x82] sm:$0xff] }
 0xa5b   : > { %16561 = vmatpush3.bf16.msra.mxu1 %v18131_v36  ;;  %v12525_v23 = vpack.c.bf16 %v12497_v3, %v12496_v41  ;;  %v12501_v36 = vld [vmem:[#allocation3 + $0xb2] sm:$0xff]  ;;  %v18214_v3 = vld [vmem:[%s19017_s11 + $0x30] sm:$0xff] }
 0xa5c   : > { %16562 = vmatprep.subr.bf16.mxu1 %v18132_v35 }
 0xa5d   : > { %16477 = vmatpush3.bf16.msra.mxu0 %v18121_v42  ;;  %v12498_v42 = vld [vmem:[#allocation3 + $0x92] sm:$0xff] }
 0xa5e   : > { %16510 = vmatprep.subr.bf16.mxu0 %v18122_v29 }
 0xa5f   : > { %16563 = vmatpush3.bf16.msra.mxu1 %v18132_v35  ;;  %v12502_v35 = vld [vmem:[#allocation3 + $0xc2] sm:$0xff] }
 0xa60   : > { %16447 = vmatmul.mubr.bf16.gmra.mrb[80].mxu0 %v20322_v40  ;;  %v18123_v40 = vld [vmem:[#allocation16 + $0x208] sm:$0xff]  }
 0xa61   : > { %16450 = vmatprep.mubr.bf16.mxu0 %v20324_v59  ;;  %v18133_v59 = vld [vmem:[#allocation18 + $0x18] sm:$0xff]  }
 0xa62   : > { %16564 = vmatprep.subr.bf16.mxu1 %v18133_v59 }
 0xa63   : > { %16565 = vmatpush3.bf16.msra.mxu1 %v18133_v59  ;;  %v12527_v59 = vpack.c.bf16 %v12501_v36, %v12500_v45 }
 0xa68   : > { %16451 = vmatmul.mubr.bf16.gmra.mrb[84].mxu0 %v20328_v30  ;;  %v18124_v30 = vld [vmem:[#allocation16 + $0x210] sm:$0xff]  }
 0xa69   : > { %16454 = vmatprep.mubr.bf16.mxu0 %v20330_v22  ;;  %v12191_v22 = vld [vmem:[#allocation3 + $0x81] sm:$0xff] }
 0xa6a   : > { %v12219_v26 = vpack.c.bf16 %v12191_v22, %v20406_v31  ;;  %v12205_v31 = vld [vmem:[#allocation3 + $0x129] sm:$0xff]  ;;  %v12504_v22 = vld [vmem:[#allocation3 + $0xda] sm:$0xff] }
 0xa6b   : > { %v12226_v0 = vpack.c.bf16 %v12205_v31, %v12204_v8  ;;  %v12521_v31 = vld [vmem:[#allocation3 + $0x1a2] sm:$0xff]  ;;  %v20472_v8 = vld [vmem:[%s20756_s27 + $0x4] ss:$0 sm:$0xff] }
 0xa70   : > { %16455 = vmatmul.mubr.bf16.gmra.mrb[88].mxu0 %v20334_v13  ;;  %v18134_v13 = vld [vmem:[#allocation18 + $0x20] sm:$0xff]  }
 0xa71   : > { %16458 = vmatprep.mubr.bf16.mxu0 %v20397_v11  ;;  %16566 = vmatprep.subr.bf16.mxu1 %v18134_v13  ;;  %v12222_v11 = vpack.c.bf16 %v12197_v46, %v20417_v38  ;;  %v12211_v38 = vld [vmem:[#allocation3 + $0x171] sm:$0xff] }
 0xa72   : > { %16567 = vmatpush3.bf16.msra.mxu1 %v18134_v13  ;;  %v12229_v39 = vpack.c.bf16 %v12211_v38, %v12210_v49  ;;  %v12505_v13 = vld [vmem:[#allocation3 + $0xe2] sm:$0xff]  ;;  %v12509_v46 = vld [vmem:[#allocation3 + $0x112] sm:$0xff] }
 0xa73   : > { %16568 = vmatprep.subr.bf16.mxu1 %v18135_v37 }
 0xa76   : > { %16569 = vmatpush3.bf16.msra.mxu1 %v18135_v37  ;;  %v12529_v37 = vpack.c.bf16 %v12505_v13, %v12504_v22 }
 0xa77   : > { %16570 = vmatprep.subr.bf16.mxu1 %v18136_v18 }
 0xa78   : > { %16459 = vmatmul.mubr.bf16.gmra.mrb[92].mxu0 %v11925_v7 }
 0xa79   : > { %16478 = vmatprep.mubr.bf16.mxu0 %v20400_v16  ;;  %v12198_v16 = vld [vmem:[#allocation3 + $0xd9] sm:$0xff] }
 0xa7a   : > { %16571 = vmatpush3.bf16.msra.mxu1 %v18136_v18  ;;  %v12223_v19 = vpack.c.bf16 %v12199_v51, %v12198_v16  ;;  %v12510_v18 = vld [vmem:[#allocation3 + $0x122] sm:$0xff]  ;;  %v12514_v51 = vld [vmem:[#allocation3 + $0x152] sm:$0xff] }
 0xa80   : > { %16479 = vmatmul.mubr.bf16.vlgmr.msra.gmra.mrb[64].mxu0 %v20402_v27  ;;  %v18129_v27 = vld [vmem:[#allocation16 + $0x238] sm:$0xff]  }
 0xa81   : > { %16482 = vmatprep.mubr.bf16.mxu0 %v20408_v10  ;;  %16511 = vmatpush3.bf16.msra.mxu0 %v18122_v29  ;;  %v12225_v10 = vpack.c.bf16 %v12203_v50, %v12202_v44  ;;  %v12499_v29 = vld [vmem:[#allocation3 + $0x9a] sm:$0xff] }
 0xa82   : > { %16512 = vmatprep.subr.bf16.mxu0 %v18123_v40  ;;  %v12526_v7 = vpack.c.bf16 %v12499_v29, %v12498_v42  ;;  %v12520_v50 = vld [vmem:[#allocation3 + $0x19a] sm:$0xff] }
 0xa83   : > { %v12537_v44 = vpack.c.bf16 %v12521_v31, %v12520_v50 }
 0xa85   : > { %16513 = vmatpush3.bf16.msra.mxu0 %v18123_v40  ;;  %v12503_v40 = vld [vmem:[#allocation3 + $0xca] sm:$0xff] }
 0xa86   : > { %16514 = vmatprep.subr.bf16.mxu0 %v18124_v30 }
 0xa88   : > { %16483 = vmatmul.mubr.bf16.gmra.mrb[68].mxu0 %v12219_v26  ;;  %v12506_v26 = vld [vmem:[#allocation3 + $0xf2] sm:$0xff] }
 0xa89   : > { %16486 = vmatprep.mubr.bf16.mxu0 %v20413_v4  ;;  %16515 = vmatpush3.bf16.msra.mxu0 %v18124_v30  ;;  %v12227_v4 = vpack.c.bf16 %v12207_v28, %v12206_v61  ;;  %v12528_v30 = vpack.c.bf16 %v12503_v40, %v12502_v35  ;;  %v18216_v35 = vld [vmem:[%s19017_s11 + $0x38] sm:$0xff] }
 0xa8a   : > { %16516 = vmatprep.subr.bf16.mxu0 %v18125_v56 }
 0xa8d   : > { %16517 = vmatpush3.bf16.msra.mxu0 %v18125_v56  ;;  %v12507_v56 = vld [vmem:[#allocation3 + $0xfa] sm:$0xff] }
 0xa8e   : > { %16518 = vmatprep.subr.bf16.mxu0 %v18126_v54 }
 0xa90   : > { %16487 = vmatmul.mubr.bf16.gmra.mrb[72].mxu0 %v12221_v32  ;;  %v12531_v32 = vpack.c.bf16 %v12509_v46, %v12508_v48 }
 0xa91   : > { %16490 = vmatprep.mubr.bf16.mxu0 %v12222_v11  ;;  %16519 = vmatpush3.bf16.msra.mxu0 %v18126_v54  ;;  %v12530_v54 = vpack.c.bf16 %v12507_v56, %v12506_v26  ;;  %v12512_v11 = vld [vmem:[#allocation3 + $0x13a] sm:$0xff] }
 0xa92   : > { %16520 = vmatprep.subr.bf16.mxu0 %v18127_v12 }
 0xa95   : > { %16521 = vmatpush3.bf16.msra.mxu0 %v18127_v12  ;;  %v12532_v12 = vpack.c.bf16 %v12511_v1, %v12510_v18 }
 0xa96   : > { %16522 = vmatprep.subr.bf16.mxu0 %v18128_v21 }
 0xa98   : > { %16491 = vmatmul.mubr.bf16.gmra.mrb[76].mxu0 %v12223_v19  ;;  %v12534_v19 = vpack.c.bf16 %v12515_v34, %v12514_v51  ;;  %v18219_v34 = vld [vmem:[%s19017_s11 + $0x40] sm:$0xff] }
 0xa99   : > { %16494 = vmatprep.mubr.bf16.mxu0 %v12224_v6  ;;  %16523 = vmatpush3.bf16.msra.mxu0 %v18128_v21  ;;  %v12513_v21 = vld [vmem:[#allocation3 + $0x142] sm:$0xff] }
 0xa9a   : > { %16524 = vmatprep.subr.bf16.mxu0 %v18129_v27  ;;  %v12533_v16 = vpack.c.bf16 %v12513_v21, %v12512_v11 }
 0xa9d   : > { %16525 = vmatpush3.bf16.msra.mxu0 %v18129_v27  ;;  %v12517_v27 = vld [vmem:[#allocation3 + $0x172] sm:$0xff] }
 0xa9e   : > { %v12535_v6 = vpack.c.bf16 %v12517_v27, %v12516_v25  ;;  %v18220_v25 = vld [vmem:[%s19017_s11 + $0x58] sm:$0xff] }
 0xaa0   : > { %16495 = vmatmul.mubr.bf16.gmra.mrb[80].mxu0 %v12225_v10  ;;  %v18137_v10 = vld [vmem:[#allocation18 + $0x38] sm:$0xff]  }
 0xaa1   : > { %16498 = vmatprep.mubr.bf16.mxu0 %v12226_v0  ;;  %16572 = vmatprep.subr.bf16.mxu1 %v18137_v10 }
 0xaa2   : > { %16573 = vmatpush3.bf16.msra.mxu1 %v18137_v10 }
 0xaa8   : > { %16499 = vmatmul.mubr.bf16.gmra.mrb[84].mxu0 %v12227_v4  ;;  %v18210_v4 = vld [vmem:[%s19017_s11 + $0x10] sm:$0xff] }
 0xaa9   : > { %16502 = vmatprep.mubr.bf16.mxu0 %v12228_v63 }
 0xab0   : > { %16503 = vmatmul.mubr.bf16.gmra.mrb[88].mxu0 %v12229_v39 }
 0xab1   : > { %16506 = vmatprep.mubr.bf16.mxu0 %v12230_v2 }
 0xab8   : > { %16507 = vmatmul.mubr.bf16.gmra.mrb[92].mxu0 %v12231_v33 }
 0xab9   : > { %16526 = vmatprep.mubr.bf16.mxu0 %v12522_v43 }
 0xac0   : > { %16527 = vmatmul.mubr.bf16.vlgmr.msra.gmra.mrb[64].mxu0 %v12523_v47 }
 0xac1   : > { %16530 = vmatprep.mubr.bf16.mxu0 %v12524_v17 }
 0xac8   : > { %16531 = vmatmul.mubr.bf16.gmra.mrb[68].mxu0 %v12525_v23 }
 0xac9   : > { %16534 = vmatprep.mubr.bf16.mxu0 %v12526_v7  ;;  %v18215_v7 = vld [vmem:[%s19017_s11 + $0x20] sm:$0xff] }
 0xad0   : > { %16535 = vmatmul.mubr.bf16.gmra.mrb[72].mxu0 %v12527_v59  ;;  %v18217_v59 = vld [vmem:[%s19017_s11 + $0x28] sm:$0xff] }
 0xad1   : > { %16538 = vmatprep.mubr.bf16.mxu0 %v12528_v30 }
 0xad8   : > { %16539 = vmatmul.mubr.bf16.gmra.mrb[76].mxu0 %v12529_v37 }
 0xad9   : > { %16542 = vmatprep.mubr.bf16.mxu0 %v12530_v54 }
 0xae0   : > { %16543 = vmatmul.mubr.bf16.gmra.mrb[80].mxu0 %v12531_v32 }
 0xae1   : > { %16546 = vmatprep.mubr.bf16.mxu0 %v12532_v12  ;;  %v18218_v12 = vld [vmem:[%s19017_s11 + $0x50] sm:$0xff] }
 0xae8   : > { %16547 = vmatmul.mubr.bf16.gmra.mrb[84].mxu0 %v12533_v16 }
 0xae9   : > { %16550 = vmatprep.mubr.bf16.mxu0 %v12534_v19 }
 0xaf0   : > { %16551 = vmatmul.mubr.bf16.gmra.mrb[88].mxu0 %v12535_v6  ;;  %v18221_v6 = vld [vmem:[%s19017_s11 + $0x48] sm:$0xff] }
 0xaf1   : > { %16554 = vmatprep.mubr.bf16.mxu0 %v20444_v58 }
 0xaf8   : > { %16555 = vmatmul.mubr.bf16.gmra.mrb[92].mxu0 %v12537_v44 }
 0xb93   : > { %v16528_v0 = vpop.f32.mrb[64].mxu0 }
 0xb94   : > { %v12803_v28 = vadd.f32 %v16528_v0, %v20472_v8  ;;  %v12637_v60 = vpop.f32.mrb[65].mxu0 }
 0xb95   : > { %v12801_v58 = vadd.f32 %v20472_v8, %v12637_v60  ;;  %v16529_v61 = vpop.f32.mrb[66].mxu0 }
 0xb96   : > { %v12835_v15 = vadd.f32 %v18210_v4, %v12803_v28  ;;  %v12804_v63 = vadd.f32 %v16529_v61, %v20472_v8  ;;  %v12640_v38 = vpop.f32.mrb[67].mxu0 }
 0xb97   : > { %v12833_v49 = vadd.f32 %v18211_v53, %v12801_v58  ;;  %v12802_v39 = vadd.f32 %v20472_v8, %v12640_v38  ;;  %v18222_v38 = vld [vmem:[%s19017_s11 + $0x70] sm:$0xff] }
 0xb98   : > { %v12836_v2 = vadd.f32 %v18212_v9, %v12804_v63  ;;  %v12867_v33 = vmax.f32 %v12835_v15, 0.0  ;;  %v18223_v9 = vld [vmem:[%s19017_s11 + $0x60] sm:$0xff] }
 0xb99   : > { %v12834_v5 = vadd.f32 %v18213_v52, %v12802_v39  ;;  %v12865_v57 = vmax.f32 %v12833_v49, 0.0 }
 0xb9a   : > { %v12868_v62 = vmax.f32 %v12836_v2, 0.0 }
 0xb9b   : > { %v12866_v43 = vmax.f32 %v12834_v5, 0.0  ;;  %v16532_v20 = vpop.f32.mrb[68].mxu0  ;;  %v18224_v5 = vld [vmem:[%s19017_s11 + $0x78] sm:$0xff] }
 0xb9c   : > { %v12898_v24 = vpack.c.bf16 %v12868_v62, %v12867_v33  ;;  %v12807_v14 = vadd.f32 %v16532_v20, %v20472_v8  ;;  %v12653_v55 = vpop.f32.mrb[69].mxu0  ;;  %v18225_v62 = vld [vmem:[%s19017_s11 + $0x68] sm:$0xff] }
 0xb9d   : > { %v12805_v47 = vadd.f32 %v20472_v8, %v12653_v55  ;;  %v16533_v17 = vpop.f32.mrb[70].mxu0  ;;  %v12897_v41 = vpack.c.bf16 %v12866_v43, %v12865_v57 }
 0xb9e   : > { %v12839_v42 = vadd.f32 %v18214_v3, %v12807_v14  ;;  %v12808_v29 = vadd.f32 %v16533_v17, %v20472_v8  ;;  %v12656_v23 = vpop.f32.mrb[71].mxu0 }
 0xb9f   : > { %v12837_v45 = vadd.f32 %v18215_v7, %v12805_v47  ;;  %v12806_v36 = vadd.f32 %v20472_v8, %v12656_v23  ;;  %16574 = vmatprep.mubr.bf16.mxu1 %v12897_v41  ;;  %v18226_v23 = vld [vmem:[%s19017_s11 + $0x90] sm:$0xff] }
 0xba0   : > { %v12840_v40 = vadd.f32 %v18216_v35, %v12808_v29  ;;  %16575 = vmatmul.mubr.bf16.vlgmr.msra.gmra.mrb[96].mxu1 %v12898_v24  ;;  %v12871_v22 = vmax.f32 %v12839_v42, 0.0  ;;  %v18227_v35 = vld [vmem:[%s19017_s11 + $0x80] sm:$0xff] }
 0xba1   : > { %v12838_v30 = vadd.f32 %v18217_v59, %v12806_v36  ;;  %v12869_v26 = vmax.f32 %v12837_v45, 0.0 }
 0xba2   : > { %v12872_v13 = vmax.f32 %v12840_v40, 0.0 }
 0xba3   : > { %v12870_v56 = vmax.f32 %v12838_v30, 0.0  ;;  %v16536_v37 = vpop.f32.mrb[72].mxu0  ;;  %v18228_v30 = vld [vmem:[%s19017_s11 + $0x98] sm:$0xff] }
 0xba4   : > { %v12811_v54 = vadd.f32 %v16536_v37, %v20472_v8  ;;  %v12669_v48 = vpop.f32.mrb[73].mxu0  ;;  %v12900_v46 = vpack.c.bf16 %v12872_v13, %v12871_v22  ;;  %v18229_v13 = vld [vmem:[%s19017_s11 + $0x88] sm:$0xff] }
 0xba5   : > { %v12809_v18 = vadd.f32 %v20472_v8, %v12669_v48  ;;  %v16537_v1 = vpop.f32.mrb[74].mxu0  ;;  %v12899_v32 = vpack.c.bf16 %v12870_v56, %v12869_v26 }
 0xba6   : > { %v12843_v11 = vadd.f32 %v18218_v12, %v12811_v54  ;;  %v12812_v21 = vadd.f32 %v16537_v1, %v20472_v8  ;;  %v12672_v51 = vpop.f32.mrb[75].mxu0 }
 0xba7   : > { %v12841_v16 = vadd.f32 %v18219_v34, %v12809_v18  ;;  %v12810_v19 = vadd.f32 %v20472_v8, %v12672_v51  ;;  %16578 = vmatprep.mubr.bf16.mxu1 %v12899_v32  ;;  %v18230_v51 = vld [vmem:[%s19017_s11 + $0xb0] sm:$0xff] }
 0xba8   : > { %v12844_v27 = vadd.f32 %v18220_v25, %v12812_v21  ;;  %16579 = vmatmul.mubr.bf16.gmra.mrb[100].mxu1 %v12900_v46  ;;  %v12875_v31 = vmax.f32 %v12843_v11, 0.0  ;;  %v18231_v25 = vld [vmem:[%s19017_s11 + $0xa0] sm:$0xff] }
 0xba9   : > { %v12842_v50 = vadd.f32 %v18221_v6, %v12810_v19  ;;  %v12873_v10 = vmax.f32 %v12841_v16, 0.0 }
 0xbaa   : > { %v12876_v44 = vmax.f32 %v12844_v27, 0.0 }
 0xbab   : > { %v12874_v0 = vmax.f32 %v12842_v50, 0.0  ;;  %v16540_v28 = vpop.f32.mrb[76].mxu0  ;;  %v18232_v50 = vld [vmem:[%s19017_s11 + $0xb8] sm:$0xff] }
 0xbac   : > { %v12815_v60 = vadd.f32 %v16540_v28, %v20472_v8  ;;  %v12685_v58 = vpop.f32.mrb[77].mxu0  ;;  %v12902_v61 = vpack.c.bf16 %v12876_v44, %v12875_v31  ;;  %v18233_v44 = vld [vmem:[%s19017_s11 + $0xa8] sm:$0xff] }
 0xbad   : > { %v12813_v4 = vadd.f32 %v20472_v8, %v12685_v58  ;;  %v16541_v15 = vpop.f32.mrb[78].mxu0  ;;  %v12901_v63 = vpack.c.bf16 %v12874_v0, %v12873_v10 }
 0xbae   : > { %v12847_v53 = vadd.f32 %v18222_v38, %v12815_v60  ;;  %v12816_v49 = vadd.f32 %v16541_v15, %v20472_v8  ;;  %v12688_v39 = vpop.f32.mrb[79].mxu0 }
 0xbaf   : > { %v12845_v2 = vadd.f32 %v18223_v9, %v12813_v4  ;;  %v12814_v52 = vadd.f32 %v20472_v8, %v12688_v39  ;;  %16582 = vmatprep.mubr.bf16.mxu1 %v12901_v63  ;;  %v18234_v39 = vld [vmem:[%s19017_s11 + $0xd0] sm:$0xff] }
 0xbb0   : > { %v12848_v33 = vadd.f32 %v18224_v5, %v12816_v49  ;;  %16583 = vmatmul.mubr.bf16.gmra.mrb[104].mxu1 %v12902_v61  ;;  %v12879_v43 = vmax.f32 %v12847_v53, 0.0  ;;  %v18235_v5 = vld [vmem:[%s19017_s11 + $0xc0] sm:$0xff] }
 0xbb1   : > { %v12846_v57 = vadd.f32 %v18225_v62, %v12814_v52  ;;  %v12877_v24 = vmax.f32 %v12845_v2, 0.0 }
 0xbb2   : > { %v12880_v20 = vmax.f32 %v12848_v33, 0.0 }
 0xbb3   : > { %v12878_v14 = vmax.f32 %v12846_v57, 0.0  ;;  %v16544_v55 = vpop.f32.mrb[80].mxu0  ;;  %v18236_v57 = vld [vmem:[%s19017_s11 + $0xd8] sm:$0xff] }
 0xbb4   : > { %v12819_v47 = vadd.f32 %v16544_v55, %v20472_v8  ;;  %v12701_v17 = vpop.f32.mrb[81].mxu0  ;;  %v12904_v41 = vpack.c.bf16 %v12880_v20, %v12879_v43  ;;  %v18237_v20 = vld [vmem:[%s19017_s11 + $0xc8] sm:$0xff] }
 0xbb5   : > { %v12817_v3 = vadd.f32 %v20472_v8, %v12701_v17  ;;  %v16545_v42 = vpop.f32.mrb[82].mxu0  ;;  %v12903_v29 = vpack.c.bf16 %v12878_v14, %v12877_v24 }
 0xbb6   : > { %v12851_v7 = vadd.f32 %v18226_v23, %v12819_v47  ;;  %v12820_v45 = vadd.f32 %v16545_v42, %v20472_v8  ;;  %v12704_v36 = vpop.f32.mrb[83].mxu0 }
 0xbb7   : > { %v12849_v40 = vadd.f32 %v18227_v35, %v12817_v3  ;;  %v12818_v59 = vadd.f32 %v20472_v8, %v12704_v36  ;;  %16586 = vmatprep.mubr.bf16.mxu1 %v12903_v29  ;;  %v18238_v36 = vld [vmem:[%s19017_s11 + $0xf0] sm:$0xff] }
 0xbb8   : > { %v12852_v22 = vadd.f32 %v18228_v30, %v12820_v45  ;;  %16587 = vmatmul.mubr.bf16.gmra.mrb[108].mxu1 %v12904_v41  ;;  %v12883_v56 = vmax.f32 %v12851_v7, 0.0  ;;  %v18239_v30 = vld [vmem:[%s19017_s11 + $0xe0] sm:$0xff] }
 0xbb9   : > { %v12850_v26 = vadd.f32 %v18229_v13, %v12818_v59  ;;  %v12881_v54 = vmax.f32 %v12849_v40, 0.0 }
 0xbba   : > { %v12884_v37 = vmax.f32 %v12852_v22, 0.0 }
 0xbbb   : > { %v12882_v48 = vmax.f32 %v12850_v26, 0.0  ;;  %v16548_v46 = vpop.f32.mrb[84].mxu0  ;;  %v18240_v26 = vld [vmem:[%s19017_s11 + $0xf8] sm:$0xff] }
 0xbbc   : > { %v12823_v18 = vadd.f32 %v16548_v46, %v20472_v8  ;;  %v12717_v1 = vpop.f32.mrb[85].mxu0  ;;  %v12906_v32 = vpack.c.bf16 %v12884_v37, %v12883_v56  ;;  %v18241_v37 = vld [vmem:[%s19017_s11 + $0xe8] sm:$0xff] }
 0xbbd   : > { %v12821_v12 = vadd.f32 %v20472_v8, %v12717_v1  ;;  %v16549_v11 = vpop.f32.mrb[86].mxu0  ;;  %v12905_v21 = vpack.c.bf16 %v12882_v48, %v12881_v54 }
 0xbbe   : > { %v12855_v34 = vadd.f32 %v18230_v51, %v12823_v18  ;;  %v12824_v16 = vadd.f32 %v16549_v11, %v20472_v8  ;;  %v12720_v19 = vpop.f32.mrb[87].mxu0  ;;  %v20541_v11 = vld [vmem:[%s20756_s27 + $0x5] ss:$0 sm:$0xff] }
 0xbbf   : > { %v12853_v27 = vadd.f32 %v18231_v25, %v12821_v12  ;;  %v12822_v6 = vadd.f32 %v20472_v8, %v12720_v19  ;;  %16590 = vmatprep.mubr.bf16.mxu1 %v12905_v21 }
 0xbc0   : > { %v12856_v31 = vadd.f32 %v18232_v50, %v12824_v16  ;;  %16591 = vmatmul.mubr.bf16.gmra.mrb[112].mxu1 %v12906_v32  ;;  %v12887_v0 = vmax.f32 %v12855_v34, 0.0 }
 0xbc1   : > { %v12854_v10 = vadd.f32 %v18233_v44, %v12822_v6  ;;  %v12885_v60 = vmax.f32 %v12853_v27, 0.0 }
 0xbc2   : > { %v12888_v28 = vmax.f32 %v12856_v31, 0.0 }
 0xbc3   : > { %v12886_v58 = vmax.f32 %v12854_v10, 0.0  ;;  %v16552_v61 = vpop.f32.mrb[88].mxu0 }
 0xbc4   : > { %v12827_v4 = vadd.f32 %v16552_v61, %v20472_v8  ;;  %v12733_v15 = vpop.f32.mrb[89].mxu0  ;;  %v12908_v63 = vpack.c.bf16 %v12888_v28, %v12887_v0 }
 0xbc5   : > { %v12825_v38 = vadd.f32 %v20472_v8, %v12733_v15  ;;  %v16553_v53 = vpop.f32.mrb[90].mxu0  ;;  %v12907_v49 = vpack.c.bf16 %v12886_v58, %v12885_v60 }
 0xbc6   : > { %v12859_v9 = vadd.f32 %v18234_v39, %v12827_v4  ;;  %v12828_v2 = vadd.f32 %v16553_v53, %v20472_v8  ;;  %v12736_v52 = vpop.f32.mrb[91].mxu0 }
 0xbc7   : > { %v12857_v33 = vadd.f32 %v18235_v5, %v12825_v38  ;;  %v12826_v62 = vadd.f32 %v20472_v8, %v12736_v52  ;;  %16594 = vmatprep.mubr.bf16.mxu1 %v12907_v49 }
 0xbc8   : > { %v12860_v43 = vadd.f32 %v18236_v57, %v12828_v2  ;;  %16595 = vmatmul.mubr.bf16.gmra.mrb[116].mxu1 %v12908_v63  ;;  %v12891_v14 = vmax.f32 %v12859_v9, 0.0 }
 0xbc9   : > { %v12858_v24 = vadd.f32 %v18237_v20, %v12826_v62  ;;  %v12889_v47 = vmax.f32 %v12857_v33, 0.0 }
 0xbca   : > { %v12892_v55 = vmax.f32 %v12860_v43, 0.0 }
 0xbcb   : > { %v12890_v17 = vmax.f32 %v12858_v24, 0.0  ;;  %v16556_v41 = vpop.f32.mrb[92].mxu0 }
 0xbcc   : > { %v12831_v3 = vadd.f32 %v16556_v41, %v20472_v8  ;;  %v12749_v42 = vpop.f32.mrb[93].mxu0  ;;  %v12910_v29 = vpack.c.bf16 %v12892_v55, %v12891_v14 }
 0xbcd   : > { %v12829_v23 = vadd.f32 %v20472_v8, %v12749_v42  ;;  %v16557_v7 = vpop.f32.mrb[94].mxu0  ;;  %v12909_v45 = vpack.c.bf16 %v12890_v17, %v12889_v47 }
 0xbce   : > { %v12863_v35 = vadd.f32 %v18238_v36, %v12831_v3  ;;  %v12832_v40 = vadd.f32 %v16557_v7, %v20472_v8  ;;  %v12752_v59 = vpop.f32.mrb[95].mxu0 }
 0xbcf   : > { %v12861_v22 = vadd.f32 %v18239_v30, %v12829_v23  ;;  %v12830_v13 = vadd.f32 %v20472_v8, %v12752_v59  ;;  %16598 = vmatprep.mubr.bf16.mxu1 %v12909_v45 }
 0xbd0   : > { %v12864_v56 = vadd.f32 %v18240_v26, %v12832_v40  ;;  %16599 = vmatmul.mubr.bf16.gmra.mrb[120].mxu1 %v12910_v29  ;;  %v12895_v48 = vmax.f32 %v12863_v35, 0.0 }
 0xbd1   : > { %v12862_v54 = vadd.f32 %v18241_v37, %v12830_v13  ;;  %v12893_v18 = vmax.f32 %v12861_v22, 0.0 }
 0xbd2   : > { %v12896_v46 = vmax.f32 %v12864_v56, 0.0 }
 0xbd3   : > { %v12894_v1 = vmax.f32 %v12862_v54, 0.0 }
 0xbd4   : > { %v12912_v32 = vpack.c.bf16 %v12896_v46, %v12895_v48 }
 0xbd5   : > { %v12911_v12 = vpack.c.bf16 %v12894_v1, %v12893_v18 }
 0xbd7   : > { %16602 = vmatprep.mubr.bf16.mxu1 %v12911_v12 }
 0xbd8   : > { %16603 = vmatmul.mubr.bf16.gmra.mrb[124].mxu1 %v12912_v32 }
 0xc73   : > { %v16576_v8 = vpop.f32.mrb[96].mxu1 }
 0xc74   : > { %v13025_v21 = vadd.f32 %v16576_v8, %v20541_v11  ;;  %v13016_v51 = vpop.f32.mrb[97].mxu1 }
 0xc75   : > { %v13017_v34 = vadd.f32 %v20541_v11, %v13016_v51  ;;  %v16577_v16 = vpop.f32.mrb[98].mxu1 }
 0xc76   : > { %13145 = vst [vmem:[%s20546_s28 + $0x10] sm:$0xff] %v13025_v21  ;;  %v13028_v19 = vadd.f32 %v16577_v16, %v20541_v11  ;;  %v13019_v25 = vpop.f32.mrb[99].mxu1 }
 0xc77   : > { %13143 = vst [vmem:[%s20546_s28] sm:$0xff] %v13017_v34  ;;  %v13020_v27 = vadd.f32 %v20541_v11, %v13019_v25 }
 0xc78   : > { %13146 = vst [vmem:[%s20546_s28 + $0x18] sm:$0xff] %v13028_v19 }
 0xc79   : > { %13144 = vst [vmem:[%s20546_s28 + $0x8] sm:$0xff] %v13020_v27 }
 0xc7b   : > { %v16580_v6 = vpop.f32.mrb[100].mxu1 }
 0xc7c   : > { %v13041_v50 = vadd.f32 %v16580_v6, %v20541_v11  ;;  %v13032_v31 = vpop.f32.mrb[101].mxu1 }
 0xc7d   : > { %v13033_v44 = vadd.f32 %v20541_v11, %v13032_v31  ;;  %v16581_v10 = vpop.f32.mrb[102].mxu1 }
 0xc7e   : > { %13149 = vst [vmem:[%s20546_s28 + $0x30] sm:$0xff] %v13041_v50  ;;  %v13044_v0 = vadd.f32 %v16581_v10, %v20541_v11  ;;  %v13035_v28 = vpop.f32.mrb[103].mxu1 }
 0xc7f   : > { %13147 = vst [vmem:[%s20546_s28 + $0x20] sm:$0xff] %v13033_v44  ;;  %v13036_v60 = vadd.f32 %v20541_v11, %v13035_v28 }
 0xc80   : > { %13150 = vst [vmem:[%s20546_s28 + $0x38] sm:$0xff] %v13044_v0 }
 0xc81   : > { %13148 = vst [vmem:[%s20546_s28 + $0x28] sm:$0xff] %v13036_v60 }
 0xc83   : > { %v16584_v58 = vpop.f32.mrb[104].mxu1 }
 0xc84   : > { %v13057_v61 = vadd.f32 %v16584_v58, %v20541_v11  ;;  %v13048_v4 = vpop.f32.mrb[105].mxu1 }
 0xc85   : > { %v13049_v15 = vadd.f32 %v20541_v11, %v13048_v4  ;;  %v16585_v63 = vpop.f32.mrb[106].mxu1 }
 0xc86   : > { %13153 = vst [vmem:[%s20546_s28 + $0x50] sm:$0xff] %v13057_v61  ;;  %v13060_v38 = vadd.f32 %v16585_v63, %v20541_v11  ;;  %v13051_v53 = vpop.f32.mrb[107].mxu1 }
 0xc87   : > { %13151 = vst [vmem:[%s20546_s28 + $0x40] sm:$0xff] %v13049_v15  ;;  %v13052_v49 = vadd.f32 %v20541_v11, %v13051_v53 }
 0xc88   : > { %13154 = vst [vmem:[%s20546_s28 + $0x58] sm:$0xff] %v13060_v38 }
 0xc89   : > { %13152 = vst [vmem:[%s20546_s28 + $0x48] sm:$0xff] %v13052_v49 }
 0xc8b   : > { %v16588_v39 = vpop.f32.mrb[108].mxu1 }
 0xc8c   : > { %v13073_v9 = vadd.f32 %v16588_v39, %v20541_v11  ;;  %v13064_v2 = vpop.f32.mrb[109].mxu1 }
 0xc8d   : > { %v13065_v52 = vadd.f32 %v20541_v11, %v13064_v2  ;;  %v16589_v5 = vpop.f32.mrb[110].mxu1 }
 0xc8e   : > { %13157 = vst [vmem:[%s20546_s28 + $0x70] sm:$0xff] %v13073_v9  ;;  %v13076_v33 = vadd.f32 %v16589_v5, %v20541_v11  ;;  %v13067_v62 = vpop.f32.mrb[111].mxu1 }
 0xc8f   : > { %13155 = vst [vmem:[%s20546_s28 + $0x60] sm:$0xff] %v13065_v52  ;;  %v13068_v57 = vadd.f32 %v20541_v11, %v13067_v62 }
 0xc90   : > { %13158 = vst [vmem:[%s20546_s28 + $0x78] sm:$0xff] %v13076_v33 }
 0xc91   : > { %13156 = vst [vmem:[%s20546_s28 + $0x68] sm:$0xff] %v13068_v57 }
 0xc93   : > { %v16592_v43 = vpop.f32.mrb[112].mxu1 }
 0xc94   : > { %v13089_v20 = vadd.f32 %v16592_v43, %v20541_v11  ;;  %v13080_v24 = vpop.f32.mrb[113].mxu1 }
 0xc95   : > { %v13081_v14 = vadd.f32 %v20541_v11, %v13080_v24  ;;  %v16593_v55 = vpop.f32.mrb[114].mxu1 }
 0xc96   : > { %13161 = vst [vmem:[%s20546_s28 + $0x90] sm:$0xff] %v13089_v20  ;;  %v13092_v47 = vadd.f32 %v16593_v55, %v20541_v11  ;;  %v13083_v17 = vpop.f32.mrb[115].mxu1 }
 0xc97   : > { %13159 = vst [vmem:[%s20546_s28 + $0x80] sm:$0xff] %v13081_v14  ;;  %v13084_v41 = vadd.f32 %v20541_v11, %v13083_v17 }
 0xc98   : > { %13162 = vst [vmem:[%s20546_s28 + $0x98] sm:$0xff] %v13092_v47 }
 0xc99   : > { %13160 = vst [vmem:[%s20546_s28 + $0x88] sm:$0xff] %v13084_v41 }
 0xc9b   : > { %v16596_v3 = vpop.f32.mrb[116].mxu1 }
 0xc9c   : > { %v13105_v42 = vadd.f32 %v16596_v3, %v20541_v11  ;;  %v13096_v29 = vpop.f32.mrb[117].mxu1 }
 0xc9d   : > { %v13097_v23 = vadd.f32 %v20541_v11, %v13096_v29  ;;  %v16597_v7 = vpop.f32.mrb[118].mxu1 }
 0xc9e   : > { %13165 = vst [vmem:[%s20546_s28 + $0xb0] sm:$0xff] %v13105_v42  ;;  %v13108_v45 = vadd.f32 %v16597_v7, %v20541_v11  ;;  %v13099_v36 = vpop.f32.mrb[119].mxu1 }
 0xc9f   : > { %13163 = vst [vmem:[%s20546_s28 + $0xa0] sm:$0xff] %v13097_v23  ;;  %v13100_v35 = vadd.f32 %v20541_v11, %v13099_v36 }
 0xca0   : > { %13166 = vst [vmem:[%s20546_s28 + $0xb8] sm:$0xff] %v13108_v45 }
 0xca1   : > { %13164 = vst [vmem:[%s20546_s28 + $0xa8] sm:$0xff] %v13100_v35 }
 0xca3   : > { %v16600_v40 = vpop.f32.mrb[120].mxu1 }
 0xca4   : > { %v13121_v59 = vadd.f32 %v16600_v40, %v20541_v11  ;;  %v13112_v30 = vpop.f32.mrb[121].mxu1 }
 0xca5   : > { %v13113_v22 = vadd.f32 %v20541_v11, %v13112_v30  ;;  %v16601_v13 = vpop.f32.mrb[122].mxu1 }
 0xca6   : > { %13169 = vst [vmem:[%s20546_s28 + $0xd0] sm:$0xff] %v13121_v59  ;;  %v13124_v26 = vadd.f32 %v16601_v13, %v20541_v11  ;;  %v13115_v56 = vpop.f32.mrb[123].mxu1 }
 0xca7   : > { %13167 = vst [vmem:[%s20546_s28 + $0xc0] sm:$0xff] %v13113_v22  ;;  %v13116_v37 = vadd.f32 %v20541_v11, %v13115_v56 }
 0xca8   : > { %13170 = vst [vmem:[%s20546_s28 + $0xd8] sm:$0xff] %v13124_v26 }
 0xca9   : > { %13168 = vst [vmem:[%s20546_s28 + $0xc8] sm:$0xff] %v13116_v37 }
 0xcab   : > { %v16604_v54 = vpop.f32.mrb[124].mxu1 }
 0xcac   : > { %v13137_v48 = vadd.f32 %v16604_v54, %v20541_v11  ;;  %v13128_v46 = vpop.f32.mrb[125].mxu1 }
 0xcad   : > { %v13129_v18 = vadd.f32 %v20541_v11, %v13128_v46  ;;  %v16605_v1 = vpop.f32.mrb[126].mxu1 }
 0xcae   : > { %13173 = vst [vmem:[%s20546_s28 + $0xf0] sm:$0xff] %v13137_v48  ;;  %v13140_v32 = vadd.f32 %v16605_v1, %v20541_v11  ;;  %v13131_v12 = vpop.f32.mrb[127].mxu1 }
 0xcaf   : > { %13171 = vst [vmem:[%s20546_s28 + $0xe0] sm:$0xff] %v13129_v18  ;;  %v13132_v8 = vadd.f32 %v20541_v11, %v13131_v12 }
 0xcb0   : > { %13174 = vst [vmem:[%s20546_s28 + $0xf8] sm:$0xff] %v13140_v32 }
 0xcb1   : > { %13172 = vst [vmem:[%s20546_s28 + $0xe8] sm:$0xff] %v13132_v8 }
 0xcb2   : > { %18513 = shalt.err (!%p18510_p10)
}
 0xcb3   : > { %s18514_s13 = scalar_lea.hbm %s20611_s16, 4096  ;;  %s18518_s26 = scalar_lea.hbm %s20770_s30, 8192 }
 0xcb4   : > { %p18515_p6 = scmp.ne.s32.totalorder %s20611_s16, %s18514_s13  ;;  %p18519_p9 = scmp.lt.u32.totalorder %s20611_s16, %s20770_s30 }
 0xcb5   : > { %p18520_p11 = scmp.lt.u32.totalorder %s18518_s26, %s18514_s13  ;;  %p18522_p1 = scmp.lt.u32.totalorder %s18514_s13, %s20611_s16 }
 0xcb6   : > { %p18516_p13 = pnand %p18515_p6, %p20771_p0 }
 0xcb7   : > { %p18521_p3 = por %p18520_p11, %p18519_p9 }
 0xcb8   : > { %p18517_p5 = pneg %p18516_p13 }
 0xcb9   : > { %p18523_p8 = por %p18522_p1, %p18521_p3 }
 0xcbb   : > { %p18524_p4 = pnand %p18523_p8, %p18517_p5 }
 0xcbd   : > { %18527 = shalt.err (!%p18524_p4)
}
 0xcbe   : > { %s18600_s18 = smov 128   ;;  %s18601_s22 = smov 8  }
 0xcbf   : > { %17724 = dma.vmem_to_hbm [thread:$0]  (%p20771_p0), %s20613_s10, 4096, %s20611_s16, %s13176_s3, %s18600_s18, %s18600_s18, %s18601_s22  }
 0xcc0 PF: > { %s20772_s19 = sld [smem:[#allocation26_spill]]  ;;  %s20773_s28 = sld [smem:[#allocation32_spill]] }
 0xcc1   : > { %s20774_s5 = sld [smem:[#allocation27_spill]] }
 0xcc6   : > { %s13204_s11 = sand.u32 1, %s20772_s19   ;;  %p20775_p7 = scmp.ne.s32.totalorder %s20773_s28, 0 }
 0xcc7   : > { %p20776_p12 = scmp.ge.s32.totalorder %s20774_s5, 2  ;;  %s13205_s20 = scalar_lea.sflag [#allocation6], %s13204_s11 }
 0xcc9   : > { %p17756_p2 = pnand %p20776_p12, %p20775_p7 }
 0xccb   : > { %18565 = dma.done.wait (!%p17756_p2), %s13205_s20, 4096  }
 0xccc   : > { %18567 = vsyncadd (!%p17756_p2), %s13205_s20, 4294963200  ;;  %s20777_s16 = sld [smem:[#allocation29_spill]]  ;;  %s20778_s23 = sld [smem:[#allocation30_spill]] }
 0xccd   : > { %s20779_s13 = smov %s18574_s14  ;;  %s20780_s14 = smov %s18578_s15 }
 0xcd2   : > { %p29_p10 = scmp.ge.s32.totalorder %s20777_s16, 4   ;;  %s20781_s15 = smov %s20778_s23 }
 0xcd4   :  { %31 = sbr.rel (!%p29_p10) target bundleno = 17 (0x11), region = 191 }
 0xcdb   :  { %13210 = vsyncpa [#allocation5], 1 }
 0xcdc   :  { %13212 = vsyncpa [#allocation5 + $0x1], 1 }
 0xcdd   :  { %13213 = vsyncpa [#allocation8], 1 }
 0xcde   :  { %13215 = vsyncpa [#allocation8 + $0x1], 1 }
 0xcdf   :  { %13216 = vsyncpa [#allocation11], 1 }
 0xce0   :  { %13217 = vsyncpa [#allocation14], 1 }
 0xce1   :  { %13218 = vsyncpa [#allocation17], 1 }
 0xce2   :  { %13219 = vsyncpa [#allocation6], 1 }
 0xce3   :  { %13221 = vsyncpa [#allocation6 + $0x1], 1 }

</bundles_post_ra>
